<compile_context>
chip_gen: v7x
topology: tpu7x:2x2x1
jax: 0.10.0
libtpu: 0.0.40
codegen_flags: <defaults>
</compile_context>

<pallas_src>
import math

import numpy as np
import jax
import jax.numpy as jnp
from jax.experimental import pallas as pl
from jax.experimental.pallas import tpu as pltpu


# ----------------------- constant spatial operators -------------------------
# Built once at trace time with numpy; they live in VMEM for the whole kernel.

def _tap_selectors(w):
    """S[t]: (M, M).  A (C, M) @ S[t] == tap t of a 3x3 conv with zero padding.
    t = ky*3 + kx, flat spatial index p = y*w + x (row-major)."""
    m = w * w
    s = np.zeros((9, m, m), np.float32)
    for ky in range(3):
        for kx in range(3):
            t = ky * 3 + kx
            dy, dx = ky - 1, kx - 1
            for y in range(w):
                for x in range(w):
                    ys, xs = y + dy, x + dx
                    if 0 <= ys < w and 0 <= xs < w:
                        s[t, ys * w + xs, y * w + x] = 1.0
    return s


def _pool_selectors(w):
    """P[k]: (M, M/4).  A (C, M) @ P[k] gathers corner k of every 2x2 window."""
    wo = w // 2
    p = np.zeros((4, w * w, wo * wo), np.float32)
    for k, (dy, dx) in enumerate(((0, 0), (0, 1), (1, 0), (1, 1))):
        for yo in range(wo):
            for xo in range(wo):
                p[k, (2 * yo + dy) * w + (2 * xo + dx), yo * wo + xo] = 1.0
    return p


def _upsample_matrix(w_in, factor):
    """U: (w_in^2, (w_in*factor)^2).  A (C, w_in^2) @ U == nearest upsample."""
    w_out = w_in * factor
    u = np.zeros((w_in * w_in, w_out * w_out), np.float32)
    for y in range(w_out):
        for x in range(w_out):
            u[(y // factor) * w_in + (x // factor), y * w_out + x] = 1.0
    return u


# ------------------------------ Pallas kernel --------------------------------

def _conv3x3(a, s_ref, wk_ref, b_ref, scr_ref, cin, relu):
    """a: (cin, M) f32.  Builds the (9*cin, M) tap patch in VMEM scratch, then
    one GEMM (Cout, 9*cin) @ (9*cin, M) with bias (+ optional ReLU) fused."""
    for t in range(9):
        scr_ref[t * cin:(t + 1) * cin, :] = jnp.dot(
            a, s_ref[t], preferred_element_type=jnp.float32)
    out = jnp.dot(wk_ref[...], scr_ref[...],
                  preferred_element_type=jnp.float32) + b_ref[...]
    return jnp.maximum(out, 0.0) if relu else out


def _maxpool2x2(a, p_ref):
    """a: (C, M).  Elementwise max of the 4 gathered 2x2-window corners."""
    c00 = jnp.dot(a, p_ref[0], preferred_element_type=jnp.float32)
    c01 = jnp.dot(a, p_ref[1], preferred_element_type=jnp.float32)
    c10 = jnp.dot(a, p_ref[2], preferred_element_type=jnp.float32)
    c11 = jnp.dot(a, p_ref[3], preferred_element_type=jnp.float32)
    return jnp.maximum(jnp.maximum(c00, c01), jnp.maximum(c10, c11))


def _cae_kernel(x_ref,
                wk0_ref, b0_ref, wk1_ref, b1_ref, wk2_ref, b2_ref,
                wk3_ref, b3_ref, wk4_ref, b4_ref,
                s16_ref, s8_ref, s4_ref, s2_ref,
                p16_ref, p8_ref, p4_ref, up_ref,
                lat_ref, out_ref,
                scr0, scr1, scr2, scr3, scr4):
    a = x_ref[...]                                                           # (8, 256)

    # -------- encoder --------
    a = _maxpool2x2(_conv3x3(a, s16_ref, wk0_ref, b0_ref, scr0, 8, True),
                    p16_ref)                                                 # (32, 64)
    a = _maxpool2x2(_conv3x3(a, s8_ref, wk1_ref, b1_ref, scr1, 32, True),
                    p8_ref)                                                  # (32, 16)
    lat = _maxpool2x2(_conv3x3(a, s4_ref, wk2_ref, b2_ref, scr2, 32, False),
                      p4_ref)                                                # (16, 4)
    lat_ref[...] = lat

    # -------- decoder --------
    d = _conv3x3(lat, s2_ref, wk3_ref, b3_ref, scr3, 16, True)               # (32, 4)
    d = jnp.dot(d, up_ref[...], preferred_element_type=jnp.float32)          # (32, 256) x8 nearest
    o = _conv3x3(d, s16_ref, wk4_ref, b4_ref, scr4, 32, False)               # (8, 256) Cout padded
    out_ref[...] = o[0:1, :]                                                 # keep real channel 0


# -------------------------------- wrapper ------------------------------------

def _kmat(w, cin_pad=None):
    """(Cout, Cin, 3, 3) OIHW -> (Cout, 9*Cin) with K ordered (ky, kx, ci)."""
    cout, cin = w.shape[0], w.shape[1]
    if cin_pad is not None and cin_pad != cin:
        w = jnp.pad(w, ((0, 0), (0, cin_pad - cin), (0, 0), (0, 0)))
        cin = cin_pad
    return jnp.transpose(w, (0, 2, 3, 1)).reshape(cout, 9 * cin)


@jax.jit
def cae_forward(params, x_nchw):
    n, c, h, w = x_nchw.shape
    assert (c, h, w) == (3, 16, 16), (c, h, w)
    x = x_nchw.astype(jnp.float32)

    # Fold grayscale (0.3R + 0.59G + 0.11B) into enc0's weights (exact), then
    # pad enc0's Cin 3 -> 8 (zero channels x zero weights).
    coef = jnp.array([0.3, 0.59, 0.11], jnp.float32).reshape(1, 3, 1, 1)
    wk0 = _kmat(params['enc0_w'] * coef, cin_pad=8)                          # (32, 72)
    wk1 = _kmat(params['enc1_w'])                                            # (32, 288)
    wk2 = _kmat(params['enc2_w'])                                            # (16, 288)
    wk3 = _kmat(params['dec0_w'])                                            # (32, 144)
    wk4 = _kmat(jnp.pad(params['dec1_w'],
                        ((0, 7), (0, 0), (0, 0), (0, 0))))                   # (8, 288), Cout 1->8

    b0 = params['enc0_b'].reshape(32, 1)
    b1 = params['enc1_b'].reshape(32, 1)
    b2 = params['enc2_b'].reshape(16, 1)
    b3 = params['dec0_b'].reshape(32, 1)
    b4 = jnp.pad(params['dec1_b'], ((0, 7),)).reshape(8, 1)

    # Only host-side glue: flatten spatial, pad channels 3 -> 8.
    xf = jnp.pad(x.reshape(n, 3, h * w), ((0, 0), (0, 5), (0, 0)))           # (n, 8, 256)

    # Constant 0/1 spatial operators.
    s16 = jnp.asarray(_tap_selectors(16))    # (9, 256, 256)
    s8 = jnp.asarray(_tap_selectors(8))      # (9, 64, 64)
    s4 = jnp.asarray(_tap_selectors(4))      # (9, 16, 16)
    s2 = jnp.asarray(_tap_selectors(2))      # (9, 4, 4)
    p16 = jnp.asarray(_pool_selectors(16))   # (4, 256, 64)
    p8 = jnp.asarray(_pool_selectors(8))     # (4, 64, 16)
    p4 = jnp.asarray(_pool_selectors(4))     # (4, 16, 4)
    up = jnp.asarray(_upsample_matrix(2, 8)) # (4, 256)

    def bcast2(shape):
        return pl.BlockSpec(shape, lambda i: (0, 0))

    def bcast3(shape):
        return pl.BlockSpec(shape, lambda i: (0, 0, 0))

    latent_flat, out_flat = pl.pallas_call(
        _cae_kernel,
        out_shape=(jax.ShapeDtypeStruct((n, 16, 4), jnp.float32),
                   jax.ShapeDtypeStruct((n, 1, 256), jnp.float32)),
        grid=(n,),
        in_specs=[
            pl.BlockSpec((None, 8, 256), lambda i: (i, 0, 0)),               # x (per sample)
            bcast2((32, 72)), bcast2((32, 1)),                               # enc0
            bcast2((32, 288)), bcast2((32, 1)),                              # enc1
            bcast2((16, 288)), bcast2((16, 1)),                              # enc2
            bcast2((32, 144)), bcast2((32, 1)),                              # dec0
            bcast2((8, 288)), bcast2((8, 1)),                                # dec1 (Cout padded)
            bcast3((9, 256, 256)), bcast3((9, 64, 64)),
            bcast3((9, 16, 16)), bcast3((9, 4, 4)),                          # tap selectors
            bcast3((4, 256, 64)), bcast3((4, 64, 16)), bcast3((4, 16, 4)),   # pool selectors
            bcast2((4, 256)),                                                # x8 upsample
        ],
        out_specs=(pl.BlockSpec((None, 16, 4), lambda i: (i, 0, 0)),
                   pl.BlockSpec((None, 1, 256), lambda i: (i, 0, 0))),
        scratch_shapes=[pltpu.VMEM((72, 256), jnp.float32),                  # enc0 patch
                        pltpu.VMEM((288, 64), jnp.float32),                  # enc1 patch
                        pltpu.VMEM((288, 16), jnp.float32),                  # enc2 patch
                        pltpu.VMEM((144, 4), jnp.float32),                   # dec0 patch
                        pltpu.VMEM((288, 256), jnp.float32)],                # dec1 patch
        compiler_params=pltpu.CompilerParams(
            dimension_semantics=("parallel",)),
    )(xf, wk0, b0, wk1, b1, wk2, b2, wk3, b3, wk4, b4,
      s16, s8, s4, s2, p16, p8, p4, up)

    return (latent_flat.reshape(n, 16, 2, 2),
            out_flat.reshape(n, 1, 16, 16))


# ------------------------------- parameters ----------------------------------

def init_params(key):
    # Conv2d weights: kaiming_normal_(mode='fan_out') as in CAE._initialize;
    # biases keep PyTorch's default uniform(+-1/sqrt(fan_in)). Synthetic init.
    specs = [('enc0', 1, 32), ('enc1', 32, 32), ('enc2', 32, 16),
             ('dec0', 16, 32), ('dec1', 32, 1)]
    params = {}
    for name, cin, cout in specs:
        key, kw, kb = jax.random.split(key, 3)
        std = math.sqrt(2.0 / (cout * 9))
        params[name + '_w'] = std * jax.random.normal(kw, (cout, cin, 3, 3), jnp.float32)
        bound = 1.0 / math.sqrt(cin * 9)
        params[name + '_b'] = jax.random.uniform(kb, (cout,), jnp.float32, -bound, bound)
    return params


# ----------------------------- pure-JAX reference ----------------------------

def ref_forward(params, x_nchw):
    def conv(x, w, b, relu):
        y = jax.lax.conv_general_dilated(
            x, w, (1, 1), 'SAME',
            dimension_numbers=('NCHW', 'OIHW', 'NCHW'),
            precision=jax.lax.Precision.HIGHEST) + b.reshape(1, -1, 1, 1)
        return jnp.maximum(y, 0.0) if relu else y

    def pool(x):
        n, c, h, w = x.shape
        return jnp.max(x.reshape(n, c, h // 2, 2, w // 2, 2), axis=(3, 5))

    x = x_nchw.astype(jnp.float32)
    g = (0.3 * x[:, 0] + 0.59 * x[:, 1] + 0.11 * x[:, 2])[:, None]
    e = pool(conv(g, params['enc0_w'], params['enc0_b'], True))
    e = pool(conv(e, params['enc1_w'], params['enc1_b'], True))
    latent = pool(conv(e, params['enc2_w'], params['enc2_b'], False))
    d = conv(latent, params['dec0_w'], params['dec0_b'], True)
    d = jnp.repeat(jnp.repeat(d, 8, axis=2), 8, axis=3)
    out = conv(d, params['dec1_w'], params['dec1_b'], False)
    return latent, out


# ---------------------------------- main --------------------------------------

if __name__ == "__main__":
    key = jax.random.PRNGKey(0)
    kx, kp = jax.random.split(key)
    x = jax.random.normal(kx, (2, 3, 16, 16), jnp.float32)
    params = init_params(kp)

    latent, out = cae_forward(params, x)
    jax.block_until_ready((latent, out))

    assert latent.shape == (2, 16, 2, 2), latent.shape
    assert out.shape == (2, 1, 16, 16), out.shape

    latent_exp, out_exp = ref_forward(params, x)
    # Scale-aware tolerance: 2% of the signal scale (robust to MXU f32 pass
    # behaviour while still catching any structural bug, which would produce
    # errors on the order of the activations themselves).
    lat_atol = max(1e-3, 2e-2 * float(jnp.max(jnp.abs(latent_exp))))
    out_atol = max(1e-3, 2e-2 * float(jnp.max(jnp.abs(out_exp))))
    assert jnp.allclose(latent, latent_exp, rtol=2e-2, atol=lat_atol), "latent mismatch"
    assert jnp.allclose(out, out_exp, rtol=2e-2, atol=out_atol), "output mismatch"

    print("KERNEL_OK")
</pallas_src>

<mosaic_0001>
module attributes {stable_mosaic.version = 11 : i64} {
  func.func @_cae_kernel(%arg0: i32, %arg1: memref<1x8x256xf32, #tpu.memory_space<vmem>>, %arg2: memref<32x72xf32, #tpu.memory_space<vmem>>, %arg3: memref<32x1xf32, #tpu.memory_space<vmem>>, %arg4: memref<32x288xf32, #tpu.memory_space<vmem>>, %arg5: memref<32x1xf32, #tpu.memory_space<vmem>>, %arg6: memref<16x288xf32, #tpu.memory_space<vmem>>, %arg7: memref<16x1xf32, #tpu.memory_space<vmem>>, %arg8: memref<32x144xf32, #tpu.memory_space<vmem>>, %arg9: memref<32x1xf32, #tpu.memory_space<vmem>>, %arg10: memref<8x288xf32, #tpu.memory_space<vmem>>, %arg11: memref<8x1xf32, #tpu.memory_space<vmem>>, %arg12: memref<9x256x256xf32, #tpu.memory_space<vmem>>, %arg13: memref<9x64x64xf32, #tpu.memory_space<vmem>>, %arg14: memref<9x16x16xf32, #tpu.memory_space<vmem>>, %arg15: memref<9x4x4xf32, #tpu.memory_space<vmem>>, %arg16: memref<4x256x64xf32, #tpu.memory_space<vmem>>, %arg17: memref<4x64x16xf32, #tpu.memory_space<vmem>>, %arg18: memref<4x16x4xf32, #tpu.memory_space<vmem>>, %arg19: memref<4x256xf32, #tpu.memory_space<vmem>>, %arg20: memref<1x16x4xf32, #tpu.memory_space<vmem>>, %arg21: memref<1x1x256xf32, #tpu.memory_space<vmem>>, %arg22: memref<72x256xf32, #tpu.memory_space<vmem>>, %arg23: memref<288x64xf32, #tpu.memory_space<vmem>>, %arg24: memref<288x16xf32, #tpu.memory_space<vmem>>, %arg25: memref<144x4xf32, #tpu.memory_space<vmem>>, %arg26: memref<288x256xf32, #tpu.memory_space<vmem>>) attributes {dimension_semantics = [#tpu.dimension_semantics<parallel>], iteration_bounds = array<i64: 2>, scalar_prefetch = 0 : i64, scratch_operands = 5 : i64, tpu.core_type = #tpu.core_type<tc>, window_params = [{transform_indices = @transform_0, window_bounds = array<i64: 1, 8, 256>}, {pipeline_mode = #tpu.pipeline_mode<synchronous>, transform_indices = @transform_1, window_bounds = array<i64: 32, 72>}, {pipeline_mode = #tpu.pipeline_mode<synchronous>, transform_indices = @transform_2, window_bounds = array<i64: 32, 1>}, {pipeline_mode = #tpu.pipeline_mode<synchronous>, transform_indices = @transform_3, window_bounds = array<i64: 32, 288>}, {pipeline_mode = #tpu.pipeline_mode<synchronous>, transform_indices = @transform_4, window_bounds = array<i64: 32, 1>}, {pipeline_mode = #tpu.pipeline_mode<synchronous>, transform_indices = @transform_5, window_bounds = array<i64: 16, 288>}, {pipeline_mode = #tpu.pipeline_mode<synchronous>, transform_indices = @transform_6, window_bounds = array<i64: 16, 1>}, {pipeline_mode = #tpu.pipeline_mode<synchronous>, transform_indices = @transform_7, window_bounds = array<i64: 32, 144>}, {pipeline_mode = #tpu.pipeline_mode<synchronous>, transform_indices = @transform_8, window_bounds = array<i64: 32, 1>}, {pipeline_mode = #tpu.pipeline_mode<synchronous>, transform_indices = @transform_9, window_bounds = array<i64: 8, 288>}, {pipeline_mode = #tpu.pipeline_mode<synchronous>, transform_indices = @transform_10, window_bounds = array<i64: 8, 1>}, {pipeline_mode = #tpu.pipeline_mode<synchronous>, transform_indices = @transform_11, window_bounds = array<i64: 9, 256, 256>}, {pipeline_mode = #tpu.pipeline_mode<synchronous>, transform_indices = @transform_12, window_bounds = array<i64: 9, 64, 64>}, {pipeline_mode = #tpu.pipeline_mode<synchronous>, transform_indices = @transform_13, window_bounds = array<i64: 9, 16, 16>}, {pipeline_mode = #tpu.pipeline_mode<synchronous>, transform_indices = @transform_14, window_bounds = array<i64: 9, 4, 4>}, {pipeline_mode = #tpu.pipeline_mode<synchronous>, transform_indices = @transform_15, window_bounds = array<i64: 4, 256, 64>}, {pipeline_mode = #tpu.pipeline_mode<synchronous>, transform_indices = @transform_16, window_bounds = array<i64: 4, 64, 16>}, {pipeline_mode = #tpu.pipeline_mode<synchronous>, transform_indices = @transform_17, window_bounds = array<i64: 4, 16, 4>}, {pipeline_mode = #tpu.pipeline_mode<synchronous>, transform_indices = @transform_18, window_bounds = array<i64: 4, 256>}, {transform_indices = @transform_19, window_bounds = array<i64: 1, 16, 4>}, {transform_indices = @transform_20, window_bounds = array<i64: 1, 1, 256>}]} {
    %c0 = arith.constant 0 : index
    %c0_0 = arith.constant 0 : index
    %c0_1 = arith.constant 0 : index
    %0 = vector.load %arg1[%c0, %c0_0, %c0_1] : memref<1x8x256xf32, #tpu.memory_space<vmem>>, vector<1x8x256xf32>
    %1 = vector.shape_cast %0 : vector<1x8x256xf32> to vector<8x256xf32>
    %c0_2 = arith.constant 0 : index
    %c0_3 = arith.constant 0 : index
    %c0_4 = arith.constant 0 : index
    %2 = vector.load %arg12[%c0_2, %c0_3, %c0_4] : memref<9x256x256xf32, #tpu.memory_space<vmem>>, vector<1x256x256xf32>
    %3 = vector.shape_cast %2 : vector<1x256x256xf32> to vector<256x256xf32>
    %cst = arith.constant dense<0.000000e+00> : vector<8x256xf32>
    %4 = tpu.matmul %1, %3, %cst {dimension_numbers = #tpu.dot_dimension_numbers<[1], [0], [0], [1], [0, 0, 1, 1], [], []>} : vector<8x256xf32>, vector<256x256xf32>, vector<8x256xf32> -> vector<8x256xf32>
    %c0_5 = arith.constant 0 : index
    %c0_6 = arith.constant 0 : index
    %5 = vector.load %arg22[%c0_5, %c0_6] : memref<72x256xf32, #tpu.memory_space<vmem>>, vector<8x256xf32>
    tpu.vector_store %arg22[%c0_5, %c0_6], %4 {strides = array<i32>} : memref<72x256xf32, #tpu.memory_space<vmem>>, vector<8x256xf32>,
    %c1 = arith.constant 1 : index
    %c0_7 = arith.constant 0 : index
    %c0_8 = arith.constant 0 : index
    %6 = vector.load %arg12[%c1, %c0_7, %c0_8] : memref<9x256x256xf32, #tpu.memory_space<vmem>>, vector<1x256x256xf32>
    %7 = vector.shape_cast %6 : vector<1x256x256xf32> to vector<256x256xf32>
    %cst_9 = arith.constant dense<0.000000e+00> : vector<8x256xf32>
    %8 = tpu.matmul %1, %7, %cst_9 {dimension_numbers = #tpu.dot_dimension_numbers<[1], [0], [0], [1], [0, 0, 1, 1], [], []>} : vector<8x256xf32>, vector<256x256xf32>, vector<8x256xf32> -> vector<8x256xf32>
    %c8 = arith.constant 8 : index
    %c0_10 = arith.constant 0 : index
    %9 = vector.load %arg22[%c8, %c0_10] : memref<72x256xf32, #tpu.memory_space<vmem>>, vector<8x256xf32>
    tpu.vector_store %arg22[%c8, %c0_10], %8 {strides = array<i32>} : memref<72x256xf32, #tpu.memory_space<vmem>>, vector<8x256xf32>,
    %c2 = arith.constant 2 : index
    %c0_11 = arith.constant 0 : index
    %c0_12 = arith.constant 0 : index
    %10 = vector.load %arg12[%c2, %c0_11, %c0_12] : memref<9x256x256xf32, #tpu.memory_space<vmem>>, vector<1x256x256xf32>
    %11 = vector.shape_cast %10 : vector<1x256x256xf32> to vector<256x256xf32>
    %cst_13 = arith.constant dense<0.000000e+00> : vector<8x256xf32>
    %12 = tpu.matmul %1, %11, %cst_13 {dimension_numbers = #tpu.dot_dimension_numbers<[1], [0], [0], [1], [0, 0, 1, 1], [], []>} : vector<8x256xf32>, vector<256x256xf32>, vector<8x256xf32> -> vector<8x256xf32>
    %c16 = arith.constant 16 : index
    %c0_14 = arith.constant 0 : index
    %13 = vector.load %arg22[%c16, %c0_14] : memref<72x256xf32, #tpu.memory_space<vmem>>, vector<8x256xf32>
    tpu.vector_store %arg22[%c16, %c0_14], %12 {strides = array<i32>} : memref<72x256xf32, #tpu.memory_space<vmem>>, vector<8x256xf32>,
    %c3 = arith.constant 3 : index
    %c0_15 = arith.constant 0 : index
    %c0_16 = arith.constant 0 : index
    %14 = vector.load %arg12[%c3, %c0_15, %c0_16] : memref<9x256x256xf32, #tpu.memory_space<vmem>>, vector<1x256x256xf32>
    %15 = vector.shape_cast %14 : vector<1x256x256xf32> to vector<256x256xf32>
    %cst_17 = arith.constant dense<0.000000e+00> : vector<8x256xf32>
    %16 = tpu.matmul %1, %15, %cst_17 {dimension_numbers = #tpu.dot_dimension_numbers<[1], [0], [0], [1], [0, 0, 1, 1], [], []>} : vector<8x256xf32>, vector<256x256xf32>, vector<8x256xf32> -> vector<8x256xf32>
    %c24 = arith.constant 24 : index
    %c0_18 = arith.constant 0 : index
    %17 = vector.load %arg22[%c24, %c0_18] : memref<72x256xf32, #tpu.memory_space<vmem>>, vector<8x256xf32>
    tpu.vector_store %arg22[%c24, %c0_18], %16 {strides = array<i32>} : memref<72x256xf32, #tpu.memory_space<vmem>>, vector<8x256xf32>,
    %c4 = arith.constant 4 : index
    %c0_19 = arith.constant 0 : index
    %c0_20 = arith.constant 0 : index
    %18 = vector.load %arg12[%c4, %c0_19, %c0_20] : memref<9x256x256xf32, #tpu.memory_space<vmem>>, vector<1x256x256xf32>
    %19 = vector.shape_cast %18 : vector<1x256x256xf32> to vector<256x256xf32>
    %cst_21 = arith.constant dense<0.000000e+00> : vector<8x256xf32>
    %20 = tpu.matmul %1, %19, %cst_21 {dimension_numbers = #tpu.dot_dimension_numbers<[1], [0], [0], [1], [0, 0, 1, 1], [], []>} : vector<8x256xf32>, vector<256x256xf32>, vector<8x256xf32> -> vector<8x256xf32>
    %c32 = arith.constant 32 : index
    %c0_22 = arith.constant 0 : index
    %21 = vector.load %arg22[%c32, %c0_22] : memref<72x256xf32, #tpu.memory_space<vmem>>, vector<8x256xf32>
    tpu.vector_store %arg22[%c32, %c0_22], %20 {strides = array<i32>} : memref<72x256xf32, #tpu.memory_space<vmem>>, vector<8x256xf32>,
    %c5 = arith.constant 5 : index
    %c0_23 = arith.constant 0 : index
    %c0_24 = arith.constant 0 : index
    %22 = vector.load %arg12[%c5, %c0_23, %c0_24] : memref<9x256x256xf32, #tpu.memory_space<vmem>>, vector<1x256x256xf32>
    %23 = vector.shape_cast %22 : vector<1x256x256xf32> to vector<256x256xf32>
    %cst_25 = arith.constant dense<0.000000e+00> : vector<8x256xf32>
    %24 = tpu.matmul %1, %23, %cst_25 {dimension_numbers = #tpu.dot_dimension_numbers<[1], [0], [0], [1], [0, 0, 1, 1], [], []>} : vector<8x256xf32>, vector<256x256xf32>, vector<8x256xf32> -> vector<8x256xf32>
    %c40 = arith.constant 40 : index
    %c0_26 = arith.constant 0 : index
    %25 = vector.load %arg22[%c40, %c0_26] : memref<72x256xf32, #tpu.memory_space<vmem>>, vector<8x256xf32>
    tpu.vector_store %arg22[%c40, %c0_26], %24 {strides = array<i32>} : memref<72x256xf32, #tpu.memory_space<vmem>>, vector<8x256xf32>,
    %c6 = arith.constant 6 : index
    %c0_27 = arith.constant 0 : index
    %c0_28 = arith.constant 0 : index
    %26 = vector.load %arg12[%c6, %c0_27, %c0_28] : memref<9x256x256xf32, #tpu.memory_space<vmem>>, vector<1x256x256xf32>
    %27 = vector.shape_cast %26 : vector<1x256x256xf32> to vector<256x256xf32>
    %cst_29 = arith.constant dense<0.000000e+00> : vector<8x256xf32>
    %28 = tpu.matmul %1, %27, %cst_29 {dimension_numbers = #tpu.dot_dimension_numbers<[1], [0], [0], [1], [0, 0, 1, 1], [], []>} : vector<8x256xf32>, vector<256x256xf32>, vector<8x256xf32> -> vector<8x256xf32>
    %c48 = arith.constant 48 : index
    %c0_30 = arith.constant 0 : index
    %29 = vector.load %arg22[%c48, %c0_30] : memref<72x256xf32, #tpu.memory_space<vmem>>, vector<8x256xf32>
    tpu.vector_store %arg22[%c48, %c0_30], %28 {strides = array<i32>} : memref<72x256xf32, #tpu.memory_space<vmem>>, vector<8x256xf32>,
    %c7 = arith.constant 7 : index
    %c0_31 = arith.constant 0 : index
    %c0_32 = arith.constant 0 : index
    %30 = vector.load %arg12[%c7, %c0_31, %c0_32] : memref<9x256x256xf32, #tpu.memory_space<vmem>>, vector<1x256x256xf32>
    %31 = vector.shape_cast %30 : vector<1x256x256xf32> to vector<256x256xf32>
    %cst_33 = arith.constant dense<0.000000e+00> : vector<8x256xf32>
    %32 = tpu.matmul %1, %31, %cst_33 {dimension_numbers = #tpu.dot_dimension_numbers<[1], [0], [0], [1], [0, 0, 1, 1], [], []>} : vector<8x256xf32>, vector<256x256xf32>, vector<8x256xf32> -> vector<8x256xf32>
    %c56 = arith.constant 56 : index
    %c0_34 = arith.constant 0 : index
    %33 = vector.load %arg22[%c56, %c0_34] : memref<72x256xf32, #tpu.memory_space<vmem>>, vector<8x256xf32>
    tpu.vector_store %arg22[%c56, %c0_34], %32 {strides = array<i32>} : memref<72x256xf32, #tpu.memory_space<vmem>>, vector<8x256xf32>,
    %c8_35 = arith.constant 8 : index
    %c0_36 = arith.constant 0 : index
    %c0_37 = arith.constant 0 : index
    %34 = vector.load %arg12[%c8_35, %c0_36, %c0_37] : memref<9x256x256xf32, #tpu.memory_space<vmem>>, vector<1x256x256xf32>
    %35 = vector.shape_cast %34 : vector<1x256x256xf32> to vector<256x256xf32>
    %cst_38 = arith.constant dense<0.000000e+00> : vector<8x256xf32>
    %36 = tpu.matmul %1, %35, %cst_38 {dimension_numbers = #tpu.dot_dimension_numbers<[1], [0], [0], [1], [0, 0, 1, 1], [], []>} : vector<8x256xf32>, vector<256x256xf32>, vector<8x256xf32> -> vector<8x256xf32>
    %c64 = arith.constant 64 : index
    %c0_39 = arith.constant 0 : index
    %37 = vector.load %arg22[%c64, %c0_39] : memref<72x256xf32, #tpu.memory_space<vmem>>, vector<8x256xf32>
    tpu.vector_store %arg22[%c64, %c0_39], %36 {strides = array<i32>} : memref<72x256xf32, #tpu.memory_space<vmem>>, vector<8x256xf32>,
    %c0_40 = arith.constant 0 : index
    %c0_41 = arith.constant 0 : index
    %38 = vector.load %arg2[%c0_40, %c0_41] : memref<32x72xf32, #tpu.memory_space<vmem>>, vector<32x72xf32>
    %c0_42 = arith.constant 0 : index
    %c0_43 = arith.constant 0 : index
    %39 = vector.load %arg22[%c0_42, %c0_43] : memref<72x256xf32, #tpu.memory_space<vmem>>, vector<72x256xf32>
    %cst_44 = arith.constant dense<0.000000e+00> : vector<32x256xf32>
    %40 = tpu.matmul %38, %39, %cst_44 {dimension_numbers = #tpu.dot_dimension_numbers<[1], [0], [0], [1], [0, 0, 1, 1], [], []>} : vector<32x72xf32>, vector<72x256xf32>, vector<32x256xf32> -> vector<32x256xf32>
    %c0_45 = arith.constant 0 : index
    %c0_46 = arith.constant 0 : index
    %41 = vector.load %arg3[%c0_45, %c0_46] : memref<32x1xf32, #tpu.memory_space<vmem>>, vector<32x1xf32>
    %42 = vector.broadcast %41 : vector<32x1xf32> to vector<32x256xf32>
    %43 = arith.addf %40, %42 : vector<32x256xf32>
    %cst_47 = arith.constant 0.000000e+00 : f32
    %44 = vector.broadcast %cst_47 : f32 to vector<32x256xf32>
    %45 = arith.maximumf %43, %44 : vector<32x256xf32>
    %c0_48 = arith.constant 0 : index
    %c0_49 = arith.constant 0 : index
    %c0_50 = arith.constant 0 : index
    %46 = vector.load %arg16[%c0_48, %c0_49, %c0_50] : memref<4x256x64xf32, #tpu.memory_space<vmem>>, vector<1x256x64xf32>
    %47 = vector.shape_cast %46 : vector<1x256x64xf32> to vector<256x64xf32>
    %cst_51 = arith.constant dense<0.000000e+00> : vector<32x64xf32>
    %48 = tpu.matmul %45, %47, %cst_51 {dimension_numbers = #tpu.dot_dimension_numbers<[1], [0], [0], [1], [0, 0, 1, 1], [], []>} : vector<32x256xf32>, vector<256x64xf32>, vector<32x64xf32> -> vector<32x64xf32>
    %c1_52 = arith.constant 1 : index
    %c0_53 = arith.constant 0 : index
    %c0_54 = arith.constant 0 : index
    %49 = vector.load %arg16[%c1_52, %c0_53, %c0_54] : memref<4x256x64xf32, #tpu.memory_space<vmem>>, vector<1x256x64xf32>
    %50 = vector.shape_cast %49 : vector<1x256x64xf32> to vector<256x64xf32>
    %cst_55 = arith.constant dense<0.000000e+00> : vector<32x64xf32>
    %51 = tpu.matmul %45, %50, %cst_55 {dimension_numbers = #tpu.dot_dimension_numbers<[1], [0], [0], [1], [0, 0, 1, 1], [], []>} : vector<32x256xf32>, vector<256x64xf32>, vector<32x64xf32> -> vector<32x64xf32>
    %c2_56 = arith.constant 2 : index
    %c0_57 = arith.constant 0 : index
    %c0_58 = arith.constant 0 : index
    %52 = vector.load %arg16[%c2_56, %c0_57, %c0_58] : memref<4x256x64xf32, #tpu.memory_space<vmem>>, vector<1x256x64xf32>
    %53 = vector.shape_cast %52 : vector<1x256x64xf32> to vector<256x64xf32>
    %cst_59 = arith.constant dense<0.000000e+00> : vector<32x64xf32>
    %54 = tpu.matmul %45, %53, %cst_59 {dimension_numbers = #tpu.dot_dimension_numbers<[1], [0], [0], [1], [0, 0, 1, 1], [], []>} : vector<32x256xf32>, vector<256x64xf32>, vector<32x64xf32> -> vector<32x64xf32>
    %c3_60 = arith.constant 3 : index
    %c0_61 = arith.constant 0 : index
    %c0_62 = arith.constant 0 : index
    %55 = vector.load %arg16[%c3_60, %c0_61, %c0_62] : memref<4x256x64xf32, #tpu.memory_space<vmem>>, vector<1x256x64xf32>
    %56 = vector.shape_cast %55 : vector<1x256x64xf32> to vector<256x64xf32>
    %cst_63 = arith.constant dense<0.000000e+00> : vector<32x64xf32>
    %57 = tpu.matmul %45, %56, %cst_63 {dimension_numbers = #tpu.dot_dimension_numbers<[1], [0], [0], [1], [0, 0, 1, 1], [], []>} : vector<32x256xf32>, vector<256x64xf32>, vector<32x64xf32> -> vector<32x64xf32>
    %58 = arith.maximumf %48, %51 : vector<32x64xf32>
    %59 = arith.maximumf %54, %57 : vector<32x64xf32>
    %60 = arith.maximumf %58, %59 : vector<32x64xf32>
    %c0_64 = arith.constant 0 : index
    %c0_65 = arith.constant 0 : index
    %c0_66 = arith.constant 0 : index
    %61 = vector.load %arg13[%c0_64, %c0_65, %c0_66] : memref<9x64x64xf32, #tpu.memory_space<vmem>>, vector<1x64x64xf32>
    %62 = vector.shape_cast %61 : vector<1x64x64xf32> to vector<64x64xf32>
    %cst_67 = arith.constant dense<0.000000e+00> : vector<32x64xf32>
    %63 = tpu.matmul %60, %62, %cst_67 {dimension_numbers = #tpu.dot_dimension_numbers<[1], [0], [0], [1], [0, 0, 1, 1], [], []>} : vector<32x64xf32>, vector<64x64xf32>, vector<32x64xf32> -> vector<32x64xf32>
    %c0_68 = arith.constant 0 : index
    %c0_69 = arith.constant 0 : index
    %64 = vector.load %arg23[%c0_68, %c0_69] : memref<288x64xf32, #tpu.memory_space<vmem>>, vector<32x64xf32>
    tpu.vector_store %arg23[%c0_68, %c0_69], %63 {strides = array<i32>} : memref<288x64xf32, #tpu.memory_space<vmem>>, vector<32x64xf32>,
    %c1_70 = arith.constant 1 : index
    %c0_71 = arith.constant 0 : index
    %c0_72 = arith.constant 0 : index
    %65 = vector.load %arg13[%c1_70, %c0_71, %c0_72] : memref<9x64x64xf32, #tpu.memory_space<vmem>>, vector<1x64x64xf32>
    %66 = vector.shape_cast %65 : vector<1x64x64xf32> to vector<64x64xf32>
    %cst_73 = arith.constant dense<0.000000e+00> : vector<32x64xf32>
    %67 = tpu.matmul %60, %66, %cst_73 {dimension_numbers = #tpu.dot_dimension_numbers<[1], [0], [0], [1], [0, 0, 1, 1], [], []>} : vector<32x64xf32>, vector<64x64xf32>, vector<32x64xf32> -> vector<32x64xf32>
    %c32_74 = arith.constant 32 : index
    %c0_75 = arith.constant 0 : index
    %68 = vector.load %arg23[%c32_74, %c0_75] : memref<288x64xf32, #tpu.memory_space<vmem>>, vector<32x64xf32>
    tpu.vector_store %arg23[%c32_74, %c0_75], %67 {strides = array<i32>} : memref<288x64xf32, #tpu.memory_space<vmem>>, vector<32x64xf32>,
    %c2_76 = arith.constant 2 : index
    %c0_77 = arith.constant 0 : index
    %c0_78 = arith.constant 0 : index
    %69 = vector.load %arg13[%c2_76, %c0_77, %c0_78] : memref<9x64x64xf32, #tpu.memory_space<vmem>>, vector<1x64x64xf32>
    %70 = vector.shape_cast %69 : vector<1x64x64xf32> to vector<64x64xf32>
    %cst_79 = arith.constant dense<0.000000e+00> : vector<32x64xf32>
    %71 = tpu.matmul %60, %70, %cst_79 {dimension_numbers = #tpu.dot_dimension_numbers<[1], [0], [0], [1], [0, 0, 1, 1], [], []>} : vector<32x64xf32>, vector<64x64xf32>, vector<32x64xf32> -> vector<32x64xf32>
    %c64_80 = arith.constant 64 : index
    %c0_81 = arith.constant 0 : index
    %72 = vector.load %arg23[%c64_80, %c0_81] : memref<288x64xf32, #tpu.memory_space<vmem>>, vector<32x64xf32>
    tpu.vector_store %arg23[%c64_80, %c0_81], %71 {strides = array<i32>} : memref<288x64xf32, #tpu.memory_space<vmem>>, vector<32x64xf32>,
    %c3_82 = arith.constant 3 : index
    %c0_83 = arith.constant 0 : index
    %c0_84 = arith.constant 0 : index
    %73 = vector.load %arg13[%c3_82, %c0_83, %c0_84] : memref<9x64x64xf32, #tpu.memory_space<vmem>>, vector<1x64x64xf32>
    %74 = vector.shape_cast %73 : vector<1x64x64xf32> to vector<64x64xf32>
    %cst_85 = arith.constant dense<0.000000e+00> : vector<32x64xf32>
    %75 = tpu.matmul %60, %74, %cst_85 {dimension_numbers = #tpu.dot_dimension_numbers<[1], [0], [0], [1], [0, 0, 1, 1], [], []>} : vector<32x64xf32>, vector<64x64xf32>, vector<32x64xf32> -> vector<32x64xf32>
    %c96 = arith.constant 96 : index
    %c0_86 = arith.constant 0 : index
    %76 = vector.load %arg23[%c96, %c0_86] : memref<288x64xf32, #tpu.memory_space<vmem>>, vector<32x64xf32>
    tpu.vector_store %arg23[%c96, %c0_86], %75 {strides = array<i32>} : memref<288x64xf32, #tpu.memory_space<vmem>>, vector<32x64xf32>,
    %c4_87 = arith.constant 4 : index
    %c0_88 = arith.constant 0 : index
    %c0_89 = arith.constant 0 : index
    %77 = vector.load %arg13[%c4_87, %c0_88, %c0_89] : memref<9x64x64xf32, #tpu.memory_space<vmem>>, vector<1x64x64xf32>
    %78 = vector.shape_cast %77 : vector<1x64x64xf32> to vector<64x64xf32>
    %cst_90 = arith.constant dense<0.000000e+00> : vector<32x64xf32>
    %79 = tpu.matmul %60, %78, %cst_90 {dimension_numbers = #tpu.dot_dimension_numbers<[1], [0], [0], [1], [0, 0, 1, 1], [], []>} : vector<32x64xf32>, vector<64x64xf32>, vector<32x64xf32> -> vector<32x64xf32>
    %c128 = arith.constant 128 : index
    %c0_91 = arith.constant 0 : index
    %80 = vector.load %arg23[%c128, %c0_91] : memref<288x64xf32, #tpu.memory_space<vmem>>, vector<32x64xf32>
    tpu.vector_store %arg23[%c128, %c0_91], %79 {strides = array<i32>} : memref<288x64xf32, #tpu.memory_space<vmem>>, vector<32x64xf32>,
    %c5_92 = arith.constant 5 : index
    %c0_93 = arith.constant 0 : index
    %c0_94 = arith.constant 0 : index
    %81 = vector.load %arg13[%c5_92, %c0_93, %c0_94] : memref<9x64x64xf32, #tpu.memory_space<vmem>>, vector<1x64x64xf32>
    %82 = vector.shape_cast %81 : vector<1x64x64xf32> to vector<64x64xf32>
    %cst_95 = arith.constant dense<0.000000e+00> : vector<32x64xf32>
    %83 = tpu.matmul %60, %82, %cst_95 {dimension_numbers = #tpu.dot_dimension_numbers<[1], [0], [0], [1], [0, 0, 1, 1], [], []>} : vector<32x64xf32>, vector<64x64xf32>, vector<32x64xf32> -> vector<32x64xf32>
    %c160 = arith.constant 160 : index
    %c0_96 = arith.constant 0 : index
    %84 = vector.load %arg23[%c160, %c0_96] : memref<288x64xf32, #tpu.memory_space<vmem>>, vector<32x64xf32>
    tpu.vector_store %arg23[%c160, %c0_96], %83 {strides = array<i32>} : memref<288x64xf32, #tpu.memory_space<vmem>>, vector<32x64xf32>,
    %c6_97 = arith.constant 6 : index
    %c0_98 = arith.constant 0 : index
    %c0_99 = arith.constant 0 : index
    %85 = vector.load %arg13[%c6_97, %c0_98, %c0_99] : memref<9x64x64xf32, #tpu.memory_space<vmem>>, vector<1x64x64xf32>
    %86 = vector.shape_cast %85 : vector<1x64x64xf32> to vector<64x64xf32>
    %cst_100 = arith.constant dense<0.000000e+00> : vector<32x64xf32>
    %87 = tpu.matmul %60, %86, %cst_100 {dimension_numbers = #tpu.dot_dimension_numbers<[1], [0], [0], [1], [0, 0, 1, 1], [], []>} : vector<32x64xf32>, vector<64x64xf32>, vector<32x64xf32> -> vector<32x64xf32>
    %c192 = arith.constant 192 : index
    %c0_101 = arith.constant 0 : index
    %88 = vector.load %arg23[%c192, %c0_101] : memref<288x64xf32, #tpu.memory_space<vmem>>, vector<32x64xf32>
    tpu.vector_store %arg23[%c192, %c0_101], %87 {strides = array<i32>} : memref<288x64xf32, #tpu.memory_space<vmem>>, vector<32x64xf32>,
    %c7_102 = arith.constant 7 : index
    %c0_103 = arith.constant 0 : index
    %c0_104 = arith.constant 0 : index
    %89 = vector.load %arg13[%c7_102, %c0_103, %c0_104] : memref<9x64x64xf32, #tpu.memory_space<vmem>>, vector<1x64x64xf32>
    %90 = vector.shape_cast %89 : vector<1x64x64xf32> to vector<64x64xf32>
    %cst_105 = arith.constant dense<0.000000e+00> : vector<32x64xf32>
    %91 = tpu.matmul %60, %90, %cst_105 {dimension_numbers = #tpu.dot_dimension_numbers<[1], [0], [0], [1], [0, 0, 1, 1], [], []>} : vector<32x64xf32>, vector<64x64xf32>, vector<32x64xf32> -> vector<32x64xf32>
    %c224 = arith.constant 224 : index
    %c0_106 = arith.constant 0 : index
    %92 = vector.load %arg23[%c224, %c0_106] : memref<288x64xf32, #tpu.memory_space<vmem>>, vector<32x64xf32>
    tpu.vector_store %arg23[%c224, %c0_106], %91 {strides = array<i32>} : memref<288x64xf32, #tpu.memory_space<vmem>>, vector<32x64xf32>,
    %c8_107 = arith.constant 8 : index
    %c0_108 = arith.constant 0 : index
    %c0_109 = arith.constant 0 : index
    %93 = vector.load %arg13[%c8_107, %c0_108, %c0_109] : memref<9x64x64xf32, #tpu.memory_space<vmem>>, vector<1x64x64xf32>
    %94 = vector.shape_cast %93 : vector<1x64x64xf32> to vector<64x64xf32>
    %cst_110 = arith.constant dense<0.000000e+00> : vector<32x64xf32>
    %95 = tpu.matmul %60, %94, %cst_110 {dimension_numbers = #tpu.dot_dimension_numbers<[1], [0], [0], [1], [0, 0, 1, 1], [], []>} : vector<32x64xf32>, vector<64x64xf32>, vector<32x64xf32> -> vector<32x64xf32>
    %c256 = arith.constant 256 : index
    %c0_111 = arith.constant 0 : index
    %96 = vector.load %arg23[%c256, %c0_111] : memref<288x64xf32, #tpu.memory_space<vmem>>, vector<32x64xf32>
    tpu.vector_store %arg23[%c256, %c0_111], %95 {strides = array<i32>} : memref<288x64xf32, #tpu.memory_space<vmem>>, vector<32x64xf32>,
    %c0_112 = arith.constant 0 : index
    %c0_113 = arith.constant 0 : index
    %97 = vector.load %arg4[%c0_112, %c0_113] : memref<32x288xf32, #tpu.memory_space<vmem>>, vector<32x288xf32>
    %c0_114 = arith.constant 0 : index
    %c0_115 = arith.constant 0 : index
    %98 = vector.load %arg23[%c0_114, %c0_115] : memref<288x64xf32, #tpu.memory_space<vmem>>, vector<288x64xf32>
    %cst_116 = arith.constant dense<0.000000e+00> : vector<32x64xf32>
    %99 = tpu.matmul %97, %98, %cst_116 {dimension_numbers = #tpu.dot_dimension_numbers<[1], [0], [0], [1], [0, 0, 1, 1], [], []>} : vector<32x288xf32>, vector<288x64xf32>, vector<32x64xf32> -> vector<32x64xf32>
    %c0_117 = arith.constant 0 : index
    %c0_118 = arith.constant 0 : index
    %100 = vector.load %arg5[%c0_117, %c0_118] : memref<32x1xf32, #tpu.memory_space<vmem>>, vector<32x1xf32>
    %101 = vector.broadcast %100 : vector<32x1xf32> to vector<32x64xf32>
    %102 = arith.addf %99, %101 : vector<32x64xf32>
    %cst_119 = arith.constant 0.000000e+00 : f32
    %103 = vector.broadcast %cst_119 : f32 to vector<32x64xf32>
    %104 = arith.maximumf %102, %103 : vector<32x64xf32>
    %c0_120 = arith.constant 0 : index
    %c0_121 = arith.constant 0 : index
    %c0_122 = arith.constant 0 : index
    %105 = vector.load %arg17[%c0_120, %c0_121, %c0_122] : memref<4x64x16xf32, #tpu.memory_space<vmem>>, vector<1x64x16xf32>
    %106 = vector.shape_cast %105 : vector<1x64x16xf32> to vector<64x16xf32>
    %cst_123 = arith.constant dense<0.000000e+00> : vector<32x16xf32>
    %107 = tpu.matmul %104, %106, %cst_123 {dimension_numbers = #tpu.dot_dimension_numbers<[1], [0], [0], [1], [0, 0, 1, 1], [], []>} : vector<32x64xf32>, vector<64x16xf32>, vector<32x16xf32> -> vector<32x16xf32>
    %c1_124 = arith.constant 1 : index
    %c0_125 = arith.constant 0 : index
    %c0_126 = arith.constant 0 : index
    %108 = vector.load %arg17[%c1_124, %c0_125, %c0_126] : memref<4x64x16xf32, #tpu.memory_space<vmem>>, vector<1x64x16xf32>
    %109 = vector.shape_cast %108 : vector<1x64x16xf32> to vector<64x16xf32>
    %cst_127 = arith.constant dense<0.000000e+00> : vector<32x16xf32>
    %110 = tpu.matmul %104, %109, %cst_127 {dimension_numbers = #tpu.dot_dimension_numbers<[1], [0], [0], [1], [0, 0, 1, 1], [], []>} : vector<32x64xf32>, vector<64x16xf32>, vector<32x16xf32> -> vector<32x16xf32>
    %c2_128 = arith.constant 2 : index
    %c0_129 = arith.constant 0 : index
    %c0_130 = arith.constant 0 : index
    %111 = vector.load %arg17[%c2_128, %c0_129, %c0_130] : memref<4x64x16xf32, #tpu.memory_space<vmem>>, vector<1x64x16xf32>
    %112 = vector.shape_cast %111 : vector<1x64x16xf32> to vector<64x16xf32>
    %cst_131 = arith.constant dense<0.000000e+00> : vector<32x16xf32>
    %113 = tpu.matmul %104, %112, %cst_131 {dimension_numbers = #tpu.dot_dimension_numbers<[1], [0], [0], [1], [0, 0, 1, 1], [], []>} : vector<32x64xf32>, vector<64x16xf32>, vector<32x16xf32> -> vector<32x16xf32>
    %c3_132 = arith.constant 3 : index
    %c0_133 = arith.constant 0 : index
    %c0_134 = arith.constant 0 : index
    %114 = vector.load %arg17[%c3_132, %c0_133, %c0_134] : memref<4x64x16xf32, #tpu.memory_space<vmem>>, vector<1x64x16xf32>
    %115 = vector.shape_cast %114 : vector<1x64x16xf32> to vector<64x16xf32>
    %cst_135 = arith.constant dense<0.000000e+00> : vector<32x16xf32>
    %116 = tpu.matmul %104, %115, %cst_135 {dimension_numbers = #tpu.dot_dimension_numbers<[1], [0], [0], [1], [0, 0, 1, 1], [], []>} : vector<32x64xf32>, vector<64x16xf32>, vector<32x16xf32> -> vector<32x16xf32>
    %117 = arith.maximumf %107, %110 : vector<32x16xf32>
    %118 = arith.maximumf %113, %116 : vector<32x16xf32>
    %119 = arith.maximumf %117, %118 : vector<32x16xf32>
    %c0_136 = arith.constant 0 : index
    %c0_137 = arith.constant 0 : index
    %c0_138 = arith.constant 0 : index
    %120 = vector.load %arg14[%c0_136, %c0_137, %c0_138] : memref<9x16x16xf32, #tpu.memory_space<vmem>>, vector<1x16x16xf32>
    %121 = vector.shape_cast %120 : vector<1x16x16xf32> to vector<16x16xf32>
    %cst_139 = arith.constant dense<0.000000e+00> : vector<32x16xf32>
    %122 = tpu.matmul %119, %121, %cst_139 {dimension_numbers = #tpu.dot_dimension_numbers<[1], [0], [0], [1], [0, 0, 1, 1], [], []>} : vector<32x16xf32>, vector<16x16xf32>, vector<32x16xf32> -> vector<32x16xf32>
    %c0_140 = arith.constant 0 : index
    %c0_141 = arith.constant 0 : index
    %123 = vector.load %arg24[%c0_140, %c0_141] : memref<288x16xf32, #tpu.memory_space<vmem>>, vector<32x16xf32>
    tpu.vector_store %arg24[%c0_140, %c0_141], %122 {strides = array<i32>} : memref<288x16xf32, #tpu.memory_space<vmem>>, vector<32x16xf32>,
    %c1_142 = arith.constant 1 : index
    %c0_143 = arith.constant 0 : index
    %c0_144 = arith.constant 0 : index
    %124 = vector.load %arg14[%c1_142, %c0_143, %c0_144] : memref<9x16x16xf32, #tpu.memory_space<vmem>>, vector<1x16x16xf32>
    %125 = vector.shape_cast %124 : vector<1x16x16xf32> to vector<16x16xf32>
    %cst_145 = arith.constant dense<0.000000e+00> : vector<32x16xf32>
    %126 = tpu.matmul %119, %125, %cst_145 {dimension_numbers = #tpu.dot_dimension_numbers<[1], [0], [0], [1], [0, 0, 1, 1], [], []>} : vector<32x16xf32>, vector<16x16xf32>, vector<32x16xf32> -> vector<32x16xf32>
    %c32_146 = arith.constant 32 : index
    %c0_147 = arith.constant 0 : index
    %127 = vector.load %arg24[%c32_146, %c0_147] : memref<288x16xf32, #tpu.memory_space<vmem>>, vector<32x16xf32>
    tpu.vector_store %arg24[%c32_146, %c0_147], %126 {strides = array<i32>} : memref<288x16xf32, #tpu.memory_space<vmem>>, vector<32x16xf32>,
    %c2_148 = arith.constant 2 : index
    %c0_149 = arith.constant 0 : index
    %c0_150 = arith.constant 0 : index
    %128 = vector.load %arg14[%c2_148, %c0_149, %c0_150] : memref<9x16x16xf32, #tpu.memory_space<vmem>>, vector<1x16x16xf32>
    %129 = vector.shape_cast %128 : vector<1x16x16xf32> to vector<16x16xf32>
    %cst_151 = arith.constant dense<0.000000e+00> : vector<32x16xf32>
    %130 = tpu.matmul %119, %129, %cst_151 {dimension_numbers = #tpu.dot_dimension_numbers<[1], [0], [0], [1], [0, 0, 1, 1], [], []>} : vector<32x16xf32>, vector<16x16xf32>, vector<32x16xf32> -> vector<32x16xf32>
    %c64_152 = arith.constant 64 : index
    %c0_153 = arith.constant 0 : index
    %131 = vector.load %arg24[%c64_152, %c0_153] : memref<288x16xf32, #tpu.memory_space<vmem>>, vector<32x16xf32>
    tpu.vector_store %arg24[%c64_152, %c0_153], %130 {strides = array<i32>} : memref<288x16xf32, #tpu.memory_space<vmem>>, vector<32x16xf32>,
    %c3_154 = arith.constant 3 : index
    %c0_155 = arith.constant 0 : index
    %c0_156 = arith.constant 0 : index
    %132 = vector.load %arg14[%c3_154, %c0_155, %c0_156] : memref<9x16x16xf32, #tpu.memory_space<vmem>>, vector<1x16x16xf32>
    %133 = vector.shape_cast %132 : vector<1x16x16xf32> to vector<16x16xf32>
    %cst_157 = arith.constant dense<0.000000e+00> : vector<32x16xf32>
    %134 = tpu.matmul %119, %133, %cst_157 {dimension_numbers = #tpu.dot_dimension_numbers<[1], [0], [0], [1], [0, 0, 1, 1], [], []>} : vector<32x16xf32>, vector<16x16xf32>, vector<32x16xf32> -> vector<32x16xf32>
    %c96_158 = arith.constant 96 : index
    %c0_159 = arith.constant 0 : index
    %135 = vector.load %arg24[%c96_158, %c0_159] : memref<288x16xf32, #tpu.memory_space<vmem>>, vector<32x16xf32>
    tpu.vector_store %arg24[%c96_158, %c0_159], %134 {strides = array<i32>} : memref<288x16xf32, #tpu.memory_space<vmem>>, vector<32x16xf32>,
    %c4_160 = arith.constant 4 : index
    %c0_161 = arith.constant 0 : index
    %c0_162 = arith.constant 0 : index
    %136 = vector.load %arg14[%c4_160, %c0_161, %c0_162] : memref<9x16x16xf32, #tpu.memory_space<vmem>>, vector<1x16x16xf32>
    %137 = vector.shape_cast %136 : vector<1x16x16xf32> to vector<16x16xf32>
    %cst_163 = arith.constant dense<0.000000e+00> : vector<32x16xf32>
    %138 = tpu.matmul %119, %137, %cst_163 {dimension_numbers = #tpu.dot_dimension_numbers<[1], [0], [0], [1], [0, 0, 1, 1], [], []>} : vector<32x16xf32>, vector<16x16xf32>, vector<32x16xf32> -> vector<32x16xf32>
    %c128_164 = arith.constant 128 : index
    %c0_165 = arith.constant 0 : index
    %139 = vector.load %arg24[%c128_164, %c0_165] : memref<288x16xf32, #tpu.memory_space<vmem>>, vector<32x16xf32>
    tpu.vector_store %arg24[%c128_164, %c0_165], %138 {strides = array<i32>} : memref<288x16xf32, #tpu.memory_space<vmem>>, vector<32x16xf32>,
    %c5_166 = arith.constant 5 : index
    %c0_167 = arith.constant 0 : index
    %c0_168 = arith.constant 0 : index
    %140 = vector.load %arg14[%c5_166, %c0_167, %c0_168] : memref<9x16x16xf32, #tpu.memory_space<vmem>>, vector<1x16x16xf32>
    %141 = vector.shape_cast %140 : vector<1x16x16xf32> to vector<16x16xf32>
    %cst_169 = arith.constant dense<0.000000e+00> : vector<32x16xf32>
    %142 = tpu.matmul %119, %141, %cst_169 {dimension_numbers = #tpu.dot_dimension_numbers<[1], [0], [0], [1], [0, 0, 1, 1], [], []>} : vector<32x16xf32>, vector<16x16xf32>, vector<32x16xf32> -> vector<32x16xf32>
    %c160_170 = arith.constant 160 : index
    %c0_171 = arith.constant 0 : index
    %143 = vector.load %arg24[%c160_170, %c0_171] : memref<288x16xf32, #tpu.memory_space<vmem>>, vector<32x16xf32>
    tpu.vector_store %arg24[%c160_170, %c0_171], %142 {strides = array<i32>} : memref<288x16xf32, #tpu.memory_space<vmem>>, vector<32x16xf32>,
    %c6_172 = arith.constant 6 : index
    %c0_173 = arith.constant 0 : index
    %c0_174 = arith.constant 0 : index
    %144 = vector.load %arg14[%c6_172, %c0_173, %c0_174] : memref<9x16x16xf32, #tpu.memory_space<vmem>>, vector<1x16x16xf32>
    %145 = vector.shape_cast %144 : vector<1x16x16xf32> to vector<16x16xf32>
    %cst_175 = arith.constant dense<0.000000e+00> : vector<32x16xf32>
    %146 = tpu.matmul %119, %145, %cst_175 {dimension_numbers = #tpu.dot_dimension_numbers<[1], [0], [0], [1], [0, 0, 1, 1], [], []>} : vector<32x16xf32>, vector<16x16xf32>, vector<32x16xf32> -> vector<32x16xf32>
    %c192_176 = arith.constant 192 : index
    %c0_177 = arith.constant 0 : index
    %147 = vector.load %arg24[%c192_176, %c0_177] : memref<288x16xf32, #tpu.memory_space<vmem>>, vector<32x16xf32>
    tpu.vector_store %arg24[%c192_176, %c0_177], %146 {strides = array<i32>} : memref<288x16xf32, #tpu.memory_space<vmem>>, vector<32x16xf32>,
    %c7_178 = arith.constant 7 : index
    %c0_179 = arith.constant 0 : index
    %c0_180 = arith.constant 0 : index
    %148 = vector.load %arg14[%c7_178, %c0_179, %c0_180] : memref<9x16x16xf32, #tpu.memory_space<vmem>>, vector<1x16x16xf32>
    %149 = vector.shape_cast %148 : vector<1x16x16xf32> to vector<16x16xf32>
    %cst_181 = arith.constant dense<0.000000e+00> : vector<32x16xf32>
    %150 = tpu.matmul %119, %149, %cst_181 {dimension_numbers = #tpu.dot_dimension_numbers<[1], [0], [0], [1], [0, 0, 1, 1], [], []>} : vector<32x16xf32>, vector<16x16xf32>, vector<32x16xf32> -> vector<32x16xf32>
    %c224_182 = arith.constant 224 : index
    %c0_183 = arith.constant 0 : index
    %151 = vector.load %arg24[%c224_182, %c0_183] : memref<288x16xf32, #tpu.memory_space<vmem>>, vector<32x16xf32>
    tpu.vector_store %arg24[%c224_182, %c0_183], %150 {strides = array<i32>} : memref<288x16xf32, #tpu.memory_space<vmem>>, vector<32x16xf32>,
    %c8_184 = arith.constant 8 : index
    %c0_185 = arith.constant 0 : index
    %c0_186 = arith.constant 0 : index
    %152 = vector.load %arg14[%c8_184, %c0_185, %c0_186] : memref<9x16x16xf32, #tpu.memory_space<vmem>>, vector<1x16x16xf32>
    %153 = vector.shape_cast %152 : vector<1x16x16xf32> to vector<16x16xf32>
    %cst_187 = arith.constant dense<0.000000e+00> : vector<32x16xf32>
    %154 = tpu.matmul %119, %153, %cst_187 {dimension_numbers = #tpu.dot_dimension_numbers<[1], [0], [0], [1], [0, 0, 1, 1], [], []>} : vector<32x16xf32>, vector<16x16xf32>, vector<32x16xf32> -> vector<32x16xf32>
    %c256_188 = arith.constant 256 : index
    %c0_189 = arith.constant 0 : index
    %155 = vector.load %arg24[%c256_188, %c0_189] : memref<288x16xf32, #tpu.memory_space<vmem>>, vector<32x16xf32>
    tpu.vector_store %arg24[%c256_188, %c0_189], %154 {strides = array<i32>} : memref<288x16xf32, #tpu.memory_space<vmem>>, vector<32x16xf32>,
    %c0_190 = arith.constant 0 : index
    %c0_191 = arith.constant 0 : index
    %156 = vector.load %arg6[%c0_190, %c0_191] : memref<16x288xf32, #tpu.memory_space<vmem>>, vector<16x288xf32>
    %c0_192 = arith.constant 0 : index
    %c0_193 = arith.constant 0 : index
    %157 = vector.load %arg24[%c0_192, %c0_193] : memref<288x16xf32, #tpu.memory_space<vmem>>, vector<288x16xf32>
    %cst_194 = arith.constant dense<0.000000e+00> : vector<16x16xf32>
    %158 = tpu.matmul %156, %157, %cst_194 {dimension_numbers = #tpu.dot_dimension_numbers<[1], [0], [0], [1], [0, 0, 1, 1], [], []>} : vector<16x288xf32>, vector<288x16xf32>, vector<16x16xf32> -> vector<16x16xf32>
    %c0_195 = arith.constant 0 : index
    %c0_196 = arith.constant 0 : index
    %159 = vector.load %arg7[%c0_195, %c0_196] : memref<16x1xf32, #tpu.memory_space<vmem>>, vector<16x1xf32>
    %160 = vector.broadcast %159 : vector<16x1xf32> to vector<16x16xf32>
    %161 = arith.addf %158, %160 : vector<16x16xf32>
    %c0_197 = arith.constant 0 : index
    %c0_198 = arith.constant 0 : index
    %c0_199 = arith.constant 0 : index
    %162 = vector.load %arg18[%c0_197, %c0_198, %c0_199] : memref<4x16x4xf32, #tpu.memory_space<vmem>>, vector<1x16x4xf32>
    %163 = vector.shape_cast %162 : vector<1x16x4xf32> to vector<16x4xf32>
    %cst_200 = arith.constant dense<0.000000e+00> : vector<16x4xf32>
    %164 = tpu.matmul %161, %163, %cst_200 {dimension_numbers = #tpu.dot_dimension_numbers<[1], [0], [0], [1], [0, 0, 1, 1], [], []>} : vector<16x16xf32>, vector<16x4xf32>, vector<16x4xf32> -> vector<16x4xf32>
    %c1_201 = arith.constant 1 : index
    %c0_202 = arith.constant 0 : index
    %c0_203 = arith.constant 0 : index
    %165 = vector.load %arg18[%c1_201, %c0_202, %c0_203] : memref<4x16x4xf32, #tpu.memory_space<vmem>>, vector<1x16x4xf32>
    %166 = vector.shape_cast %165 : vector<1x16x4xf32> to vector<16x4xf32>
    %cst_204 = arith.constant dense<0.000000e+00> : vector<16x4xf32>
    %167 = tpu.matmul %161, %166, %cst_204 {dimension_numbers = #tpu.dot_dimension_numbers<[1], [0], [0], [1], [0, 0, 1, 1], [], []>} : vector<16x16xf32>, vector<16x4xf32>, vector<16x4xf32> -> vector<16x4xf32>
    %c2_205 = arith.constant 2 : index
    %c0_206 = arith.constant 0 : index
    %c0_207 = arith.constant 0 : index
    %168 = vector.load %arg18[%c2_205, %c0_206, %c0_207] : memref<4x16x4xf32, #tpu.memory_space<vmem>>, vector<1x16x4xf32>
    %169 = vector.shape_cast %168 : vector<1x16x4xf32> to vector<16x4xf32>
    %cst_208 = arith.constant dense<0.000000e+00> : vector<16x4xf32>
    %170 = tpu.matmul %161, %169, %cst_208 {dimension_numbers = #tpu.dot_dimension_numbers<[1], [0], [0], [1], [0, 0, 1, 1], [], []>} : vector<16x16xf32>, vector<16x4xf32>, vector<16x4xf32> -> vector<16x4xf32>
    %c3_209 = arith.constant 3 : index
    %c0_210 = arith.constant 0 : index
    %c0_211 = arith.constant 0 : index
    %171 = vector.load %arg18[%c3_209, %c0_210, %c0_211] : memref<4x16x4xf32, #tpu.memory_space<vmem>>, vector<1x16x4xf32>
    %172 = vector.shape_cast %171 : vector<1x16x4xf32> to vector<16x4xf32>
    %cst_212 = arith.constant dense<0.000000e+00> : vector<16x4xf32>
    %173 = tpu.matmul %161, %172, %cst_212 {dimension_numbers = #tpu.dot_dimension_numbers<[1], [0], [0], [1], [0, 0, 1, 1], [], []>} : vector<16x16xf32>, vector<16x4xf32>, vector<16x4xf32> -> vector<16x4xf32>
    %174 = arith.maximumf %164, %167 : vector<16x4xf32>
    %175 = arith.maximumf %170, %173 : vector<16x4xf32>
    %176 = arith.maximumf %174, %175 : vector<16x4xf32>
    %c0_213 = arith.constant 0 : index
    %c0_214 = arith.constant 0 : index
    %c0_215 = arith.constant 0 : index
    %177 = vector.load %arg20[%c0_213, %c0_214, %c0_215] : memref<1x16x4xf32, #tpu.memory_space<vmem>>, vector<1x16x4xf32>
    %178 = vector.shape_cast %177 : vector<1x16x4xf32> to vector<16x4xf32>
    %179 = vector.shape_cast %176 : vector<16x4xf32> to vector<1x16x4xf32>
    tpu.vector_store %arg20[%c0_213, %c0_214, %c0_215], %179 {strides = array<i32>} : memref<1x16x4xf32, #tpu.memory_space<vmem>>, vector<1x16x4xf32>,
    %c0_216 = arith.constant 0 : index
    %c0_217 = arith.constant 0 : index
    %c0_218 = arith.constant 0 : index
    %180 = vector.load %arg15[%c0_216, %c0_217, %c0_218] : memref<9x4x4xf32, #tpu.memory_space<vmem>>, vector<1x4x4xf32>
    %181 = vector.shape_cast %180 : vector<1x4x4xf32> to vector<4x4xf32>
    %cst_219 = arith.constant dense<0.000000e+00> : vector<16x4xf32>
    %182 = tpu.matmul %176, %181, %cst_219 {dimension_numbers = #tpu.dot_dimension_numbers<[1], [0], [0], [1], [0, 0, 1, 1], [], []>} : vector<16x4xf32>, vector<4x4xf32>, vector<16x4xf32> -> vector<16x4xf32>
    %c0_220 = arith.constant 0 : index
    %c0_221 = arith.constant 0 : index
    %183 = vector.load %arg25[%c0_220, %c0_221] : memref<144x4xf32, #tpu.memory_space<vmem>>, vector<16x4xf32>
    tpu.vector_store %arg25[%c0_220, %c0_221], %182 {strides = array<i32>} : memref<144x4xf32, #tpu.memory_space<vmem>>, vector<16x4xf32>,
    %c1_222 = arith.constant 1 : index
    %c0_223 = arith.constant 0 : index
    %c0_224 = arith.constant 0 : index
    %184 = vector.load %arg15[%c1_222, %c0_223, %c0_224] : memref<9x4x4xf32, #tpu.memory_space<vmem>>, vector<1x4x4xf32>
    %185 = vector.shape_cast %184 : vector<1x4x4xf32> to vector<4x4xf32>
    %cst_225 = arith.constant dense<0.000000e+00> : vector<16x4xf32>
    %186 = tpu.matmul %176, %185, %cst_225 {dimension_numbers = #tpu.dot_dimension_numbers<[1], [0], [0], [1], [0, 0, 1, 1], [], []>} : vector<16x4xf32>, vector<4x4xf32>, vector<16x4xf32> -> vector<16x4xf32>
    %c16_226 = arith.constant 16 : index
    %c0_227 = arith.constant 0 : index
    %187 = vector.load %arg25[%c16_226, %c0_227] : memref<144x4xf32, #tpu.memory_space<vmem>>, vector<16x4xf32>
    tpu.vector_store %arg25[%c16_226, %c0_227], %186 {strides = array<i32>} : memref<144x4xf32, #tpu.memory_space<vmem>>, vector<16x4xf32>,
    %c2_228 = arith.constant 2 : index
    %c0_229 = arith.constant 0 : index
    %c0_230 = arith.constant 0 : index
    %188 = vector.load %arg15[%c2_228, %c0_229, %c0_230] : memref<9x4x4xf32, #tpu.memory_space<vmem>>, vector<1x4x4xf32>
    %189 = vector.shape_cast %188 : vector<1x4x4xf32> to vector<4x4xf32>
    %cst_231 = arith.constant dense<0.000000e+00> : vector<16x4xf32>
    %190 = tpu.matmul %176, %189, %cst_231 {dimension_numbers = #tpu.dot_dimension_numbers<[1], [0], [0], [1], [0, 0, 1, 1], [], []>} : vector<16x4xf32>, vector<4x4xf32>, vector<16x4xf32> -> vector<16x4xf32>
    %c32_232 = arith.constant 32 : index
    %c0_233 = arith.constant 0 : index
    %191 = vector.load %arg25[%c32_232, %c0_233] : memref<144x4xf32, #tpu.memory_space<vmem>>, vector<16x4xf32>
    tpu.vector_store %arg25[%c32_232, %c0_233], %190 {strides = array<i32>} : memref<144x4xf32, #tpu.memory_space<vmem>>, vector<16x4xf32>,
    %c3_234 = arith.constant 3 : index
    %c0_235 = arith.constant 0 : index
    %c0_236 = arith.constant 0 : index
    %192 = vector.load %arg15[%c3_234, %c0_235, %c0_236] : memref<9x4x4xf32, #tpu.memory_space<vmem>>, vector<1x4x4xf32>
    %193 = vector.shape_cast %192 : vector<1x4x4xf32> to vector<4x4xf32>
    %cst_237 = arith.constant dense<0.000000e+00> : vector<16x4xf32>
    %194 = tpu.matmul %176, %193, %cst_237 {dimension_numbers = #tpu.dot_dimension_numbers<[1], [0], [0], [1], [0, 0, 1, 1], [], []>} : vector<16x4xf32>, vector<4x4xf32>, vector<16x4xf32> -> vector<16x4xf32>
    %c48_238 = arith.constant 48 : index
    %c0_239 = arith.constant 0 : index
    %195 = vector.load %arg25[%c48_238, %c0_239] : memref<144x4xf32, #tpu.memory_space<vmem>>, vector<16x4xf32>
    tpu.vector_store %arg25[%c48_238, %c0_239], %194 {strides = array<i32>} : memref<144x4xf32, #tpu.memory_space<vmem>>, vector<16x4xf32>,
    %c4_240 = arith.constant 4 : index
    %c0_241 = arith.constant 0 : index
    %c0_242 = arith.constant 0 : index
    %196 = vector.load %arg15[%c4_240, %c0_241, %c0_242] : memref<9x4x4xf32, #tpu.memory_space<vmem>>, vector<1x4x4xf32>
    %197 = vector.shape_cast %196 : vector<1x4x4xf32> to vector<4x4xf32>
    %cst_243 = arith.constant dense<0.000000e+00> : vector<16x4xf32>
    %198 = tpu.matmul %176, %197, %cst_243 {dimension_numbers = #tpu.dot_dimension_numbers<[1], [0], [0], [1], [0, 0, 1, 1], [], []>} : vector<16x4xf32>, vector<4x4xf32>, vector<16x4xf32> -> vector<16x4xf32>
    %c64_244 = arith.constant 64 : index
    %c0_245 = arith.constant 0 : index
    %199 = vector.load %arg25[%c64_244, %c0_245] : memref<144x4xf32, #tpu.memory_space<vmem>>, vector<16x4xf32>
    tpu.vector_store %arg25[%c64_244, %c0_245], %198 {strides = array<i32>} : memref<144x4xf32, #tpu.memory_space<vmem>>, vector<16x4xf32>,
    %c5_246 = arith.constant 5 : index
    %c0_247 = arith.constant 0 : index
    %c0_248 = arith.constant 0 : index
    %200 = vector.load %arg15[%c5_246, %c0_247, %c0_248] : memref<9x4x4xf32, #tpu.memory_space<vmem>>, vector<1x4x4xf32>
    %201 = vector.shape_cast %200 : vector<1x4x4xf32> to vector<4x4xf32>
    %cst_249 = arith.constant dense<0.000000e+00> : vector<16x4xf32>
    %202 = tpu.matmul %176, %201, %cst_249 {dimension_numbers = #tpu.dot_dimension_numbers<[1], [0], [0], [1], [0, 0, 1, 1], [], []>} : vector<16x4xf32>, vector<4x4xf32>, vector<16x4xf32> -> vector<16x4xf32>
    %c80 = arith.constant 80 : index
    %c0_250 = arith.constant 0 : index
    %203 = vector.load %arg25[%c80, %c0_250] : memref<144x4xf32, #tpu.memory_space<vmem>>, vector<16x4xf32>
    tpu.vector_store %arg25[%c80, %c0_250], %202 {strides = array<i32>} : memref<144x4xf32, #tpu.memory_space<vmem>>, vector<16x4xf32>,
    %c6_251 = arith.constant 6 : index
    %c0_252 = arith.constant 0 : index
    %c0_253 = arith.constant 0 : index
    %204 = vector.load %arg15[%c6_251, %c0_252, %c0_253] : memref<9x4x4xf32, #tpu.memory_space<vmem>>, vector<1x4x4xf32>
    %205 = vector.shape_cast %204 : vector<1x4x4xf32> to vector<4x4xf32>
    %cst_254 = arith.constant dense<0.000000e+00> : vector<16x4xf32>
    %206 = tpu.matmul %176, %205, %cst_254 {dimension_numbers = #tpu.dot_dimension_numbers<[1], [0], [0], [1], [0, 0, 1, 1], [], []>} : vector<16x4xf32>, vector<4x4xf32>, vector<16x4xf32> -> vector<16x4xf32>
    %c96_255 = arith.constant 96 : index
    %c0_256 = arith.constant 0 : index
    %207 = vector.load %arg25[%c96_255, %c0_256] : memref<144x4xf32, #tpu.memory_space<vmem>>, vector<16x4xf32>
    tpu.vector_store %arg25[%c96_255, %c0_256], %206 {strides = array<i32>} : memref<144x4xf32, #tpu.memory_space<vmem>>, vector<16x4xf32>,
    %c7_257 = arith.constant 7 : index
    %c0_258 = arith.constant 0 : index
    %c0_259 = arith.constant 0 : index
    %208 = vector.load %arg15[%c7_257, %c0_258, %c0_259] : memref<9x4x4xf32, #tpu.memory_space<vmem>>, vector<1x4x4xf32>
    %209 = vector.shape_cast %208 : vector<1x4x4xf32> to vector<4x4xf32>
    %cst_260 = arith.constant dense<0.000000e+00> : vector<16x4xf32>
    %210 = tpu.matmul %176, %209, %cst_260 {dimension_numbers = #tpu.dot_dimension_numbers<[1], [0], [0], [1], [0, 0, 1, 1], [], []>} : vector<16x4xf32>, vector<4x4xf32>, vector<16x4xf32> -> vector<16x4xf32>
    %c112 = arith.constant 112 : index
    %c0_261 = arith.constant 0 : index
    %211 = vector.load %arg25[%c112, %c0_261] : memref<144x4xf32, #tpu.memory_space<vmem>>, vector<16x4xf32>
    tpu.vector_store %arg25[%c112, %c0_261], %210 {strides = array<i32>} : memref<144x4xf32, #tpu.memory_space<vmem>>, vector<16x4xf32>,
    %c8_262 = arith.constant 8 : index
    %c0_263 = arith.constant 0 : index
    %c0_264 = arith.constant 0 : index
    %212 = vector.load %arg15[%c8_262, %c0_263, %c0_264] : memref<9x4x4xf32, #tpu.memory_space<vmem>>, vector<1x4x4xf32>
    %213 = vector.shape_cast %212 : vector<1x4x4xf32> to vector<4x4xf32>
    %cst_265 = arith.constant dense<0.000000e+00> : vector<16x4xf32>
    %214 = tpu.matmul %176, %213, %cst_265 {dimension_numbers = #tpu.dot_dimension_numbers<[1], [0], [0], [1], [0, 0, 1, 1], [], []>} : vector<16x4xf32>, vector<4x4xf32>, vector<16x4xf32> -> vector<16x4xf32>
    %c128_266 = arith.constant 128 : index
    %c0_267 = arith.constant 0 : index
    %215 = vector.load %arg25[%c128_266, %c0_267] : memref<144x4xf32, #tpu.memory_space<vmem>>, vector<16x4xf32>
    tpu.vector_store %arg25[%c128_266, %c0_267], %214 {strides = array<i32>} : memref<144x4xf32, #tpu.memory_space<vmem>>, vector<16x4xf32>,
    %c0_268 = arith.constant 0 : index
    %c0_269 = arith.constant 0 : index
    %216 = vector.load %arg8[%c0_268, %c0_269] : memref<32x144xf32, #tpu.memory_space<vmem>>, vector<32x144xf32>
    %c0_270 = arith.constant 0 : index
    %c0_271 = arith.constant 0 : index
    %217 = vector.load %arg25[%c0_270, %c0_271] : memref<144x4xf32, #tpu.memory_space<vmem>>, vector<144x4xf32>
    %cst_272 = arith.constant dense<0.000000e+00> : vector<32x4xf32>
    %218 = tpu.matmul %216, %217, %cst_272 {dimension_numbers = #tpu.dot_dimension_numbers<[1], [0], [0], [1], [0, 0, 1, 1], [], []>} : vector<32x144xf32>, vector<144x4xf32>, vector<32x4xf32> -> vector<32x4xf32>
    %c0_273 = arith.constant 0 : index
    %c0_274 = arith.constant 0 : index
    %219 = vector.load %arg9[%c0_273, %c0_274] : memref<32x1xf32, #tpu.memory_space<vmem>>, vector<32x1xf32>
    %220 = vector.broadcast %219 : vector<32x1xf32> to vector<32x4xf32>
    %221 = arith.addf %218, %220 : vector<32x4xf32>
    %cst_275 = arith.constant 0.000000e+00 : f32
    %222 = vector.broadcast %cst_275 : f32 to vector<32x4xf32>
    %223 = arith.maximumf %221, %222 : vector<32x4xf32>
    %c0_276 = arith.constant 0 : index
    %c0_277 = arith.constant 0 : index
    %224 = vector.load %arg19[%c0_276, %c0_277] : memref<4x256xf32, #tpu.memory_space<vmem>>, vector<4x256xf32>
    %cst_278 = arith.constant dense<0.000000e+00> : vector<32x256xf32>
    %225 = tpu.matmul %223, %224, %cst_278 {dimension_numbers = #tpu.dot_dimension_numbers<[1], [0], [0], [1], [0, 0, 1, 1], [], []>} : vector<32x4xf32>, vector<4x256xf32>, vector<32x256xf32> -> vector<32x256xf32>
    %c0_279 = arith.constant 0 : index
    %c0_280 = arith.constant 0 : index
    %c0_281 = arith.constant 0 : index
    %226 = vector.load %arg12[%c0_279, %c0_280, %c0_281] : memref<9x256x256xf32, #tpu.memory_space<vmem>>, vector<1x256x256xf32>
    %227 = vector.shape_cast %226 : vector<1x256x256xf32> to vector<256x256xf32>
    %cst_282 = arith.constant dense<0.000000e+00> : vector<32x256xf32>
    %228 = tpu.matmul %225, %227, %cst_282 {dimension_numbers = #tpu.dot_dimension_numbers<[1], [0], [0], [1], [0, 0, 1, 1], [], []>} : vector<32x256xf32>, vector<256x256xf32>, vector<32x256xf32> -> vector<32x256xf32>
    %c0_283 = arith.constant 0 : index
    %c0_284 = arith.constant 0 : index
    %229 = vector.load %arg26[%c0_283, %c0_284] : memref<288x256xf32, #tpu.memory_space<vmem>>, vector<32x256xf32>
    tpu.vector_store %arg26[%c0_283, %c0_284], %228 {strides = array<i32>} : memref<288x256xf32, #tpu.memory_space<vmem>>, vector<32x256xf32>,
    %c1_285 = arith.constant 1 : index
    %c0_286 = arith.constant 0 : index
    %c0_287 = arith.constant 0 : index
    %230 = vector.load %arg12[%c1_285, %c0_286, %c0_287] : memref<9x256x256xf32, #tpu.memory_space<vmem>>, vector<1x256x256xf32>
    %231 = vector.shape_cast %230 : vector<1x256x256xf32> to vector<256x256xf32>
    %cst_288 = arith.constant dense<0.000000e+00> : vector<32x256xf32>
    %232 = tpu.matmul %225, %231, %cst_288 {dimension_numbers = #tpu.dot_dimension_numbers<[1], [0], [0], [1], [0, 0, 1, 1], [], []>} : vector<32x256xf32>, vector<256x256xf32>, vector<32x256xf32> -> vector<32x256xf32>
    %c32_289 = arith.constant 32 : index
    %c0_290 = arith.constant 0 : index
    %233 = vector.load %arg26[%c32_289, %c0_290] : memref<288x256xf32, #tpu.memory_space<vmem>>, vector<32x256xf32>
    tpu.vector_store %arg26[%c32_289, %c0_290], %232 {strides = array<i32>} : memref<288x256xf32, #tpu.memory_space<vmem>>, vector<32x256xf32>,
    %c2_291 = arith.constant 2 : index
    %c0_292 = arith.constant 0 : index
    %c0_293 = arith.constant 0 : index
    %234 = vector.load %arg12[%c2_291, %c0_292, %c0_293] : memref<9x256x256xf32, #tpu.memory_space<vmem>>, vector<1x256x256xf32>
    %235 = vector.shape_cast %234 : vector<1x256x256xf32> to vector<256x256xf32>
    %cst_294 = arith.constant dense<0.000000e+00> : vector<32x256xf32>
    %236 = tpu.matmul %225, %235, %cst_294 {dimension_numbers = #tpu.dot_dimension_numbers<[1], [0], [0], [1], [0, 0, 1, 1], [], []>} : vector<32x256xf32>, vector<256x256xf32>, vector<32x256xf32> -> vector<32x256xf32>
    %c64_295 = arith.constant 64 : index
    %c0_296 = arith.constant 0 : index
    %237 = vector.load %arg26[%c64_295, %c0_296] : memref<288x256xf32, #tpu.memory_space<vmem>>, vector<32x256xf32>
    tpu.vector_store %arg26[%c64_295, %c0_296], %236 {strides = array<i32>} : memref<288x256xf32, #tpu.memory_space<vmem>>, vector<32x256xf32>,
    %c3_297 = arith.constant 3 : index
    %c0_298 = arith.constant 0 : index
    %c0_299 = arith.constant 0 : index
    %238 = vector.load %arg12[%c3_297, %c0_298, %c0_299] : memref<9x256x256xf32, #tpu.memory_space<vmem>>, vector<1x256x256xf32>
    %239 = vector.shape_cast %238 : vector<1x256x256xf32> to vector<256x256xf32>
    %cst_300 = arith.constant dense<0.000000e+00> : vector<32x256xf32>
    %240 = tpu.matmul %225, %239, %cst_300 {dimension_numbers = #tpu.dot_dimension_numbers<[1], [0], [0], [1], [0, 0, 1, 1], [], []>} : vector<32x256xf32>, vector<256x256xf32>, vector<32x256xf32> -> vector<32x256xf32>
    %c96_301 = arith.constant 96 : index
    %c0_302 = arith.constant 0 : index
    %241 = vector.load %arg26[%c96_301, %c0_302] : memref<288x256xf32, #tpu.memory_space<vmem>>, vector<32x256xf32>
    tpu.vector_store %arg26[%c96_301, %c0_302], %240 {strides = array<i32>} : memref<288x256xf32, #tpu.memory_space<vmem>>, vector<32x256xf32>,
    %c4_303 = arith.constant 4 : index
    %c0_304 = arith.constant 0 : index
    %c0_305 = arith.constant 0 : index
    %242 = vector.load %arg12[%c4_303, %c0_304, %c0_305] : memref<9x256x256xf32, #tpu.memory_space<vmem>>, vector<1x256x256xf32>
    %243 = vector.shape_cast %242 : vector<1x256x256xf32> to vector<256x256xf32>
    %cst_306 = arith.constant dense<0.000000e+00> : vector<32x256xf32>
    %244 = tpu.matmul %225, %243, %cst_306 {dimension_numbers = #tpu.dot_dimension_numbers<[1], [0], [0], [1], [0, 0, 1, 1], [], []>} : vector<32x256xf32>, vector<256x256xf32>, vector<32x256xf32> -> vector<32x256xf32>
    %c128_307 = arith.constant 128 : index
    %c0_308 = arith.constant 0 : index
    %245 = vector.load %arg26[%c128_307, %c0_308] : memref<288x256xf32, #tpu.memory_space<vmem>>, vector<32x256xf32>
    tpu.vector_store %arg26[%c128_307, %c0_308], %244 {strides = array<i32>} : memref<288x256xf32, #tpu.memory_space<vmem>>, vector<32x256xf32>,
    %c5_309 = arith.constant 5 : index
    %c0_310 = arith.constant 0 : index
    %c0_311 = arith.constant 0 : index
    %246 = vector.load %arg12[%c5_309, %c0_310, %c0_311] : memref<9x256x256xf32, #tpu.memory_space<vmem>>, vector<1x256x256xf32>
    %247 = vector.shape_cast %246 : vector<1x256x256xf32> to vector<256x256xf32>
    %cst_312 = arith.constant dense<0.000000e+00> : vector<32x256xf32>
    %248 = tpu.matmul %225, %247, %cst_312 {dimension_numbers = #tpu.dot_dimension_numbers<[1], [0], [0], [1], [0, 0, 1, 1], [], []>} : vector<32x256xf32>, vector<256x256xf32>, vector<32x256xf32> -> vector<32x256xf32>
    %c160_313 = arith.constant 160 : index
    %c0_314 = arith.constant 0 : index
    %249 = vector.load %arg26[%c160_313, %c0_314] : memref<288x256xf32, #tpu.memory_space<vmem>>, vector<32x256xf32>
    tpu.vector_store %arg26[%c160_313, %c0_314], %248 {strides = array<i32>} : memref<288x256xf32, #tpu.memory_space<vmem>>, vector<32x256xf32>,
    %c6_315 = arith.constant 6 : index
    %c0_316 = arith.constant 0 : index
    %c0_317 = arith.constant 0 : index
    %250 = vector.load %arg12[%c6_315, %c0_316, %c0_317] : memref<9x256x256xf32, #tpu.memory_space<vmem>>, vector<1x256x256xf32>
    %251 = vector.shape_cast %250 : vector<1x256x256xf32> to vector<256x256xf32>
    %cst_318 = arith.constant dense<0.000000e+00> : vector<32x256xf32>
    %252 = tpu.matmul %225, %251, %cst_318 {dimension_numbers = #tpu.dot_dimension_numbers<[1], [0], [0], [1], [0, 0, 1, 1], [], []>} : vector<32x256xf32>, vector<256x256xf32>, vector<32x256xf32> -> vector<32x256xf32>
    %c192_319 = arith.constant 192 : index
    %c0_320 = arith.constant 0 : index
    %253 = vector.load %arg26[%c192_319, %c0_320] : memref<288x256xf32, #tpu.memory_space<vmem>>, vector<32x256xf32>
    tpu.vector_store %arg26[%c192_319, %c0_320], %252 {strides = array<i32>} : memref<288x256xf32, #tpu.memory_space<vmem>>, vector<32x256xf32>,
    %c7_321 = arith.constant 7 : index
    %c0_322 = arith.constant 0 : index
    %c0_323 = arith.constant 0 : index
    %254 = vector.load %arg12[%c7_321, %c0_322, %c0_323] : memref<9x256x256xf32, #tpu.memory_space<vmem>>, vector<1x256x256xf32>
    %255 = vector.shape_cast %254 : vector<1x256x256xf32> to vector<256x256xf32>
    %cst_324 = arith.constant dense<0.000000e+00> : vector<32x256xf32>
    %256 = tpu.matmul %225, %255, %cst_324 {dimension_numbers = #tpu.dot_dimension_numbers<[1], [0], [0], [1], [0, 0, 1, 1], [], []>} : vector<32x256xf32>, vector<256x256xf32>, vector<32x256xf32> -> vector<32x256xf32>
    %c224_325 = arith.constant 224 : index
    %c0_326 = arith.constant 0 : index
    %257 = vector.load %arg26[%c224_325, %c0_326] : memref<288x256xf32, #tpu.memory_space<vmem>>, vector<32x256xf32>
    tpu.vector_store %arg26[%c224_325, %c0_326], %256 {strides = array<i32>} : memref<288x256xf32, #tpu.memory_space<vmem>>, vector<32x256xf32>,
    %c8_327 = arith.constant 8 : index
    %c0_328 = arith.constant 0 : index
    %c0_329 = arith.constant 0 : index
    %258 = vector.load %arg12[%c8_327, %c0_328, %c0_329] : memref<9x256x256xf32, #tpu.memory_space<vmem>>, vector<1x256x256xf32>
    %259 = vector.shape_cast %258 : vector<1x256x256xf32> to vector<256x256xf32>
    %cst_330 = arith.constant dense<0.000000e+00> : vector<32x256xf32>
    %260 = tpu.matmul %225, %259, %cst_330 {dimension_numbers = #tpu.dot_dimension_numbers<[1], [0], [0], [1], [0, 0, 1, 1], [], []>} : vector<32x256xf32>, vector<256x256xf32>, vector<32x256xf32> -> vector<32x256xf32>
    %c256_331 = arith.constant 256 : index
    %c0_332 = arith.constant 0 : index
    %261 = vector.load %arg26[%c256_331, %c0_332] : memref<288x256xf32, #tpu.memory_space<vmem>>, vector<32x256xf32>
    tpu.vector_store %arg26[%c256_331, %c0_332], %260 {strides = array<i32>} : memref<288x256xf32, #tpu.memory_space<vmem>>, vector<32x256xf32>,
    %c0_333 = arith.constant 0 : index
    %c0_334 = arith.constant 0 : index
    %262 = vector.load %arg10[%c0_333, %c0_334] : memref<8x288xf32, #tpu.memory_space<vmem>>, vector<8x288xf32>
    %c0_335 = arith.constant 0 : index
    %c0_336 = arith.constant 0 : index
    %263 = vector.load %arg26[%c0_335, %c0_336] : memref<288x256xf32, #tpu.memory_space<vmem>>, vector<288x256xf32>
    %cst_337 = arith.constant dense<0.000000e+00> : vector<8x256xf32>
    %264 = tpu.matmul %262, %263, %cst_337 {dimension_numbers = #tpu.dot_dimension_numbers<[1], [0], [0], [1], [0, 0, 1, 1], [], []>} : vector<8x288xf32>, vector<288x256xf32>, vector<8x256xf32> -> vector<8x256xf32>
    %c0_338 = arith.constant 0 : index
    %c0_339 = arith.constant 0 : index
    %265 = vector.load %arg11[%c0_338, %c0_339] : memref<8x1xf32, #tpu.memory_space<vmem>>, vector<8x1xf32>
    %266 = vector.broadcast %265 : vector<8x1xf32> to vector<8x256xf32>
    %267 = arith.addf %264, %266 : vector<8x256xf32>
    %268 = vector.extract_strided_slice %267 {offsets = [0, 0], sizes = [1, 256], strides = [1, 1]} : vector<8x256xf32> to vector<1x256xf32>
    %c0_340 = arith.constant 0 : index
    %c0_341 = arith.constant 0 : index
    %c0_342 = arith.constant 0 : index
    %269 = vector.load %arg21[%c0_340, %c0_341, %c0_342] : memref<1x1x256xf32, #tpu.memory_space<vmem>>, vector<1x1x256xf32>
    %270 = vector.shape_cast %269 : vector<1x1x256xf32> to vector<1x256xf32>
    %271 = vector.shape_cast %268 : vector<1x256xf32> to vector<1x1x256xf32>
    tpu.vector_store %arg21[%c0_340, %c0_341, %c0_342], %271 {strides = array<i32>} : memref<1x1x256xf32, #tpu.memory_space<vmem>>, vector<1x1x256xf32>,
    return
  }
  func.func @transform_0(%arg0: i32) -> (i32, i32, i32) {
    %c0_i32 = arith.constant 0 : i32
    %c0_i32_0 = arith.constant 0 : i32
    %c0_i32_1 = arith.constant 0 : i32
    return %arg0, %c0_i32, %c0_i32_0 : i32, i32, i32
  }
  func.func @transform_1(%arg0: i32) -> (i32, i32) {
    %c0_i32 = arith.constant 0 : i32
    %c0_i32_0 = arith.constant 0 : i32
    %c0_i32_1 = arith.constant 0 : i32
    return %c0_i32, %c0_i32_0 : i32, i32
  }
  func.func @transform_2(%arg0: i32) -> (i32, i32) {
    %c0_i32 = arith.constant 0 : i32
    %c0_i32_0 = arith.constant 0 : i32
    %c0_i32_1 = arith.constant 0 : i32
    return %c0_i32, %c0_i32_0 : i32, i32
  }
  func.func @transform_3(%arg0: i32) -> (i32, i32) {
    %c0_i32 = arith.constant 0 : i32
    %c0_i32_0 = arith.constant 0 : i32
    %c0_i32_1 = arith.constant 0 : i32
    return %c0_i32, %c0_i32_0 : i32, i32
  }
  func.func @transform_4(%arg0: i32) -> (i32, i32) {
    %c0_i32 = arith.constant 0 : i32
    %c0_i32_0 = arith.constant 0 : i32
    %c0_i32_1 = arith.constant 0 : i32
    return %c0_i32, %c0_i32_0 : i32, i32
  }
  func.func @transform_5(%arg0: i32) -> (i32, i32) {
    %c0_i32 = arith.constant 0 : i32
    %c0_i32_0 = arith.constant 0 : i32
    %c0_i32_1 = arith.constant 0 : i32
    return %c0_i32, %c0_i32_0 : i32, i32
  }
  func.func @transform_6(%arg0: i32) -> (i32, i32) {
    %c0_i32 = arith.constant 0 : i32
    %c0_i32_0 = arith.constant 0 : i32
    %c0_i32_1 = arith.constant 0 : i32
    return %c0_i32, %c0_i32_0 : i32, i32
  }
  func.func @transform_7(%arg0: i32) -> (i32, i32) {
    %c0_i32 = arith.constant 0 : i32
    %c0_i32_0 = arith.constant 0 : i32
    %c0_i32_1 = arith.constant 0 : i32
    return %c0_i32, %c0_i32_0 : i32, i32
  }
  func.func @transform_8(%arg0: i32) -> (i32, i32) {
    %c0_i32 = arith.constant 0 : i32
    %c0_i32_0 = arith.constant 0 : i32
    %c0_i32_1 = arith.constant 0 : i32
    return %c0_i32, %c0_i32_0 : i32, i32
  }
  func.func @transform_9(%arg0: i32) -> (i32, i32) {
    %c0_i32 = arith.constant 0 : i32
    %c0_i32_0 = arith.constant 0 : i32
    %c0_i32_1 = arith.constant 0 : i32
    return %c0_i32, %c0_i32_0 : i32, i32
  }
  func.func @transform_10(%arg0: i32) -> (i32, i32) {
    %c0_i32 = arith.constant 0 : i32
    %c0_i32_0 = arith.constant 0 : i32
    %c0_i32_1 = arith.constant 0 : i32
    return %c0_i32, %c0_i32_0 : i32, i32
  }
  func.func @transform_11(%arg0: i32) -> (i32, i32, i32) {
    %c0_i32 = arith.constant 0 : i32
    %c0_i32_0 = arith.constant 0 : i32
    %c0_i32_1 = arith.constant 0 : i32
    %c0_i32_2 = arith.constant 0 : i32
    return %c0_i32, %c0_i32_0, %c0_i32_1 : i32, i32, i32
  }
  func.func @transform_12(%arg0: i32) -> (i32, i32, i32) {
    %c0_i32 = arith.constant 0 : i32
    %c0_i32_0 = arith.constant 0 : i32
    %c0_i32_1 = arith.constant 0 : i32
    %c0_i32_2 = arith.constant 0 : i32
    return %c0_i32, %c0_i32_0, %c0_i32_1 : i32, i32, i32
  }
  func.func @transform_13(%arg0: i32) -> (i32, i32, i32) {
    %c0_i32 = arith.constant 0 : i32
    %c0_i32_0 = arith.constant 0 : i32
    %c0_i32_1 = arith.constant 0 : i32
    %c0_i32_2 = arith.constant 0 : i32
    return %c0_i32, %c0_i32_0, %c0_i32_1 : i32, i32, i32
  }
  func.func @transform_14(%arg0: i32) -> (i32, i32, i32) {
    %c0_i32 = arith.constant 0 : i32
    %c0_i32_0 = arith.constant 0 : i32
    %c0_i32_1 = arith.constant 0 : i32
    %c0_i32_2 = arith.constant 0 : i32
    return %c0_i32, %c0_i32_0, %c0_i32_1 : i32, i32, i32
  }
  func.func @transform_15(%arg0: i32) -> (i32, i32, i32) {
    %c0_i32 = arith.constant 0 : i32
    %c0_i32_0 = arith.constant 0 : i32
    %c0_i32_1 = arith.constant 0 : i32
    %c0_i32_2 = arith.constant 0 : i32
    return %c0_i32, %c0_i32_0, %c0_i32_1 : i32, i32, i32
  }
  func.func @transform_16(%arg0: i32) -> (i32, i32, i32) {
    %c0_i32 = arith.constant 0 : i32
    %c0_i32_0 = arith.constant 0 : i32
    %c0_i32_1 = arith.constant 0 : i32
    %c0_i32_2 = arith.constant 0 : i32
    return %c0_i32, %c0_i32_0, %c0_i32_1 : i32, i32, i32
  }
  func.func @transform_17(%arg0: i32) -> (i32, i32, i32) {
    %c0_i32 = arith.constant 0 : i32
    %c0_i32_0 = arith.constant 0 : i32
    %c0_i32_1 = arith.constant 0 : i32
    %c0_i32_2 = arith.constant 0 : i32
    return %c0_i32, %c0_i32_0, %c0_i32_1 : i32, i32, i32
  }
  func.func @transform_18(%arg0: i32) -> (i32, i32) {
    %c0_i32 = arith.constant 0 : i32
    %c0_i32_0 = arith.constant 0 : i32
    %c0_i32_1 = arith.constant 0 : i32
    return %c0_i32, %c0_i32_0 : i32, i32
  }
  func.func @transform_19(%arg0: i32) -> (i32, i32, i32) {
    %c0_i32 = arith.constant 0 : i32
    %c0_i32_0 = arith.constant 0 : i32
    %c0_i32_1 = arith.constant 0 : i32
    return %arg0, %c0_i32, %c0_i32_0 : i32, i32, i32
  }
  func.func @transform_20(%arg0: i32) -> (i32, i32, i32) {
    %c0_i32 = arith.constant 0 : i32
    %c0_i32_0 = arith.constant 0 : i32
    %c0_i32_1 = arith.constant 0 : i32
    return %arg0, %c0_i32, %c0_i32_0 : i32, i32, i32
  }
}

</mosaic_0001>

<bundles_post_ra>
// kernel: cae_forward.1
= control target key start
LH: loop header
LB: loop body
LE: loop exit
PB: predicated region body
PF: predicated region fallthrough
CT: control target
= control target key end

     0   :  { %s12751_s0 = inlined_call_operand.vmem [shape: f32[2,8,256], index: 0, kind: input, shape index: {}]   ;;  %s12752_s1 = inlined_call_operand.vmem [shape: f32[32,72], index: 1, kind: input, shape index: {}]   ;;  %s12753_s2 = inlined_call_operand.vmem [shape: f32[32,1], index: 2, kind: input, shape index: {}]   ;;  %s12754_s3 = inlined_call_operand.vmem [shape: f32[32,288], index: 3, kind: input, shape index: {}]   ;;  %s12755_s4 = inlined_call_operand.vmem [shape: f32[32,1], index: 4, kind: input, shape index: {}]   ;;  %s12756_s5 = inlined_call_operand.vmem [shape: f32[16,288], index: 5, kind: input, shape index: {}]   ;;  %s12757_s6 = inlined_call_operand.vmem [shape: f32[16,1], index: 6, kind: input, shape index: {}]   ;;  %s12758_s7 = inlined_call_operand.vmem [shape: f32[32,144], index: 7, kind: input, shape index: {}]   ;;  %s12759_s8 = inlined_call_operand.vmem [shape: f32[32,1], index: 8, kind: input, shape index: {}]   ;;  %s12760_s9 = inlined_call_operand.vmem [shape: f32[8,288], index: 9, kind: input, shape index: {}]   ;;  %s12761_s10 = inlined_call_operand.vmem [shape: f32[8,1], index: 10, kind: input, shape index: {}]   ;;  %s12762_s11 = inlined_call_operand.hbm [shape: f32[9,256,256], index: 11, kind: input, shape index: {}]   ;;  %s12763_s12 = inlined_call_operand.hbm [shape: f32[9,64,64], index: 12, kind: input, shape index: {}]   ;;  %s12764_s13 = inlined_call_operand.hbm [shape: f32[9,16,16], index: 13, kind: input, shape index: {}]   ;;  %s12765_s14 = inlined_call_operand.hbm [shape: f32[9,4,4], index: 14, kind: input, shape index: {}]   ;;  %s12766_s15 = inlined_call_operand.hbm [shape: f32[4,256,64], index: 15, kind: input, shape index: {}]   ;;  %s12767_s16 = inlined_call_operand.hbm [shape: f32[4,64,16], index: 16, kind: input, shape index: {}]   ;;  %s12768_s17 = inlined_call_operand.hbm [shape: f32[4,16,4], index: 17, kind: input, shape index: {}]   ;;  %s12769_s18 = inlined_call_operand.hbm [shape: f32[4,256], index: 18, kind: input, shape index: {}]   ;;  %s12770_s19 = inlined_call_operand.vmem [shape: f32[2,16,4], index: 19, kind: output, shape index: {0}]   ;;  %s12771_s20 = inlined_call_operand.vmem [shape: f32[2,1,256], index: 20, kind: output, shape index: {1}]  }
   0x1   :  { %12785 = sst [smem:[#allocation26_spill]] %s12751_s0 }
   0x2   :  { %12786 = sst [smem:[#allocation27_spill]] %s12752_s1 }
   0x3   :  { %12787 = sst [smem:[#allocation28_spill]] %s12753_s2 }
   0x4   :  { %12788 = sst [smem:[#allocation29_spill]] %s12754_s3 }
   0x5   :  { %12789 = sst [smem:[#allocation30_spill]] %s12755_s4 }
   0x6   :  { %12790 = sst [smem:[#allocation31_spill]] %s12758_s7 }
   0x7   :  { %12791 = sst [smem:[#allocation32_spill]] %s12760_s9 }
   0x8   :  { %12792 = sst [smem:[#allocation33_spill]] %s12763_s12 }
   0x9   :  { %12793 = sst [smem:[#allocation34_spill]] %s12765_s14 }
   0xa   :  { %12794 = sst [smem:[#allocation35_spill]] %s12767_s16 }
   0xb   :  { %12795 = sst [smem:[#allocation36_spill]] %s12770_s19 }
   0xc   :  { %12796 = sst [smem:[#allocation37_spill]] %s12771_s20 }
   0xd   :  { %26 = vsyncpa [#allocation8], 0 }
   0xe   :  { %27 = vsyncpa [#allocation10], 0 }
   0xf   :  { %28 = vsyncpa [#allocation13], 0 }
  0x10   :  { %29 = vsyncpa [#allocation16], 0 }
  0x11   :  { %30 = vsyncpa [#allocation19], 0  ;;  %s11825_s1 = smov 0  }
  0x12 LB: > { %12797 = sst [smem:[#allocation25_spill]] %s11700_s1  ;;  %s11702_s22 = smov [#allocation9]   ;;  %s11700_s1 = sphi %s11825_s1, %s36_s1  }
  0x13   : > { %s552_s23 = sshll.u32 %s11702_s22, 4  ;;  %s11831_s24 = sadd.s32 4294967295, %s11700_s1   ;;  %s11836_s23 = int_to_ptr.vmem [resolvable:$true] %s552_s23 }
  0x14   : > { %p8434_p0 = scmp.ge.s32.totalorder %s11700_s1, 1  ;;  %p497_p1 = scmp.lt.s32.totalorder %s11700_s1, 3 }
  0x15   : > { %p12783_p2 = scmp.eq.s32.totalorder %s11831_s24, 0  ;;  %s11703_s25 = smov [#allocation12]  }
  0x16   : > { %p11838_p3 = pnand %p8434_p0, %p497_p1  ;;  %s578_s3 = sshll.u32 %s11703_s25, 4  ;;  %s11844_s3 = int_to_ptr.vmem [resolvable:$true] %s578_s3 }
  0x17   : > { %s11704_s27 = smov [#allocation15]   ;;  %s12800_s12 = sld [smem:[#allocation33_spill]] }
  0x18   : > { %s12798_s2 = scalar_select %p11838_p3, 1, 0 }
  0x19   : > { %p11378_p4 = pneg %p11838_p3  ;;  %s11852_s28 = sshll.u32 %s11704_s27, 4  ;;  %s605_s28 = int_to_ptr.vmem [resolvable:$true] %s11852_s28 }
  0x1b   : > { %p11848_p5 = pnand %p12783_p2, %p11378_p4 }
  0x1d   : > { %s11450_s30 = scalar_lea.hbm %s12800_s12, 9216  ;;  %p11862_p7 = pneg %p11848_p5 }
  0x1e   : > { %p11451_p6 = scmp.ne.s32.totalorder %s12800_s12, %s11450_s30  ;;  %p11457_p10 = scmp.lt.u32.totalorder %s11450_s30, %s12800_s12 }
  0x20   : > { %p11453_p8 = pnand %p11862_p7, %p11451_p6 }
  0x22   : > { %p11454_p9 = pneg %p11453_p8 }
  0x24   : > { %p11459_p11 = pnand %p11457_p10, %p11454_p9 }
  0x26   : > { %11462 = shalt.err (!%p11459_p11)
}
  0x27   : > { %s11463_s4 = scalar_lea.vmem %s11836_s23, 9216  ;;  %p11471_p1 = scmp.lt.s32.totalorder %s11836_s23, %s11836_s23 }
  0x28   : > { %p11464_p12 = scmp.ne.s32.totalorder %s11836_s23, %s11463_s4  ;;  %p11472_p4 = scmp.lt.s32.totalorder %s11463_s4, %s11463_s4 }
  0x2a   : > { %p11466_p13 = pnand %p11464_p12, %p11862_p7  ;;  %p11473_p6 = por %p11472_p4, %p11471_p1 }
  0x2c   : > { %p11467_p0 = pneg %p11466_p13 }
  0x2e   : > { %p11474_p8 = pnand %p11473_p6, %p11467_p0 }
  0x30   : > { %11477 = shalt.err (!%p11474_p8)
}
  0x31   : > { %s12779_s29 = smov 128   ;;  %s12781_s30 = smov 8  }
  0x32   : > { %11384 = dma.hbm_to_vmem [thread:$0]  (!%p11848_p5), %s12800_s12, 9216, %s11836_s23, [#allocation10], %s12779_s29, %s12779_s29, %s12781_s30  }
  0x33   : > { %s12802_s14 = sld [smem:[#allocation34_spill]] }
  0x39   : > { %s11478_s4 = scalar_lea.hbm %s12802_s14, 576 }
  0x3a   : > { %p11479_p9 = scmp.ne.s32.totalorder %s12802_s14, %s11478_s4  ;;  %p11485_p12 = scmp.lt.u32.totalorder %s11478_s4, %s12802_s14 }
  0x3c   : > { %p11481_p10 = pnand %p11479_p9, %p11862_p7 }
  0x3e   : > { %p11482_p11 = pneg %p11481_p10 }
  0x40   : > { %p11487_p13 = pnand %p11485_p12, %p11482_p11 }
  0x42   : > { %11490 = shalt.err (!%p11487_p13)
}
  0x43   : > { %s11491_s23 = scalar_lea.vmem %s11844_s3, 576  ;;  %p11499_p6 = scmp.lt.s32.totalorder %s11844_s3, %s11844_s3 }
  0x44   : > { %p11492_p0 = scmp.ne.s32.totalorder %s11844_s3, %s11491_s23  ;;  %p11500_p8 = scmp.lt.s32.totalorder %s11491_s23, %s11491_s23 }
  0x46   : > { %p11494_p1 = pnand %p11492_p0, %p11862_p7  ;;  %p11501_p9 = por %p11500_p8, %p11499_p6 }
  0x48   : > { %p11495_p4 = pneg %p11494_p1 }
  0x4a   : > { %p11502_p10 = pnand %p11501_p9, %p11495_p4 }
  0x4c   : > { %11505 = shalt.err (!%p11502_p10)
}
  0x4d   : > { %s11707_s20 = smov 64   ;;  %s11708_s7 = smov 4  }
  0x4e   : > { %11390 = dma.hbm_to_vmem [thread:$0]  (!%p11848_p5), %s12802_s14, 576, %s11844_s3, [#allocation13], %s11707_s20, %s11707_s20, %s11708_s7  }
  0x4f   : > { %s11709_s0 = smov [#allocation7]   ;;  %s12803_s16 = sld [smem:[#allocation35_spill]] }
  0x50   : > { %s539_s21 = sshll.u32 %s11709_s0, 4  ;;  %s540_s21 = int_to_ptr.vmem [resolvable:$true] %s539_s21 }
  0x55   : > { %s11506_s4 = scalar_lea.hbm %s12803_s16, 4096 }
  0x56   : > { %p11507_p11 = scmp.ne.s32.totalorder %s12803_s16, %s11506_s4  ;;  %p11513_p0 = scmp.lt.u32.totalorder %s11506_s4, %s12803_s16 }
  0x58   : > { %p11509_p12 = pnand %p11507_p11, %p11862_p7 }
  0x5a   : > { %p11510_p13 = pneg %p11509_p12 }
  0x5c   : > { %p11515_p1 = pnand %p11513_p0, %p11510_p13 }
  0x5e   : > { %11518 = shalt.err (!%p11515_p1)
}
  0x5f   : > { %s11519_s3 = scalar_lea.vmem %s605_s28, 4096  ;;  %p11527_p9 = scmp.lt.s32.totalorder %s605_s28, %s605_s28 }
  0x60   : > { %p11520_p4 = scmp.ne.s32.totalorder %s605_s28, %s11519_s3  ;;  %p11528_p10 = scmp.lt.s32.totalorder %s11519_s3, %s11519_s3 }
  0x62   : > { %p11522_p6 = pnand %p11520_p4, %p11862_p7  ;;  %p11529_p2 = por %p11528_p10, %p11527_p9 }
  0x64   : > { %p11523_p8 = pneg %p11522_p6 }
  0x66   : > { %p11530_p3 = pnand %p11529_p2, %p11523_p8 }
  0x68   : > { %11533 = shalt.err (!%p11530_p3)
}
  0x69   : > { %s12804_s29 = smov 8   ;;  %s12805_s20 = smov 128  }
  0x6a   : > { %11396 = dma.hbm_to_vmem [thread:$0]  (!%p11848_p5), %s12803_s16, 4096, %s605_s28, [#allocation16], %s12805_s20, %s12805_s20, %s12804_s29  }
  0x6b   : > { %s11534_s1 = scalar_lea.hbm %s12762_s11, 73728 }
  0x6c   : > { %p11535_p2 = scmp.ne.s32.totalorder %s12762_s11, %s11534_s1  ;;  %p11541_p12 = scmp.lt.u32.totalorder %s11534_s1, %s12762_s11 }
  0x6e   : > { %p11537_p3 = pnand %p11535_p2, %p11862_p7 }
  0x70   : > { %p11538_p11 = pneg %p11537_p3 }
  0x72   : > { %p11543_p13 = pnand %p11541_p12, %p11538_p11 }
  0x74   : > { %11546 = shalt.err (!%p11543_p13)
}
  0x75   : > { %s11547_s23 = scalar_lea.vmem %s540_s21, 73728  ;;  %p11555_p6 = scmp.lt.s32.totalorder %s540_s21, %s540_s21 }
  0x76   : > { %p11548_p0 = scmp.ne.s32.totalorder %s540_s21, %s11547_s23  ;;  %p11556_p8 = scmp.lt.s32.totalorder %s11547_s23, %s11547_s23 }
  0x78   : > { %p11550_p1 = pnand %p11548_p0, %p11862_p7  ;;  %p11557_p9 = por %p11556_p8, %p11555_p6 }
  0x7a   : > { %p11551_p4 = pneg %p11550_p1 }
  0x7c   : > { %p11558_p10 = pnand %p11557_p9, %p11551_p4 }
  0x7e   : > { %11561 = shalt.err (!%p11558_p10)
}
  0x7f   : > { %s11710_s28 = smov 256   ;;  %s11711_s3 = smov 16  }
  0x80   : > { %11381 = dma.hbm_to_vmem [thread:$0]  (!%p11848_p5), %s12762_s11, 73728, %s540_s21, [#allocation8], %s11710_s28, %s11710_s28, %s11711_s3  }
  0x81   : > { %s11712_s7 = smov [#allocation11]   ;;  %s11713_s1 = smov [#allocation14]  }
  0x82   : > { %s565_s9 = sshll.u32 %s11712_s7, 4  ;;  %s591_s0 = sshll.u32 %s11713_s1, 4  ;;  %s566_s9 = int_to_ptr.vmem [resolvable:$true] %s565_s9  ;;  %s592_s0 = int_to_ptr.vmem [resolvable:$true] %s591_s0 }
  0x83   : > { %s11562_s4 = scalar_lea.hbm %s12764_s13, 2304 }
  0x84   : > { %p11563_p2 = scmp.ne.s32.totalorder %s12764_s13, %s11562_s4  ;;  %p11569_p12 = scmp.lt.u32.totalorder %s11562_s4, %s12764_s13 }
  0x86   : > { %p11565_p3 = pnand %p11563_p2, %p11862_p7 }
  0x88   : > { %p11566_p11 = pneg %p11565_p3 }
  0x8a   : > { %p11571_p13 = pnand %p11569_p12, %p11566_p11 }
  0x8c   : > { %11574 = shalt.err (!%p11571_p13)
}
  0x8d   : > { %s11575_s21 = scalar_lea.vmem %s566_s9, 2304  ;;  %p11583_p6 = scmp.lt.s32.totalorder %s566_s9, %s566_s9 }
  0x8e   : > { %p11576_p0 = scmp.ne.s32.totalorder %s566_s9, %s11575_s21  ;;  %p11584_p8 = scmp.lt.s32.totalorder %s11575_s21, %s11575_s21 }
  0x90   : > { %p11578_p1 = pnand %p11576_p0, %p11862_p7  ;;  %p11585_p9 = por %p11584_p8, %p11583_p6 }
  0x92   : > { %p11579_p4 = pneg %p11578_p1 }
  0x94   : > { %p11586_p10 = pnand %p11585_p9, %p11579_p4 }
  0x96   : > { %11589 = shalt.err (!%p11586_p10)
}
  0x97   : > { %11387 = dma.hbm_to_vmem [thread:$0]  (!%p11848_p5), %s12764_s13, 2304, %s566_s9, [#allocation10], %s12805_s20, %s12805_s20, %s12804_s29  }
  0x98   : > { %s11590_s3 = scalar_lea.hbm %s12766_s15, 16384 }
  0x99   : > { %p11591_p2 = scmp.ne.s32.totalorder %s12766_s15, %s11590_s3  ;;  %p11597_p12 = scmp.lt.u32.totalorder %s11590_s3, %s12766_s15 }
  0x9b   : > { %p11593_p3 = pnand %p11591_p2, %p11862_p7 }
  0x9d   : > { %p11594_p11 = pneg %p11593_p3 }
  0x9f   : > { %p11599_p13 = pnand %p11597_p12, %p11594_p11 }
  0xa1   : > { %11602 = shalt.err (!%p11599_p13)
}
  0xa2   : > { %s11603_s25 = scalar_lea.vmem %s592_s0, 16384  ;;  %p11611_p6 = scmp.lt.s32.totalorder %s592_s0, %s592_s0 }
  0xa3   : > { %p11604_p0 = scmp.ne.s32.totalorder %s592_s0, %s11603_s25  ;;  %p11612_p8 = scmp.lt.s32.totalorder %s11603_s25, %s11603_s25 }
  0xa5   : > { %p11606_p1 = pnand %p11604_p0, %p11862_p7  ;;  %p11613_p9 = por %p11612_p8, %p11611_p6 }
  0xa7   : > { %p11607_p4 = pneg %p11606_p1 }
  0xa9   : > { %p11614_p10 = pnand %p11613_p9, %p11607_p4 }
  0xab   : > { %11617 = shalt.err (!%p11614_p10)
}
  0xac   : > { %11393 = dma.hbm_to_vmem [thread:$0]  (!%p11848_p5), %s12766_s15, 16384, %s592_s0, [#allocation13], %s12805_s20, %s12805_s20, %s12804_s29  }
  0xad   : > { %s11714_s4 = smov [#allocation17]   ;;  %s11715_s21 = smov [#allocation18]  }
  0xae   : > { %s617_s23 = sshll.u32 %s11714_s4, 4  ;;  %s631_s14 = sshll.u32 %s11715_s21, 4  ;;  %s618_s23 = int_to_ptr.vmem [resolvable:$true] %s617_s23  ;;  %s632_s14 = int_to_ptr.vmem [resolvable:$true] %s631_s14 }
  0xaf   : > { %s11618_s28 = scalar_lea.hbm %s12768_s17, 1024 }
  0xb0   : > { %p11619_p2 = scmp.ne.s32.totalorder %s12768_s17, %s11618_s28  ;;  %p11625_p12 = scmp.lt.u32.totalorder %s11618_s28, %s12768_s17 }
  0xb2   : > { %p11621_p3 = pnand %p11619_p2, %p11862_p7 }
  0xb4   : > { %p11622_p11 = pneg %p11621_p3 }
  0xb6   : > { %p11627_p13 = pnand %p11625_p12, %p11622_p11 }
  0xb8   : > { %11630 = shalt.err (!%p11627_p13)
}
  0xb9   : > { %s11631_s0 = scalar_lea.vmem %s618_s23, 1024  ;;  %p11639_p6 = scmp.lt.s32.totalorder %s618_s23, %s618_s23 }
  0xba   : > { %p11632_p0 = scmp.ne.s32.totalorder %s618_s23, %s11631_s0  ;;  %p11640_p8 = scmp.lt.s32.totalorder %s11631_s0, %s11631_s0 }
  0xbc   : > { %p11634_p1 = pnand %p11632_p0, %p11862_p7  ;;  %p11641_p9 = por %p11640_p8, %p11639_p6 }
  0xbe   : > { %p11635_p4 = pneg %p11634_p1 }
  0xc0   : > { %p11642_p10 = pnand %p11641_p9, %p11635_p4 }
  0xc2   : > { %11645 = shalt.err (!%p11642_p10)
}
  0xc3   : > { %11399 = dma.hbm_to_vmem [thread:$0]  (!%p11848_p5), %s12768_s17, 1024, %s618_s23, [#allocation16], %s12805_s20, %s12805_s20, %s12804_s29  }
  0xc4   : > { %s11646_s4 = scalar_lea.hbm %s12769_s18, 128 }
  0xc5   : > { %p11647_p2 = scmp.ne.s32.totalorder %s12769_s18, %s11646_s4  ;;  %p11653_p12 = scmp.lt.u32.totalorder %s11646_s4, %s12769_s18 }
  0xc7   : > { %p11649_p3 = pnand %p11647_p2, %p11862_p7 }
  0xc9   : > { %p11650_p11 = pneg %p11649_p3 }
  0xcb   : > { %p11655_p13 = pnand %p11653_p12, %p11650_p11 }
  0xcd   : > { %11658 = shalt.err (!%p11655_p13)
}
  0xce   : > { %s11659_s3 = scalar_lea.vmem %s632_s14, 128  ;;  %p11667_p6 = scmp.lt.s32.totalorder %s632_s14, %s632_s14 }
  0xcf   : > { %p11660_p0 = scmp.ne.s32.totalorder %s632_s14, %s11659_s3  ;;  %p11668_p8 = scmp.lt.s32.totalorder %s11659_s3, %s11659_s3 }
  0xd1   : > { %p11662_p1 = pnand %p11660_p0, %p11862_p7  ;;  %p11669_p9 = por %p11668_p8, %p11667_p6 }
  0xd3   : > { %p11663_p4 = pneg %p11662_p1 }
  0xd5   : > { %p11670_p10 = pnand %p11669_p9, %p11663_p4 }
  0xd7   : > { %11673 = shalt.err (!%p11670_p10)
}
  0xd8   : > { %11402 = dma.hbm_to_vmem [thread:$0]  (!%p11848_p5), %s12769_s18, 128, %s632_s14, [#allocation19]  }
  0xd9   : > { %p12806_p2 = scmp.ne.s32.totalorder %s12798_s2, 0 }
  0xda   : > { %p12807_p3 = scmp.eq.s32.totalorder (!%p12806_p2), %s11831_s24, 0 }
  0xdb   : > { %652 = sbr.rel (%p12806_p2) target bundleno = 4177 (0x1051), region = 96 }
  0xe2   : > { %11679 = dma.done.wait (%p12807_p3), [#allocation8], 73728   ;;  %p12808_p7 = pmov %p12807_p3 }
  0xe3   : > { %p12809_p11 = pmov %p12807_p3 }
  0xe4   : > { %11681 = vsyncadd (%p12808_p7), [#allocation8], 4294893568 }
  0xe5   : > { %11683 = dma.done.wait (%p12809_p11), [#allocation10], 11520   ;;  %p12810_p12 = pmov %p12807_p3 }
  0xe6   : > { %p12811_p13 = pmov %p12807_p3 }
  0xe7   : > { %11685 = vsyncadd (%p12810_p12), [#allocation10], 4294955776 }
  0xe8   : > { %11687 = dma.done.wait (%p12811_p13), [#allocation13], 16960   ;;  %p12812_p5 = pmov %p12807_p3 }
  0xe9   : > { %p12813_p0 = pmov %p12807_p3 }
  0xea   : > { %11689 = vsyncadd (%p12812_p5), [#allocation13], 4294950336 }
  0xeb   : > { %11691 = dma.done.wait (%p12813_p0), [#allocation16], 5120   ;;  %p12814_p1 = pmov %p12813_p0 }
  0xec   : > { %p12815_p4 = pmov %p12813_p0 }
  0xed   : > { %11693 = vsyncadd (%p12814_p1), [#allocation16], 4294962176 }
  0xee   : > { %11695 = dma.done.wait (%p12815_p4), [#allocation19], 128   ;;  %p12816_p6 = pmov %p12813_p0 }
  0xef   : > { %v759_v0 = vld [vmem:[#allocation7 + $0x8] sm:$0xff]  ;;  %v761_v1 = vld [vmem:[#allocation7 + $0x18] sm:$0xff]  ;;  %v758_v5 = vld [vmem:[#allocation7] sm:$0xff]  ;;  %p742_p8 = scmp.lt.s32.totalorder %s11831_s24, 1  ;;  %s12817_s23 = sld [smem:[#allocation26_spill]]  ;;  %vm2045_vm0 = vcmask 588800  }
  0xf0   : > { %11697 = vsyncadd (%p12816_p6), [#allocation19], 4294967168  ;;  %v897_v2 = vld [vmem:[#allocation7 + $0x208] sm:$0xff]  ;;  %v9605_v3 = vpack.c.bf16 %v761_v1, %v759_v0  ;;  %v899_v4 = vld [vmem:[#allocation7 + $0x218] sm:$0xff]  ;;  %s12818_s7 = sld [smem:[#allocation28_spill]]  ;;  %s12819_s19 = sld [smem:[#allocation30_spill]] }
  0xf1   : > { %v760_v6 = vld [vmem:[#allocation7 + $0x10] sm:$0xff]  ;;  %v9669_v7 = vpack.c.bf16 %v899_v4, %v897_v2  ;;  %v896_v9 = vld [vmem:[#allocation7 + $0x200] sm:$0xff]  ;;  %v763_v11 = vld [vmem:[#allocation7 + $0x28] sm:$0xff]  ;;  %s12828_s24 = smov (!%p742_p8, %s11831_s24), 1  ;;  %s12820_s26 = sld [smem:[#allocation27_spill]]  ;;  %vm2646_vm1 = vcmask 523264  }
  0xf2   : > { %v9607_v8 = vpack.c.bf16 %v760_v6, %v758_v5  ;;  %v898_v10 = vld [vmem:[#allocation7 + $0x210] sm:$0xff]  ;;  %9606 = vmatprep.subr.bf16.mxu0 %v9605_v3  ;;  %v765_v13 = vld [vmem:[#allocation7 + $0x38] sm:$0xff]  ;;  %v901_v14 = vld [vmem:[#allocation7 + $0x228] sm:$0xff]  ;;  %s8604_s2 = sshll.u32 %s12828_s24, 4  ;;  %s12821_s9 = sld [smem:[#allocation29_spill]]  ;;  %vm3604_vm2 = vcmask 261120  }
  0xf3   : > { %v9671_v12 = vpack.c.bf16 %v898_v10, %v896_v9  ;;  %v903_v15 = vld [vmem:[#allocation7 + $0x238] sm:$0xff]  ;;  %9670 = vmatprep.subr.bf16.mxu1 %v9669_v7  ;;  %v9609_v16 = vpack.c.bf16 %v765_v13, %v763_v11  ;;  %v762_v18 = vld [vmem:[#allocation7 + $0x20] sm:$0xff]  ;;  %v764_v19 = vld [vmem:[#allocation7 + $0x30] sm:$0xff]  ;;  %vm4192_vm3 = vcmask 130048   ;;  %vm5573_vm4 = vcmask 1043456   ;;  %s12822_s28 = sld [smem:[#allocation36_spill]] }
  0xf4   : > { %9608 = vmatpush1.bf16.msra.mxu0 %v9607_v8  ;;  %v9673_v17 = vpack.c.bf16 %v903_v15, %v901_v14  ;;  %v900_v20 = vld [vmem:[#allocation7 + $0x220] sm:$0xff]  ;;  %v9611_v21 = vpack.c.bf16 %v764_v19, %v762_v18  ;;  %v902_v22 = vld [vmem:[#allocation7 + $0x230] sm:$0xff]  ;;  %v767_v23 = vld [vmem:[#allocation7 + $0x48] sm:$0xff]  ;;  %vm5563_vm5 = vcmask 31744   ;;  %s12823_s20 = sld [smem:[#allocation31_spill]]  ;;  %s12824_s22 = sld [smem:[#allocation32_spill]] }
  0xf5   : > { %9672 = vmatpush1.bf16.msra.mxu1 %v9671_v12  ;;  %v769_v24 = vld [vmem:[#allocation7 + $0x58] sm:$0xff]  ;;  %9610 = vmatprep.subr.bf16.mxu0 %v9609_v16  ;;  %v9675_v25 = vpack.c.bf16 %v902_v22, %v900_v20  ;;  %v905_v27 = vld [vmem:[#allocation7 + $0x248] sm:$0xff]  ;;  %v766_v29 = vld [vmem:[#allocation7 + $0x40] sm:$0xff]  ;;  %s12064_s14 = scalar_lea.vmem %s12817_s23, %s8604_s2  ;;  %s8457_s0 = sshll.u32 %s12828_s24, 1 }
  0xf6   : > { %9674 = vmatprep.subr.bf16.mxu1 %v9673_v17  ;;  %v9613_v26 = vpack.c.bf16 %v769_v24, %v767_v23  ;;  %v907_v28 = vld [vmem:[#allocation7 + $0x258] sm:$0xff]  ;;  %v768_v31 = vld [vmem:[#allocation7 + $0x50] sm:$0xff]  ;;  %v904_v32 = vld [vmem:[#allocation7 + $0x240] sm:$0xff]  ;;  %s12825_s27 = sld [smem:[#allocation37_spill]] }
  0xf7   : > { %v9677_v30 = vpack.c.bf16 %v907_v28, %v905_v27  ;;  %v906_v33 = vld [vmem:[#allocation7 + $0x250] sm:$0xff]  ;;  %v9615_v34 = vpack.c.bf16 %v768_v31, %v766_v29  ;;  %v771_v35 = vld [vmem:[#allocation7 + $0x68] sm:$0xff]  ;;  %v773_v36 = vld [vmem:[#allocation7 + $0x78] sm:$0xff] }
  0xf8   : > { %9612 = vmatpush1.bf16.msra.mxu0 %v9611_v21  ;;  %v909_v37 = vld [vmem:[#allocation7 + $0x268] sm:$0xff]  ;;  %v9679_v38 = vpack.c.bf16 %v906_v33, %v904_v32  ;;  %v9617_v39 = vpack.c.bf16 %v773_v36, %v771_v35  ;;  %v911_v40 = vld [vmem:[#allocation7 + $0x278] sm:$0xff]  ;;  %v770_v41 = vld [vmem:[#allocation7 + $0x60] sm:$0xff] }
  0xf9   : > { %9676 = vmatpush1.bf16.msra.mxu1 %v9675_v25  ;;  %9614 = vmatprep.subr.bf16.mxu0 %v9613_v26  ;;  %v772_v42 = vld [vmem:[#allocation7 + $0x70] sm:$0xff]  ;;  %v9681_v43 = vpack.c.bf16 %v911_v40, %v909_v37  ;;  %v908_v44 = vld [vmem:[#allocation7 + $0x260] sm:$0xff]  ;;  %v775_v46 = vld [vmem:[#allocation7 + $0x88] sm:$0xff]  ;;  %s751_s3 = scalar_lea.vmem %s12822_s28, %s8604_s2 }
  0xfa   : > { %9678 = vmatprep.subr.bf16.mxu1 %v9677_v30  ;;  %v910_v45 = vld [vmem:[#allocation7 + $0x270] sm:$0xff]  ;;  %v777_v47 = vld [vmem:[#allocation7 + $0x98] sm:$0xff]  ;;  %v913_v48 = vld [vmem:[#allocation7 + $0x288] sm:$0xff]  ;;  %v9619_v50 = vpack.c.bf16 %v772_v42, %v770_v41 }
  0xfb   : > { %v915_v49 = vld [vmem:[#allocation7 + $0x298] sm:$0xff]  ;;  %v9683_v51 = vpack.c.bf16 %v910_v45, %v908_v44  ;;  %v9621_v52 = vpack.c.bf16 %v777_v47, %v775_v46  ;;  %v774_v53 = vld [vmem:[#allocation7 + $0x80] sm:$0xff]  ;;  %v776_v54 = vld [vmem:[#allocation7 + $0x90] sm:$0xff] }
  0xfc   : > { %9616 = vmatpush1.bf16.msra.mxu0 %v9615_v34  ;;  %v912_v55 = vld [vmem:[#allocation7 + $0x280] sm:$0xff]  ;;  %v9685_v56 = vpack.c.bf16 %v915_v49, %v913_v48  ;;  %v914_v57 = vld [vmem:[#allocation7 + $0x290] sm:$0xff]  ;;  %v779_v58 = vld [vmem:[#allocation7 + $0xa8] sm:$0xff]  ;;  %v9623_v62 = vpack.c.bf16 %v776_v54, %v774_v53  ;;  %s755_s4 = scalar_lea.vmem %s12825_s27, %s8457_s0 }
  0xfd   : > { %9680 = vmatpush1.bf16.msra.mxu1 %v9679_v38  ;;  %9618 = vmatprep.subr.bf16.mxu0 %v9617_v39  ;;  %v781_v59 = vld [vmem:[#allocation7 + $0xb8] sm:$0xff]  ;;  %v917_v60 = vld [vmem:[#allocation7 + $0x2a8] sm:$0xff]  ;;  %v9687_v63 = vpack.c.bf16 %v914_v57, %v912_v55  ;;  %v778_v1 = vld [vmem:[#allocation7 + $0xa0] sm:$0xff] }
  0xfe   : > { %9682 = vmatprep.subr.bf16.mxu1 %v9681_v43  ;;  %v919_v61 = vld [vmem:[#allocation7 + $0x2b8] sm:$0xff]  ;;  %v9625_v0 = vpack.c.bf16 %v781_v59, %v779_v58  ;;  %v780_v2 = vld [vmem:[#allocation7 + $0xb0] sm:$0xff]  ;;  %v916_v3 = vld [vmem:[#allocation7 + $0x2a0] sm:$0xff] }
  0xff   : > { %v9689_v4 = vpack.c.bf16 %v919_v61, %v917_v60  ;;  %v918_v5 = vld [vmem:[#allocation7 + $0x2b0] sm:$0xff]  ;;  %v783_v6 = vld [vmem:[#allocation7 + $0xc8] sm:$0xff]  ;;  %v785_v7 = vld [vmem:[#allocation7 + $0xd8] sm:$0xff]  ;;  %v9627_v10 = vpack.c.bf16 %v780_v2, %v778_v1 }
 0x100   : > { %9620 = vmatpush1.bf16.msra.mxu0 %v9619_v50  ;;  %v921_v8 = vld [vmem:[#allocation7 + $0x2c8] sm:$0xff]  ;;  %v923_v9 = vld [vmem:[#allocation7 + $0x2d8] sm:$0xff]  ;;  %v9691_v11 = vpack.c.bf16 %v918_v5, %v916_v3  ;;  %v9629_v12 = vpack.c.bf16 %v785_v7, %v783_v6  ;;  %v782_v13 = vld [vmem:[#allocation7 + $0xc0] sm:$0xff] }
 0x101   : > { %9684 = vmatpush1.bf16.msra.mxu1 %v9683_v51  ;;  %9622 = vmatprep.subr.bf16.mxu0 %v9621_v52  ;;  %v784_v14 = vld [vmem:[#allocation7 + $0xd0] sm:$0xff]  ;;  %v920_v15 = vld [vmem:[#allocation7 + $0x2c0] sm:$0xff]  ;;  %v9693_v16 = vpack.c.bf16 %v923_v9, %v921_v8  ;;  %v787_v18 = vld [vmem:[#allocation7 + $0xe8] sm:$0xff] }
 0x102   : > { %9686 = vmatprep.subr.bf16.mxu1 %v9685_v56  ;;  %v922_v17 = vld [vmem:[#allocation7 + $0x2d0] sm:$0xff]  ;;  %v789_v19 = vld [vmem:[#allocation7 + $0xf8] sm:$0xff]  ;;  %v925_v20 = vld [vmem:[#allocation7 + $0x2e8] sm:$0xff]  ;;  %v9631_v22 = vpack.c.bf16 %v784_v14, %v782_v13 }
 0x103   : > { %v927_v21 = vld [vmem:[#allocation7 + $0x2f8] sm:$0xff]  ;;  %v9695_v23 = vpack.c.bf16 %v922_v17, %v920_v15  ;;  %v9633_v24 = vpack.c.bf16 %v789_v19, %v787_v18  ;;  %v786_v25 = vld [vmem:[#allocation7 + $0xe0] sm:$0xff]  ;;  %v788_v26 = vld [vmem:[#allocation7 + $0xf0] sm:$0xff] }
 0x104   : > { %9624 = vmatpush1.bf16.msra.mxu0 %v9623_v62  ;;  %v924_v27 = vld [vmem:[#allocation7 + $0x2e0] sm:$0xff]  ;;  %v9697_v28 = vpack.c.bf16 %v927_v21, %v925_v20  ;;  %v926_v29 = vld [vmem:[#allocation7 + $0x2f0] sm:$0xff]  ;;  %v791_v30 = vld [vmem:[#allocation7 + $0x108] sm:$0xff]  ;;  %v9635_v34 = vpack.c.bf16 %v788_v26, %v786_v25 }
 0x105   : > { %9688 = vmatpush1.bf16.msra.mxu1 %v9687_v63  ;;  %9626 = vmatprep.subr.bf16.mxu0 %v9625_v0  ;;  %v793_v31 = vld [vmem:[#allocation7 + $0x118] sm:$0xff]  ;;  %v929_v32 = vld [vmem:[#allocation7 + $0x308] sm:$0xff]  ;;  %v9699_v35 = vpack.c.bf16 %v926_v29, %v924_v27  ;;  %v790_v37 = vld [vmem:[#allocation7 + $0x100] sm:$0xff] }
 0x106   : > { %9690 = vmatprep.subr.bf16.mxu1 %v9689_v4  ;;  %v931_v33 = vld [vmem:[#allocation7 + $0x318] sm:$0xff]  ;;  %v9637_v36 = vpack.c.bf16 %v793_v31, %v791_v30  ;;  %v792_v38 = vld [vmem:[#allocation7 + $0x110] sm:$0xff]  ;;  %v928_v39 = vld [vmem:[#allocation7 + $0x300] sm:$0xff] }
 0x107   : > { %v9701_v40 = vpack.c.bf16 %v931_v33, %v929_v32  ;;  %v930_v41 = vld [vmem:[#allocation7 + $0x310] sm:$0xff]  ;;  %v795_v42 = vld [vmem:[#allocation7 + $0x128] sm:$0xff]  ;;  %v797_v43 = vld [vmem:[#allocation7 + $0x138] sm:$0xff]  ;;  %v9639_v46 = vpack.c.bf16 %v792_v38, %v790_v37 }
 0x108   : > { %9628 = vmatpush1.bf16.msra.mxu0 %v9627_v10  ;;  %v933_v44 = vld [vmem:[#allocation7 + $0x328] sm:$0xff]  ;;  %v935_v45 = vld [vmem:[#allocation7 + $0x338] sm:$0xff]  ;;  %v9703_v47 = vpack.c.bf16 %v930_v41, %v928_v39  ;;  %v9641_v48 = vpack.c.bf16 %v797_v43, %v795_v42  ;;  %v794_v49 = vld [vmem:[#allocation7 + $0x120] sm:$0xff] }
 0x109   : > { %9692 = vmatpush1.bf16.msra.mxu1 %v9691_v11  ;;  %9630 = vmatprep.subr.bf16.mxu0 %v9629_v12  ;;  %v796_v50 = vld [vmem:[#allocation7 + $0x130] sm:$0xff]  ;;  %v932_v51 = vld [vmem:[#allocation7 + $0x320] sm:$0xff]  ;;  %v9705_v52 = vpack.c.bf16 %v935_v45, %v933_v44  ;;  %v799_v54 = vld [vmem:[#allocation7 + $0x148] sm:$0xff] }
 0x10a   : > { %9694 = vmatprep.subr.bf16.mxu1 %v9693_v16  ;;  %v934_v53 = vld [vmem:[#allocation7 + $0x330] sm:$0xff]  ;;  %v801_v55 = vld [vmem:[#allocation7 + $0x158] sm:$0xff]  ;;  %v937_v56 = vld [vmem:[#allocation7 + $0x348] sm:$0xff]  ;;  %v9643_v58 = vpack.c.bf16 %v796_v50, %v794_v49 }
 0x10b   : > { %v939_v57 = vld [vmem:[#allocation7 + $0x358] sm:$0xff]  ;;  %v9707_v59 = vpack.c.bf16 %v934_v53, %v932_v51  ;;  %v9645_v60 = vpack.c.bf16 %v801_v55, %v799_v54  ;;  %v798_v61 = vld [vmem:[#allocation7 + $0x140] sm:$0xff]  ;;  %v800_v62 = vld [vmem:[#allocation7 + $0x150] sm:$0xff] }
 0x10c   : > { %9632 = vmatpush1.bf16.msra.mxu0 %v9631_v22  ;;  %v936_v63 = vld [vmem:[#allocation7 + $0x340] sm:$0xff]  ;;  %v9709_v0 = vpack.c.bf16 %v939_v57, %v937_v56  ;;  %v938_v1 = vld [vmem:[#allocation7 + $0x350] sm:$0xff]  ;;  %v803_v2 = vld [vmem:[#allocation7 + $0x168] sm:$0xff]  ;;  %v9647_v6 = vpack.c.bf16 %v800_v62, %v798_v61 }
 0x10d   : > { %9696 = vmatpush1.bf16.msra.mxu1 %v9695_v23  ;;  %9634 = vmatprep.subr.bf16.mxu0 %v9633_v24  ;;  %v805_v3 = vld [vmem:[#allocation7 + $0x178] sm:$0xff]  ;;  %v941_v4 = vld [vmem:[#allocation7 + $0x368] sm:$0xff]  ;;  %v802_v7 = vld [vmem:[#allocation7 + $0x160] sm:$0xff]  ;;  %v9711_v8 = vpack.c.bf16 %v938_v1, %v936_v63 }
 0x10e   : > { %9698 = vmatprep.subr.bf16.mxu1 %v9697_v28  ;;  %v943_v5 = vld [vmem:[#allocation7 + $0x378] sm:$0xff]  ;;  %v9649_v9 = vpack.c.bf16 %v805_v3, %v803_v2  ;;  %v804_v10 = vld [vmem:[#allocation7 + $0x170] sm:$0xff]  ;;  %v940_v11 = vld [vmem:[#allocation7 + $0x360] sm:$0xff] }
 0x10f   : > { %v942_v12 = vld [vmem:[#allocation7 + $0x370] sm:$0xff]  ;;  %v9713_v13 = vpack.c.bf16 %v943_v5, %v941_v4  ;;  %v807_v14 = vld [vmem:[#allocation7 + $0x188] sm:$0xff]  ;;  %v809_v15 = vld [vmem:[#allocation7 + $0x198] sm:$0xff]  ;;  %v9651_v19 = vpack.c.bf16 %v804_v10, %v802_v7 }
 0x110   : > { %9636 = vmatpush1.bf16.msra.mxu0 %v9635_v34  ;;  %v12067_v16 = vld [vmem:[%s12064_s14 + $0x8] sm:$0xff]  ;;  %v945_v17 = vld [vmem:[#allocation7 + $0x388] sm:$0xff]  ;;  %v9715_v20 = vpack.c.bf16 %v942_v12, %v940_v11  ;;  %v9653_v21 = vpack.c.bf16 %v809_v15, %v807_v14  ;;  %v806_v22 = vld [vmem:[#allocation7 + $0x180] sm:$0xff] }
 0x111   : > { %9700 = vmatpush1.bf16.msra.mxu1 %v9699_v35  ;;  %9638 = vmatprep.subr.bf16.mxu0 %v9637_v36  ;;  %v947_v18 = vld [vmem:[#allocation7 + $0x398] sm:$0xff]  ;;  %v808_v23 = vld [vmem:[#allocation7 + $0x190] sm:$0xff]  ;;  %v944_v24 = vld [vmem:[#allocation7 + $0x380] sm:$0xff] }
 0x112   : > { %9702 = vmatprep.subr.bf16.mxu1 %v9701_v40  ;;  %886 = vmatprep.mubr.f32.mxu0 %v12067_v16  ;;  %v9717_v25 = vpack.c.bf16 %v947_v18, %v945_v17  ;;  %v946_v26 = vld [vmem:[#allocation7 + $0x390] sm:$0xff]  ;;  %v811_v27 = vld [vmem:[#allocation7 + $0x1a8] sm:$0xff]  ;;  %v813_v28 = vld [vmem:[#allocation7 + $0x1b8] sm:$0xff]  ;;  %v9655_v31 = vpack.c.bf16 %v808_v23, %v806_v22 }
 0x113   : > { %1024 = vmatprep.mubr.f32.mxu1 %v12067_v16  ;;  %v949_v29 = vld [vmem:[#allocation7 + $0x3a8] sm:$0xff]  ;;  %v951_v30 = vld [vmem:[#allocation7 + $0x3b8] sm:$0xff]  ;;  %v9719_v32 = vpack.c.bf16 %v946_v26, %v944_v24  ;;  %v9657_v33 = vpack.c.bf16 %v813_v28, %v811_v27  ;;  %v810_v34 = vld [vmem:[#allocation7 + $0x1a0] sm:$0xff] }
 0x114   : > { %9640 = vmatpush1.bf16.msra.mxu0 %v9639_v46  ;;  %v812_v35 = vld [vmem:[#allocation7 + $0x1b0] sm:$0xff]  ;;  %v948_v36 = vld [vmem:[#allocation7 + $0x3a0] sm:$0xff]  ;;  %v9721_v37 = vpack.c.bf16 %v951_v30, %v949_v29  ;;  %v815_v39 = vld [vmem:[#allocation7 + $0x1c8] sm:$0xff] }
 0x115   : > { %9704 = vmatpush1.bf16.msra.mxu1 %v9703_v47  ;;  %9642 = vmatprep.subr.bf16.mxu0 %v9641_v48  ;;  %v950_v38 = vld [vmem:[#allocation7 + $0x3b0] sm:$0xff]  ;;  %v817_v40 = vld [vmem:[#allocation7 + $0x1d8] sm:$0xff]  ;;  %v953_v41 = vld [vmem:[#allocation7 + $0x3c8] sm:$0xff]  ;;  %v9659_v43 = vpack.c.bf16 %v812_v35, %v810_v34 }
 0x116   : > { %9706 = vmatprep.subr.bf16.mxu1 %v9705_v52  ;;  %v955_v42 = vld [vmem:[#allocation7 + $0x3d8] sm:$0xff]  ;;  %v9723_v44 = vpack.c.bf16 %v950_v38, %v948_v36  ;;  %v9661_v45 = vpack.c.bf16 %v817_v40, %v815_v39  ;;  %v814_v46 = vld [vmem:[#allocation7 + $0x1c0] sm:$0xff]  ;;  %v816_v47 = vld [vmem:[#allocation7 + $0x1d0] sm:$0xff] }
 0x117   : > { %v952_v48 = vld [vmem:[#allocation7 + $0x3c0] sm:$0xff]  ;;  %v9725_v49 = vpack.c.bf16 %v955_v42, %v953_v41  ;;  %v954_v50 = vld [vmem:[#allocation7 + $0x3d0] sm:$0xff]  ;;  %v819_v51 = vld [vmem:[#allocation7 + $0x1e8] sm:$0xff]  ;;  %v9663_v55 = vpack.c.bf16 %v816_v47, %v814_v46 }
 0x118   : > { %9644 = vmatpush1.bf16.msra.mxu0 %v9643_v58  ;;  %v821_v52 = vld [vmem:[#allocation7 + $0x1f8] sm:$0xff]  ;;  %v957_v53 = vld [vmem:[#allocation7 + $0x3e8] sm:$0xff]  ;;  %v9727_v56 = vpack.c.bf16 %v954_v50, %v952_v48  ;;  %v818_v58 = vld [vmem:[#allocation7 + $0x1e0] sm:$0xff] }
 0x119   : > { %9708 = vmatpush1.bf16.msra.mxu1 %v9707_v59  ;;  %9646 = vmatprep.subr.bf16.mxu0 %v9645_v60  ;;  %v959_v54 = vld [vmem:[#allocation7 + $0x3f8] sm:$0xff]  ;;  %v9665_v57 = vpack.c.bf16 %v821_v52, %v819_v51  ;;  %v820_v59 = vld [vmem:[#allocation7 + $0x1f0] sm:$0xff]  ;;  %v956_v60 = vld [vmem:[#allocation7 + $0x3e0] sm:$0xff] }
 0x11a   : > { %9710 = vmatprep.subr.bf16.mxu1 %v9709_v0  ;;  %v9729_v61 = vpack.c.bf16 %v959_v54, %v957_v53  ;;  %v958_v62 = vld [vmem:[#allocation7 + $0x3f0] sm:$0xff]  ;;  %v1035_v63 = vld [vmem:[#allocation7 + $0x408] sm:$0xff]  ;;  %v1037_v0 = vld [vmem:[#allocation7 + $0x418] sm:$0xff]  ;;  %v9667_v3 = vpack.c.bf16 %v820_v59, %v818_v58 }
 0x11b   : > { %v1173_v1 = vld [vmem:[#allocation7 + $0x608] sm:$0xff]  ;;  %v1175_v2 = vld [vmem:[#allocation7 + $0x618] sm:$0xff]  ;;  %v9731_v4 = vpack.c.bf16 %v958_v62, %v956_v60  ;;  %v9733_v5 = vpack.c.bf16 %v1037_v0, %v1035_v63  ;;  %v1036_v7 = vld [vmem:[#allocation7 + $0x410] sm:$0xff] }
 0x11c   : > { %9648 = vmatpush1.bf16.msra.mxu0 %v9647_v6  ;;  %v1034_v6 = vld [vmem:[#allocation7 + $0x400] sm:$0xff]  ;;  %v1174_v10 = vld [vmem:[#allocation7 + $0x610] sm:$0xff]  ;;  %v1039_v11 = vld [vmem:[#allocation7 + $0x428] sm:$0xff] }
 0x11d   : > { %9712 = vmatpush1.bf16.msra.mxu1 %v9711_v8  ;;  %9650 = vmatprep.subr.bf16.mxu0 %v9649_v9  ;;  %v1172_v8 = vld [vmem:[#allocation7 + $0x600] sm:$0xff]  ;;  %v9797_v9 = vpack.c.bf16 %v1175_v2, %v1173_v1  ;;  %v1041_v12 = vld [vmem:[#allocation7 + $0x438] sm:$0xff]  ;;  %v12072_v15 = vld [vmem:[%s12064_s14] sm:$0xff]  ;;  %v9735_v17 = vpack.c.bf16 %v1036_v7, %v1034_v6 }
 0x11e   : > { %9714 = vmatprep.subr.bf16.mxu1 %v9713_v13  ;;  %v1177_v13 = vld [vmem:[#allocation7 + $0x628] sm:$0xff]  ;;  %v1179_v14 = vld [vmem:[#allocation7 + $0x638] sm:$0xff]  ;;  %v9799_v18 = vpack.c.bf16 %v1174_v10, %v1172_v8  ;;  %v1176_v22 = vld [vmem:[#allocation7 + $0x620] sm:$0xff] }
 0x11f   : > { %v9801_v23 = vpack.c.bf16 %v1179_v14, %v1177_v13  ;;  %v1178_v24 = vld [vmem:[#allocation7 + $0x630] sm:$0xff]  ;;  %v1045_v26 = vld [vmem:[#allocation7 + $0x458] sm:$0xff]  ;;  %v1181_v27 = vld [vmem:[#allocation7 + $0x648] sm:$0xff] }
 0x120   : > { %9652 = vmatpush1.bf16.msra.mxu0 %v9651_v19  ;;  %v9737_v19 = vpack.c.bf16 %v1041_v12, %v1039_v11  ;;  %v1183_v28 = vld [vmem:[#allocation7 + $0x658] sm:$0xff]  ;;  %v9803_v30 = vpack.c.bf16 %v1178_v24, %v1176_v22  ;;  %v1180_v34 = vld [vmem:[#allocation7 + $0x640] sm:$0xff]  ;;  %v1182_v36 = vld [vmem:[#allocation7 + $0x650] sm:$0xff] }
 0x121   : > { %9716 = vmatpush1.bf16.msra.mxu1 %v9715_v20  ;;  %9654 = vmatprep.subr.bf16.mxu0 %v9653_v21  ;;  %v1038_v20 = vld [vmem:[#allocation7 + $0x420] sm:$0xff]  ;;  %v1040_v21 = vld [vmem:[#allocation7 + $0x430] sm:$0xff]  ;;  %v9805_v35 = vpack.c.bf16 %v1183_v28, %v1181_v27  ;;  %v1049_v38 = vld [vmem:[#allocation7 + $0x478] sm:$0xff]  ;;  %v9807_v42 = vpack.c.bf16 %v1182_v36, %v1180_v34 }
 0x122   : > { %9718 = vmatprep.subr.bf16.mxu1 %v9717_v25  ;;  %v1043_v25 = vld [vmem:[#allocation7 + $0x448] sm:$0xff]  ;;  %v9739_v29 = vpack.c.bf16 %v1040_v21, %v1038_v20  ;;  %v1187_v40 = vld [vmem:[#allocation7 + $0x678] sm:$0xff]  ;;  %v1184_v46 = vld [vmem:[#allocation7 + $0x660] sm:$0xff] }
 0x123   : > { %v1185_v39 = vld [vmem:[#allocation7 + $0x668] sm:$0xff]  ;;  %v1186_v48 = vld [vmem:[#allocation7 + $0x670] sm:$0xff]  ;;  %v1053_v50 = vld [vmem:[#allocation7 + $0x498] sm:$0xff] }
 0x124   : > { %9656 = vmatpush1.bf16.msra.mxu0 %v9655_v31  ;;  %v9741_v31 = vpack.c.bf16 %v1045_v26, %v1043_v25  ;;  %v9809_v47 = vpack.c.bf16 %v1187_v40, %v1185_v39  ;;  %v1189_v51 = vld [vmem:[#allocation7 + $0x688] sm:$0xff]  ;;  %v1191_v52 = vld [vmem:[#allocation7 + $0x698] sm:$0xff]  ;;  %v9811_v54 = vpack.c.bf16 %v1186_v48, %v1184_v46  ;;  %v1188_v58 = vld [vmem:[#allocation7 + $0x680] sm:$0xff] }
 0x125   : > { %9720 = vmatpush1.bf16.msra.mxu1 %v9719_v32  ;;  %9658 = vmatprep.subr.bf16.mxu0 %v9657_v33  ;;  %v1042_v32 = vld [vmem:[#allocation7 + $0x440] sm:$0xff]  ;;  %v1044_v33 = vld [vmem:[#allocation7 + $0x450] sm:$0xff]  ;;  %v9813_v59 = vpack.c.bf16 %v1191_v52, %v1189_v51  ;;  %v1057_v62 = vld [vmem:[#allocation7 + $0x4b8] sm:$0xff] }
 0x126   : > { %9722 = vmatprep.subr.bf16.mxu1 %v9721_v37  ;;  %v1047_v37 = vld [vmem:[#allocation7 + $0x468] sm:$0xff]  ;;  %v9743_v41 = vpack.c.bf16 %v1044_v33, %v1042_v32  ;;  %v1190_v60 = vld [vmem:[#allocation7 + $0x690] sm:$0xff]  ;;  %v1195_v0 = vld [vmem:[#allocation7 + $0x6b8] sm:$0xff] }
 0x127   : > { %v1193_v63 = vld [vmem:[#allocation7 + $0x6a8] sm:$0xff]  ;;  %v9815_v2 = vpack.c.bf16 %v1190_v60, %v1188_v58  ;;  %v1192_v6 = vld [vmem:[#allocation7 + $0x6a0] sm:$0xff]  ;;  %v1194_v8 = vld [vmem:[#allocation7 + $0x6b0] sm:$0xff] }
 0x128   : > { %9660 = vmatpush1.bf16.msra.mxu0 %v9659_v43  ;;  %v9745_v43 = vpack.c.bf16 %v1049_v38, %v1047_v37  ;;  %v9817_v7 = vpack.c.bf16 %v1195_v0, %v1193_v63  ;;  %v1061_v10 = vld [vmem:[#allocation7 + $0x4d8] sm:$0xff]  ;;  %v1197_v11 = vld [vmem:[#allocation7 + $0x6c8] sm:$0xff]  ;;  %v9819_v14 = vpack.c.bf16 %v1194_v8, %v1192_v6  ;;  %v1196_v20 = vld [vmem:[#allocation7 + $0x6c0] sm:$0xff] }
 0x129   : > { %9724 = vmatpush1.bf16.msra.mxu1 %v9723_v44  ;;  %9662 = vmatprep.subr.bf16.mxu0 %v9661_v45  ;;  %v1046_v44 = vld [vmem:[#allocation7 + $0x460] sm:$0xff]  ;;  %v1048_v45 = vld [vmem:[#allocation7 + $0x470] sm:$0xff]  ;;  %v1199_v12 = vld [vmem:[#allocation7 + $0x6d8] sm:$0xff] }
 0x12a   : > { %9726 = vmatprep.subr.bf16.mxu1 %v9725_v49  ;;  %v1051_v49 = vld [vmem:[#allocation7 + $0x488] sm:$0xff]  ;;  %v9747_v53 = vpack.c.bf16 %v1048_v45, %v1046_v44  ;;  %v9821_v21 = vpack.c.bf16 %v1199_v12, %v1197_v11  ;;  %v1198_v22 = vld [vmem:[#allocation7 + $0x6d0] sm:$0xff]  ;;  %v1065_v24 = vld [vmem:[#allocation7 + $0x4f8] sm:$0xff] }
 0x12b   : > { %v1201_v25 = vld [vmem:[#allocation7 + $0x6e8] sm:$0xff]  ;;  %v1203_v26 = vld [vmem:[#allocation7 + $0x6f8] sm:$0xff]  ;;  %v9823_v28 = vpack.c.bf16 %v1198_v22, %v1196_v20  ;;  %v1200_v32 = vld [vmem:[#allocation7 + $0x6e0] sm:$0xff] }
 0x12c   : > { %9664 = vmatpush1.bf16.msra.mxu0 %v9663_v55  ;;  %v9749_v55 = vpack.c.bf16 %v1053_v50, %v1051_v49  ;;  %v9825_v33 = vpack.c.bf16 %v1203_v26, %v1201_v25  ;;  %v1202_v34 = vld [vmem:[#allocation7 + $0x6f0] sm:$0xff]  ;;  %v1069_v36 = vld [vmem:[#allocation7 + $0x518] sm:$0xff]  ;;  %v1205_v37 = vld [vmem:[#allocation7 + $0x708] sm:$0xff] }
 0x12d   : > { %9728 = vmatpush1.bf16.msra.mxu1 %v9727_v56  ;;  %9666 = vmatprep.subr.bf16.mxu0 %v9665_v57  ;;  %v1050_v56 = vld [vmem:[#allocation7 + $0x480] sm:$0xff]  ;;  %v1052_v57 = vld [vmem:[#allocation7 + $0x490] sm:$0xff]  ;;  %v1207_v38 = vld [vmem:[#allocation7 + $0x718] sm:$0xff]  ;;  %v9827_v40 = vpack.c.bf16 %v1202_v34, %v1200_v32 }
 0x12e   : > { %9730 = vmatprep.subr.bf16.mxu1 %v9729_v61  ;;  %v1055_v61 = vld [vmem:[#allocation7 + $0x4a8] sm:$0xff]  ;;  %v9751_v1 = vpack.c.bf16 %v1052_v57, %v1050_v56  ;;  %v1204_v44 = vld [vmem:[#allocation7 + $0x700] sm:$0xff]  ;;  %v9829_v45 = vpack.c.bf16 %v1207_v38, %v1205_v37  ;;  %v1206_v46 = vld [vmem:[#allocation7 + $0x710] sm:$0xff] }
 0x12f   : > { %v1073_v48 = vld [vmem:[#allocation7 + $0x538] sm:$0xff]  ;;  %v1209_v49 = vld [vmem:[#allocation7 + $0x728] sm:$0xff]  ;;  %v9831_v52 = vpack.c.bf16 %v1206_v46, %v1204_v44  ;;  %v1208_v56 = vld [vmem:[#allocation7 + $0x720] sm:$0xff] }
 0x130   : > { %9668 = vmatpush1.bf16.msra.mxu0 %v9667_v3  ;;  %v9753_v3 = vpack.c.bf16 %v1057_v62, %v1055_v61  ;;  %v1211_v50 = vld [vmem:[#allocation7 + $0x738] sm:$0xff]  ;;  %v1210_v58 = vld [vmem:[#allocation7 + $0x730] sm:$0xff]  ;;  %v1213_v61 = vld [vmem:[#allocation7 + $0x748] sm:$0xff] }
 0x131   : > { %9732 = vmatpush1.bf16.msra.mxu1 %v9731_v4  ;;  %9734 = vmatprep.subr.bf16.mxu0 %v9733_v5  ;;  %v1054_v4 = vld [vmem:[#allocation7 + $0x4a0] sm:$0xff]  ;;  %v1056_v5 = vld [vmem:[#allocation7 + $0x4b0] sm:$0xff]  ;;  %v9833_v57 = vpack.c.bf16 %v1211_v50, %v1209_v49  ;;  %v1077_v60 = vld [vmem:[#allocation7 + $0x558] sm:$0xff]  ;;  %v9835_v0 = vpack.c.bf16 %v1210_v58, %v1208_v56 }
 0x132   : > { %9798 = vmatprep.subr.bf16.mxu1 %v9797_v9  ;;  %v1059_v9 = vld [vmem:[#allocation7 + $0x4c8] sm:$0xff]  ;;  %v9755_v13 = vpack.c.bf16 %v1056_v5, %v1054_v4  ;;  %v1215_v62 = vld [vmem:[#allocation7 + $0x758] sm:$0xff]  ;;  %v1212_v4 = vld [vmem:[#allocation7 + $0x740] sm:$0xff] }
 0x133   : > { %887 = vmatmul.mubr.f32.vlgmr.msra.gmra.mrb[0].mxu0 %v12072_v15  ;;  %v9837_v5 = vpack.c.bf16 %v1215_v62, %v1213_v61  ;;  %v1214_v6 = vld [vmem:[#allocation7 + $0x750] sm:$0xff]  ;;  %v1081_v8 = vld [vmem:[#allocation7 + $0x578] sm:$0xff] }
 0x134   : > { %1025 = vmatmul.mubr.f32.vlgmr.msra.gmra.mrb[0].mxu1 %v12072_v15  ;;  %9736 = vmatpush1.bf16.msra.mxu0 %v9735_v17  ;;  %v9757_v17 = vpack.c.bf16 %v1061_v10, %v1059_v9  ;;  %v1217_v9 = vld [vmem:[#allocation7 + $0x768] sm:$0xff]  ;;  %v1219_v10 = vld [vmem:[#allocation7 + $0x778] sm:$0xff]  ;;  %v9839_v12 = vpack.c.bf16 %v1214_v6, %v1212_v4  ;;  %v1218_v20 = vld [vmem:[#allocation7 + $0x770] sm:$0xff] }
 0x135   : > { %9800 = vmatpush1.bf16.msra.mxu1 %v9799_v18  ;;  %9738 = vmatprep.subr.bf16.mxu0 %v9737_v19  ;;  %v1058_v18 = vld [vmem:[#allocation7 + $0x4c0] sm:$0xff]  ;;  %v1060_v19 = vld [vmem:[#allocation7 + $0x4d0] sm:$0xff]  ;;  %v1085_v22 = vld [vmem:[#allocation7 + $0x598] sm:$0xff] }
 0x136   : > { %9802 = vmatprep.subr.bf16.mxu1 %v9801_v23  ;;  %1162 = vmatprep.mubr.f32.mxu0 %v12067_v16  ;;  %v1063_v23 = vld [vmem:[#allocation7 + $0x4e8] sm:$0xff]  ;;  %v9759_v27 = vpack.c.bf16 %v1060_v19, %v1058_v18  ;;  %v1216_v18 = vld [vmem:[#allocation7 + $0x760] sm:$0xff]  ;;  %v9841_v19 = vpack.c.bf16 %v1219_v10, %v1217_v9  ;;  %v1222_v32 = vld [vmem:[#allocation7 + $0x790] sm:$0xff] }
 0x137   : > { %1300 = vmatprep.mubr.f32.mxu1 %v12067_v16  ;;  %v9843_v26 = vpack.c.bf16 %v1218_v20, %v1216_v18  ;;  %v1089_v34 = vld [vmem:[#allocation7 + $0x5b8] sm:$0xff]  ;;  %v1226_v44 = vld [vmem:[#allocation7 + $0x7b0] sm:$0xff] }
 0x138   : > { %9740 = vmatpush1.bf16.msra.mxu0 %v9739_v29  ;;  %v9761_v29 = vpack.c.bf16 %v1065_v24, %v1063_v23  ;;  %v1221_v23 = vld [vmem:[#allocation7 + $0x788] sm:$0xff]  ;;  %v1223_v24 = vld [vmem:[#allocation7 + $0x798] sm:$0xff]  ;;  %v1230_v56 = vld [vmem:[#allocation7 + $0x7d0] sm:$0xff] }
 0x139   : > { %9804 = vmatpush1.bf16.msra.mxu1 %v9803_v30  ;;  %9742 = vmatprep.subr.bf16.mxu0 %v9741_v31  ;;  %v1062_v30 = vld [vmem:[#allocation7 + $0x4e0] sm:$0xff]  ;;  %v1064_v31 = vld [vmem:[#allocation7 + $0x4f0] sm:$0xff]  ;;  %v1093_v46 = vld [vmem:[#allocation7 + $0x5d8] sm:$0xff] }
 0x13a   : > { %9806 = vmatprep.subr.bf16.mxu1 %v9805_v35  ;;  %v1067_v35 = vld [vmem:[#allocation7 + $0x508] sm:$0xff]  ;;  %v9763_v39 = vpack.c.bf16 %v1064_v31, %v1062_v30  ;;  %v1220_v30 = vld [vmem:[#allocation7 + $0x780] sm:$0xff]  ;;  %v9845_v31 = vpack.c.bf16 %v1223_v24, %v1221_v23  ;;  %v1097_v58 = vld [vmem:[#allocation7 + $0x5f8] sm:$0xff] }
 0x13b   : > { %v9847_v38 = vpack.c.bf16 %v1222_v32, %v1220_v30  ;;  %v1234_v4 = vld [vmem:[#allocation7 + $0x7f0] sm:$0xff]  ;;  %v1313_v6 = vld [vmem:[#allocation7 + $0x818] sm:$0xff] }
 0x13c   : > { %9744 = vmatpush1.bf16.msra.mxu0 %v9743_v41  ;;  %v9765_v41 = vpack.c.bf16 %v1069_v36, %v1067_v35  ;;  %v1225_v35 = vld [vmem:[#allocation7 + $0x7a8] sm:$0xff]  ;;  %v1227_v36 = vld [vmem:[#allocation7 + $0x7b8] sm:$0xff]  ;;  %v1450_v18 = vld [vmem:[#allocation7 + $0xa10] sm:$0xff] }
 0x13d   : > { %9808 = vmatpush1.bf16.msra.mxu1 %v9807_v42  ;;  %9746 = vmatprep.subr.bf16.mxu0 %v9745_v43  ;;  %v1066_v42 = vld [vmem:[#allocation7 + $0x500] sm:$0xff]  ;;  %v1068_v43 = vld [vmem:[#allocation7 + $0x510] sm:$0xff]  ;;  %v1317_v20 = vld [vmem:[#allocation7 + $0x838] sm:$0xff] }
 0x13e   : > { %9810 = vmatprep.subr.bf16.mxu1 %v9809_v47  ;;  %v1071_v47 = vld [vmem:[#allocation7 + $0x528] sm:$0xff]  ;;  %v9767_v51 = vpack.c.bf16 %v1068_v43, %v1066_v42  ;;  %v1224_v42 = vld [vmem:[#allocation7 + $0x7a0] sm:$0xff]  ;;  %v9849_v43 = vpack.c.bf16 %v1227_v36, %v1225_v35  ;;  %v1454_v30 = vld [vmem:[#allocation7 + $0xa30] sm:$0xff] }
 0x13f   : > { %v9851_v50 = vpack.c.bf16 %v1226_v44, %v1224_v42  ;;  %v1321_v32 = vld [vmem:[#allocation7 + $0x858] sm:$0xff]  ;;  %v1458_v42 = vld [vmem:[#allocation7 + $0xa50] sm:$0xff] }
 0x140   : > { %9748 = vmatpush1.bf16.msra.mxu0 %v9747_v53  ;;  %v9769_v53 = vpack.c.bf16 %v1073_v48, %v1071_v47  ;;  %v1229_v47 = vld [vmem:[#allocation7 + $0x7c8] sm:$0xff]  ;;  %v1231_v48 = vld [vmem:[#allocation7 + $0x7d8] sm:$0xff] }
 0x141   : > { %9812 = vmatpush1.bf16.msra.mxu1 %v9811_v54  ;;  %9750 = vmatprep.subr.bf16.mxu0 %v9749_v55  ;;  %v1070_v54 = vld [vmem:[#allocation7 + $0x520] sm:$0xff]  ;;  %v1072_v55 = vld [vmem:[#allocation7 + $0x530] sm:$0xff]  ;;  %v1325_v44 = vld [vmem:[#allocation7 + $0x878] sm:$0xff] }
 0x142   : > { %9814 = vmatprep.subr.bf16.mxu1 %v9813_v59  ;;  %v1075_v59 = vld [vmem:[#allocation7 + $0x548] sm:$0xff]  ;;  %v9771_v63 = vpack.c.bf16 %v1072_v55, %v1070_v54  ;;  %v1228_v54 = vld [vmem:[#allocation7 + $0x7c0] sm:$0xff]  ;;  %v9853_v55 = vpack.c.bf16 %v1231_v48, %v1229_v47 }
 0x143   : > { %v9855_v62 = vpack.c.bf16 %v1230_v56, %v1228_v54  ;;  %v1327_v54 = vld [vmem:[#allocation7 + $0x888] sm:$0xff] }
 0x144   : > { %9752 = vmatpush1.bf16.msra.mxu0 %v9751_v1  ;;  %v9773_v1 = vpack.c.bf16 %v1077_v60, %v1075_v59  ;;  %v1233_v59 = vld [vmem:[#allocation7 + $0x7e8] sm:$0xff]  ;;  %v1235_v60 = vld [vmem:[#allocation7 + $0x7f8] sm:$0xff] }
 0x145   : > { %9816 = vmatpush1.bf16.msra.mxu1 %v9815_v2  ;;  %9754 = vmatprep.subr.bf16.mxu0 %v9753_v3  ;;  %v1074_v2 = vld [vmem:[#allocation7 + $0x540] sm:$0xff]  ;;  %v1076_v3 = vld [vmem:[#allocation7 + $0x550] sm:$0xff]  ;;  %v1465_v56 = vld [vmem:[#allocation7 + $0xa88] sm:$0xff] }
 0x146   : > { %9818 = vmatprep.subr.bf16.mxu1 %v9817_v7  ;;  %v1079_v7 = vld [vmem:[#allocation7 + $0x568] sm:$0xff]  ;;  %v9775_v11 = vpack.c.bf16 %v1076_v3, %v1074_v2  ;;  %v1232_v2 = vld [vmem:[#allocation7 + $0x7e0] sm:$0xff]  ;;  %v9857_v3 = vpack.c.bf16 %v1235_v60, %v1233_v59 }
 0x147   : > { %v9859_v10 = vpack.c.bf16 %v1234_v4, %v1232_v2  ;;  %v1326_v60 = vld [vmem:[#allocation7 + $0x880] sm:$0xff]  ;;  %v1333_v2 = vld [vmem:[#allocation7 + $0x8b8] sm:$0xff] }
 0x148   : > { %9756 = vmatpush1.bf16.msra.mxu0 %v9755_v13  ;;  %v9777_v13 = vpack.c.bf16 %v1081_v8, %v1079_v7  ;;  %v1449_v7 = vld [vmem:[#allocation7 + $0xa08] sm:$0xff]  ;;  %v1451_v8 = vld [vmem:[#allocation7 + $0xa18] sm:$0xff] }
 0x149   : > { %9820 = vmatpush1.bf16.msra.mxu1 %v9819_v14  ;;  %9758 = vmatprep.subr.bf16.mxu0 %v9757_v17  ;;  %v1078_v14 = vld [vmem:[#allocation7 + $0x560] sm:$0xff]  ;;  %v1080_v17 = vld [vmem:[#allocation7 + $0x570] sm:$0xff]  ;;  %v1471_v4 = vld [vmem:[#allocation7 + $0xab8] sm:$0xff] }
 0x14a   : > { %9822 = vmatprep.subr.bf16.mxu1 %v9821_v21  ;;  %v1083_v21 = vld [vmem:[#allocation7 + $0x588] sm:$0xff]  ;;  %v9779_v25 = vpack.c.bf16 %v1080_v17, %v1078_v14  ;;  %v1448_v14 = vld [vmem:[#allocation7 + $0xa00] sm:$0xff]  ;;  %v9925_v17 = vpack.c.bf16 %v1451_v8, %v1449_v7 }
 0x14b   : > { %v9927_v24 = vpack.c.bf16 %v1450_v18, %v1448_v14  ;;  %v1330_v8 = vld [vmem:[#allocation7 + $0x8a0] sm:$0xff]  ;;  %v1337_v14 = vld [vmem:[#allocation7 + $0x8d8] sm:$0xff] }
 0x14c   : > { %9760 = vmatpush1.bf16.msra.mxu0 %v9759_v27  ;;  %v9781_v27 = vpack.c.bf16 %v1085_v22, %v1083_v21  ;;  %v1453_v21 = vld [vmem:[#allocation7 + $0xa28] sm:$0xff]  ;;  %v1455_v22 = vld [vmem:[#allocation7 + $0xa38] sm:$0xff] }
 0x14d   : > { %9824 = vmatpush1.bf16.msra.mxu1 %v9823_v28  ;;  %9762 = vmatprep.subr.bf16.mxu0 %v9761_v29  ;;  %v1082_v28 = vld [vmem:[#allocation7 + $0x580] sm:$0xff]  ;;  %v1084_v29 = vld [vmem:[#allocation7 + $0x590] sm:$0xff]  ;;  %v1475_v18 = vld [vmem:[#allocation7 + $0xad8] sm:$0xff] }
 0x14e   : > { %9826 = vmatprep.subr.bf16.mxu1 %v9825_v33  ;;  %v1087_v33 = vld [vmem:[#allocation7 + $0x5a8] sm:$0xff]  ;;  %v9783_v37 = vpack.c.bf16 %v1084_v29, %v1082_v28  ;;  %v1452_v28 = vld [vmem:[#allocation7 + $0xa20] sm:$0xff]  ;;  %v9929_v29 = vpack.c.bf16 %v1455_v22, %v1453_v21 }
 0x14f   : > { %v9931_v36 = vpack.c.bf16 %v1454_v30, %v1452_v28  ;;  %v1334_v22 = vld [vmem:[#allocation7 + $0x8c0] sm:$0xff]  ;;  %v1341_v28 = vld [vmem:[#allocation7 + $0x8f8] sm:$0xff] }
 0x150   : > { %9764 = vmatpush1.bf16.msra.mxu0 %v9763_v39  ;;  %v9785_v39 = vpack.c.bf16 %v1089_v34, %v1087_v33  ;;  %v1457_v33 = vld [vmem:[#allocation7 + $0xa48] sm:$0xff]  ;;  %v1459_v34 = vld [vmem:[#allocation7 + $0xa58] sm:$0xff] }
 0x151   : > { %9828 = vmatpush1.bf16.msra.mxu1 %v9827_v40  ;;  %9766 = vmatprep.subr.bf16.mxu0 %v9765_v41  ;;  %v1086_v40 = vld [vmem:[#allocation7 + $0x5a0] sm:$0xff]  ;;  %v1088_v41 = vld [vmem:[#allocation7 + $0x5b0] sm:$0xff]  ;;  %v1479_v30 = vld [vmem:[#allocation7 + $0xaf8] sm:$0xff] }
 0x152   : > { %9830 = vmatprep.subr.bf16.mxu1 %v9829_v45  ;;  %v1091_v45 = vld [vmem:[#allocation7 + $0x5c8] sm:$0xff]  ;;  %v9787_v49 = vpack.c.bf16 %v1088_v41, %v1086_v40  ;;  %v1456_v40 = vld [vmem:[#allocation7 + $0xa40] sm:$0xff]  ;;  %v9933_v41 = vpack.c.bf16 %v1459_v34, %v1457_v33 }
 0x153   : > { %v9935_v47 = vpack.c.bf16 %v1458_v42, %v1456_v40  ;;  %v1338_v34 = vld [vmem:[#allocation7 + $0x8e0] sm:$0xff]  ;;  %v1345_v40 = vld [vmem:[#allocation7 + $0x918] sm:$0xff] }
 0x154   : > { %9768 = vmatpush1.bf16.msra.mxu0 %v9767_v51  ;;  %v9789_v51 = vpack.c.bf16 %v1093_v46, %v1091_v45  ;;  %v1461_v45 = vld [vmem:[#allocation7 + $0xa68] sm:$0xff]  ;;  %v1463_v46 = vld [vmem:[#allocation7 + $0xa78] sm:$0xff] }
 0x155   : > { %9832 = vmatpush1.bf16.msra.mxu1 %v9831_v52  ;;  %9770 = vmatprep.subr.bf16.mxu0 %v9769_v53  ;;  %v1090_v52 = vld [vmem:[#allocation7 + $0x5c0] sm:$0xff]  ;;  %v1092_v53 = vld [vmem:[#allocation7 + $0x5d0] sm:$0xff]  ;;  %v1483_v42 = vld [vmem:[#allocation7 + $0xb18] sm:$0xff] }
 0x156   : > { %9834 = vmatprep.subr.bf16.mxu1 %v9833_v57  ;;  %v1095_v57 = vld [vmem:[#allocation7 + $0x5e8] sm:$0xff]  ;;  %v9791_v61 = vpack.c.bf16 %v1092_v53, %v1090_v52  ;;  %v9937_v52 = vpack.c.bf16 %v1463_v46, %v1461_v45  ;;  %v1462_v53 = vld [vmem:[#allocation7 + $0xa70] sm:$0xff]  ;;  %v1342_v46 = vld [vmem:[#allocation7 + $0x900] sm:$0xff] }
 0x158   : > { %9772 = vmatpush1.bf16.msra.mxu0 %v9771_v63  ;;  %v9793_v63 = vpack.c.bf16 %v1097_v58, %v1095_v57  ;;  %v1467_v57 = vld [vmem:[#allocation7 + $0xa98] sm:$0xff] }
 0x159   : > { %9836 = vmatpush1.bf16.msra.mxu1 %v9835_v0  ;;  %9774 = vmatprep.subr.bf16.mxu0 %v9773_v1  ;;  %v1094_v0 = vld [vmem:[#allocation7 + $0x5e0] sm:$0xff]  ;;  %v1096_v1 = vld [vmem:[#allocation7 + $0x5f0] sm:$0xff] }
 0x15a   : > { %9838 = vmatprep.subr.bf16.mxu1 %v9837_v5  ;;  %v1311_v5 = vld [vmem:[#allocation7 + $0x808] sm:$0xff]  ;;  %v9795_v9 = vpack.c.bf16 %v1096_v1, %v1094_v0  ;;  %v1466_v0 = vld [vmem:[#allocation7 + $0xa90] sm:$0xff] }
 0x15b   : > { %v1331_v1 = vld [vmem:[#allocation7 + $0x8a8] sm:$0xff] }
 0x15c   : > { %9776 = vmatpush1.bf16.msra.mxu0 %v9775_v11  ;;  %v9861_v11 = vpack.c.bf16 %v1313_v6, %v1311_v5  ;;  %v9881_v7 = vpack.c.bf16 %v1333_v2, %v1331_v1 }
 0x15d   : > { %9840 = vmatpush1.bf16.msra.mxu1 %v9839_v12  ;;  %9778 = vmatprep.subr.bf16.mxu0 %v9777_v13  ;;  %v1310_v12 = vld [vmem:[#allocation7 + $0x800] sm:$0xff]  ;;  %v1312_v13 = vld [vmem:[#allocation7 + $0x810] sm:$0xff] }
 0x15e   : > { %9842 = vmatprep.subr.bf16.mxu1 %v9841_v19  ;;  %v1315_v19 = vld [vmem:[#allocation7 + $0x828] sm:$0xff]  ;;  %v9863_v23 = vpack.c.bf16 %v1312_v13, %v1310_v12  ;;  %v1470_v12 = vld [vmem:[#allocation7 + $0xab0] sm:$0xff] }
 0x15f   : > { %v1335_v13 = vld [vmem:[#allocation7 + $0x8c8] sm:$0xff] }
 0x160   : > { %9780 = vmatpush1.bf16.msra.mxu0 %v9779_v25  ;;  %v9865_v25 = vpack.c.bf16 %v1317_v20, %v1315_v19  ;;  %v9885_v21 = vpack.c.bf16 %v1337_v14, %v1335_v13 }
 0x161   : > { %9844 = vmatpush1.bf16.msra.mxu1 %v9843_v26  ;;  %9782 = vmatprep.subr.bf16.mxu0 %v9781_v27  ;;  %v1314_v26 = vld [vmem:[#allocation7 + $0x820] sm:$0xff]  ;;  %v1316_v27 = vld [vmem:[#allocation7 + $0x830] sm:$0xff] }
 0x162   : > { %9846 = vmatprep.subr.bf16.mxu1 %v9845_v31  ;;  %v1319_v31 = vld [vmem:[#allocation7 + $0x848] sm:$0xff]  ;;  %v9867_v35 = vpack.c.bf16 %v1316_v27, %v1314_v26  ;;  %v1474_v26 = vld [vmem:[#allocation7 + $0xad0] sm:$0xff] }
 0x163   : > { %v1339_v27 = vld [vmem:[#allocation7 + $0x8e8] sm:$0xff] }
 0x164   : > { %9784 = vmatpush1.bf16.msra.mxu0 %v9783_v37  ;;  %v9869_v37 = vpack.c.bf16 %v1321_v32, %v1319_v31  ;;  %v9889_v33 = vpack.c.bf16 %v1341_v28, %v1339_v27 }
 0x165   : > { %9848 = vmatpush1.bf16.msra.mxu1 %v9847_v38  ;;  %9786 = vmatprep.subr.bf16.mxu0 %v9785_v39  ;;  %v1318_v38 = vld [vmem:[#allocation7 + $0x840] sm:$0xff]  ;;  %v1320_v39 = vld [vmem:[#allocation7 + $0x850] sm:$0xff] }
 0x166   : > { %9850 = vmatprep.subr.bf16.mxu1 %v9849_v43  ;;  %v1323_v43 = vld [vmem:[#allocation7 + $0x868] sm:$0xff] }
 0x167   : > { %v9873_v48 = vpack.c.bf16 %v1325_v44, %v1323_v43 }
 0x168   : > { %9788 = vmatpush1.bf16.msra.mxu0 %v9787_v49  ;;  %v1322_v49 = vld [vmem:[#allocation7 + $0x860] sm:$0xff] }
 0x169   : > { %9852 = vmatpush1.bf16.msra.mxu1 %v9851_v50  ;;  %9790 = vmatprep.subr.bf16.mxu0 %v9789_v51  ;;  %v1324_v50 = vld [vmem:[#allocation7 + $0x870] sm:$0xff]  ;;  %v1460_v51 = vld [vmem:[#allocation7 + $0xa60] sm:$0xff] }
 0x16a   : > { %9854 = vmatprep.subr.bf16.mxu1 %v9853_v55  ;;  %v1329_v55 = vld [vmem:[#allocation7 + $0x898] sm:$0xff]  ;;  %v9875_v58 = vpack.c.bf16 %v1324_v50, %v1322_v49  ;;  %v1482_v49 = vld [vmem:[#allocation7 + $0xb10] sm:$0xff]  ;;  %v1347_v50 = vld [vmem:[#allocation7 + $0x928] sm:$0xff] }
 0x16b   : > { %v9877_v59 = vpack.c.bf16 %v1329_v55, %v1327_v54 }
 0x16c   : > { %9792 = vmatpush1.bf16.msra.mxu0 %v9791_v61  ;;  %v1328_v61 = vld [vmem:[#allocation7 + $0x890] sm:$0xff] }
 0x16d   : > { %9856 = vmatpush1.bf16.msra.mxu1 %v9855_v62  ;;  %9794 = vmatprep.subr.bf16.mxu0 %v9793_v63  ;;  %v1464_v62 = vld [vmem:[#allocation7 + $0xa80] sm:$0xff]  ;;  %v9941_v63 = vpack.c.bf16 %v1467_v57, %v1465_v56  ;;  %v9879_v5 = vpack.c.bf16 %v1328_v61, %v1326_v60  ;;  %v1486_v60 = vld [vmem:[#allocation7 + $0xb30] sm:$0xff]  ;;  %v1351_v61 = vld [vmem:[#allocation7 + $0x948] sm:$0xff] }
 0x16e   : > { %9858 = vmatprep.subr.bf16.mxu1 %v9857_v3  ;;  %v1469_v3 = vld [vmem:[#allocation7 + $0xaa8] sm:$0xff]  ;;  %v9943_v6 = vpack.c.bf16 %v1466_v0, %v1464_v62  ;;  %v1346_v57 = vld [vmem:[#allocation7 + $0x920] sm:$0xff]  ;;  %v1353_v62 = vld [vmem:[#allocation7 + $0x958] sm:$0xff] }
 0x16f   : > { %v1491_v0 = vld [vmem:[#allocation7 + $0xb58] sm:$0xff] }
 0x170   : > { %9796 = vmatpush1.bf16.msra.mxu0 %v9795_v9  ;;  %v1332_v9 = vld [vmem:[#allocation7 + $0x8b0] sm:$0xff] }
 0x171   : > { %9860 = vmatpush1.bf16.msra.mxu1 %v9859_v10  ;;  %9862 = vmatprep.subr.bf16.mxu0 %v9861_v11  ;;  %v1468_v10 = vld [vmem:[#allocation7 + $0xaa0] sm:$0xff]  ;;  %v9945_v11 = vpack.c.bf16 %v1471_v4, %v1469_v3  ;;  %v9883_v19 = vpack.c.bf16 %v1332_v9, %v1330_v8  ;;  %v9901_v3 = vpack.c.bf16 %v1353_v62, %v1351_v61  ;;  %v1490_v8 = vld [vmem:[#allocation7 + $0xb50] sm:$0xff]  ;;  %v1355_v9 = vld [vmem:[#allocation7 + $0x968] sm:$0xff] }
 0x172   : > { %9926 = vmatprep.subr.bf16.mxu1 %v9925_v17  ;;  %v1473_v17 = vld [vmem:[#allocation7 + $0xac8] sm:$0xff]  ;;  %v9947_v20 = vpack.c.bf16 %v1470_v12, %v1468_v10  ;;  %v1350_v4 = vld [vmem:[#allocation7 + $0x940] sm:$0xff]  ;;  %v1357_v10 = vld [vmem:[#allocation7 + $0x978] sm:$0xff] }
 0x173   : > { %1163 = vmatmul.mubr.f32.vlgmr.msra.gmra.mrb[2].mxu0 %v12072_v15  ;;  %v1495_v12 = vld [vmem:[#allocation7 + $0xb78] sm:$0xff] }
 0x174   : > { %1301 = vmatmul.mubr.f32.vlgmr.msra.gmra.mrb[2].mxu1 %v12072_v15  ;;  %9864 = vmatpush1.bf16.msra.mxu0 %v9863_v23  ;;  %v9871_v15 = vpack.c.bf16 %v1320_v39, %v1318_v38  ;;  %v1336_v23 = vld [vmem:[#allocation7 + $0x8d0] sm:$0xff]  ;;  %v1343_v39 = vld [vmem:[#allocation7 + $0x908] sm:$0xff] }
 0x175   : > { %9928 = vmatpush1.bf16.msra.mxu1 %v9927_v24  ;;  %9866 = vmatprep.subr.bf16.mxu0 %v9865_v25  ;;  %v1472_v24 = vld [vmem:[#allocation7 + $0xac0] sm:$0xff]  ;;  %v9949_v25 = vpack.c.bf16 %v1475_v18, %v1473_v17  ;;  %v9887_v31 = vpack.c.bf16 %v1336_v23, %v1334_v22  ;;  %v1478_v38 = vld [vmem:[#allocation7 + $0xaf0] sm:$0xff]  ;;  %v9893_v45 = vpack.c.bf16 %v1345_v40, %v1343_v39  ;;  %v1359_v23 = vld [vmem:[#allocation7 + $0x988] sm:$0xff] }
 0x176   : > { %9930 = vmatprep.subr.bf16.mxu1 %v9929_v29  ;;  %1438 = vmatprep.mubr.f32.mxu0 %v12067_v16  ;;  %v1477_v29 = vld [vmem:[#allocation7 + $0xae8] sm:$0xff]  ;;  %v9951_v32 = vpack.c.bf16 %v1474_v26, %v1472_v24  ;;  %v9905_v17 = vpack.c.bf16 %v1357_v10, %v1355_v9  ;;  %v1354_v18 = vld [vmem:[#allocation7 + $0x960] sm:$0xff]  ;;  %v1494_v22 = vld [vmem:[#allocation7 + $0xb70] sm:$0xff] }
 0x177   : > { %1576 = vmatprep.mubr.f32.mxu1 %v12067_v16  ;;  %v9939_v16 = vpack.c.bf16 %v1462_v53, %v1460_v51  ;;  %v1349_v51 = vld [vmem:[#allocation7 + $0x938] sm:$0xff] }
 0x178   : > { %9868 = vmatpush1.bf16.msra.mxu0 %v9867_v35  ;;  %v1340_v35 = vld [vmem:[#allocation7 + $0x8f0] sm:$0xff]  ;;  %v1487_v53 = vld [vmem:[#allocation7 + $0xb38] sm:$0xff]  ;;  %v9897_v56 = vpack.c.bf16 %v1349_v51, %v1347_v50 }
 0x179   : > { %9932 = vmatpush1.bf16.msra.mxu1 %v9931_v36  ;;  %9870 = vmatprep.subr.bf16.mxu0 %v9869_v37  ;;  %v1476_v36 = vld [vmem:[#allocation7 + $0xae0] sm:$0xff]  ;;  %v9953_v37 = vpack.c.bf16 %v1479_v30, %v1477_v29  ;;  %v9891_v43 = vpack.c.bf16 %v1340_v35, %v1338_v34  ;;  %v1361_v24 = vld [vmem:[#allocation7 + $0x998] sm:$0xff]  ;;  %v1498_v34 = vld [vmem:[#allocation7 + $0xb90] sm:$0xff] }
 0x17a   : > { %9934 = vmatprep.subr.bf16.mxu1 %v9933_v41  ;;  %v1481_v41 = vld [vmem:[#allocation7 + $0xb08] sm:$0xff]  ;;  %v9955_v44 = vpack.c.bf16 %v1478_v38, %v1476_v36  ;;  %v1499_v26 = vld [vmem:[#allocation7 + $0xb98] sm:$0xff]  ;;  %v9909_v29 = vpack.c.bf16 %v1361_v24, %v1359_v23  ;;  %v1358_v30 = vld [vmem:[#allocation7 + $0x980] sm:$0xff] }
 0x17b   : > { %v1363_v35 = vld [vmem:[#allocation7 + $0x9a8] sm:$0xff]  ;;  %v1365_v36 = vld [vmem:[#allocation7 + $0x9b8] sm:$0xff] }
 0x17c   : > { %9872 = vmatpush1.bf16.msra.mxu0 %v9871_v15  ;;  %v1344_v15 = vld [vmem:[#allocation7 + $0x910] sm:$0xff]  ;;  %v1503_v38 = vld [vmem:[#allocation7 + $0xbb8] sm:$0xff] }
 0x17d   : > { %9936 = vmatpush1.bf16.msra.mxu1 %v9935_v47  ;;  %9874 = vmatprep.subr.bf16.mxu0 %v9873_v48  ;;  %v1480_v47 = vld [vmem:[#allocation7 + $0xb00] sm:$0xff]  ;;  %v9957_v48 = vpack.c.bf16 %v1483_v42, %v1481_v41  ;;  %v9895_v54 = vpack.c.bf16 %v1344_v15, %v1342_v46  ;;  %v9913_v41 = vpack.c.bf16 %v1365_v36, %v1363_v35  ;;  %v1502_v46 = vld [vmem:[#allocation7 + $0xbb0] sm:$0xff]  ;;  %v1367_v15 = vld [vmem:[#allocation7 + $0x9c8] sm:$0xff] }
 0x17e   : > { %9938 = vmatprep.subr.bf16.mxu1 %v9937_v52  ;;  %v1485_v52 = vld [vmem:[#allocation7 + $0xb28] sm:$0xff]  ;;  %v9959_v55 = vpack.c.bf16 %v1482_v49, %v1480_v47  ;;  %v1362_v42 = vld [vmem:[#allocation7 + $0x9a0] sm:$0xff]  ;;  %v1369_v47 = vld [vmem:[#allocation7 + $0x9d8] sm:$0xff] }
 0x17f   : > { %v1507_v49 = vld [vmem:[#allocation7 + $0xbd8] sm:$0xff] }
 0x180   : > { %9876 = vmatpush1.bf16.msra.mxu0 %v9875_v58  ;;  %v1348_v58 = vld [vmem:[#allocation7 + $0x930] sm:$0xff]  ;;  %v1735_v35 = vld [vmem:[#allocation7 + $0xe58] sm:$0xff] }
 0x181   : > { %9940 = vmatpush1.bf16.msra.mxu1 %v9939_v16  ;;  %9878 = vmatprep.subr.bf16.mxu0 %v9877_v59  ;;  %v1484_v16 = vld [vmem:[#allocation7 + $0xb20] sm:$0xff]  ;;  %v9961_v59 = vpack.c.bf16 %v1487_v53, %v1485_v52  ;;  %v9899_v1 = vpack.c.bf16 %v1348_v58, %v1346_v57  ;;  %v9917_v52 = vpack.c.bf16 %v1369_v47, %v1367_v15  ;;  %v1506_v57 = vld [vmem:[#allocation7 + $0xbd0] sm:$0xff]  ;;  %v1371_v58 = vld [vmem:[#allocation7 + $0x9e8] sm:$0xff] }
 0x182   : > { %9942 = vmatprep.subr.bf16.mxu1 %v9941_v63  ;;  %v1489_v63 = vld [vmem:[#allocation7 + $0xb48] sm:$0xff]  ;;  %v9963_v2 = vpack.c.bf16 %v1486_v60, %v1484_v16  ;;  %v1366_v53 = vld [vmem:[#allocation7 + $0x9c0] sm:$0xff]  ;;  %v1373_v16 = vld [vmem:[#allocation7 + $0x9f8] sm:$0xff] }
 0x183   : > { %v1511_v60 = vld [vmem:[#allocation7 + $0xbf8] sm:$0xff]  ;;  %v1737_v15 = vld [vmem:[#allocation7 + $0xe68] sm:$0xff] }
 0x184   : > { %9880 = vmatpush1.bf16.msra.mxu0 %v9879_v5  ;;  %v1352_v5 = vld [vmem:[#allocation7 + $0x950] sm:$0xff]  ;;  %v1739_v47 = vld [vmem:[#allocation7 + $0xe78] sm:$0xff] }
 0x185   : > { %9944 = vmatpush1.bf16.msra.mxu1 %v9943_v6  ;;  %9882 = vmatprep.subr.bf16.mxu0 %v9881_v7  ;;  %v1488_v6 = vld [vmem:[#allocation7 + $0xb40] sm:$0xff]  ;;  %v9965_v7 = vpack.c.bf16 %v1491_v0, %v1489_v63  ;;  %v9903_v13 = vpack.c.bf16 %v1352_v5, %v1350_v4  ;;  %v9921_v63 = vpack.c.bf16 %v1373_v16, %v1371_v58  ;;  %v1510_v4 = vld [vmem:[#allocation7 + $0xbf0] sm:$0xff]  ;;  %v1587_v5 = vld [vmem:[#allocation7 + $0xc08] sm:$0xff] }
 0x186   : > { %9946 = vmatprep.subr.bf16.mxu1 %v9945_v11  ;;  %v1493_v11 = vld [vmem:[#allocation7 + $0xb68] sm:$0xff]  ;;  %v9967_v14 = vpack.c.bf16 %v1490_v8, %v1488_v6  ;;  %v1370_v0 = vld [vmem:[#allocation7 + $0x9e0] sm:$0xff]  ;;  %v1589_v6 = vld [vmem:[#allocation7 + $0xc18] sm:$0xff] }
 0x187   : > { %v1727_v8 = vld [vmem:[#allocation7 + $0xe18] sm:$0xff]  ;;  %v1741_v58 = vld [vmem:[#allocation7 + $0xe88] sm:$0xff] }
 0x188   : > { %9884 = vmatpush1.bf16.msra.mxu0 %v9883_v19  ;;  %v1356_v19 = vld [vmem:[#allocation7 + $0x970] sm:$0xff]  ;;  %v1743_v16 = vld [vmem:[#allocation7 + $0xe98] sm:$0xff] }
 0x189   : > { %9948 = vmatpush1.bf16.msra.mxu1 %v9947_v20  ;;  %9886 = vmatprep.subr.bf16.mxu0 %v9885_v21  ;;  %v1492_v20 = vld [vmem:[#allocation7 + $0xb60] sm:$0xff]  ;;  %v9969_v21 = vpack.c.bf16 %v1495_v12, %v1493_v11  ;;  %v9907_v27 = vpack.c.bf16 %v1356_v19, %v1354_v18  ;;  %v9989_v11 = vpack.c.bf16 %v1589_v6, %v1587_v5  ;;  %v1726_v18 = vld [vmem:[#allocation7 + $0xe10] sm:$0xff]  ;;  %v1591_v19 = vld [vmem:[#allocation7 + $0xc28] sm:$0xff] }
 0x18a   : > { %9950 = vmatprep.subr.bf16.mxu1 %v9949_v25  ;;  %v1497_v25 = vld [vmem:[#allocation7 + $0xb88] sm:$0xff]  ;;  %v9971_v28 = vpack.c.bf16 %v1494_v22, %v1492_v20  ;;  %v1586_v12 = vld [vmem:[#allocation7 + $0xc00] sm:$0xff]  ;;  %v1593_v20 = vld [vmem:[#allocation7 + $0xc38] sm:$0xff] }
 0x18b   : > { %v1731_v22 = vld [vmem:[#allocation7 + $0xe38] sm:$0xff]  ;;  %v1745_v5 = vld [vmem:[#allocation7 + $0xea8] sm:$0xff] }
 0x18c   : > { %9888 = vmatpush1.bf16.msra.mxu0 %v9887_v31  ;;  %v1360_v31 = vld [vmem:[#allocation7 + $0x990] sm:$0xff]  ;;  %v1747_v6 = vld [vmem:[#allocation7 + $0xeb8] sm:$0xff] }
 0x18d   : > { %9952 = vmatpush1.bf16.msra.mxu1 %v9951_v32  ;;  %9890 = vmatprep.subr.bf16.mxu0 %v9889_v33  ;;  %v1496_v32 = vld [vmem:[#allocation7 + $0xb80] sm:$0xff]  ;;  %v9973_v33 = vpack.c.bf16 %v1499_v26, %v1497_v25  ;;  %v9911_v39 = vpack.c.bf16 %v1360_v31, %v1358_v30  ;;  %v9993_v25 = vpack.c.bf16 %v1593_v20, %v1591_v19  ;;  %v1730_v30 = vld [vmem:[#allocation7 + $0xe30] sm:$0xff]  ;;  %v1595_v31 = vld [vmem:[#allocation7 + $0xc48] sm:$0xff] }
 0x18e   : > { %9954 = vmatprep.subr.bf16.mxu1 %v9953_v37  ;;  %v1501_v37 = vld [vmem:[#allocation7 + $0xba8] sm:$0xff]  ;;  %v9975_v40 = vpack.c.bf16 %v1498_v34, %v1496_v32  ;;  %v1590_v26 = vld [vmem:[#allocation7 + $0xc20] sm:$0xff]  ;;  %v1597_v32 = vld [vmem:[#allocation7 + $0xc58] sm:$0xff] }
 0x18f   : > { %v1733_v34 = vld [vmem:[#allocation7 + $0xe48] sm:$0xff]  ;;  %v1751_v20 = vld [vmem:[#allocation7 + $0xed8] sm:$0xff] }
 0x190   : > { %9892 = vmatpush1.bf16.msra.mxu0 %v9891_v43  ;;  %v1364_v43 = vld [vmem:[#allocation7 + $0x9b0] sm:$0xff]  ;;  %v1749_v19 = vld [vmem:[#allocation7 + $0xec8] sm:$0xff] }
 0x191   : > { %9956 = vmatpush1.bf16.msra.mxu1 %v9955_v44  ;;  %9894 = vmatprep.subr.bf16.mxu0 %v9893_v45  ;;  %v1500_v44 = vld [vmem:[#allocation7 + $0xba0] sm:$0xff]  ;;  %v9977_v45 = vpack.c.bf16 %v1503_v38, %v1501_v37  ;;  %v9915_v50 = vpack.c.bf16 %v1364_v43, %v1362_v42  ;;  %v9997_v38 = vpack.c.bf16 %v1597_v32, %v1595_v31  ;;  %v1734_v43 = vld [vmem:[#allocation7 + $0xe50] sm:$0xff]  ;;  %v1753_v31 = vld [vmem:[#allocation7 + $0xee8] sm:$0xff] }
 0x192   : > { %9958 = vmatprep.subr.bf16.mxu1 %v9957_v48  ;;  %v1505_v48 = vld [vmem:[#allocation7 + $0xbc8] sm:$0xff]  ;;  %v9979_v51 = vpack.c.bf16 %v1502_v46, %v1500_v44  ;;  %v10061_v42 = vpack.c.bf16 %v1735_v35, %v1733_v34  ;;  %v12088_v46 = vld [vmem:[%s12064_s14 + $0x8] sm:$0xff] }
 0x193   : > { %v1599_v44 = vld [vmem:[#allocation7 + $0xc68] sm:$0xff]  ;;  %v1755_v32 = vld [vmem:[#allocation7 + $0xef8] sm:$0xff] }
 0x194   : > { %9896 = vmatpush1.bf16.msra.mxu0 %v9895_v54  ;;  %v1368_v54 = vld [vmem:[#allocation7 + $0x9d0] sm:$0xff] }
 0x195   : > { %9960 = vmatpush1.bf16.msra.mxu1 %v9959_v55  ;;  %9898 = vmatprep.subr.bf16.mxu0 %v9897_v56  ;;  %v1504_v55 = vld [vmem:[#allocation7 + $0xbc0] sm:$0xff]  ;;  %v9981_v56 = vpack.c.bf16 %v1507_v49, %v1505_v48  ;;  %v9919_v61 = vpack.c.bf16 %v1368_v54, %v1366_v53  ;;  %v10065_v54 = vpack.c.bf16 %v1739_v47, %v1737_v15 }
 0x196   : > { %9962 = vmatprep.subr.bf16.mxu1 %v9961_v59  ;;  %v1509_v59 = vld [vmem:[#allocation7 + $0xbe8] sm:$0xff]  ;;  %v9983_v62 = vpack.c.bf16 %v1506_v57, %v1504_v55  ;;  %v1736_v53 = vld [vmem:[#allocation7 + $0xe60] sm:$0xff]  ;;  %v1738_v55 = vld [vmem:[#allocation7 + $0xe70] sm:$0xff] }
 0x197   : > { %v1605_v57 = vld [vmem:[#allocation7 + $0xc98] sm:$0xff] }
 0x198   : > { %9900 = vmatpush1.bf16.msra.mxu0 %v9899_v1  ;;  %v1372_v1 = vld [vmem:[#allocation7 + $0x9f0] sm:$0xff] }
 0x199   : > { %9964 = vmatpush1.bf16.msra.mxu1 %v9963_v2  ;;  %9902 = vmatprep.subr.bf16.mxu0 %v9901_v3  ;;  %v1508_v2 = vld [vmem:[#allocation7 + $0xbe0] sm:$0xff]  ;;  %v9985_v3 = vpack.c.bf16 %v1511_v60, %v1509_v59  ;;  %v9923_v9 = vpack.c.bf16 %v1372_v1, %v1370_v0  ;;  %v10067_v60 = vpack.c.bf16 %v1738_v55, %v1736_v53  ;;  %v1758_v53 = vld [vmem:[#allocation7 + $0xf10] sm:$0xff]  ;;  %v1625_v55 = vld [vmem:[#allocation7 + $0xd38] sm:$0xff] }
 0x19a   : > { %9966 = vmatprep.subr.bf16.mxu1 %v9965_v7  ;;  %v1725_v7 = vld [vmem:[#allocation7 + $0xe08] sm:$0xff]  ;;  %v9987_v10 = vpack.c.bf16 %v1510_v4, %v1508_v2  ;;  %v1740_v0 = vld [vmem:[#allocation7 + $0xe80] sm:$0xff]  ;;  %v10069_v1 = vpack.c.bf16 %v1743_v16, %v1741_v58  ;;  %v1742_v2 = vld [vmem:[#allocation7 + $0xe90] sm:$0xff] }
 0x19b   : > { %v1609_v4 = vld [vmem:[#allocation7 + $0xcb8] sm:$0xff] }
 0x19c   : > { %9904 = vmatpush1.bf16.msra.mxu0 %v9903_v13  ;;  %v1588_v13 = vld [vmem:[#allocation7 + $0xc10] sm:$0xff] }
 0x19d   : > { %9968 = vmatpush1.bf16.msra.mxu1 %v9967_v14  ;;  %9906 = vmatprep.subr.bf16.mxu0 %v9905_v17  ;;  %v1724_v14 = vld [vmem:[#allocation7 + $0xe00] sm:$0xff]  ;;  %v10053_v17 = vpack.c.bf16 %v1727_v8, %v1725_v7  ;;  %v9991_v23 = vpack.c.bf16 %v1588_v13, %v1586_v12  ;;  %v10071_v8 = vpack.c.bf16 %v1742_v2, %v1740_v0  ;;  %v1762_v0 = vld [vmem:[#allocation7 + $0xf30] sm:$0xff]  ;;  %v1629_v2 = vld [vmem:[#allocation7 + $0xd58] sm:$0xff] }
 0x19e   : > { %9970 = vmatprep.subr.bf16.mxu1 %v9969_v21  ;;  %v1729_v21 = vld [vmem:[#allocation7 + $0xe28] sm:$0xff]  ;;  %v10055_v24 = vpack.c.bf16 %v1726_v18, %v1724_v14  ;;  %v1744_v12 = vld [vmem:[#allocation7 + $0xea0] sm:$0xff]  ;;  %v10073_v13 = vpack.c.bf16 %v1747_v6, %v1745_v5  ;;  %v1746_v14 = vld [vmem:[#allocation7 + $0xeb0] sm:$0xff] }
 0x19f   : > { %v1613_v18 = vld [vmem:[#allocation7 + $0xcd8] sm:$0xff] }
 0x1a0   : > { %9908 = vmatpush1.bf16.msra.mxu0 %v9907_v27  ;;  %v1592_v27 = vld [vmem:[#allocation7 + $0xc30] sm:$0xff] }
 0x1a1   : > { %9972 = vmatpush1.bf16.msra.mxu1 %v9971_v28  ;;  %9910 = vmatprep.subr.bf16.mxu0 %v9909_v29  ;;  %v1728_v28 = vld [vmem:[#allocation7 + $0xe20] sm:$0xff]  ;;  %v10057_v29 = vpack.c.bf16 %v1731_v22, %v1729_v21  ;;  %v9995_v36 = vpack.c.bf16 %v1592_v27, %v1590_v26  ;;  %v10075_v22 = vpack.c.bf16 %v1746_v14, %v1744_v12  ;;  %v1766_v12 = vld [vmem:[#allocation7 + $0xf50] sm:$0xff]  ;;  %v1633_v14 = vld [vmem:[#allocation7 + $0xd78] sm:$0xff] }
 0x1a2   : > { %9974 = vmatprep.subr.bf16.mxu1 %v9973_v33  ;;  %v12083_v33 = vld [vmem:[%s12064_s14] sm:$0xff]  ;;  %v10059_v37 = vpack.c.bf16 %v1730_v30, %v1728_v28  ;;  %v1748_v26 = vld [vmem:[#allocation7 + $0xec0] sm:$0xff]  ;;  %v10077_v27 = vpack.c.bf16 %v1751_v20, %v1749_v19  ;;  %v1617_v30 = vld [vmem:[#allocation7 + $0xcf8] sm:$0xff] }
 0x1a3   : > { %v1750_v28 = vld [vmem:[#allocation7 + $0xed0] sm:$0xff] }
 0x1a4   : > { %9912 = vmatpush1.bf16.msra.mxu0 %v9911_v39  ;;  %v1594_v39 = vld [vmem:[#allocation7 + $0xc40] sm:$0xff]  ;;  %v10079_v35 = vpack.c.bf16 %v1750_v28, %v1748_v26  ;;  %v1770_v26 = vld [vmem:[#allocation7 + $0xf70] sm:$0xff]  ;;  %v1637_v28 = vld [vmem:[#allocation7 + $0xd98] sm:$0xff] }
 0x1a5   : > { %9976 = vmatpush1.bf16.msra.mxu1 %v9975_v40  ;;  %9914 = vmatprep.subr.bf16.mxu0 %v9913_v41  ;;  %v1596_v40 = vld [vmem:[#allocation7 + $0xc50] sm:$0xff]  ;;  %v1732_v41 = vld [vmem:[#allocation7 + $0xe40] sm:$0xff] }
 0x1a6   : > { %9978 = vmatprep.subr.bf16.mxu1 %v9977_v45  ;;  %v1601_v45 = vld [vmem:[#allocation7 + $0xc78] sm:$0xff]  ;;  %v9999_v48 = vpack.c.bf16 %v1596_v40, %v1594_v39  ;;  %v10063_v49 = vpack.c.bf16 %v1734_v43, %v1732_v41  ;;  %v1752_v39 = vld [vmem:[#allocation7 + $0xee0] sm:$0xff]  ;;  %v10081_v40 = vpack.c.bf16 %v1755_v32, %v1753_v31  ;;  %v1754_v41 = vld [vmem:[#allocation7 + $0xef0] sm:$0xff] }
 0x1a7   : > { %v1621_v43 = vld [vmem:[#allocation7 + $0xd18] sm:$0xff]  ;;  %v10083_v47 = vpack.c.bf16 %v1754_v41, %v1752_v39  ;;  %v1774_v39 = vld [vmem:[#allocation7 + $0xf90] sm:$0xff] }
 0x1a8   : > { %9916 = vmatpush1.bf16.msra.mxu0 %v9915_v50  ;;  %v10001_v50 = vpack.c.bf16 %v1601_v45, %v1599_v44  ;;  %v1757_v44 = vld [vmem:[#allocation7 + $0xf08] sm:$0xff]  ;;  %v1759_v45 = vld [vmem:[#allocation7 + $0xf18] sm:$0xff] }
 0x1a9   : > { %9980 = vmatpush1.bf16.msra.mxu1 %v9979_v51  ;;  %9918 = vmatprep.subr.bf16.mxu0 %v9917_v52  ;;  %v1598_v51 = vld [vmem:[#allocation7 + $0xc60] sm:$0xff]  ;;  %v1600_v52 = vld [vmem:[#allocation7 + $0xc70] sm:$0xff]  ;;  %v1641_v41 = vld [vmem:[#allocation7 + $0xdb8] sm:$0xff] }
 0x1aa   : > { %9982 = vmatprep.subr.bf16.mxu1 %v9981_v56  ;;  %v1603_v56 = vld [vmem:[#allocation7 + $0xc88] sm:$0xff]  ;;  %v10003_v59 = vpack.c.bf16 %v1600_v52, %v1598_v51  ;;  %v1756_v51 = vld [vmem:[#allocation7 + $0xf00] sm:$0xff]  ;;  %v10085_v52 = vpack.c.bf16 %v1759_v45, %v1757_v44 }
 0x1ab   : > { %v10087_v16 = vpack.c.bf16 %v1758_v53, %v1756_v51  ;;  %v1778_v51 = vld [vmem:[#allocation7 + $0xfb0] sm:$0xff]  ;;  %v1645_v53 = vld [vmem:[#allocation7 + $0xdd8] sm:$0xff] }
 0x1ac   : > { %9920 = vmatpush1.bf16.msra.mxu0 %v9919_v61  ;;  %v10005_v61 = vpack.c.bf16 %v1605_v57, %v1603_v56  ;;  %v1761_v56 = vld [vmem:[#allocation7 + $0xf28] sm:$0xff]  ;;  %v1763_v57 = vld [vmem:[#allocation7 + $0xf38] sm:$0xff] }
 0x1ad   : > { %9984 = vmatpush1.bf16.msra.mxu1 %v9983_v62  ;;  %9922 = vmatprep.subr.bf16.mxu0 %v9921_v63  ;;  %v1602_v62 = vld [vmem:[#allocation7 + $0xc80] sm:$0xff]  ;;  %v1604_v63 = vld [vmem:[#allocation7 + $0xc90] sm:$0xff] }
 0x1ae   : > { %9986 = vmatprep.subr.bf16.mxu1 %v9985_v3  ;;  %v1607_v3 = vld [vmem:[#allocation7 + $0xca8] sm:$0xff]  ;;  %v10007_v7 = vpack.c.bf16 %v1604_v63, %v1602_v62  ;;  %v1760_v62 = vld [vmem:[#allocation7 + $0xf20] sm:$0xff]  ;;  %v10089_v63 = vpack.c.bf16 %v1763_v57, %v1761_v56 }
 0x1af   : > { %v10091_v6 = vpack.c.bf16 %v1762_v0, %v1760_v62  ;;  %v1782_v62 = vld [vmem:[#allocation7 + $0xfd0] sm:$0xff]  ;;  %v1649_v0 = vld [vmem:[#allocation7 + $0xdf8] sm:$0xff] }
 0x1b0   : > { %9924 = vmatpush1.bf16.msra.mxu0 %v9923_v9  ;;  %v10009_v9 = vpack.c.bf16 %v1609_v4, %v1607_v3  ;;  %v1765_v3 = vld [vmem:[#allocation7 + $0xf48] sm:$0xff]  ;;  %v1767_v4 = vld [vmem:[#allocation7 + $0xf58] sm:$0xff] }
 0x1b1   : > { %9988 = vmatpush1.bf16.msra.mxu1 %v9987_v10  ;;  %9990 = vmatprep.subr.bf16.mxu0 %v9989_v11  ;;  %v1606_v10 = vld [vmem:[#allocation7 + $0xca0] sm:$0xff]  ;;  %v1608_v11 = vld [vmem:[#allocation7 + $0xcb0] sm:$0xff] }
 0x1b2   : > { %10054 = vmatprep.subr.bf16.mxu1 %v10053_v17  ;;  %v1611_v17 = vld [vmem:[#allocation7 + $0xcc8] sm:$0xff]  ;;  %v10011_v21 = vpack.c.bf16 %v1608_v11, %v1606_v10  ;;  %v1764_v10 = vld [vmem:[#allocation7 + $0xf40] sm:$0xff]  ;;  %v10093_v11 = vpack.c.bf16 %v1767_v4, %v1765_v3 }
 0x1b3   : > { %1439 = vmatmul.mubr.f32.vlgmr.msra.gmra.mrb[4].mxu0 %v12083_v33  ;;  %v10095_v20 = vpack.c.bf16 %v1766_v12, %v1764_v10  ;;  %v1786_v10 = vld [vmem:[#allocation7 + $0xff0] sm:$0xff]  ;;  %v1865_v12 = vld [vmem:[#allocation7 + $0x1018] sm:$0xff] }
 0x1b4   : > { %1577 = vmatmul.mubr.f32.vlgmr.msra.gmra.mrb[4].mxu1 %v12083_v33  ;;  %9992 = vmatpush1.bf16.msra.mxu0 %v9991_v23  ;;  %v10013_v23 = vpack.c.bf16 %v1613_v18, %v1611_v17  ;;  %v1769_v17 = vld [vmem:[#allocation7 + $0xf68] sm:$0xff]  ;;  %v1771_v18 = vld [vmem:[#allocation7 + $0xf78] sm:$0xff] }
 0x1b5   : > { %10056 = vmatpush1.bf16.msra.mxu1 %v10055_v24  ;;  %9994 = vmatprep.subr.bf16.mxu0 %v9993_v25  ;;  %v1610_v24 = vld [vmem:[#allocation7 + $0xcc0] sm:$0xff]  ;;  %v1612_v25 = vld [vmem:[#allocation7 + $0xcd0] sm:$0xff] }
 0x1b6   : > { %10058 = vmatprep.subr.bf16.mxu1 %v10057_v29  ;;  %1714 = vmatprep.mubr.f32.mxu0 %v12088_v46  ;;  %v1615_v29 = vld [vmem:[#allocation7 + $0xce8] sm:$0xff]  ;;  %v10015_v34 = vpack.c.bf16 %v1612_v25, %v1610_v24  ;;  %v1768_v24 = vld [vmem:[#allocation7 + $0xf60] sm:$0xff]  ;;  %v10097_v25 = vpack.c.bf16 %v1771_v18, %v1769_v17 }
 0x1b7   : > { %1852 = vmatprep.mubr.f32.mxu1 %v12088_v46  ;;  %v10099_v32 = vpack.c.bf16 %v1770_v26, %v1768_v24  ;;  %v1862_v18 = vld [vmem:[#allocation7 + $0x1000] sm:$0xff]  ;;  %v1871_v26 = vld [vmem:[#allocation7 + $0x1048] sm:$0xff] }
 0x1b8   : > { %9996 = vmatpush1.bf16.msra.mxu0 %v9995_v36  ;;  %v10017_v36 = vpack.c.bf16 %v1617_v30, %v1615_v29  ;;  %v1773_v29 = vld [vmem:[#allocation7 + $0xf88] sm:$0xff]  ;;  %v1775_v30 = vld [vmem:[#allocation7 + $0xf98] sm:$0xff]  ;;  %v1866_v24 = vld [vmem:[#allocation7 + $0x1020] sm:$0xff] }
 0x1b9   : > { %10060 = vmatpush1.bf16.msra.mxu1 %v10059_v37  ;;  %9998 = vmatprep.subr.bf16.mxu0 %v9997_v38  ;;  %v1614_v37 = vld [vmem:[#allocation7 + $0xce0] sm:$0xff]  ;;  %v1616_v38 = vld [vmem:[#allocation7 + $0xcf0] sm:$0xff] }
 0x1ba   : > { %10062 = vmatprep.subr.bf16.mxu1 %v10061_v42  ;;  %v1619_v42 = vld [vmem:[#allocation7 + $0xd08] sm:$0xff]  ;;  %v10019_v15 = vpack.c.bf16 %v1616_v38, %v1614_v37  ;;  %v1772_v37 = vld [vmem:[#allocation7 + $0xf80] sm:$0xff]  ;;  %v10101_v38 = vpack.c.bf16 %v1775_v30, %v1773_v29 }
 0x1bb   : > { %v10103_v45 = vpack.c.bf16 %v1774_v39, %v1772_v37  ;;  %v1870_v30 = vld [vmem:[#allocation7 + $0x1040] sm:$0xff]  ;;  %v1879_v39 = vld [vmem:[#allocation7 + $0x1088] sm:$0xff] }
 0x1bc   : > { %10000 = vmatpush1.bf16.msra.mxu0 %v9999_v48  ;;  %v10021_v48 = vpack.c.bf16 %v1621_v43, %v1619_v42  ;;  %v1777_v42 = vld [vmem:[#allocation7 + $0xfa8] sm:$0xff]  ;;  %v1779_v43 = vld [vmem:[#allocation7 + $0xfb8] sm:$0xff]  ;;  %v1874_v37 = vld [vmem:[#allocation7 + $0x1060] sm:$0xff] }
 0x1bd   : > { %10064 = vmatpush1.bf16.msra.mxu1 %v10063_v49  ;;  %10002 = vmatprep.subr.bf16.mxu0 %v10001_v50  ;;  %v1618_v49 = vld [vmem:[#allocation7 + $0xd00] sm:$0xff]  ;;  %v1620_v50 = vld [vmem:[#allocation7 + $0xd10] sm:$0xff] }
 0x1be   : > { %10066 = vmatprep.subr.bf16.mxu1 %v10065_v54  ;;  %v1623_v54 = vld [vmem:[#allocation7 + $0xd28] sm:$0xff]  ;;  %v10023_v58 = vpack.c.bf16 %v1620_v50, %v1618_v49  ;;  %v1776_v49 = vld [vmem:[#allocation7 + $0xfa0] sm:$0xff]  ;;  %v10105_v50 = vpack.c.bf16 %v1779_v43, %v1777_v42 }
 0x1bf   : > { %v10107_v57 = vpack.c.bf16 %v1778_v51, %v1776_v49  ;;  %v1878_v43 = vld [vmem:[#allocation7 + $0x1080] sm:$0xff]  ;;  %v1884_v49 = vld [vmem:[#allocation7 + $0x10b0] sm:$0xff]  ;;  %v1889_v51 = vld [vmem:[#allocation7 + $0x10d8] sm:$0xff] }
 0x1c0   : > { %10004 = vmatpush1.bf16.msra.mxu0 %v10003_v59  ;;  %v10025_v59 = vpack.c.bf16 %v1625_v55, %v1623_v54  ;;  %v1781_v54 = vld [vmem:[#allocation7 + $0xfc8] sm:$0xff]  ;;  %v1783_v55 = vld [vmem:[#allocation7 + $0xfd8] sm:$0xff] }
 0x1c1   : > { %10068 = vmatpush1.bf16.msra.mxu1 %v10067_v60  ;;  %10006 = vmatprep.subr.bf16.mxu0 %v10005_v61  ;;  %v1622_v60 = vld [vmem:[#allocation7 + $0xd20] sm:$0xff]  ;;  %v1624_v61 = vld [vmem:[#allocation7 + $0xd30] sm:$0xff] }
 0x1c2   : > { %10070 = vmatprep.subr.bf16.mxu1 %v10069_v1  ;;  %v1627_v1 = vld [vmem:[#allocation7 + $0xd48] sm:$0xff]  ;;  %v10027_v5 = vpack.c.bf16 %v1624_v61, %v1622_v60  ;;  %v1780_v60 = vld [vmem:[#allocation7 + $0xfc0] sm:$0xff]  ;;  %v10109_v61 = vpack.c.bf16 %v1783_v55, %v1781_v54  ;;  %v1888_v55 = vld [vmem:[#allocation7 + $0x10d0] sm:$0xff] }
 0x1c3   : > { %v10111_v4 = vpack.c.bf16 %v1782_v62, %v1780_v60  ;;  %v1886_v54 = vld [vmem:[#allocation7 + $0x10c0] sm:$0xff] }
 0x1c4   : > { %10008 = vmatpush1.bf16.msra.mxu0 %v10007_v7  ;;  %v10029_v7 = vpack.c.bf16 %v1629_v2, %v1627_v1  ;;  %v1785_v1 = vld [vmem:[#allocation7 + $0xfe8] sm:$0xff]  ;;  %v1787_v2 = vld [vmem:[#allocation7 + $0xff8] sm:$0xff]  ;;  %v10143_v62 = vpack.c.bf16 %v1888_v55, %v1886_v54 }
 0x1c5   : > { %10072 = vmatpush1.bf16.msra.mxu1 %v10071_v8  ;;  %10010 = vmatprep.subr.bf16.mxu0 %v10009_v9  ;;  %v1626_v8 = vld [vmem:[#allocation7 + $0xd40] sm:$0xff]  ;;  %v1628_v9 = vld [vmem:[#allocation7 + $0xd50] sm:$0xff] }
 0x1c6   : > { %10074 = vmatprep.subr.bf16.mxu1 %v10073_v13  ;;  %v1631_v13 = vld [vmem:[#allocation7 + $0xd68] sm:$0xff]  ;;  %v10031_v19 = vpack.c.bf16 %v1628_v9, %v1626_v8  ;;  %v1784_v8 = vld [vmem:[#allocation7 + $0xfe0] sm:$0xff]  ;;  %v10113_v9 = vpack.c.bf16 %v1787_v2, %v1785_v1  ;;  %v1892_v2 = vld [vmem:[#allocation7 + $0x10f0] sm:$0xff] }
 0x1c7   : > { %v1890_v1 = vld [vmem:[#allocation7 + $0x10e0] sm:$0xff] }
 0x1c8   : > { %10012 = vmatpush1.bf16.msra.mxu0 %v10011_v21  ;;  %v10033_v21 = vpack.c.bf16 %v1633_v14, %v1631_v13  ;;  %v10115_v14 = vpack.c.bf16 %v1786_v10, %v1784_v8  ;;  %v1896_v8 = vld [vmem:[#allocation7 + $0x1110] sm:$0xff]  ;;  %v1901_v10 = vld [vmem:[#allocation7 + $0x1138] sm:$0xff] }
 0x1c9   : > { %10076 = vmatpush1.bf16.msra.mxu1 %v10075_v22  ;;  %10014 = vmatprep.subr.bf16.mxu0 %v10013_v23  ;;  %v1630_v22 = vld [vmem:[#allocation7 + $0xd60] sm:$0xff]  ;;  %v1632_v23 = vld [vmem:[#allocation7 + $0xd70] sm:$0xff] }
 0x1ca   : > { %10078 = vmatprep.subr.bf16.mxu1 %v10077_v27  ;;  %v1635_v27 = vld [vmem:[#allocation7 + $0xd88] sm:$0xff]  ;;  %v10035_v31 = vpack.c.bf16 %v1632_v23, %v1630_v22 }
 0x1cc   : > { %10016 = vmatpush1.bf16.msra.mxu0 %v10015_v34  ;;  %v10037_v34 = vpack.c.bf16 %v1637_v28, %v1635_v27  ;;  %v1873_v27 = vld [vmem:[#allocation7 + $0x1058] sm:$0xff] }
 0x1cd   : > { %10080 = vmatpush1.bf16.msra.mxu1 %v10079_v35  ;;  %10018 = vmatprep.subr.bf16.mxu0 %v10017_v36  ;;  %v1634_v35 = vld [vmem:[#allocation7 + $0xd80] sm:$0xff]  ;;  %v1636_v36 = vld [vmem:[#allocation7 + $0xd90] sm:$0xff]  ;;  %v10125_v29 = vpack.c.bf16 %v1873_v27, %v1871_v26 }
 0x1ce   : > { %10082 = vmatprep.subr.bf16.mxu1 %v10081_v40  ;;  %v1639_v40 = vld [vmem:[#allocation7 + $0xda8] sm:$0xff]  ;;  %v10039_v44 = vpack.c.bf16 %v1636_v36, %v1634_v35  ;;  %v1906_v27 = vld [vmem:[#allocation7 + $0x1160] sm:$0xff] }
 0x1d0   : > { %10020 = vmatpush1.bf16.msra.mxu0 %v10019_v15  ;;  %v10041_v15 = vpack.c.bf16 %v1641_v41, %v1639_v40  ;;  %v1881_v40 = vld [vmem:[#allocation7 + $0x1098] sm:$0xff] }
 0x1d1   : > { %10084 = vmatpush1.bf16.msra.mxu1 %v10083_v47  ;;  %10022 = vmatprep.subr.bf16.mxu0 %v10021_v48  ;;  %v1638_v47 = vld [vmem:[#allocation7 + $0xda0] sm:$0xff]  ;;  %v1640_v48 = vld [vmem:[#allocation7 + $0xdb0] sm:$0xff]  ;;  %v10133_v42 = vpack.c.bf16 %v1881_v40, %v1879_v39 }
 0x1d2   : > { %10086 = vmatprep.subr.bf16.mxu1 %v10085_v52  ;;  %v1643_v52 = vld [vmem:[#allocation7 + $0xdc8] sm:$0xff]  ;;  %v10043_v56 = vpack.c.bf16 %v1640_v48, %v1638_v47  ;;  %v1882_v48 = vld [vmem:[#allocation7 + $0x10a0] sm:$0xff] }
 0x1d3   : > { %v1914_v40 = vld [vmem:[#allocation7 + $0x11a0] sm:$0xff] }
 0x1d4   : > { %10024 = vmatpush1.bf16.msra.mxu0 %v10023_v58  ;;  %v10045_v58 = vpack.c.bf16 %v1645_v53, %v1643_v52  ;;  %v10139_v52 = vpack.c.bf16 %v1884_v49, %v1882_v48  ;;  %v1925_v48 = vld [vmem:[#allocation7 + $0x11f8] sm:$0xff] }
 0x1d5   : > { %10088 = vmatpush1.bf16.msra.mxu1 %v10087_v16  ;;  %10026 = vmatprep.subr.bf16.mxu0 %v10025_v59  ;;  %v1642_v16 = vld [vmem:[#allocation7 + $0xdc0] sm:$0xff]  ;;  %v1644_v59 = vld [vmem:[#allocation7 + $0xdd0] sm:$0xff] }
 0x1d6   : > { %10090 = vmatprep.subr.bf16.mxu1 %v10089_v63  ;;  %v1647_v63 = vld [vmem:[#allocation7 + $0xde8] sm:$0xff]  ;;  %v10047_v3 = vpack.c.bf16 %v1644_v59, %v1642_v16 }
 0x1d8   : > { %10028 = vmatpush1.bf16.msra.mxu0 %v10027_v5  ;;  %v10049_v5 = vpack.c.bf16 %v1649_v0, %v1647_v63 }
 0x1d9   : > { %10092 = vmatpush1.bf16.msra.mxu1 %v10091_v6  ;;  %10030 = vmatprep.subr.bf16.mxu0 %v10029_v7  ;;  %v1646_v6 = vld [vmem:[#allocation7 + $0xde0] sm:$0xff]  ;;  %v1648_v7 = vld [vmem:[#allocation7 + $0xdf0] sm:$0xff] }
 0x1da   : > { %10094 = vmatprep.subr.bf16.mxu1 %v10093_v11  ;;  %v1863_v11 = vld [vmem:[#allocation7 + $0x1008] sm:$0xff]  ;;  %v10051_v13 = vpack.c.bf16 %v1648_v7, %v1646_v6  ;;  %v1894_v7 = vld [vmem:[#allocation7 + $0x1100] sm:$0xff] }
 0x1db   : > { %v10117_v17 = vpack.c.bf16 %v1865_v12, %v1863_v11  ;;  %v10151_v11 = vpack.c.bf16 %v1896_v8, %v1894_v7  ;;  %v2408_v7 = vld [vmem:[#allocation14 + $0x288] sm:$0xff]  ;;  %v3580_v8 = vld [vmem:[%s12819_s19] sm:$0xff] }
 0x1dc   : > { %10032 = vmatpush1.bf16.msra.mxu0 %v10031_v19  ;;  %v1864_v19 = vld [vmem:[#allocation7 + $0x1010] sm:$0xff] }
 0x1dd   : > { %10096 = vmatpush1.bf16.msra.mxu1 %v10095_v20  ;;  %10034 = vmatprep.subr.bf16.mxu0 %v10033_v21  ;;  %v1867_v20 = vld [vmem:[#allocation7 + $0x1028] sm:$0xff]  ;;  %v1869_v21 = vld [vmem:[#allocation7 + $0x1038] sm:$0xff]  ;;  %v10119_v22 = vpack.c.bf16 %v1864_v19, %v1862_v18 }
 0x1de   : > { %10098 = vmatprep.subr.bf16.mxu1 %v10097_v25  ;;  %v10121_v23 = vpack.c.bf16 %v1869_v21, %v1867_v20  ;;  %v1868_v25 = vld [vmem:[#allocation7 + $0x1030] sm:$0xff]  ;;  %v1905_v18 = vld [vmem:[#allocation7 + $0x1158] sm:$0xff]  ;;  %v1902_v21 = vld [vmem:[#allocation7 + $0x1140] sm:$0xff] }
 0x1df   : > { %v10123_v28 = vpack.c.bf16 %v1868_v25, %v1866_v24  ;;  %v1909_v24 = vld [vmem:[#allocation7 + $0x1178] sm:$0xff] }
 0x1e0   : > { %10036 = vmatpush1.bf16.msra.mxu0 %v10035_v31  ;;  %v1872_v31 = vld [vmem:[#allocation7 + $0x1050] sm:$0xff] }
 0x1e1   : > { %10100 = vmatpush1.bf16.msra.mxu1 %v10099_v32  ;;  %10038 = vmatprep.subr.bf16.mxu0 %v10037_v34  ;;  %v1875_v32 = vld [vmem:[#allocation7 + $0x1068] sm:$0xff]  ;;  %v1877_v34 = vld [vmem:[#allocation7 + $0x1078] sm:$0xff]  ;;  %v10127_v35 = vpack.c.bf16 %v1872_v31, %v1870_v30 }
 0x1e2   : > { %10102 = vmatprep.subr.bf16.mxu1 %v10101_v38  ;;  %v10129_v36 = vpack.c.bf16 %v1877_v34, %v1875_v32  ;;  %v1876_v38 = vld [vmem:[#allocation7 + $0x1070] sm:$0xff]  ;;  %v1913_v30 = vld [vmem:[#allocation7 + $0x1198] sm:$0xff]  ;;  %v1910_v34 = vld [vmem:[#allocation7 + $0x1180] sm:$0xff] }
 0x1e3   : > { %v10131_v41 = vpack.c.bf16 %v1876_v38, %v1874_v37  ;;  %v1917_v37 = vld [vmem:[#allocation7 + $0x11b8] sm:$0xff] }
 0x1e4   : > { %10040 = vmatpush1.bf16.msra.mxu0 %v10039_v44  ;;  %v1880_v44 = vld [vmem:[#allocation7 + $0x1090] sm:$0xff] }
 0x1e5   : > { %10104 = vmatpush1.bf16.msra.mxu1 %v10103_v45  ;;  %10042 = vmatprep.subr.bf16.mxu0 %v10041_v15  ;;  %v1883_v45 = vld [vmem:[#allocation7 + $0x10a8] sm:$0xff]  ;;  %v1885_v15 = vld [vmem:[#allocation7 + $0x10b8] sm:$0xff] }
 0x1e6   : > { %10106 = vmatprep.subr.bf16.mxu1 %v10105_v50  ;;  %v10137_v47 = vpack.c.bf16 %v1885_v15, %v1883_v45  ;;  %v1887_v50 = vld [vmem:[#allocation7 + $0x10c8] sm:$0xff]  ;;  %v1918_v15 = vld [vmem:[#allocation7 + $0x11c0] sm:$0xff] }
 0x1e7   : > { %v10141_v53 = vpack.c.bf16 %v1889_v51, %v1887_v50  ;;  %v1922_v51 = vld [vmem:[#allocation7 + $0x11e0] sm:$0xff] }
 0x1e8   : > { %10044 = vmatpush1.bf16.msra.mxu0 %v10043_v56 }
 0x1e9   : > { %10108 = vmatpush1.bf16.msra.mxu1 %v10107_v57  ;;  %10046 = vmatprep.subr.bf16.mxu0 %v10045_v58  ;;  %v1891_v57 = vld [vmem:[#allocation7 + $0x10e8] sm:$0xff]  ;;  %v1893_v58 = vld [vmem:[#allocation7 + $0x10f8] sm:$0xff] }
 0x1ea   : > { %10110 = vmatprep.subr.bf16.mxu1 %v10109_v61  ;;  %v10145_v0 = vpack.c.bf16 %v1893_v58, %v1891_v57 }
 0x1ec   : > { %10048 = vmatpush1.bf16.msra.mxu0 %v10047_v3  ;;  %v1895_v3 = vld [vmem:[#allocation7 + $0x1108] sm:$0xff] }
 0x1ed   : > { %10112 = vmatpush1.bf16.msra.mxu1 %v10111_v4  ;;  %10050 = vmatprep.subr.bf16.mxu0 %v10049_v5  ;;  %v1897_v4 = vld [vmem:[#allocation7 + $0x1118] sm:$0xff]  ;;  %v10147_v5 = vpack.c.bf16 %v1892_v2, %v1890_v1  ;;  %v11716_v1 = vmov 0.0   ;;  %v11717_v2 = vmov 0  }
 0x1ee   : > { %10114 = vmatprep.subr.bf16.mxu1 %v10113_v9  ;;  %v10149_v6 = vpack.c.bf16 %v1897_v4, %v1895_v3  ;;  %v1899_v9 = vld [vmem:[#allocation7 + $0x1128] sm:$0xff]  ;;  %11445 = vset.pattern.permute.xlu0 %v11717_v2  ;;  %v2023_v3 = vld [vmem:[%s12818_s7 + $0x10] sm:$0xff]  ;;  %v2022_v4 = vld [vmem:[%s12818_s7 + $0x8] sm:$0xff] }
 0x1ef   : > { %v10153_v12 = vpack.c.bf16 %v1901_v10, %v1899_v9  ;;  %11446 = vset.pattern.permute.xlu1 %v11717_v2  ;;  %v2391_v10 = vld [vmem:[#allocation14 + $0x200] sm:$0xff]  ;;  %v2156_v2 = vld [vmem:[#allocation14 + $0x8] sm:$0xff] }
 0x1f0   : > { %10052 = vmatpush1.bf16.msra.mxu0 %v10051_v13  ;;  %v1898_v13 = vld [vmem:[#allocation7 + $0x1120] sm:$0xff]  ;;  %2037 = vperm.xlu1 %11446, %v2023_v3  }
 0x1f1   : > { %10116 = vmatpush1.bf16.msra.mxu1 %v10115_v14  ;;  %10118 = vmatprep.subr.bf16.mxu0 %v10117_v17  ;;  %v1900_v14 = vld [vmem:[#allocation7 + $0x1130] sm:$0xff]  ;;  %v1903_v17 = vld [vmem:[#allocation7 + $0x1148] sm:$0xff] }
 0x1f2   : > { %v10155_v19 = vpack.c.bf16 %v1900_v14, %v1898_v13  ;;  %v10157_v20 = vpack.c.bf16 %v1905_v18, %v1903_v17  ;;  %v2409_v14 = vld [vmem:[#allocation14 + $0x290] sm:$0xff]  ;;  %v2410_v17 = vld [vmem:[#allocation14 + $0x298] sm:$0xff] }
 0x1f3   : > { %1715 = vmatmul.mubr.f32.vlgmr.msra.gmra.mrb[6].mxu0 %v12083_v33  ;;  %v2393_v18 = vld [vmem:[#allocation14 + $0x210] sm:$0xff] }
 0x1f4   : > { %1853 = vmatmul.mubr.f32.vlgmr.msra.gmra.mrb[6].mxu1 %v12083_v33  ;;  %10120 = vmatpush1.bf16.msra.mxu0 %v10119_v22  ;;  %v1904_v22 = vld [vmem:[#allocation7 + $0x1150] sm:$0xff]  ;;  %v2173_v3 = vld [vmem:[#allocation14 + $0x90] sm:$0xff] }
 0x1f5   : > { %10122 = vmatprep.subr.bf16.mxu0 %v10121_v23  ;;  %1990 = vmatprep.mubr.f32.mxu0 %v12088_v46  ;;  %v10135_v46 = vpack.c.bf16 %v1880_v44, %v1878_v43  ;;  %v1907_v23 = vld [vmem:[#allocation7 + $0x1168] sm:$0xff]  ;;  %v10159_v25 = vpack.c.bf16 %v1904_v22, %v1902_v21  ;;  %v1921_v43 = vld [vmem:[#allocation7 + $0x11d8] sm:$0xff]  ;;  %v3582_v21 = vld [vmem:[%s12819_s19 + $0x10] sm:$0xff] }
 0x1f6   : > { %v10161_v26 = vpack.c.bf16 %v1909_v24, %v1907_v23  ;;  %2122 = vmatprep.mubr.f32.mxu1 %v11716_v1  ;;  %v3583_v22 = vld [vmem:[%s12819_s19 + $0x18] sm:$0xff]  ;;  %v2411_v24 = vld [vmem:[#allocation14 + $0x2a0] sm:$0xff] }
 0x1f8   : > { %10124 = vmatpush1.bf16.msra.mxu0 %v10123_v28  ;;  %v1908_v28 = vld [vmem:[#allocation7 + $0x1170] sm:$0xff] }
 0x1f9   : > { %10126 = vmatprep.subr.bf16.mxu0 %v10125_v29  ;;  %v1911_v29 = vld [vmem:[#allocation7 + $0x1188] sm:$0xff]  ;;  %v10163_v31 = vpack.c.bf16 %v1908_v28, %v1906_v27  ;;  %v2396_v27 = vld [vmem:[#allocation14 + $0x228] sm:$0xff] }
 0x1fa   : > { %v10165_v32 = vpack.c.bf16 %v1913_v30, %v1911_v29  ;;  %v2413_v30 = vld [vmem:[#allocation14 + $0x2b0] sm:$0xff] }
 0x1fc   : > { %10128 = vmatpush1.bf16.msra.mxu0 %v10127_v35  ;;  %v1912_v35 = vld [vmem:[#allocation7 + $0x1190] sm:$0xff] }
 0x1fd   : > { %10130 = vmatprep.subr.bf16.mxu0 %v10129_v36  ;;  %v1915_v36 = vld [vmem:[#allocation7 + $0x11a8] sm:$0xff]  ;;  %v10167_v38 = vpack.c.bf16 %v1912_v35, %v1910_v34 }
 0x1fe   : > { %v10169_v39 = vpack.c.bf16 %v1917_v37, %v1915_v36  ;;  %v2397_v35 = vld [vmem:[#allocation14 + $0x230] sm:$0xff]  ;;  %v2398_v36 = vld [vmem:[#allocation14 + $0x238] sm:$0xff]  ;;  %v5073_v37 = vld [vmem:[%s12757_s6 + $0x8] sm:$0xff] }
 0x200   : > { %10132 = vmatpush1.bf16.msra.mxu0 %v10131_v41  ;;  %v1916_v41 = vld [vmem:[#allocation7 + $0x11b0] sm:$0xff] }
 0x201   : > { %10134 = vmatprep.subr.bf16.mxu0 %v10133_v42  ;;  %v1919_v42 = vld [vmem:[#allocation7 + $0x11c8] sm:$0xff]  ;;  %v10171_v44 = vpack.c.bf16 %v1916_v41, %v1914_v40  ;;  %v2416_v40 = vld [vmem:[#allocation14 + $0x2c8] sm:$0xff]  ;;  %v6336_v41 = vld [vmem:[%s12759_s8] sm:$0xff] }
 0x202   : > { %v10173_v45 = vpack.c.bf16 %v1921_v43, %v1919_v42  ;;  %v2399_v43 = vld [vmem:[#allocation14 + $0x240] sm:$0xff] }
 0x204   : > { %10136 = vmatpush1.bf16.msra.mxu0 %v10135_v46  ;;  %v1920_v46 = vld [vmem:[#allocation7 + $0x11d0] sm:$0xff] }
 0x205   : > { %10138 = vmatprep.subr.bf16.mxu0 %v10137_v47  ;;  %v1923_v47 = vld [vmem:[#allocation7 + $0x11e8] sm:$0xff]  ;;  %v10175_v49 = vpack.c.bf16 %v1920_v46, %v1918_v15 }
 0x206   : > { %v888_v56 = vpop.f32.mrb[0].mxu0  ;;  %v10177_v50 = vpack.c.bf16 %v1925_v48, %v1923_v47  ;;  %v2417_v46 = vld [vmem:[#allocation14 + $0x2d0] sm:$0xff]  ;;  %v2418_v47 = vld [vmem:[#allocation14 + $0x2d8] sm:$0xff] }
 0x207   : > { %v1026_v16 = vpop.f32.mrb[0].mxu1  ;;  %v890_v59 = vpop.f32.mrb[1].mxu0  ;;  %v6338_v48 = vld [vmem:[%s12759_s8 + $0x10] sm:$0xff] }
 0x208   : > { %v10183_v60 = vpack.c.bf16 %v1026_v16, %v888_v56  ;;  %v1028_v61 = vpop.f32.mrb[1].mxu1  ;;  %10140 = vmatpush1.bf16.msra.mxu0 %v10139_v52  ;;  %v1924_v52 = vld [vmem:[#allocation7 + $0x11f0] sm:$0xff] }
 0x209   : > { %v10181_v63 = vpack.c.bf16 %v1028_v61, %v890_v59  ;;  %10142 = vmatprep.subr.bf16.mxu0 %v10141_v53  ;;  %v10179_v53 = vpack.c.bf16 %v1924_v52, %v1922_v51  ;;  %v2402_v51 = vld [vmem:[#allocation14 + $0x258] sm:$0xff] }
 0x20a   : > { %v6339_v52 = vld [vmem:[%s12759_s8 + $0x18] sm:$0xff] }
 0x20b   : > { %10182 = vmatprep.subr.bf16.mxu1 %v10181_v63 }
 0x20c   : > { %10184 = vmatpush1.bf16.msra.mxu1 %v10183_v60  ;;  %10144 = vmatpush1.bf16.msra.mxu0 %v10143_v62 }
 0x20d   : > { %10146 = vmatprep.subr.bf16.mxu0 %v10145_v0 }
 0x210   : > { %10148 = vmatpush1.bf16.msra.mxu0 %v10147_v5  ;;  %v2024_v5 = vld [vmem:[%s12818_s7 + $0x18] sm:$0xff] }
 0x211   : > { %10150 = vmatprep.subr.bf16.mxu0 %v10149_v6  ;;  %v2407_v6 = vld [vmem:[#allocation14 + $0x280] sm:$0xff]  ;;  %2042 = vperm.xlu1 %11446, %v2024_v5  }
 0x212   : > { %v10261_v9 = vpack.c.bf16 %v2408_v7, %v2407_v6 }
 0x214   : > { %10152 = vmatpush1.bf16.msra.mxu0 %v10151_v11  ;;  %v2392_v11 = vld [vmem:[#allocation14 + $0x208] sm:$0xff] }
 0x215   : > { %10154 = vmatprep.subr.bf16.mxu0 %v10153_v12  ;;  %v3581_v12 = vld [vmem:[%s12819_s19 + $0x8] sm:$0xff]  ;;  %v10263_v13 = vpack.c.bf16 %v2392_v11, %v2391_v10  ;;  %v2157_v11 = vld [vmem:[#allocation14 + $0x10] sm:$0xff] }
 0x216   : > { %3591 = vperm.xlu1 %11446, %v3581_v12   ;;  %v2158_v12 = vld [vmem:[#allocation14 + $0x18] sm:$0xff] }
 0x218   : > { %10156 = vmatpush1.bf16.msra.mxu0 %v10155_v19  ;;  %v10265_v19 = vpack.c.bf16 %v2410_v17, %v2409_v14  ;;  %v2176_v14 = vld [vmem:[#allocation14 + $0xa8] sm:$0xff] }
 0x219   : > { %10158 = vmatprep.subr.bf16.mxu0 %v10157_v20  ;;  %v2394_v20 = vld [vmem:[#allocation14 + $0x218] sm:$0xff]  ;;  %v2000_v17 = vld [vmem:[%s12820_s26 + $0x8] sm:$0xff] }
 0x21a   : > { %v10267_v23 = vpack.c.bf16 %v2394_v20, %v2393_v18  ;;  %3601 = vperm.xlu1 %11446, %v3583_v22   ;;  %v10203_v18 = vpack.c.bf16 %v2158_v12, %v2157_v11  ;;  %v2159_v20 = vld [vmem:[#allocation14 + $0x20] sm:$0xff]  ;;  %v2177_v22 = vld [vmem:[#allocation14 + $0xb0] sm:$0xff] }
 0x21c   : > { %10160 = vmatpush1.bf16.msra.mxu0 %v10159_v25  ;;  %v2412_v25 = vld [vmem:[#allocation14 + $0x2a8] sm:$0xff] }
 0x21d   : > { %10162 = vmatprep.subr.bf16.mxu0 %v10161_v26  ;;  %v2395_v26 = vld [vmem:[#allocation14 + $0x220] sm:$0xff]  ;;  %v10269_v28 = vpack.c.bf16 %v2412_v25, %v2411_v24  ;;  %v2001_v24 = vld [vmem:[%s12820_s26 + $0x10] sm:$0xff] }
 0x21e   : > { %v10271_v29 = vpack.c.bf16 %v2396_v27, %v2395_v26  ;;  %5081 = vperm.xlu1 %11446, %v5073_v37   ;;  %v2161_v27 = vld [vmem:[#allocation14 + $0x30] sm:$0xff] }
 0x21f   : > { %v2181_v37 = vld [vmem:[#allocation14 + $0xd0] sm:$0xff] }
 0x220   : > { %10164 = vmatpush1.bf16.msra.mxu0 %v10163_v31  ;;  %v2414_v31 = vld [vmem:[#allocation14 + $0x2b8] sm:$0xff] }
 0x221   : > { %10166 = vmatprep.subr.bf16.mxu0 %v10165_v32  ;;  %v5072_v32 = vld [vmem:[%s12757_s6] sm:$0xff]  ;;  %v10273_v34 = vpack.c.bf16 %v2414_v31, %v2413_v30  ;;  %v2180_v30 = vld [vmem:[#allocation14 + $0xc8] sm:$0xff]  ;;  %v2002_v31 = vld [vmem:[%s12820_s26 + $0x18] sm:$0xff] }
 0x224   : > { %10168 = vmatpush1.bf16.msra.mxu0 %v10167_v38  ;;  %v10275_v38 = vpack.c.bf16 %v2398_v36, %v2397_v35  ;;  %v2163_v35 = vld [vmem:[#allocation14 + $0x40] sm:$0xff]  ;;  %v2164_v36 = vld [vmem:[#allocation14 + $0x48] sm:$0xff] }
 0x225   : > { %10170 = vmatprep.subr.bf16.mxu0 %v10169_v39  ;;  %v2415_v39 = vld [vmem:[#allocation14 + $0x2c0] sm:$0xff] }
 0x226   : > { %v10277_v42 = vpack.c.bf16 %v2416_v40, %v2415_v39  ;;  %v10215_v39 = vpack.c.bf16 %v2164_v36, %v2163_v35  ;;  %v2277_v35 = vld [vmem:[#allocation14 + $0x120] sm:$0xff]  ;;  %v2278_v36 = vld [vmem:[#allocation14 + $0x128] sm:$0xff] }
 0x228   : > { %10172 = vmatpush1.bf16.msra.mxu0 %v10171_v44  ;;  %v2400_v44 = vld [vmem:[#allocation14 + $0x248] sm:$0xff] }
 0x229   : > { %10174 = vmatprep.subr.bf16.mxu0 %v10173_v45  ;;  %v6337_v45 = vld [vmem:[%s12759_s8 + $0x8] sm:$0xff]  ;;  %v10279_v15 = vpack.c.bf16 %v2400_v44, %v2399_v43 }
 0x22a   : > { %6347 = vperm.xlu1 %11446, %v6337_v45   ;;  %v2183_v43 = vld [vmem:[#allocation14 + $0xe0] sm:$0xff]  ;;  %v2184_v44 = vld [vmem:[#allocation14 + $0xe8] sm:$0xff] }
 0x22c   : > { %10176 = vmatpush1.bf16.msra.mxu0 %v10175_v49  ;;  %v10281_v49 = vpack.c.bf16 %v2418_v47, %v2417_v46  ;;  %v2167_v46 = vld [vmem:[#allocation14 + $0x60] sm:$0xff]  ;;  %v2168_v47 = vld [vmem:[#allocation14 + $0x68] sm:$0xff] }
 0x22d   : > { %10178 = vmatprep.subr.bf16.mxu0 %v10177_v50  ;;  %v2401_v50 = vld [vmem:[#allocation14 + $0x250] sm:$0xff] }
 0x22e   : > { %6357 = vperm.xlu1 %11446, %v6339_v52   ;;  %v2185_v52 = vld [vmem:[#allocation14 + $0xf0] sm:$0xff] }
 0x230   : > { %10180 = vmatpush1.bf16.msra.mxu0 %v10179_v53  ;;  %v10283_v53 = vpack.c.bf16 %v2402_v51, %v2401_v50  ;;  %v2404_v50 = vld [vmem:[#allocation14 + $0x268] sm:$0xff] }
 0x231   : > { %10262 = vmatprep.subr.bf16.mxu0 %v10261_v9 }
 0x233   : > { %1991 = vmatmul.mubr.f32.vlgmr.msra.gmra.mrb[8].mxu0 %v12083_v33  ;;  %v2021_v33 = vld [vmem:[%s12818_s7] sm:$0xff] }
 0x234   : > { %2027 = vperm.xlu0 %11445, %v2021_v33   ;;  %10264 = vmatpush3.bf16.msra.mxu0 %v10263_v13  ;;  %v2155_v33 = vld [vmem:[#allocation14] sm:$0xff] }
 0x235   : > { %10266 = vmatprep.subr.bf16.mxu0 %v10265_v19  ;;  %v10199_v9 = vpack.c.bf16 %v2156_v2, %v2155_v33  ;;  %v2175_v13 = vld [vmem:[#allocation14 + $0xa0] sm:$0xff] }
 0x236   : > { %v10205_v19 = vpack.c.bf16 %v2176_v14, %v2175_v13 }
 0x238   : > { %2032 = vperm.xlu0 %11445, %v2022_v4   ;;  %10268 = vmatpush3.bf16.msra.mxu0 %v10267_v23  ;;  %v2174_v4 = vld [vmem:[#allocation14 + $0x98] sm:$0xff] }
 0x239   : > { %10270 = vmatprep.subr.bf16.mxu0 %v10269_v28  ;;  %v10201_v10 = vpack.c.bf16 %v2174_v4, %v2173_v3  ;;  %v2178_v23 = vld [vmem:[#allocation14 + $0xb8] sm:$0xff] }
 0x23a   : > { %v10209_v26 = vpack.c.bf16 %v2178_v23, %v2177_v22  ;;  %v2162_v28 = vld [vmem:[#allocation14 + $0x38] sm:$0xff] }
 0x23b   : > { %v2276_v22 = vld [vmem:[#allocation14 + $0x118] sm:$0xff] }
 0x23c   : > { %3586 = vperm.xlu0 %11445, %v3580_v8   ;;  %10272 = vmatpush3.bf16.msra.mxu0 %v10271_v29  ;;  %v1999_v8 = vld [vmem:[%s12820_s26] sm:$0xff] }
 0x23d   : > { %10274 = vmatprep.subr.bf16.mxu0 %v10273_v34  ;;  %v2179_v29 = vld [vmem:[#allocation14 + $0xc0] sm:$0xff] }
 0x23e   : > { %v10213_v34 = vpack.c.bf16 %v2180_v30, %v2179_v29 }
 0x240   : > { %3596 = vperm.xlu0 %11445, %v3582_v21   ;;  %10276 = vmatpush3.bf16.msra.mxu0 %v10275_v38  ;;  %v2160_v21 = vld [vmem:[#allocation14 + $0x28] sm:$0xff]  ;;  %v2182_v38 = vld [vmem:[#allocation14 + $0xd8] sm:$0xff] }
 0x241   : > { %10278 = vmatprep.subr.bf16.mxu0 %v10277_v42  ;;  %v10207_v25 = vpack.c.bf16 %v2160_v21, %v2159_v20  ;;  %v10217_v40 = vpack.c.bf16 %v2182_v38, %v2181_v37  ;;  %v2166_v42 = vld [vmem:[#allocation14 + $0x58] sm:$0xff]  ;;  %v2275_v21 = vld [vmem:[#allocation14 + $0x110] sm:$0xff] }
 0x242   : > { %v10235_v29 = vpack.c.bf16 %v2276_v22, %v2275_v21  ;;  %v2295_v38 = vld [vmem:[#allocation14 + $0x1b0] sm:$0xff]  ;;  %v2528_v22 = vld [vmem:[#allocation14 + $0x398] sm:$0xff] }
 0x243   : > { %v2527_v21 = vld [vmem:[#allocation14 + $0x390] sm:$0xff] }
 0x244   : > { %5076 = vperm.xlu0 %11445, %v5072_v32   ;;  %10280 = vmatpush3.bf16.msra.mxu0 %v10279_v15  ;;  %v10211_v32 = vpack.c.bf16 %v2162_v28, %v2161_v27  ;;  %v10221_v15 = vpack.c.bf16 %v2184_v44, %v2183_v43  ;;  %v10239_v44 = vpack.c.bf16 %v2278_v36, %v2277_v35  ;;  %v2514_v35 = vld [vmem:[#allocation14 + $0x328] sm:$0xff]  ;;  %v2531_v36 = vld [vmem:[#allocation14 + $0x3b0] sm:$0xff] }
 0x245   : > { %10282 = vmatprep.subr.bf16.mxu0 %v10281_v49  ;;  %v2403_v49 = vld [vmem:[#allocation14 + $0x260] sm:$0xff] }
 0x246   : > { %v1164_v54 = vpop.f32.mrb[2].mxu0  ;;  %v10287_v51 = vpack.c.bf16 %v2404_v50, %v2403_v49  ;;  %v2297_v50 = vld [vmem:[#allocation14 + $0x1c0] sm:$0xff] }
 0x247   : > { %v1302_v55 = vpop.f32.mrb[2].mxu1  ;;  %v1166_v56 = vpop.f32.mrb[3].mxu0 }
 0x248   : > { %v10187_v57 = vpack.c.bf16 %v1302_v55, %v1164_v54  ;;  %v1304_v58 = vpop.f32.mrb[3].mxu1  ;;  %6342 = vperm.xlu0 %11445, %v6336_v41   ;;  %v2419_v54 = vld [vmem:[#allocation14 + $0x2e0] sm:$0xff]  ;;  %v2420_v55 = vld [vmem:[#allocation14 + $0x2e8] sm:$0xff]  ;;  %10284 = vmatpush3.bf16.msra.mxu0 %v10283_v53  ;;  %v2165_v41 = vld [vmem:[#allocation14 + $0x50] sm:$0xff] }
 0x249   : > { %v10185_v16 = vpack.c.bf16 %v1304_v58, %v1166_v56  ;;  %v8093_v56 = vld [vmem:[%s12761_s10] sm:$0xff]  ;;  %v10219_v45 = vpack.c.bf16 %v2166_v42, %v2165_v41 }
 0x24a   : > { %v2186_v53 = vld [vmem:[#allocation14 + $0xf8] sm:$0xff] }
 0x24b   : > { %10186 = vmatprep.subr.bf16.mxu1 %v10185_v16 }
 0x24c   : > { %10188 = vmatpush1.bf16.msra.mxu1 %v10187_v57  ;;  %6352 = vperm.xlu0 %11445, %v6338_v48   ;;  %v10285_v57 = vpack.c.bf16 %v2420_v55, %v2419_v54  ;;  %v10223_v48 = vpack.c.bf16 %v2168_v47, %v2167_v46  ;;  %v10225_v54 = vpack.c.bf16 %v2186_v53, %v2185_v52  ;;  %v2169_v55 = vld [vmem:[#allocation14 + $0x70] sm:$0xff] }
 0x24d   : > { %v2279_v47 = vld [vmem:[#allocation14 + $0x130] sm:$0xff] }
 0x24e   : > { %10286 = vmatprep.subr.bf16.mxu0 %v10285_v57  ;;  %v2421_v57 = vld [vmem:[#allocation14 + $0x2f0] sm:$0xff] }
 0x24f   : > { %10288 = vmatpush3.bf16.msra.mxu0 %v10287_v51  ;;  %v2298_v51 = vld [vmem:[#allocation14 + $0x1c8] sm:$0xff] }
 0x250   : > { %8096 = vperm.xlu0 %11445, %v8093_v56   ;;  %v2170_v56 = vld [vmem:[#allocation14 + $0x78] sm:$0xff] }
 0x26f   : > { %v2038_v23 = vpop.permute.xlu1 %2037 }
 0x286   : > { %v1440_v59 = vpop.f32.mrb[4].mxu0 }
 0x287   : > { %v1578_v60 = vpop.f32.mrb[4].mxu1  ;;  %v1442_v61 = vpop.f32.mrb[5].mxu0 }
 0x288   : > { %v10191_v62 = vpack.c.bf16 %v1578_v60, %v1440_v59  ;;  %v1580_v63 = vpop.f32.mrb[5].mxu1 }
 0x289   : > { %v10189_v0 = vpack.c.bf16 %v1580_v63, %v1442_v61  ;;  %v2171_v63 = vld [vmem:[#allocation14 + $0x80] sm:$0xff] }
 0x28b   : > { %10190 = vmatprep.subr.bf16.mxu1 %v10189_v0  ;;  %v2172_v0 = vld [vmem:[#allocation14 + $0x88] sm:$0xff] }
 0x28c   : > { %10192 = vmatpush1.bf16.msra.mxu1 %v10191_v62  ;;  %v10197_v6 = vpack.c.bf16 %v2172_v0, %v2171_v63  ;;  %v2289_v63 = vld [vmem:[#allocation14 + $0x180] sm:$0xff]  ;;  %v2290_v0 = vld [vmem:[#allocation14 + $0x188] sm:$0xff] }
 0x28d   : > { %v10229_v33 = vpack.c.bf16 %v2290_v0, %v2289_v63  ;;  %v2301_v63 = vld [vmem:[#allocation14 + $0x1e0] sm:$0xff]  ;;  %v2302_v0 = vld [vmem:[#allocation14 + $0x1e8] sm:$0xff] }
 0x290   : > { %v2043_v41 = vpop.permute.xlu1 %2042 }
 0x2b3   : > { %v2028_v2 = vpop.permute.xlu0 %2027 }
 0x2b7   : > { %v2033_v11 = vpop.permute.xlu0 %2032 }
 0x2c6   : > { %v1716_v58 = vpop.f32.mrb[6].mxu0 }
 0x2c7   : > { %v1854_v16 = vpop.f32.mrb[6].mxu1  ;;  %v1718_v59 = vpop.f32.mrb[7].mxu0 }
 0x2c8   : > { %v10195_v60 = vpack.c.bf16 %v1854_v16, %v1716_v58  ;;  %v1856_v61 = vpop.f32.mrb[7].mxu1  ;;  %v10227_v58 = vpack.c.bf16 %v2170_v56, %v2169_v55  ;;  %v2422_v16 = vld [vmem:[#allocation14 + $0x2f8] sm:$0xff]  ;;  %v10245_v55 = vpack.c.bf16 %v2298_v51, %v2297_v50  ;;  %v2281_v56 = vld [vmem:[#allocation14 + $0x140] sm:$0xff] }
 0x2c9   : > { %v10193_v62 = vpack.c.bf16 %v1856_v61, %v1718_v59  ;;  %v2405_v59 = vld [vmem:[#allocation14 + $0x270] sm:$0xff]  ;;  %v10289_v61 = vpack.c.bf16 %v2422_v16, %v2421_v57  ;;  %v2282_v57 = vld [vmem:[#allocation14 + $0x148] sm:$0xff]  ;;  %v2300_v16 = vld [vmem:[#allocation14 + $0x1d8] sm:$0xff] }
 0x2ca   : > { %v2536_v50 = vld [vmem:[#allocation14 + $0x3d8] sm:$0xff] }
 0x2cb   : > { %10194 = vmatprep.subr.bf16.mxu1 %v10193_v62  ;;  %10290 = vmatprep.subr.bf16.mxu0 %v10289_v61  ;;  %v2283_v61 = vld [vmem:[#allocation14 + $0x150] sm:$0xff] }
 0x2cc   : > { %10196 = vmatpush1.bf16.msra.mxu1 %v10195_v60  ;;  %v2406_v60 = vld [vmem:[#allocation14 + $0x278] sm:$0xff] }
 0x2cd   : > { %v10291_v62 = vpack.c.bf16 %v2406_v60, %v2405_v59  ;;  %v10247_v59 = vpack.c.bf16 %v2282_v57, %v2281_v56  ;;  %v2520_v56 = vld [vmem:[#allocation14 + $0x358] sm:$0xff]  ;;  %v2537_v57 = vld [vmem:[#allocation14 + $0x3e0] sm:$0xff] }
 0x2cf   : > { %10292 = vmatpush3.bf16.msra.mxu0 %v10291_v62  ;;  %v2284_v62 = vld [vmem:[#allocation14 + $0x158] sm:$0xff] }
 0x306   : > { %v1992_v5 = vpop.f32.mrb[8].mxu0 }
 0x307   : > { %v1994_v7 = vpop.f32.mrb[9].mxu0 }
 0x308   : > { %2074 = vmatprep.subr.mxu1 %v1994_v7  ;;  %v2274_v7 = vld [vmem:[#allocation14 + $0x108] sm:$0xff] }
 0x309   : > { %2075 = vmatpush1.msra.mxu1 %v1992_v5 }
 0x30a   : > { %8458 = vmatmul.mubr.msk.f32.vlgmr.msra.gmra.mrb[8].mxu1 %vm2045_vm0, %v1999_v8  ;;  %10198 = vmatprep.subr.bf16.mxu1 %v10197_v6  ;;  %v2273_v6 = vld [vmem:[#allocation14 + $0x100] sm:$0xff] }
 0x30b   : > { %2128 = vmatprep.mubr.f32.mxu1 %v11716_v1  ;;  %10200 = vmatpush3.bf16.msra.mxu1 %v10199_v9  ;;  %v2291_v9 = vld [vmem:[#allocation14 + $0x190] sm:$0xff]  ;;  %v10231_v14 = vpack.c.bf16 %v2274_v7, %v2273_v6  ;;  %v2304_v6 = vld [vmem:[#allocation14 + $0x1f8] sm:$0xff] }
 0x30c   : > { %10202 = vmatprep.subr.bf16.mxu1 %v10201_v10  ;;  %v2292_v10 = vld [vmem:[#allocation14 + $0x198] sm:$0xff] }
 0x30d   : > { %v10233_v20 = vpack.c.bf16 %v2292_v10, %v2291_v9  ;;  %v2287_v9 = vld [vmem:[#allocation14 + $0x170] sm:$0xff]  ;;  %v2288_v10 = vld [vmem:[#allocation14 + $0x178] sm:$0xff] }
 0x30e   : > { %8459 = vmatmul.mubr.msk.f32.gmra.mrb[10].mxu1 %vm2045_vm0, %v2000_v17 }
 0x30f   : > { %2134 = vmatprep.mubr.f32.mxu1 %v11716_v1  ;;  %10204 = vmatpush3.bf16.msra.mxu1 %v10203_v18 }
 0x310   : > { %10206 = vmatprep.subr.bf16.mxu1 %v10205_v19 }
 0x312   : > { %8460 = vmatmul.mubr.msk.f32.gmra.mrb[12].mxu1 %vm2045_vm0, %v2001_v24 }
 0x313   : > { %2140 = vmatprep.mubr.f32.mxu1 %v11716_v1  ;;  %10208 = vmatpush3.bf16.msra.mxu1 %v10207_v25  ;;  %v2293_v25 = vld [vmem:[#allocation14 + $0x1a0] sm:$0xff] }
 0x314   : > { %10210 = vmatprep.subr.bf16.mxu1 %v10209_v26  ;;  %v2294_v26 = vld [vmem:[#allocation14 + $0x1a8] sm:$0xff] }
 0x316   : > { %8461 = vmatmul.mubr.msk.f32.gmra.mrb[14].mxu1 %vm2045_vm0, %v2002_v31 }
 0x317   : > { %10212 = vmatpush3.bf16.msra.mxu1 %v10211_v32 }
 0x318   : > { %10214 = vmatprep.subr.bf16.mxu1 %v10213_v34  ;;  %v10237_v34 = vpack.c.bf16 %v2294_v26, %v2293_v25  ;;  %v2511_v25 = vld [vmem:[#allocation14 + $0x310] sm:$0xff]  ;;  %v2512_v26 = vld [vmem:[#allocation14 + $0x318] sm:$0xff] }
 0x31b   : > { %10216 = vmatpush3.bf16.msra.mxu1 %v10215_v39  ;;  %v2296_v39 = vld [vmem:[#allocation14 + $0x1b8] sm:$0xff] }
 0x31c   : > { %10218 = vmatprep.subr.bf16.mxu1 %v10217_v40  ;;  %v10241_v46 = vpack.c.bf16 %v2296_v39, %v2295_v38 }
 0x31f   : > { %10220 = vmatpush3.bf16.msra.mxu1 %v10219_v45 }
 0x320   : > { %10222 = vmatprep.subr.bf16.mxu1 %v10221_v15 }
 0x323   : > { %10224 = vmatpush3.bf16.msra.mxu1 %v10223_v48  ;;  %v2280_v48 = vld [vmem:[#allocation14 + $0x138] sm:$0xff] }
 0x324   : > { %10226 = vmatprep.subr.bf16.mxu1 %v10225_v54  ;;  %v10243_v54 = vpack.c.bf16 %v2280_v48, %v2279_v47  ;;  %v2517_v47 = vld [vmem:[#allocation14 + $0x340] sm:$0xff]  ;;  %v2518_v48 = vld [vmem:[#allocation14 + $0x348] sm:$0xff] }
 0x325   : > { %v10311_v51 = vpack.c.bf16 %v2518_v48, %v2517_v47 }
 0x327   : > { %10228 = vmatpush3.bf16.msra.mxu1 %v10227_v58  ;;  %v2299_v58 = vld [vmem:[#allocation14 + $0x1d0] sm:$0xff] }
 0x328   : > { %10230 = vmatprep.subr.bf16.mxu1 %v10229_v33  ;;  %v10249_v60 = vpack.c.bf16 %v2300_v16, %v2299_v58  ;;  %v10251_v33 = vpack.c.bf16 %v2284_v62, %v2283_v61  ;;  %v2538_v58 = vld [vmem:[#allocation14 + $0x3e8] sm:$0xff]  ;;  %v2539_v62 = vld [vmem:[#allocation14 + $0x3f0] sm:$0xff] }
 0x329   : > { %v2522_v61 = vld [vmem:[#allocation14 + $0x368] sm:$0xff] }
 0x3dd   : > { %v2124_v3 = vpop.f32.mrb[8].mxu1 }
 0x3de   : > { %v2125_v4 = vadd.f32 %v2124_v3, %v2028_v2  ;;  %v2126_v5 = vpop.f32.mrb[9].mxu1  ;;  %v2285_v3 = vld [vmem:[#allocation14 + $0x160] sm:$0xff] }
 0x3df   : > { %v2127_v8 = vadd.f32 %v2126_v5, %v2028_v2  ;;  %v10253_v2 = vpack.c.bf16 %v2302_v0, %v2301_v63  ;;  %v2303_v5 = vld [vmem:[#allocation14 + $0x1f0] sm:$0xff]  ;;  %v2540_v63 = vld [vmem:[#allocation14 + $0x3f8] sm:$0xff] }
 0x3e0   : > { %v12163_v17 = vmax.f32 %v2125_v4, 0.0  ;;  %v2286_v4 = vld [vmem:[#allocation14 + $0x168] sm:$0xff] }
 0x3e1   : > { %v12161_v12 = vmax.f32 %v2127_v8, 0.0  ;;  %v2130_v13 = vpop.f32.mrb[10].mxu1  ;;  %v10255_v7 = vpack.c.bf16 %v2286_v4, %v2285_v3  ;;  %v10257_v8 = vpack.c.bf16 %v2304_v6, %v2303_v5  ;;  %v2638_v4 = vld [vmem:[#allocation9] sm:$0xff]  ;;  %v2639_v5 = vld [vmem:[#allocation9 + $0x8] sm:$0xff] }
 0x3e2   : > { %v2131_v18 = vadd.f32 %v2130_v13, %v2033_v11  ;;  %v2132_v19 = vpop.f32.mrb[11].mxu1  ;;  %v2526_v13 = vld [vmem:[#allocation14 + $0x388] sm:$0xff] }
 0x3e3   : > { %v2133_v24 = vadd.f32 %v2132_v19, %v2033_v11  ;;  %2251 = vmatprep.mubr.f32.mxu1 %v12161_v12  ;;  %2487 = vmatprep.mubr.f32.mxu0 %v12161_v12  ;;  %v2525_v11 = vld [vmem:[#allocation14 + $0x380] sm:$0xff]  ;;  %v2749_v6 = vld [vmem:[#allocation9 + $0x40] sm:$0xff] }
 0x3e4   : > { %2252 = vmatmul.mubr.f32.vlgmr.msra.gmra.mrb[16].mxu1 %v12163_v17  ;;  %2488 = vmatmul.mubr.f32.vlgmr.msra.gmra.mrb[10].mxu0 %v12163_v17  ;;  %v12171_v30 = vmax.f32 %v2131_v18, 0.0  ;;  %v10293_v18 = vpack.c.bf16 %v2526_v13, %v2525_v11  ;;  %v2509_v19 = vld [vmem:[#allocation14 + $0x300] sm:$0xff] }
 0x3e5   : > { %v12169_v27 = vmax.f32 %v2133_v24, 0.0  ;;  %10232 = vmatpush3.bf16.msra.mxu1 %v10231_v14  ;;  %v2136_v28 = vpop.f32.mrb[12].mxu1  ;;  %v10259_v14 = vpack.c.bf16 %v2288_v10, %v2287_v9  ;;  %v10297_v24 = vpack.c.bf16 %v2528_v22, %v2527_v21  ;;  %v2640_v9 = vld [vmem:[#allocation9 + $0x10] sm:$0xff]  ;;  %v2641_v10 = vld [vmem:[#allocation9 + $0x18] sm:$0xff] }
 0x3e6   : > { %v2137_v31 = vadd.f32 %v2136_v28, %v2038_v23  ;;  %v2138_v32 = vpop.f32.mrb[13].mxu1  ;;  %10234 = vmatprep.subr.bf16.mxu1 %v10233_v20  ;;  %v2510_v20 = vld [vmem:[#allocation14 + $0x308] sm:$0xff]  ;;  %v2529_v28 = vld [vmem:[#allocation14 + $0x3a0] sm:$0xff]  ;;  %v10329_v11 = vpack.c.bf16 %v2641_v10, %v2640_v9 }
 0x3e7   : > { %v2139_v37 = vadd.f32 %v2138_v32, %v2038_v23  ;;  %2256 = vmatprep.mubr.f32.mxu1 %v12169_v27  ;;  %2492 = vmatprep.mubr.f32.mxu0 %v12169_v27  ;;  %v10295_v23 = vpack.c.bf16 %v2510_v20, %v2509_v19  ;;  %v2752_v13 = vld [vmem:[#allocation9 + $0x58] sm:$0xff]  ;;  %v2644_v19 = vld [vmem:[#allocation9 + $0x30] sm:$0xff] }
 0x3e8   : > { %v12175_v40 = vmax.f32 %v2137_v31, 0.0  ;;  %2257 = vmatmul.mubr.f32.gmra.mrb[18].mxu1 %v12171_v30  ;;  %2493 = vmatmul.mubr.f32.gmra.mrb[12].mxu0 %v12171_v30  ;;  %v10299_v31 = vpack.c.bf16 %v2512_v26, %v2511_v25  ;;  %v2645_v20 = vld [vmem:[#allocation9 + $0x38] sm:$0xff]  ;;  %v2755_v21 = vld [vmem:[#allocation9 + $0x70] sm:$0xff]  ;;  %v2847_v25 = vld [vmem:[#allocation9 + $0x80] sm:$0xff] }
 0x3e9   : > { %v12179_v42 = vmax.f32 %v2139_v37, 0.0  ;;  %10236 = vmatpush3.bf16.msra.mxu1 %v10235_v29  ;;  %v2142_v43 = vpop.f32.mrb[14].mxu1  ;;  %v2530_v29 = vld [vmem:[#allocation14 + $0x3a8] sm:$0xff]  ;;  %v2532_v37 = vld [vmem:[#allocation14 + $0x3b8] sm:$0xff]  ;;  %v10337_v22 = vpack.c.bf16 %v2645_v20, %v2644_v19 }
 0x3ea   : > { %v2143_v45 = vadd.f32 %v2142_v43, %v2043_v41  ;;  %v2144_v15 = vpop.f32.mrb[15].mxu1  ;;  %10238 = vmatprep.subr.bf16.mxu1 %v10237_v34  ;;  %v10301_v32 = vpack.c.bf16 %v2530_v29, %v2529_v28  ;;  %v2513_v34 = vld [vmem:[#allocation14 + $0x320] sm:$0xff]  ;;  %v10305_v39 = vpack.c.bf16 %v2532_v37, %v2531_v36  ;;  %v2516_v43 = vld [vmem:[#allocation14 + $0x338] sm:$0xff]  ;;  %v2945_v28 = vld [vmem:[#allocation9 + $0xc0] sm:$0xff] }
 0x3eb   : > { %v2145_v49 = vadd.f32 %v2144_v15, %v2043_v41  ;;  %2261 = vmatprep.mubr.f32.mxu1 %v12179_v42  ;;  %2497 = vmatprep.mubr.f32.mxu0 %v12179_v42  ;;  %v10303_v38 = vpack.c.bf16 %v2514_v35, %v2513_v34  ;;  %v2515_v41 = vld [vmem:[#allocation14 + $0x330] sm:$0xff]  ;;  %v2948_v19 = vld [vmem:[#allocation9 + $0xd8] sm:$0xff] }
 0x3ec   : > { %v12183_v52 = vmax.f32 %v2143_v45, 0.0  ;;  %2262 = vmatmul.mubr.f32.gmra.mrb[20].mxu1 %v12175_v40  ;;  %2498 = vmatmul.mubr.f32.gmra.mrb[14].mxu0 %v12175_v40  ;;  %v2534_v45 = vld [vmem:[#allocation14 + $0x3c8] sm:$0xff]  ;;  %v10307_v15 = vpack.c.bf16 %v2516_v43, %v2515_v41  ;;  %v2848_v26 = vld [vmem:[#allocation9 + $0x88] sm:$0xff] }
 0x3ed   : > { %v12187_v53 = vmax.f32 %v2145_v49, 0.0  ;;  %10240 = vmatpush3.bf16.msra.mxu1 %v10239_v44  ;;  %v2533_v44 = vld [vmem:[#allocation14 + $0x3c0] sm:$0xff]  ;;  %v2535_v49 = vld [vmem:[#allocation14 + $0x3d0] sm:$0xff]  ;;  %v12209_v29 = vpack.c.bf16 %v2848_v26, %v2847_v25 }
 0x3ee   : > { %10242 = vmatprep.subr.bf16.mxu1 %v10241_v46  ;;  %v10309_v46 = vpack.c.bf16 %v2534_v45, %v2533_v44 }
 0x3ef   : > { %2266 = vmatprep.mubr.f32.mxu1 %v12187_v53  ;;  %2502 = vmatprep.mubr.f32.mxu0 %v12187_v53 }
 0x3f0   : > { %2267 = vmatmul.mubr.f32.gmra.mrb[22].mxu1 %v12183_v52  ;;  %2503 = vmatmul.mubr.f32.gmra.mrb[16].mxu0 %v12183_v52 }
 0x3f1   : > { %10244 = vmatpush3.bf16.msra.mxu1 %v10243_v54  ;;  %2369 = vmatprep.mubr.f32.mxu1 %v12161_v12  ;;  %v10313_v54 = vpack.c.bf16 %v2536_v50, %v2535_v49 }
 0x3f2   : > { %10246 = vmatprep.subr.bf16.mxu1 %v10245_v55  ;;  %v2519_v55 = vld [vmem:[#allocation14 + $0x350] sm:$0xff] }
 0x3f3   : > { %v10315_v16 = vpack.c.bf16 %v2520_v56, %v2519_v55 }
 0x3f5   : > { %10248 = vmatpush3.bf16.msra.mxu1 %v10247_v59  ;;  %v10317_v59 = vpack.c.bf16 %v2538_v58, %v2537_v57 }
 0x3f6   : > { %10250 = vmatprep.subr.bf16.mxu1 %v10249_v60  ;;  %v2521_v60 = vld [vmem:[#allocation14 + $0x360] sm:$0xff] }
 0x3f7   : > { %v10319_v0 = vpack.c.bf16 %v2522_v61, %v2521_v60 }
 0x3f9   : > { %10252 = vmatpush3.bf16.msra.mxu1 %v10251_v33  ;;  %v10321_v33 = vpack.c.bf16 %v2540_v63, %v2539_v62 }
 0x3fa   : > { %10254 = vmatprep.subr.bf16.mxu1 %v10253_v2  ;;  %v2524_v2 = vld [vmem:[#allocation14 + $0x378] sm:$0xff] }
 0x3fd   : > { %10256 = vmatpush3.bf16.msra.mxu1 %v10255_v7  ;;  %v10325_v7 = vpack.c.bf16 %v2639_v5, %v2638_v4 }
 0x3fe   : > { %10258 = vmatprep.subr.bf16.mxu1 %v10257_v8  ;;  %v2750_v8 = vld [vmem:[#allocation9 + $0x48] sm:$0xff] }
 0x401   : > { %10260 = vmatpush3.bf16.msra.mxu1 %v10259_v14  ;;  %v2754_v14 = vld [vmem:[#allocation9 + $0x68] sm:$0xff] }
 0x402   : > { %10294 = vmatprep.subr.bf16.mxu1 %v10293_v18 }
 0x404   : > { %2370 = vmatmul.mubr.f32.vlgmr.msra.gmra.mrb[24].mxu1 %v12163_v17 }
 0x405   : > { %2374 = vmatprep.mubr.f32.mxu1 %v12169_v27  ;;  %10296 = vmatpush3.bf16.msra.mxu1 %v10295_v23  ;;  %v2756_v23 = vld [vmem:[#allocation9 + $0x78] sm:$0xff] }
 0x406   : > { %10298 = vmatprep.subr.bf16.mxu1 %v10297_v24  ;;  %v10353_v24 = vpack.c.bf16 %v2756_v23, %v2755_v21 }
 0x408   : > { %2375 = vmatmul.mubr.f32.gmra.mrb[26].mxu1 %v12171_v30 }
 0x409   : > { %2379 = vmatprep.mubr.f32.mxu1 %v12179_v42  ;;  %10300 = vmatpush3.bf16.msra.mxu1 %v10299_v31  ;;  %v2946_v31 = vld [vmem:[#allocation9 + $0xc8] sm:$0xff] }
 0x40a   : > { %10302 = vmatprep.subr.bf16.mxu1 %v10301_v32  ;;  %v12211_v32 = vpack.c.bf16 %v2946_v31, %v2945_v28  ;;  %v2851_v28 = vld [vmem:[#allocation9 + $0xa0] sm:$0xff]  ;;  %v2852_v31 = vld [vmem:[#allocation9 + $0xa8] sm:$0xff] }
 0x40c   : > { %2380 = vmatmul.mubr.f32.gmra.mrb[28].mxu1 %v12175_v40 }
 0x40d   : > { %2384 = vmatprep.mubr.f32.mxu1 %v12187_v53  ;;  %10304 = vmatpush3.bf16.msra.mxu1 %v10303_v38 }
 0x40e   : > { %10306 = vmatprep.subr.bf16.mxu1 %v10305_v39 }
 0x410   : > { %2385 = vmatmul.mubr.f32.gmra.mrb[30].mxu1 %v12183_v52 }
 0x411   : > { %10308 = vmatpush3.bf16.msra.mxu1 %v10307_v15  ;;  %2605 = vmatprep.mubr.f32.mxu1 %v12161_v12  ;;  %v2523_v12 = vld [vmem:[#allocation14 + $0x370] sm:$0xff] }
 0x412   : > { %10310 = vmatprep.subr.bf16.mxu1 %v10309_v46  ;;  %v10323_v3 = vpack.c.bf16 %v2524_v2, %v2523_v12 }
 0x415   : > { %10312 = vmatpush3.bf16.msra.mxu1 %v10311_v51 }
 0x416   : > { %10314 = vmatprep.subr.bf16.mxu1 %v10313_v54 }
 0x419   : > { %10316 = vmatpush3.bf16.msra.mxu1 %v10315_v16 }
 0x41a   : > { %10318 = vmatprep.subr.bf16.mxu1 %v10317_v59 }
 0x41d   : > { %10320 = vmatpush3.bf16.msra.mxu1 %v10319_v0 }
 0x41e   : > { %10322 = vmatprep.subr.bf16.mxu1 %v10321_v33 }
 0x421   : > { %10324 = vmatpush3.bf16.msra.mxu1 %v10323_v3 }
 0x422   : > { %10326 = vmatprep.subr.bf16.mxu1 %v10325_v7 }
 0x424   : > { %2606 = vmatmul.mubr.f32.vlgmr.msra.gmra.mrb[32].mxu1 %v12163_v17  ;;  %v10341_v17 = vpack.c.bf16 %v2750_v8, %v2749_v6 }
 0x425   : > { %2610 = vmatprep.mubr.f32.mxu1 %v12169_v27  ;;  %v2751_v27 = vld [vmem:[#allocation9 + $0x50] sm:$0xff]  ;;  %10328 = vmatpush3.bf16.msra.mxu1 %v10325_v7 }
 0x426   : > { %10342 = vmatprep.subr.bf16.mxu0 %v10341_v17  ;;  %10330 = vmatprep.subr.bf16.mxu1 %v10329_v11 }
 0x427   : > { %10344 = vmatpush3.bf16.msra.mxu0 %v10341_v17 }
 0x428   : > { %2611 = vmatmul.mubr.f32.gmra.mrb[34].mxu1 %v12171_v30  ;;  %v10345_v30 = vpack.c.bf16 %v2752_v13, %v2751_v27 }
 0x429   : > { %2615 = vmatprep.mubr.f32.mxu1 %v12179_v42  ;;  %10332 = vmatpush3.bf16.msra.mxu1 %v10329_v11  ;;  %v2643_v42 = vld [vmem:[#allocation9 + $0x28] sm:$0xff] }
 0x42a   : > { %10346 = vmatprep.subr.bf16.mxu0 %v10345_v30 }
 0x42b   : > { %10348 = vmatpush3.bf16.msra.mxu0 %v10345_v30 }
 0x42c   : > { %2616 = vmatmul.mubr.f32.gmra.mrb[36].mxu1 %v12175_v40  ;;  %v2642_v40 = vld [vmem:[#allocation9 + $0x20] sm:$0xff] }
 0x42d   : > { %2620 = vmatprep.mubr.f32.mxu1 %v12187_v53  ;;  %v10333_v53 = vpack.c.bf16 %v2643_v42, %v2642_v40 }
 0x42f   : > { %10334 = vmatprep.subr.bf16.mxu1 %v10333_v53 }
 0x430   : > { %2621 = vmatmul.mubr.f32.gmra.mrb[38].mxu1 %v12183_v52  ;;  %v2753_v52 = vld [vmem:[#allocation9 + $0x60] sm:$0xff] }
 0x431   : > { %v10349_v18 = vpack.c.bf16 %v2754_v14, %v2753_v52  ;;  %10336 = vmatpush3.bf16.msra.mxu1 %v10333_v53  ;;  %v2849_v53 = vld [vmem:[#allocation9 + $0x90] sm:$0xff]  ;;  %v2850_v14 = vld [vmem:[#allocation9 + $0x98] sm:$0xff] }
 0x432   : > { %10338 = vmatprep.subr.bf16.mxu1 %v10337_v22  ;;  %v10361_v25 = vpack.c.bf16 %v2850_v14, %v2849_v53  ;;  %v3339_v53 = vld [vmem:[#allocation9 + $0x1d0] sm:$0xff]  ;;  %v3340_v14 = vld [vmem:[#allocation9 + $0x1d8] sm:$0xff] }
 0x433   : > { %10350 = vmatprep.subr.bf16.mxu0 %v10349_v18 }
 0x434   : > { %10352 = vmatpush3.bf16.msra.mxu0 %v10349_v18  ;;  %v2947_v18 = vld [vmem:[#allocation9 + $0xd0] sm:$0xff] }
 0x435   : > { %10354 = vmatprep.subr.bf16.mxu0 %v10353_v24  ;;  %10340 = vmatpush3.bf16.msra.mxu1 %v10337_v22  ;;  %v10377_v26 = vpack.c.bf16 %v2948_v19, %v2947_v18  ;;  %v10441_v19 = vpack.c.bf16 %v3340_v14, %v3339_v53 }
 0x436   : > { %10358 = vmatprep.subr.bf16.mxu1 %v12209_v29 }
 0x438   : > { %10356 = vmatpush3.bf16.msra.mxu0 %v10353_v24 }
 0x439   : > { %10374 = vmatprep.subr.bf16.mxu0 %v12211_v32 }
 0x4b7   : > { %v8638_v34 = vpop.f32.mrb[16].mxu1  ;;  %v8726_v35 = vpop.f32.mrb[10].mxu0 }
 0x4b8   : > { %v8639_v36 = vpop.f32.mrb[17].mxu1  ;;  %v8727_v37 = vpop.f32.mrb[11].mxu0 }
 0x4b9   : > { %v8640_v38 = vadd.f32 %v8639_v36, %v8638_v34  ;;  %v8728_v39 = vadd.f32 %v8727_v37, %v8726_v35  ;;  %v2949_v34 = vld [vmem:[#allocation9 + $0xe0] sm:$0xff]  ;;  %v2950_v35 = vld [vmem:[#allocation9 + $0xe8] sm:$0xff] }
 0x4bb   : > { %v8641_v41 = vpop.f32.mrb[18].mxu1  ;;  %v8729_v43 = vpop.f32.mrb[12].mxu0 }
 0x4bc   : > { %v8642_v44 = vpop.f32.mrb[19].mxu1  ;;  %v8730_v45 = vpop.f32.mrb[13].mxu0 }
 0x4bd   : > { %v8643_v15 = vadd.f32 %v8642_v44, %v8641_v41  ;;  %v8731_v46 = vadd.f32 %v8730_v45, %v8729_v43  ;;  %v10381_v44 = vpack.c.bf16 %v2950_v35, %v2949_v34  ;;  %v2853_v45 = vld [vmem:[#allocation9 + $0xb0] sm:$0xff]  ;;  %v3344_v35 = vld [vmem:[#allocation9 + $0x1f8] sm:$0xff] }
 0x4be   : > { %v3343_v34 = vld [vmem:[#allocation9 + $0x1f0] sm:$0xff] }
 0x4bf   : > { %v8644_v47 = vpop.f32.mrb[20].mxu1  ;;  %v8732_v48 = vpop.f32.mrb[14].mxu0 }
 0x4c0   : > { %v8645_v49 = vpop.f32.mrb[21].mxu1  ;;  %v8733_v50 = vpop.f32.mrb[15].mxu0 }
 0x4c1   : > { %v8646_v51 = vadd.f32 %v8645_v49, %v8644_v47  ;;  %v8734_v54 = vadd.f32 %v8733_v50, %v8732_v48  ;;  %v3043_v48 = vld [vmem:[#allocation9 + $0x100] sm:$0xff] }
 0x4c3   : > { %v8647_v55 = vpop.f32.mrb[22].mxu1  ;;  %v8735_v56 = vpop.f32.mrb[16].mxu0 }
 0x4c4   : > { %v8648_v57 = vpop.f32.mrb[23].mxu1  ;;  %v8736_v58 = vpop.f32.mrb[17].mxu0 }
 0x4c5   : > { %v12215_v16 = vadd.f32 %v8648_v57, %v8647_v55  ;;  %v12217_v59 = vadd.f32 %v8736_v58, %v8735_v56  ;;  %v3142_v55 = vld [vmem:[#allocation9 + $0x148] sm:$0xff]  ;;  %v3045_v58 = vld [vmem:[#allocation9 + $0x110] sm:$0xff] }
 0x4d7   : > { %v8682_v60 = vpop.f32.mrb[24].mxu1 }
 0x4d8   : > { %v8683_v61 = vpop.f32.mrb[25].mxu1 }
 0x4d9   : > { %v8684_v62 = vadd.f32 %v8683_v61, %v8682_v60  ;;  %v3144_v60 = vld [vmem:[#allocation9 + $0x158] sm:$0xff] }
 0x4db   : > { %v2626_v63 = vmax.f32 %v8640_v38, %v8684_v62  ;;  %v8685_v0 = vpop.f32.mrb[26].mxu1 }
 0x4dc   : > { %v8686_v33 = vpop.f32.mrb[27].mxu1 }
 0x4dd   : > { %v8687_v12 = vadd.f32 %v8686_v33, %v8685_v0  ;;  %v3048_v0 = vld [vmem:[#allocation9 + $0x128] sm:$0xff]  ;;  %v3145_v33 = vld [vmem:[#allocation9 + $0x160] sm:$0xff] }
 0x4df   : > { %v2627_v2 = vmax.f32 %v8643_v15, %v8687_v12  ;;  %v8688_v3 = vpop.f32.mrb[28].mxu1  ;;  %v3146_v12 = vld [vmem:[#allocation9 + $0x168] sm:$0xff] }
 0x4e0   : > { %v8689_v4 = vpop.f32.mrb[29].mxu1 }
 0x4e1   : > { %v8690_v5 = vadd.f32 %v8689_v4, %v8688_v3  ;;  %v10413_v3 = vpack.c.bf16 %v3146_v12, %v3145_v33  ;;  %v3049_v4 = vld [vmem:[#allocation9 + $0x130] sm:$0xff] }
 0x4e3   : > { %v2628_v6 = vmax.f32 %v8646_v51, %v8690_v5  ;;  %v8691_v7 = vpop.f32.mrb[30].mxu1  ;;  %v3044_v51 = vld [vmem:[#allocation9 + $0x108] sm:$0xff]  ;;  %v3050_v5 = vld [vmem:[#allocation9 + $0x138] sm:$0xff] }
 0x4e4   : > { %v8692_v8 = vpop.f32.mrb[31].mxu1  ;;  %v10389_v56 = vpack.c.bf16 %v3044_v51, %v3043_v48  ;;  %v3441_v48 = vld [vmem:[#allocation9 + $0x230] sm:$0xff]  ;;  %v3533_v51 = vld [vmem:[%s12821_s9 + $0x8] sm:$0xff] }
 0x4e5   : > { %v8693_v9 = vadd.f32 %v8692_v8, %v8691_v7  ;;  %v3148_v7 = vld [vmem:[#allocation9 + $0x178] sm:$0xff]  ;;  %v10401_v8 = vpack.c.bf16 %v3050_v5, %v3049_v4 }
 0x4e7   : > { %v2629_v10 = vmax.f32 %v12215_v16, %v8693_v9  ;;  %v3046_v16 = vld [vmem:[#allocation9 + $0x118] sm:$0xff] }
 0x4e8   : > { %v10393_v61 = vpack.c.bf16 %v3046_v16, %v3045_v58 }
 0x4f7   : > { %v8770_v17 = vpop.f32.mrb[32].mxu1 }
 0x4f8   : > { %v8771_v11 = vpop.f32.mrb[33].mxu1 }
 0x4f9   : > { %v8772_v27 = vadd.f32 %v8771_v11, %v8770_v17  ;;  %v3240_v17 = vld [vmem:[#allocation9 + $0x188] sm:$0xff]  ;;  %v3337_v11 = vld [vmem:[#allocation9 + $0x1c0] sm:$0xff] }
 0x4fb   : > { %v2630_v13 = vmax.f32 %v8728_v39, %v8772_v27  ;;  %v8773_v30 = vpop.f32.mrb[34].mxu1  ;;  %v10365_v39 = vpack.c.bf16 %v2852_v31, %v2851_v28  ;;  %v3338_v27 = vld [vmem:[#allocation9 + $0x1c8] sm:$0xff]  ;;  %v3245_v28 = vld [vmem:[#allocation9 + $0x1b0] sm:$0xff]  ;;  %v3246_v31 = vld [vmem:[#allocation9 + $0x1b8] sm:$0xff] }
 0x4fc   : > { %v8774_v40 = vpop.f32.mrb[35].mxu1 }
 0x4fd   : > { %v12220_v42 = vmax.f32 %v2626_v63, %v2630_v13  ;;  %v8775_v52 = vadd.f32 %v8774_v40, %v8773_v30  ;;  %v3047_v63 = vld [vmem:[#allocation9 + $0x120] sm:$0xff]  ;;  %v10437_v30 = vpack.c.bf16 %v3338_v27, %v3337_v11  ;;  %v3241_v40 = vld [vmem:[#allocation9 + $0x190] sm:$0xff] }
 0x4ff   : > { %v2631_v20 = vmax.f32 %v8731_v46, %v8775_v52  ;;  %v8776_v21 = vpop.f32.mrb[36].mxu1  ;;  %9147 = vmatprep.mubr.msk.f32.mxu1 %vm2646_vm1, %v12220_v42  ;;  %9169 = vmatprep.mubr.msk.f32.mxu0 %vm2646_vm1, %v12220_v42  ;;  %v2951_v46 = vld [vmem:[#allocation9 + $0xf0] sm:$0xff]  ;;  %v3242_v52 = vld [vmem:[#allocation9 + $0x198] sm:$0xff] }
 0x500   : > { %v8777_v22 = vpop.f32.mrb[37].mxu1  ;;  %v10425_v18 = vpack.c.bf16 %v3242_v52, %v3241_v40 }
 0x501   : > { %v12226_v23 = vmax.f32 %v2627_v2, %v2631_v20  ;;  %v8778_v24 = vadd.f32 %v8777_v22, %v8776_v21  ;;  %v10397_v2 = vpack.c.bf16 %v3048_v0, %v3047_v63  ;;  %v3243_v20 = vld [vmem:[#allocation9 + $0x1a0] sm:$0xff]  ;;  %v3244_v21 = vld [vmem:[#allocation9 + $0x1a8] sm:$0xff] }
 0x502   : > { %v3341_v22 = vld [vmem:[#allocation9 + $0x1e0] sm:$0xff] }
 0x503   : > { %v2632_v36 = vmax.f32 %v8734_v54, %v8778_v24  ;;  %v8779_v37 = vpop.f32.mrb[38].mxu1  ;;  %9148 = vmatmul.mubr.msk.f32.vlgmr.msra.gmra.mrb[40].mxu1 %vm2646_vm1, %v12226_v23  ;;  %9170 = vmatmul.mubr.msk.f32.vlgmr.msra.gmra.mrb[18].mxu0 %vm2646_vm1, %v12226_v23  ;;  %v3141_v54 = vld [vmem:[#allocation9 + $0x140] sm:$0xff]  ;;  %v3342_v24 = vld [vmem:[#allocation9 + $0x1e8] sm:$0xff] }
 0x504   : > { %10360 = vmatpush3.bf16.msra.mxu1 %v12209_v29  ;;  %10376 = vmatpush3.bf16.msra.mxu0 %v12211_v32  ;;  %v8780_v38 = vpop.f32.mrb[39].mxu1  ;;  %v2854_v29 = vld [vmem:[#allocation9 + $0xb8] sm:$0xff]  ;;  %v10405_v57 = vpack.c.bf16 %v3142_v55, %v3141_v54 }
 0x505   : > { %v12234_v41 = vmax.f32 %v2628_v6, %v2632_v36  ;;  %v8781_v43 = vadd.f32 %v8780_v38, %v8779_v37  ;;  %10362 = vmatprep.subr.bf16.mxu1 %v10361_v25  ;;  %10378 = vmatprep.subr.bf16.mxu0 %v10377_v26  ;;  %v2952_v32 = vld [vmem:[#allocation9 + $0xf8] sm:$0xff]  ;;  %v10369_v49 = vpack.c.bf16 %v2854_v29, %v2853_v45  ;;  %v3147_v6 = vld [vmem:[#allocation9 + $0x170] sm:$0xff]  ;;  %v3435_v38 = vld [vmem:[#allocation9 + $0x200] sm:$0xff] }
 0x506   : > { %v10385_v50 = vpack.c.bf16 %v2952_v32, %v2951_v46  ;;  %v10417_v9 = vpack.c.bf16 %v3148_v7, %v3147_v6  ;;  %v10433_v36 = vpack.c.bf16 %v3246_v31, %v3245_v28  ;;  %v10449_v37 = vpack.c.bf16 %v3344_v35, %v3343_v34  ;;  %v3438_v45 = vld [vmem:[#allocation9 + $0x218] sm:$0xff]  ;;  %v3439_v29 = vld [vmem:[#allocation9 + $0x220] sm:$0xff]  ;;  %v3440_v46 = vld [vmem:[#allocation9 + $0x228] sm:$0xff] }
 0x507   : > { %v2633_v15 = vmax.f32 %v12217_v59, %v8781_v43  ;;  %9150 = vmatprep.mubr.msk.f32.mxu1 %vm2646_vm1, %v12234_v41  ;;  %9172 = vmatprep.mubr.msk.f32.mxu0 %vm2646_vm1, %v12234_v41  ;;  %v3143_v59 = vld [vmem:[#allocation9 + $0x150] sm:$0xff]  ;;  %v10461_v32 = vpack.c.bf16 %v3440_v46, %v3439_v29 }
 0x508   : > { %10364 = vmatpush3.bf16.msra.mxu1 %v10361_v25  ;;  %10380 = vmatpush3.bf16.msra.mxu0 %v10377_v26  ;;  %v10409_v62 = vpack.c.bf16 %v3144_v60, %v3143_v59  ;;  %v10429_v25 = vpack.c.bf16 %v3244_v21, %v3243_v20  ;;  %v10445_v26 = vpack.c.bf16 %v3342_v24, %v3341_v22 }
 0x509   : > { %v12241_v47 = vmax.f32 %v2629_v10, %v2633_v15  ;;  %10366 = vmatprep.subr.bf16.mxu1 %v10365_v39  ;;  %10382 = vmatprep.subr.bf16.mxu0 %v10381_v44  ;;  %v3239_v10 = vld [vmem:[#allocation9 + $0x180] sm:$0xff] }
 0x50a   : > { %v10421_v13 = vpack.c.bf16 %v3240_v17, %v3239_v10 }
 0x50b   : > { %9151 = vmatmul.mubr.msk.f32.gmra.mrb[42].mxu1 %vm2646_vm1, %v12241_v47  ;;  %9173 = vmatmul.mubr.msk.f32.gmra.mrb[20].mxu0 %vm2646_vm1, %v12241_v47 }
 0x50c   : > { %10368 = vmatpush3.bf16.msra.mxu1 %v10365_v39  ;;  %10384 = vmatpush3.bf16.msra.mxu0 %v10381_v44  ;;  %v3436_v39 = vld [vmem:[#allocation9 + $0x208] sm:$0xff]  ;;  %v3437_v44 = vld [vmem:[#allocation9 + $0x210] sm:$0xff] }
 0x50d   : > { %9191 = vmatprep.mubr.msk.f32.mxu1 %vm2646_vm1, %v12220_v42  ;;  %9213 = vmatprep.mubr.msk.f32.mxu0 %vm2646_vm1, %v12220_v42  ;;  %v10453_v43 = vpack.c.bf16 %v3436_v39, %v3435_v38  ;;  %v10457_v15 = vpack.c.bf16 %v3438_v45, %v3437_v44 }
 0x50e   : > { %10370 = vmatprep.subr.bf16.mxu1 %v10369_v49  ;;  %10386 = vmatprep.subr.bf16.mxu0 %v10385_v50 }
 0x510   : > { %10372 = vmatpush3.bf16.msra.mxu1 %v10369_v49  ;;  %10388 = vmatpush3.bf16.msra.mxu0 %v10385_v50  ;;  %v3442_v49 = vld [vmem:[#allocation9 + $0x238] sm:$0xff] }
 0x511   : > { %10390 = vmatprep.subr.bf16.mxu1 %v10389_v56  ;;  %10406 = vmatprep.subr.bf16.mxu0 %v10405_v57  ;;  %v10465_v50 = vpack.c.bf16 %v3442_v49, %v3441_v48 }
 0x513   : > { %9192 = vmatmul.mubr.msk.f32.vlgmr.msra.gmra.mrb[44].mxu1 %vm2646_vm1, %v12226_v23  ;;  %9214 = vmatmul.mubr.msk.f32.vlgmr.msra.gmra.mrb[22].mxu0 %vm2646_vm1, %v12226_v23 }
 0x514   : > { %9194 = vmatprep.mubr.msk.f32.mxu1 %vm2646_vm1, %v12234_v41  ;;  %9216 = vmatprep.mubr.msk.f32.mxu0 %vm2646_vm1, %v12234_v41 }
 0x515   : > { %10392 = vmatpush3.bf16.msra.mxu1 %v10389_v56  ;;  %10408 = vmatpush3.bf16.msra.mxu0 %v10405_v57 }
 0x516   : > { %10394 = vmatprep.subr.bf16.mxu1 %v10393_v61  ;;  %10410 = vmatprep.subr.bf16.mxu0 %v10409_v62 }
 0x517   : > { %9195 = vmatmul.mubr.msk.f32.gmra.mrb[46].mxu1 %vm2646_vm1, %v12241_v47  ;;  %9217 = vmatmul.mubr.msk.f32.gmra.mrb[24].mxu0 %vm2646_vm1, %v12241_v47 }
 0x518   : > { %9235 = vmatprep.mubr.msk.f32.mxu1 %vm2646_vm1, %v12220_v42  ;;  %9257 = vmatprep.mubr.msk.f32.mxu0 %vm2646_vm1, %v12220_v42 }
 0x519   : > { %10396 = vmatpush3.bf16.msra.mxu1 %v10393_v61  ;;  %10412 = vmatpush3.bf16.msra.mxu0 %v10409_v62 }
 0x51a   : > { %10398 = vmatprep.subr.bf16.mxu1 %v10397_v2  ;;  %10414 = vmatprep.subr.bf16.mxu0 %v10413_v3 }
 0x51d   : > { %10400 = vmatpush3.bf16.msra.mxu1 %v10397_v2  ;;  %10416 = vmatpush3.bf16.msra.mxu0 %v10413_v3 }
 0x51e   : > { %10402 = vmatprep.subr.bf16.mxu1 %v10401_v8  ;;  %10418 = vmatprep.subr.bf16.mxu0 %v10417_v9 }
 0x521   : > { %10404 = vmatpush3.bf16.msra.mxu1 %v10401_v8  ;;  %10420 = vmatpush3.bf16.msra.mxu0 %v10417_v9 }
 0x522   : > { %10422 = vmatprep.subr.bf16.mxu1 %v10421_v13  ;;  %10438 = vmatprep.subr.bf16.mxu0 %v10437_v30 }
 0x524   : > { %9236 = vmatmul.mubr.msk.f32.vlgmr.msra.gmra.mrb[48].mxu1 %vm2646_vm1, %v12226_v23  ;;  %9258 = vmatmul.mubr.msk.f32.vlgmr.msra.gmra.mrb[26].mxu0 %vm2646_vm1, %v12226_v23 }
 0x525   : > { %9238 = vmatprep.mubr.msk.f32.mxu1 %vm2646_vm1, %v12234_v41  ;;  %9260 = vmatprep.mubr.msk.f32.mxu0 %vm2646_vm1, %v12234_v41 }
 0x526   : > { %10424 = vmatpush3.bf16.msra.mxu1 %v10421_v13  ;;  %10440 = vmatpush3.bf16.msra.mxu0 %v10437_v30 }
 0x527   : > { %10426 = vmatprep.subr.bf16.mxu1 %v10425_v18  ;;  %10442 = vmatprep.subr.bf16.mxu0 %v10441_v19 }
 0x528   : > { %9239 = vmatmul.mubr.msk.f32.gmra.mrb[50].mxu1 %vm2646_vm1, %v12241_v47  ;;  %9261 = vmatmul.mubr.msk.f32.gmra.mrb[28].mxu0 %vm2646_vm1, %v12241_v47 }
 0x529   : > { %9279 = vmatprep.mubr.msk.f32.mxu1 %vm2646_vm1, %v12220_v42  ;;  %9301 = vmatprep.mubr.msk.f32.mxu0 %vm2646_vm1, %v12220_v42 }
 0x52a   : > { %10428 = vmatpush3.bf16.msra.mxu1 %v10425_v18  ;;  %10444 = vmatpush3.bf16.msra.mxu0 %v10441_v19 }
 0x52b   : > { %10430 = vmatprep.subr.bf16.mxu1 %v10429_v25  ;;  %10446 = vmatprep.subr.bf16.mxu0 %v10445_v26 }
 0x52e   : > { %10432 = vmatpush3.bf16.msra.mxu1 %v10429_v25  ;;  %10448 = vmatpush3.bf16.msra.mxu0 %v10445_v26 }
 0x52f   : > { %10434 = vmatprep.subr.bf16.mxu1 %v10433_v36  ;;  %10450 = vmatprep.subr.bf16.mxu0 %v10449_v37 }
 0x532   : > { %10436 = vmatpush3.bf16.msra.mxu1 %v10433_v36  ;;  %10452 = vmatpush3.bf16.msra.mxu0 %v10449_v37 }
 0x533   : > { %10454 = vmatprep.subr.bf16.mxu1 %v10453_v43 }
 0x535   : > { %9280 = vmatmul.mubr.msk.f32.vlgmr.msra.gmra.mrb[52].mxu1 %vm2646_vm1, %v12226_v23  ;;  %9302 = vmatmul.mubr.msk.f32.vlgmr.msra.gmra.mrb[30].mxu0 %vm2646_vm1, %v12226_v23 }
 0x536   : > { %9282 = vmatprep.mubr.msk.f32.mxu1 %vm2646_vm1, %v12234_v41  ;;  %9304 = vmatprep.mubr.msk.f32.mxu0 %vm2646_vm1, %v12234_v41 }
 0x537   : > { %10456 = vmatpush3.bf16.msra.mxu1 %v10453_v43 }
 0x538   : > { %10458 = vmatprep.subr.bf16.mxu1 %v10457_v15 }
 0x539   : > { %9283 = vmatmul.mubr.msk.f32.gmra.mrb[54].mxu1 %vm2646_vm1, %v12241_v47  ;;  %9305 = vmatmul.mubr.msk.f32.gmra.mrb[32].mxu0 %vm2646_vm1, %v12241_v47 }
 0x53a   : > { %9323 = vmatprep.mubr.msk.f32.mxu1 %vm2646_vm1, %v12220_v42  ;;  %3681 = vmatprep.mubr.f32.mxu0 %v3533_v51  ;;  %v3534_v42 = vld [vmem:[%s12821_s9 + $0x10] sm:$0xff] }
 0x53b   : > { %10460 = vmatpush3.bf16.msra.mxu1 %v10457_v15 }
 0x53c   : > { %10462 = vmatprep.subr.bf16.mxu1 %v10461_v32 }
 0x53f   : > { %10464 = vmatpush3.bf16.msra.mxu1 %v10461_v32 }
 0x540   : > { %10466 = vmatprep.subr.bf16.mxu1 %v10465_v50 }
 0x543   : > { %10468 = vmatpush3.bf16.msra.mxu1 %v10465_v50 }
 0x546   : > { %9324 = vmatmul.mubr.msk.f32.vlgmr.msra.gmra.mrb[56].mxu1 %vm2646_vm1, %v12226_v23 }
 0x547   : > { %9326 = vmatprep.mubr.msk.f32.mxu1 %vm2646_vm1, %v12234_v41 }
 0x54a   : > { %9327 = vmatmul.mubr.msk.f32.gmra.mrb[58].mxu1 %vm2646_vm1, %v12241_v47 }
 0x54b   : > { %9337 = vmatprep.mubr.msk.f32.mxu1 %vm3604_vm2, %v3534_v42 }
 0x5d6   : > { %v9149_v54 = vpop.f32.mrb[40].mxu1  ;;  %v9171_v23 = vpop.f32.mrb[18].mxu0 }
 0x5d7   : > { %2745 = vst.msk [vmem:[#allocation3 + $0x8] sm:$0xff] %vm2646_vm1, %v9149_v54  ;;  %2843 = vst.msk [vmem:[#allocation3 + $0x28] sm:$0xff] %vm2646_vm1, %v9171_v23  ;;  %v2725_v41 = vpop.f32.mrb[41].mxu1  ;;  %v2823_v47 = vpop.f32.mrb[19].mxu0 }
 0x5d8   : > { %2744 = vst.msk [vmem:[#allocation3] sm:$0xff] %vm2646_vm1, %v2725_v41  ;;  %2842 = vst.msk [vmem:[#allocation3 + $0x20] sm:$0xff] %vm2646_vm1, %v2823_v47 }
 0x5de   : > { %v9152_v55 = vpop.f32.mrb[42].mxu1  ;;  %v9174_v56 = vpop.f32.mrb[20].mxu0  ;;  %v3545_v17 = vld [vmem:[#allocation3 + $0x8] sm:$0xff] }
 0x5df   : > { %2747 = vst.msk [vmem:[#allocation3 + $0x18] sm:$0xff] %vm2646_vm1, %v9152_v55  ;;  %2845 = vst.msk [vmem:[#allocation3 + $0x38] sm:$0xff] %vm2646_vm1, %v9174_v56  ;;  %v2735_v57 = vpop.f32.mrb[43].mxu1  ;;  %v2833_v58 = vpop.f32.mrb[21].mxu0  ;;  %v3544_v10 = vld [vmem:[#allocation3] sm:$0xff]  ;;  %v3549_v24 = vld [vmem:[#allocation3 + $0x28] sm:$0xff] }
 0x5e0   : > { %2746 = vst.msk [vmem:[#allocation3 + $0x10] sm:$0xff] %vm2646_vm1, %v2735_v57  ;;  %2844 = vst.msk [vmem:[#allocation3 + $0x30] sm:$0xff] %vm2646_vm1, %v2833_v58  ;;  %v10471_v13 = vpack.c.bf16 %v3545_v17, %v3544_v10  ;;  %v3548_v22 = vld [vmem:[#allocation3 + $0x20] sm:$0xff] }
 0x5e1   : > { %v10479_v36 = vpack.c.bf16 %v3549_v24, %v3548_v22  ;;  %v3542_v22 = vld [vmem:[%s12821_s9 + $0x50] sm:$0xff]  ;;  %v3540_v24 = vld [vmem:[%s12821_s9 + $0x40] sm:$0xff] }
 0x5e6   : > { %v9193_v16 = vpop.f32.mrb[44].mxu1  ;;  %v9215_v59 = vpop.f32.mrb[22].mxu0  ;;  %v3547_v52 = vld [vmem:[#allocation3 + $0x18] sm:$0xff] }
 0x5e7   : > { %2941 = vst.msk [vmem:[#allocation3 + $0x48] sm:$0xff] %vm2646_vm1, %v9193_v16  ;;  %3039 = vst.msk [vmem:[#allocation3 + $0x68] sm:$0xff] %vm2646_vm1, %v9215_v59  ;;  %v2921_v60 = vpop.f32.mrb[45].mxu1  ;;  %v3019_v61 = vpop.f32.mrb[23].mxu0  ;;  %v3546_v40 = vld [vmem:[#allocation3 + $0x10] sm:$0xff]  ;;  %v3551_v39 = vld [vmem:[#allocation3 + $0x38] sm:$0xff] }
 0x5e8   : > { %2940 = vst.msk [vmem:[#allocation3 + $0x40] sm:$0xff] %vm2646_vm1, %v2921_v60  ;;  %3038 = vst.msk [vmem:[#allocation3 + $0x60] sm:$0xff] %vm2646_vm1, %v3019_v61  ;;  %v10475_v20 = vpack.c.bf16 %v3547_v52, %v3546_v40  ;;  %v3550_v38 = vld [vmem:[#allocation3 + $0x30] sm:$0xff]  ;;  %v3535_v40 = vld [vmem:[%s12821_s9 + $0x18] sm:$0xff] }
 0x5e9   : > { %v10483_v29 = vpack.c.bf16 %v3551_v39, %v3550_v38  ;;  %v3795_v38 = vld [vmem:[#allocation15 + $0x20] sm:$0xff]  ;;  %v3796_v39 = vld [vmem:[#allocation15 + $0x28] sm:$0xff] }
 0x5ea   : > { %v9196_v62 = vpop.f32.mrb[46].mxu1  ;;  %v9218_v63 = vpop.f32.mrb[24].mxu0 }
 0x5eb   : > { %2943 = vst.msk [vmem:[#allocation3 + $0x58] sm:$0xff] %vm2646_vm1, %v9196_v62  ;;  %3041 = vst.msk [vmem:[#allocation3 + $0x78] sm:$0xff] %vm2646_vm1, %v9218_v63  ;;  %v2931_v0 = vpop.f32.mrb[47].mxu1  ;;  %v3029_v33 = vpop.f32.mrb[25].mxu0 }
 0x5ec   : > { %2942 = vst.msk [vmem:[#allocation3 + $0x50] sm:$0xff] %vm2646_vm1, %v2931_v0  ;;  %3040 = vst.msk [vmem:[#allocation3 + $0x70] sm:$0xff] %vm2646_vm1, %v3029_v33  ;;  %v3991_v33 = vld [vmem:[#allocation15 + $0x80] sm:$0xff] }
 0x5ee   : > { %v3553_v48 = vld [vmem:[#allocation3 + $0x48] sm:$0xff] }
 0x5ef   : > { %v3552_v32 = vld [vmem:[#allocation3 + $0x40] sm:$0xff]  ;;  %v3557_v59 = vld [vmem:[#allocation3 + $0x68] sm:$0xff] }
 0x5f0   : > { %v10487_v51 = vpack.c.bf16 %v3553_v48, %v3552_v32  ;;  %v3556_v16 = vld [vmem:[#allocation3 + $0x60] sm:$0xff]  ;;  %v3997_v48 = vld [vmem:[#allocation15 + $0xb0] sm:$0xff] }
 0x5f1   : > { %v10495_v0 = vpack.c.bf16 %v3557_v59, %v3556_v16  ;;  %v3592_v16 = vpop.permute.xlu1 %3591 }
 0x5f2   : > { %v3555_v23 = vld [vmem:[#allocation3 + $0x58] sm:$0xff] }
 0x5f3   : > { %v3554_v54 = vld [vmem:[#allocation3 + $0x50] sm:$0xff] }
 0x5f4   : > { %v10491_v57 = vpack.c.bf16 %v3555_v23, %v3554_v54 }
 0x5f7   : > { %v9237_v12 = vpop.f32.mrb[48].mxu1  ;;  %v9259_v2 = vpop.f32.mrb[26].mxu0 }
 0x5f8   : > { %3137 = vst.msk [vmem:[#allocation3 + $0x88] sm:$0xff] %vm2646_vm1, %v9237_v12  ;;  %3235 = vst.msk [vmem:[#allocation3 + $0xa8] sm:$0xff] %vm2646_vm1, %v9259_v2  ;;  %v3117_v3 = vpop.f32.mrb[49].mxu1  ;;  %v3215_v4 = vpop.f32.mrb[27].mxu0  ;;  %v3992_v12 = vld [vmem:[#allocation15 + $0x88] sm:$0xff] }
 0x5f9   : > { %3136 = vst.msk [vmem:[#allocation3 + $0x80] sm:$0xff] %vm2646_vm1, %v3117_v3  ;;  %3234 = vst.msk [vmem:[#allocation3 + $0xa0] sm:$0xff] %vm2646_vm1, %v3215_v4  ;;  %v3558_v3 = vld [vmem:[#allocation3 + $0x70] sm:$0xff]  ;;  %v3559_v4 = vld [vmem:[#allocation3 + $0x78] sm:$0xff] }
 0x5fb   : > { %v9240_v5 = vpop.f32.mrb[50].mxu1  ;;  %v9262_v6 = vpop.f32.mrb[28].mxu0 }
 0x5fc   : > { %3139 = vst.msk [vmem:[#allocation3 + $0x98] sm:$0xff] %vm2646_vm1, %v9240_v5  ;;  %3237 = vst.msk [vmem:[#allocation3 + $0xb8] sm:$0xff] %vm2646_vm1, %v9262_v6  ;;  %v3127_v7 = vpop.f32.mrb[51].mxu1  ;;  %v3225_v8 = vpop.f32.mrb[29].mxu0 }
 0x5fd   : > { %3138 = vst.msk [vmem:[#allocation3 + $0x90] sm:$0xff] %vm2646_vm1, %v3127_v7  ;;  %3236 = vst.msk [vmem:[#allocation3 + $0xb0] sm:$0xff] %vm2646_vm1, %v3225_v8  ;;  %v10541_v7 = vpack.c.bf16 %v3992_v12, %v3991_v33  ;;  %v10499_v8 = vpack.c.bf16 %v3559_v4, %v3558_v3  ;;  %v3899_v4 = vld [vmem:[#allocation15 + $0x50] sm:$0xff] }
 0x5ff   : > { %v3561_v9 = vld [vmem:[#allocation3 + $0x88] sm:$0xff] }
 0x600   : > { %v3560_v11 = vld [vmem:[#allocation3 + $0x80] sm:$0xff]  ;;  %v3565_v18 = vld [vmem:[#allocation3 + $0xa8] sm:$0xff] }
 0x601   : > { %v10469_v27 = vpack.c.bf16 %v3561_v9, %v3560_v11  ;;  %v3564_v14 = vld [vmem:[#allocation3 + $0xa0] sm:$0xff] }
 0x602   : > { %v10477_v21 = vpack.c.bf16 %v3565_v18, %v3564_v14  ;;  %v3532_v9 = vld [vmem:[%s12821_s9] sm:$0xff]  ;;  %v3539_v14 = vld [vmem:[%s12821_s9 + $0x38] sm:$0xff] }
 0x603   : > { %10470 = vmatprep.subr.bf16.mxu0 %v10469_v27  ;;  %v3563_v30 = vld [vmem:[#allocation3 + $0x98] sm:$0xff]  ;;  %v3536_v11 = vld [vmem:[%s12821_s9 + $0x20] sm:$0xff] }
 0x604   : > { %10472 = vmatpush3.bf16.msra.mxu0 %v10471_v13  ;;  %v3562_v53 = vld [vmem:[#allocation3 + $0x90] sm:$0xff]  ;;  %v3567_v31 = vld [vmem:[#allocation3 + $0xb8] sm:$0xff]  ;;  %v3791_v13 = vld [vmem:[#allocation15] sm:$0xff] }
 0x605   : > { %v10473_v19 = vpack.c.bf16 %v3563_v30, %v3562_v53  ;;  %v3566_v28 = vld [vmem:[#allocation3 + $0xb0] sm:$0xff] }
 0x606   : > { %v10481_v37 = vpack.c.bf16 %v3567_v31, %v3566_v28  ;;  %v3792_v30 = vld [vmem:[#allocation15 + $0x8] sm:$0xff]  ;;  %v3793_v28 = vld [vmem:[#allocation15 + $0x10] sm:$0xff]  ;;  %v3794_v31 = vld [vmem:[#allocation15 + $0x18] sm:$0xff] }
 0x607   : > { %10474 = vmatprep.subr.bf16.mxu0 %v10473_v19  ;;  %v10509_v19 = vpack.c.bf16 %v3792_v30, %v3791_v13  ;;  %v3602_v30 = vpop.permute.xlu1 %3601 }
 0x608   : > { %v9281_v25 = vpop.f32.mrb[52].mxu1  ;;  %v9303_v26 = vpop.f32.mrb[30].mxu0  ;;  %10476 = vmatpush3.bf16.msra.mxu0 %v10475_v20  ;;  %v3538_v20 = vld [vmem:[%s12821_s9 + $0x30] sm:$0xff] }
 0x609   : > { %3333 = vst.msk [vmem:[#allocation3 + $0xc8] sm:$0xff] %vm2646_vm1, %v9281_v25  ;;  %3431 = vst.msk [vmem:[#allocation3 + $0xe8] sm:$0xff] %vm2646_vm1, %v9303_v26  ;;  %v3313_v34 = vpop.f32.mrb[53].mxu1  ;;  %v3411_v35 = vpop.f32.mrb[31].mxu0  ;;  %10478 = vmatprep.subr.bf16.mxu0 %v10477_v21  ;;  %v3537_v21 = vld [vmem:[%s12821_s9 + $0x28] sm:$0xff]  ;;  %v3543_v26 = vld [vmem:[%s12821_s9 + $0x58] sm:$0xff] }
 0x60a   : > { %3332 = vst.msk [vmem:[#allocation3 + $0xc0] sm:$0xff] %vm2646_vm1, %v3313_v34  ;;  %3430 = vst.msk [vmem:[#allocation3 + $0xe0] sm:$0xff] %vm2646_vm1, %v3411_v35  ;;  %v3541_v25 = vld [vmem:[%s12821_s9 + $0x48] sm:$0xff]  ;;  %v10513_v34 = vpack.c.bf16 %v3794_v31, %v3793_v28  ;;  %v3993_v35 = vld [vmem:[#allocation15 + $0x90] sm:$0xff] }
 0x60b   : > { %v4086_v28 = vld [vmem:[#allocation15 + $0xc8] sm:$0xff] }
 0x60c   : > { %v9284_v43 = vpop.f32.mrb[54].mxu1  ;;  %v9306_v44 = vpop.f32.mrb[32].mxu0  ;;  %10480 = vmatpush3.bf16.msra.mxu0 %v10479_v36  ;;  %v3994_v36 = vld [vmem:[#allocation15 + $0x98] sm:$0xff] }
 0x60d   : > { %3335 = vst.msk [vmem:[#allocation3 + $0xd8] sm:$0xff] %vm2646_vm1, %v9284_v43  ;;  %3433 = vst.msk [vmem:[#allocation3 + $0xf8] sm:$0xff] %vm2646_vm1, %v9306_v44  ;;  %v3323_v45 = vpop.f32.mrb[55].mxu1  ;;  %v3421_v15 = vpop.f32.mrb[33].mxu0  ;;  %10482 = vmatprep.subr.bf16.mxu0 %v10481_v37  ;;  %v10545_v37 = vpack.c.bf16 %v3994_v36, %v3993_v35  ;;  %v10517_v43 = vpack.c.bf16 %v3796_v39, %v3795_v38  ;;  %v3995_v44 = vld [vmem:[#allocation15 + $0xa0] sm:$0xff]  ;;  %v4088_v35 = vld [vmem:[#allocation15 + $0xd8] sm:$0xff] }
 0x60e   : > { %3334 = vst.msk [vmem:[#allocation3 + $0xd0] sm:$0xff] %vm2646_vm1, %v3323_v45  ;;  %3432 = vst.msk [vmem:[#allocation3 + $0xf0] sm:$0xff] %vm2646_vm1, %v3421_v15  ;;  %v3996_v45 = vld [vmem:[#allocation15 + $0xa8] sm:$0xff] }
 0x60f   : > { %v10549_v15 = vpack.c.bf16 %v3996_v45, %v3995_v44  ;;  %v4090_v38 = vld [vmem:[#allocation15 + $0xe8] sm:$0xff]  ;;  %v4092_v44 = vld [vmem:[#allocation15 + $0xf8] sm:$0xff] }
 0x610   : > { %10484 = vmatpush3.bf16.msra.mxu0 %v10483_v29  ;;  %v3569_v46 = vld [vmem:[#allocation3 + $0xc8] sm:$0xff]  ;;  %v3797_v29 = vld [vmem:[#allocation15 + $0x30] sm:$0xff] }
 0x611   : > { %v3568_v49 = vld [vmem:[#allocation3 + $0xc0] sm:$0xff]  ;;  %v3573_v55 = vld [vmem:[#allocation3 + $0xe8] sm:$0xff] }
 0x612   : > { %v10485_v50 = vpack.c.bf16 %v3569_v46, %v3568_v49  ;;  %v3572_v47 = vld [vmem:[#allocation3 + $0xe0] sm:$0xff] }
 0x613   : > { %v10493_v58 = vpack.c.bf16 %v3573_v55, %v3572_v47  ;;  %v3798_v46 = vld [vmem:[#allocation15 + $0x38] sm:$0xff] }
 0x614   : > { %10486 = vmatprep.subr.bf16.mxu0 %v10485_v50  ;;  %v3571_v42 = vld [vmem:[#allocation3 + $0xd8] sm:$0xff]  ;;  %v10521_v32 = vpack.c.bf16 %v3798_v46, %v3797_v29 }
 0x615   : > { %10488 = vmatpush3.bf16.msra.mxu0 %v10487_v51  ;;  %v3570_v41 = vld [vmem:[#allocation3 + $0xd0] sm:$0xff]  ;;  %v3575_v62 = vld [vmem:[#allocation3 + $0xf8] sm:$0xff]  ;;  %v3897_v51 = vld [vmem:[#allocation15 + $0x40] sm:$0xff] }
 0x616   : > { %v10489_v56 = vpack.c.bf16 %v3571_v42, %v3570_v41  ;;  %v3574_v61 = vld [vmem:[#allocation3 + $0xf0] sm:$0xff]  ;;  %v3998_v49 = vld [vmem:[#allocation15 + $0xb8] sm:$0xff] }
 0x617   : > { %v10497_v2 = vpack.c.bf16 %v3575_v62, %v3574_v61  ;;  %v10553_v50 = vpack.c.bf16 %v3998_v49, %v3997_v48  ;;  %v3898_v42 = vld [vmem:[#allocation15 + $0x48] sm:$0xff]  ;;  %v4191_v29 = vld [vmem:[#allocation11 + $0x8] sm:$0xff] }
 0x618   : > { %10490 = vmatprep.subr.bf16.mxu0 %v10489_v56  ;;  %v10525_v54 = vpack.c.bf16 %v3898_v42, %v3897_v51  ;;  %v3587_v56 = vpop.permute.xlu0 %3586  ;;  %v4388_v48 = vld [vmem:[#allocation11 + $0x28] sm:$0xff]  ;;  %v4296_v51 = vld [vmem:[#allocation11 + $0x18] sm:$0xff]  ;;  %v4571_v42 = vld [vmem:[#allocation11 + $0x40] sm:$0xff] }
 0x619   : > { %v9325_v60 = vpop.f32.mrb[56].mxu1  ;;  %10492 = vmatpush3.bf16.msra.mxu0 %v10491_v57 }
 0x61a   : > { %3529 = vst.msk [vmem:[#allocation3 + $0x108] sm:$0xff] %vm2646_vm1, %v9325_v60  ;;  %v3509_v63 = vpop.f32.mrb[57].mxu1  ;;  %10494 = vmatprep.subr.bf16.mxu0 %v10493_v58 }
 0x61b   : > { %3528 = vst.msk [vmem:[#allocation3 + $0x100] sm:$0xff] %vm2646_vm1, %v3509_v63 }
 0x61d   : > { %v9328_v5 = vpop.f32.mrb[58].mxu1  ;;  %10496 = vmatpush3.bf16.msra.mxu0 %v10495_v0 }
 0x61e   : > { %3531 = vst.msk [vmem:[#allocation3 + $0x118] sm:$0xff] %vm2646_vm1, %v9328_v5  ;;  %v3519_v6 = vpop.f32.mrb[59].mxu1  ;;  %10498 = vmatprep.subr.bf16.mxu0 %v10497_v2  ;;  %v3597_v2 = vpop.permute.xlu0 %3596  ;;  %v3900_v5 = vld [vmem:[#allocation15 + $0x58] sm:$0xff] }
 0x61f   : > { %3530 = vst.msk [vmem:[#allocation3 + $0x110] sm:$0xff] %vm2646_vm1, %v3519_v6  ;;  %v10529_v13 = vpack.c.bf16 %v3900_v5, %v3899_v4 }
 0x621   : > { %10500 = vmatpush3.bf16.msra.mxu0 %v10499_v8  ;;  %v3577_v10 = vld [vmem:[#allocation3 + $0x108] sm:$0xff] }
 0x622   : > { %v3576_v17 = vld [vmem:[#allocation3 + $0x100] sm:$0xff]  ;;  %10542 = vmatprep.subr.bf16.mxu0 %v10541_v7 }
 0x623   : > { %v10501_v27 = vpack.c.bf16 %v3577_v10, %v3576_v17 }
 0x624   : > { %3682 = vmatmul.mubr.f32.vlgmr.msra.gmra.mrb[34].mxu0 %v3532_v9 }
 0x625   : > { %10502 = vmatprep.subr.bf16.mxu1 %v10501_v27  ;;  %3686 = vmatprep.mubr.f32.mxu0 %v3536_v11  ;;  %v3579_v52 = vld [vmem:[#allocation3 + $0x118] sm:$0xff] }
 0x626   : > { %10504 = vmatpush3.bf16.msra.mxu1 %v10501_v27  ;;  %v3578_v53 = vld [vmem:[#allocation3 + $0x110] sm:$0xff]  ;;  %10544 = vmatpush3.bf16.msra.mxu0 %v10541_v7 }
 0x627   : > { %v10505_v18 = vpack.c.bf16 %v3579_v52, %v3578_v53  ;;  %10546 = vmatprep.subr.bf16.mxu0 %v10545_v37  ;;  %v3901_v52 = vld [vmem:[#allocation15 + $0x60] sm:$0xff]  ;;  %v3902_v53 = vld [vmem:[#allocation15 + $0x68] sm:$0xff] }
 0x628   : > { %3687 = vmatmul.mubr.f32.gmra.mrb[36].mxu0 %v3535_v40 }
 0x629   : > { %10506 = vmatprep.subr.bf16.mxu1 %v10505_v18  ;;  %3691 = vmatprep.mubr.f32.mxu0 %v3539_v14 }
 0x62a   : > { %10508 = vmatpush3.bf16.msra.mxu1 %v10505_v18  ;;  %10548 = vmatpush3.bf16.msra.mxu0 %v10545_v37  ;;  %v4089_v37 = vld [vmem:[#allocation15 + $0xe0] sm:$0xff] }
 0x62b   : > { %10510 = vmatprep.subr.bf16.mxu1 %v10509_v19  ;;  %10550 = vmatprep.subr.bf16.mxu0 %v10549_v15  ;;  %v10565_v39 = vpack.c.bf16 %v4090_v38, %v4089_v37 }
 0x62c   : > { %3692 = vmatmul.mubr.f32.gmra.mrb[38].mxu0 %v3538_v20  ;;  %v10533_v20 = vpack.c.bf16 %v3902_v53, %v3901_v52 }
 0x62d   : > { %9338 = vmatmul.mubr.msk.f32.vlgmr.msra.gmra.mrb[60].mxu1 %vm3604_vm2, %v3537_v21  ;;  %3696 = vmatprep.mubr.f32.mxu0 %v3542_v22  ;;  %v3903_v21 = vld [vmem:[#allocation15 + $0x70] sm:$0xff]  ;;  %v3904_v22 = vld [vmem:[#allocation15 + $0x78] sm:$0xff] }
 0x62e   : > { %9340 = vmatprep.mubr.msk.f32.mxu1 %vm3604_vm2, %v3540_v24  ;;  %10512 = vmatpush3.bf16.msra.mxu1 %v10509_v19 }
 0x62f   : > { %10514 = vmatprep.subr.bf16.mxu1 %v10513_v34  ;;  %10552 = vmatpush3.bf16.msra.mxu0 %v10549_v15  ;;  %v4190_v15 = vld [vmem:[#allocation11] sm:$0xff] }
 0x630   : > { %3697 = vmatmul.mubr.f32.gmra.mrb[40].mxu0 %v3541_v25  ;;  %10554 = vmatprep.subr.bf16.mxu0 %v10553_v50  ;;  %v10537_v25 = vpack.c.bf16 %v3904_v22, %v3903_v21  ;;  %v10573_v46 = vpack.c.bf16 %v4191_v29, %v4190_v15 }
 0x631   : > { %9341 = vmatmul.mubr.msk.f32.gmra.mrb[62].mxu1 %vm3604_vm2, %v3543_v26  ;;  %v4085_v26 = vld [vmem:[#allocation15 + $0xc0] sm:$0xff] }
 0x632   : > { %10516 = vmatpush3.bf16.msra.mxu1 %v10513_v34  ;;  %v10557_v31 = vpack.c.bf16 %v4086_v28, %v4085_v26  ;;  %v4087_v34 = vld [vmem:[#allocation15 + $0xd0] sm:$0xff]  ;;  %v4847_v28 = vld [vmem:[#allocation11 + $0x70] sm:$0xff] }
 0x633   : > { %10518 = vmatprep.subr.bf16.mxu1 %v10517_v43  ;;  %10556 = vmatpush3.bf16.msra.mxu0 %v10553_v50  ;;  %v10561_v36 = vpack.c.bf16 %v4088_v35, %v4087_v34  ;;  %v4295_v50 = vld [vmem:[#allocation11 + $0x10] sm:$0xff]  ;;  %v5031_v35 = vld [vmem:[%s12756_s5 + $0x8] sm:$0xff] }
 0x634   : > { %10574 = vmatprep.subr.bf16.mxu0 %v10573_v46 }
 0x636   : > { %10520 = vmatpush3.bf16.msra.mxu1 %v10517_v43  ;;  %v4091_v43 = vld [vmem:[#allocation15 + $0xf0] sm:$0xff] }
 0x637   : > { %10522 = vmatprep.subr.bf16.mxu1 %v10521_v32  ;;  %v10569_v45 = vpack.c.bf16 %v4092_v44, %v4091_v43 }
 0x63a   : > { %10524 = vmatpush3.bf16.msra.mxu1 %v10521_v32  ;;  %v4387_v32 = vld [vmem:[#allocation11 + $0x20] sm:$0xff] }
 0x63b   : > { %10526 = vmatprep.subr.bf16.mxu1 %v10525_v54  ;;  %v12395_v49 = vpack.c.bf16 %v4388_v48, %v4387_v32 }
 0x6f7   : > { %v8922_v23 = vpop.f32.mrb[34].mxu0 }
 0x6f8   : > { %v8923_v41 = vpop.f32.mrb[35].mxu0 }
 0x6f9   : > { %v8924_v47 = vadd.f32 %v8923_v41, %v8922_v23  ;;  %v4572_v23 = vld [vmem:[#allocation11 + $0x48] sm:$0xff] }
 0x6fa   : > { %v10589_v41 = vpack.c.bf16 %v4572_v23, %v4571_v42 }
 0x6fb   : > { %v8925_v55 = vpop.f32.mrb[36].mxu0  ;;  %v3684_v63 = vadd.f32 %v8924_v47, %v3587_v56 }
 0x6fc   : > { %v8926_v57 = vpop.f32.mrb[37].mxu0 }
 0x6fd   : > { %v8927_v58 = vadd.f32 %v8926_v57, %v8925_v55 }
 0x6ff   : > { %v8928_v59 = vpop.f32.mrb[38].mxu0  ;;  %v3689_v60 = vadd.f32 %v8927_v58, %v3592_v16 }
 0x700   : > { %v9339_v61 = vpop.f32.mrb[60].mxu1  ;;  %v8929_v62 = vpop.f32.mrb[39].mxu0 }
 0x701   : > { %v3774_v0 = vadd.f32 %v9339_v61, %v3689_v60  ;;  %v8930_v33 = vadd.f32 %v8929_v62, %v8928_v59  ;;  %v3768_v12 = vpop.f32.mrb[61].mxu1 }
 0x702   : > { %v3769_v3 = vadd.f32 %v3768_v12, %v3684_v63 }
 0x703   : > { %v3788_v6 = vmax.f32 %v3774_v0, 0.0  ;;  %v8931_v7 = vpop.f32.mrb[40].mxu0  ;;  %v3694_v8 = vadd.f32 %v8930_v33, %v3597_v2 }
 0x704   : > { %v3787_v9 = vmax.f32 %v3769_v3, 0.0  ;;  %v9342_v10 = vpop.f32.mrb[62].mxu1  ;;  %v8932_v17 = vpop.f32.mrb[41].mxu0 }
 0x705   : > { %v8933_v11 = vadd.f32 %v8932_v17, %v8931_v7  ;;  %v3778_v27 = vpop.f32.mrb[63].mxu1 }
 0x706   : > { %v3779_v40 = vadd.f32 %v3778_v27, %v3694_v8  ;;  %9359 = vmatprep.mubr.msk.f32.mxu1 %vm2646_vm1, %v3787_v9  ;;  %9403 = vmatprep.mubr.msk.f32.mxu0 %vm2646_vm1, %v3787_v9 }
 0x707   : > { %v3699_v14 = vadd.f32 %v8933_v11, %v3602_v30  ;;  %9360 = vmatmul.mubr.msk.f32.vlgmr.msra.gmra.mrb[64].mxu1 %vm2646_vm1, %v3788_v6  ;;  %9404 = vmatmul.mubr.msk.f32.vlgmr.msra.gmra.mrb[42].mxu0 %vm2646_vm1, %v3788_v6  ;;  %v4756_v30 = vld [vmem:[#allocation11 + $0x68] sm:$0xff] }
 0x708   : > { %v3789_v18 = vmax.f32 %v3779_v40, 0.0  ;;  %10528 = vmatpush3.bf16.msra.mxu1 %v10525_v54  ;;  %10576 = vmatpush3.bf16.msra.mxu0 %v10573_v46  ;;  %v10577_v54 = vpack.c.bf16 %v4296_v51, %v4295_v50 }
 0x709   : > { %v3784_v19 = vadd.f32 %v9342_v10, %v3699_v14  ;;  %10530 = vmatprep.subr.bf16.mxu1 %v10529_v13  ;;  %v4479_v14 = vld [vmem:[#allocation11 + $0x30] sm:$0xff] }
 0x70a   : > { %9362 = vmatprep.mubr.msk.f32.mxu1 %vm2646_vm1, %v3789_v18  ;;  %9406 = vmatprep.mubr.msk.f32.mxu0 %vm2646_vm1, %v3789_v18 }
 0x70b   : > { %v3790_v24 = vmax.f32 %v3784_v19, 0.0  ;;  %10578 = vmatprep.subr.bf16.mxu0 %v10577_v54  ;;  %v4939_v19 = vld [vmem:[#allocation11 + $0x80] sm:$0xff] }
 0x70c   : > { %10532 = vmatpush3.bf16.msra.mxu1 %v10529_v13  ;;  %v4755_v13 = vld [vmem:[#allocation11 + $0x60] sm:$0xff] }
 0x70d   : > { %9363 = vmatmul.mubr.msk.f32.gmra.mrb[66].mxu1 %vm2646_vm1, %v3790_v24  ;;  %10534 = vmatprep.subr.bf16.mxu1 %v10533_v20  ;;  %v10597_v53 = vpack.c.bf16 %v4756_v30, %v4755_v13 }
 0x70e   : > { %9407 = vmatmul.mubr.msk.f32.gmra.mrb[44].mxu0 %vm2646_vm1, %v3790_v24  ;;  %9381 = vmatprep.mubr.msk.f32.mxu1 %vm2646_vm1, %v3787_v9 }
 0x710   : > { %10536 = vmatpush3.bf16.msra.mxu1 %v10533_v20  ;;  %v4940_v20 = vld [vmem:[#allocation11 + $0x88] sm:$0xff] }
 0x711   : > { %10538 = vmatprep.subr.bf16.mxu1 %v10537_v25  ;;  %v10605_v22 = vpack.c.bf16 %v4940_v20, %v4939_v19 }
 0x714   : > { %10540 = vmatpush3.bf16.msra.mxu1 %v10537_v25  ;;  %v4664_v25 = vld [vmem:[#allocation11 + $0x58] sm:$0xff] }
 0x715   : > { %10558 = vmatprep.subr.bf16.mxu1 %v10557_v31 }
 0x717   : > { %9382 = vmatmul.mubr.msk.f32.vlgmr.msra.gmra.mrb[68].mxu1 %vm2646_vm1, %v3788_v6 }
 0x718   : > { %9384 = vmatprep.mubr.msk.f32.mxu1 %vm2646_vm1, %v3789_v18  ;;  %10560 = vmatpush3.bf16.msra.mxu1 %v10557_v31  ;;  %v4848_v31 = vld [vmem:[#allocation11 + $0x78] sm:$0xff] }
 0x719   : > { %10562 = vmatprep.subr.bf16.mxu1 %v10561_v36  ;;  %v10601_v34 = vpack.c.bf16 %v4848_v31, %v4847_v28  ;;  %v5035_v28 = vld [vmem:[%s12756_s5 + $0x28] sm:$0xff] }
 0x71b   : > { %9385 = vmatmul.mubr.msk.f32.gmra.mrb[70].mxu1 %vm2646_vm1, %v3790_v24 }
 0x71c   : > { %10564 = vmatpush3.bf16.msra.mxu1 %v10561_v36  ;;  %9425 = vmatprep.mubr.msk.f32.mxu1 %vm2646_vm1, %v3787_v9  ;;  %v5032_v36 = vld [vmem:[%s12756_s5 + $0x10] sm:$0xff] }
 0x71d   : > { %10566 = vmatprep.subr.bf16.mxu1 %v10565_v39 }
 0x720   : > { %10568 = vmatpush3.bf16.msra.mxu1 %v10565_v39 }
 0x721   : > { %10570 = vmatprep.subr.bf16.mxu1 %v10569_v45 }
 0x724   : > { %10572 = vmatpush3.bf16.msra.mxu1 %v10569_v45 }
 0x725   : > { %11340 = vmatprep.subr.bf16.mxu1 %v12395_v49 }
 0x727   : > { %9426 = vmatmul.mubr.msk.f32.vlgmr.msra.gmra.mrb[72].mxu1 %vm2646_vm1, %v3788_v6 }
 0x728   : > { %9428 = vmatprep.mubr.msk.f32.mxu1 %vm2646_vm1, %v3789_v18  ;;  %11341 = vmatpush3.bf16.msra.mxu1 %v12395_v49  ;;  %v4480_v18 = vld [vmem:[#allocation11 + $0x38] sm:$0xff] }
 0x729   : > { %10590 = vmatprep.subr.bf16.mxu1 %v10589_v41  ;;  %v10585_v21 = vpack.c.bf16 %v4480_v18, %v4479_v14 }
 0x72b   : > { %9429 = vmatmul.mubr.msk.f32.gmra.mrb[74].mxu1 %vm2646_vm1, %v3790_v24  ;;  %v4663_v24 = vld [vmem:[#allocation11 + $0x50] sm:$0xff] }
 0x72c   : > { %v10593_v26 = vpack.c.bf16 %v4664_v25, %v4663_v24 }
 0x7da   : > { %v9361_v47 = vpop.f32.mrb[64].mxu1  ;;  %v9405_v55 = vpop.f32.mrb[42].mxu0 }
 0x7db   : > { %v3877_v56 = vpop.f32.mrb[65].mxu1  ;;  %v4065_v57 = vpop.f32.mrb[43].mxu0 }
 0x7e0   : > { %v9364_v58 = vpop.f32.mrb[66].mxu1 }
 0x7e1   : > { %v9408_v16 = vpop.f32.mrb[44].mxu0  ;;  %v3887_v59 = vpop.f32.mrb[67].mxu1 }
 0x7e2   : > { %v4075_v60 = vpop.f32.mrb[45].mxu0 }
 0x7ea   : > { %v9383_v61 = vpop.f32.mrb[68].mxu1 }
 0x7eb   : > { %v4179_v62 = vmax.f32 %v9361_v47, %v9383_v61  ;;  %v3971_v63 = vpop.f32.mrb[69].mxu1 }
 0x7ec   : > { %v4178_v0 = vmax.f32 %v3877_v56, %v3971_v63 }
 0x7ee   : > { %v9386_v33 = vpop.f32.mrb[70].mxu1 }
 0x7ef   : > { %v4181_v12 = vmax.f32 %v9364_v58, %v9386_v33  ;;  %v3981_v2 = vpop.f32.mrb[71].mxu1 }
 0x7f0   : > { %v4180_v3 = vmax.f32 %v3887_v59, %v3981_v2 }
 0x7fa   : > { %v9427_v4 = vpop.f32.mrb[72].mxu1 }
 0x7fb   : > { %v4183_v5 = vmax.f32 %v9405_v55, %v9427_v4  ;;  %v4159_v6 = vpop.f32.mrb[73].mxu1 }
 0x7fc   : > { %v4182_v7 = vmax.f32 %v4065_v57, %v4159_v6 }
 0x7fd   : > { %v12399_v8 = vmax.f32 %v4179_v62, %v4183_v5 }
 0x7fe   : > { %v12401_v9 = vmax.f32 %v4178_v0, %v4182_v7  ;;  %v9430_v10 = vpop.f32.mrb[74].mxu1 }
 0x7ff   : > { %v4185_v17 = vmax.f32 %v9408_v16, %v9430_v10  ;;  %v4169_v11 = vpop.f32.mrb[75].mxu1 }
 0x800   : > { %v4184_v27 = vmax.f32 %v4075_v60, %v4169_v11  ;;  %9435 = vmatprep.mubr.msk.f32.mxu0 %vm4192_vm3, %v12401_v9 }
 0x801   : > { %v12405_v40 = vmax.f32 %v4181_v12, %v4185_v17  ;;  %9436 = vmatmul.mubr.msk.f32.vlgmr.msra.gmra.mrb[46].mxu0 %vm4192_vm3, %v12399_v8 }
 0x802   : > { %v4188_v52 = vmax.f32 %v4180_v3, %v4184_v27  ;;  %10580 = vmatpush3.bf16.msra.mxu0 %v10577_v54 }
 0x803   : > { %10582 = vmatprep.subr.bf16.mxu0 %v12395_v49 }
 0x804   : > { %9438 = vmatprep.mubr.msk.f32.mxu0 %vm4192_vm3, %v4188_v52  ;;  %9458 = vmatprep.mubr.msk.f32.mxu1 %vm4192_vm3, %v4188_v52 }
 0x805   : > { %9439 = vmatmul.mubr.msk.f32.gmra.mrb[48].mxu0 %vm4192_vm3, %v12405_v40  ;;  %9459 = vmatmul.mubr.msk.f32.vlgmr.msra.gmra.mrb[76].mxu1 %vm4192_vm3, %v12405_v40 }
 0x806   : > { %9445 = vmatprep.mubr.msk.f32.mxu0 %vm4192_vm3, %v12401_v9  ;;  %10592 = vmatpush3.bf16.msra.mxu1 %v10589_v41 }
 0x807   : > { %9475 = vmatprep.mubr.msk.f32.mxu1 %vm4192_vm3, %v12401_v9  ;;  %10598 = vmatprep.subr.bf16.mxu1 %v10597_v53 }
 0x809   : > { %9446 = vmatmul.mubr.msk.f32.vlgmr.msra.gmra.mrb[50].mxu0 %vm4192_vm3, %v12399_v8  ;;  %9476 = vmatmul.mubr.msk.f32.vlgmr.msra.gmra.mrb[78].mxu1 %vm4192_vm3, %v12399_v8 }
 0x80a   : > { %9448 = vmatprep.mubr.msk.f32.mxu0 %vm4192_vm3, %v4188_v52  ;;  %10584 = vmatpush3.bf16.msra.mxu0 %v12395_v49 }
 0x80b   : > { %9478 = vmatprep.mubr.msk.f32.mxu1 %vm4192_vm3, %v4188_v52  ;;  %10600 = vmatpush3.bf16.msra.mxu1 %v10597_v53 }
 0x80c   : > { %10586 = vmatprep.subr.bf16.mxu0 %v10585_v21  ;;  %10606 = vmatprep.subr.bf16.mxu1 %v10605_v22 }
 0x80d   : > { %9449 = vmatmul.mubr.msk.f32.gmra.mrb[52].mxu0 %vm4192_vm3, %v12405_v40  ;;  %9479 = vmatmul.mubr.msk.f32.gmra.mrb[80].mxu1 %vm4192_vm3, %v12405_v40 }
 0x80e   : > { %9455 = vmatprep.mubr.msk.f32.mxu0 %vm4192_vm3, %v12401_v9  ;;  %9495 = vmatprep.mubr.msk.f32.mxu1 %vm4192_vm3, %v12401_v9 }
 0x811   : > { %9456 = vmatmul.mubr.msk.f32.vlgmr.msra.gmra.mrb[54].mxu0 %vm4192_vm3, %v12399_v8  ;;  %9496 = vmatmul.mubr.msk.f32.vlgmr.msra.gmra.mrb[82].mxu1 %vm4192_vm3, %v12399_v8 }
 0x812   : > { %10588 = vmatpush3.bf16.msra.mxu0 %v10585_v21  ;;  %9465 = vmatprep.mubr.msk.f32.mxu0 %vm4192_vm3, %v12401_v9 }
 0x813   : > { %9498 = vmatprep.mubr.msk.f32.mxu1 %vm4192_vm3, %v4188_v52  ;;  %10594 = vmatprep.subr.bf16.mxu0 %v10593_v26 }
 0x814   : > { %10608 = vmatpush3.bf16.msra.mxu1 %v10605_v22 }
 0x815   : > { %9466 = vmatmul.mubr.msk.f32.vlgmr.msra.gmra.mrb[56].mxu0 %vm4192_vm3, %v12399_v8  ;;  %9499 = vmatmul.mubr.msk.f32.gmra.mrb[84].mxu1 %vm4192_vm3, %v12405_v40 }
 0x816   : > { %9468 = vmatprep.mubr.msk.f32.mxu0 %vm4192_vm3, %v4188_v52  ;;  %10596 = vmatpush3.bf16.msra.mxu0 %v10593_v26 }
 0x817   : > { %9515 = vmatprep.mubr.msk.f32.mxu1 %vm4192_vm3, %v12401_v9  ;;  %10602 = vmatprep.subr.bf16.mxu0 %v10601_v34 }
 0x819   : > { %9469 = vmatmul.mubr.msk.f32.gmra.mrb[58].mxu0 %vm4192_vm3, %v12405_v40  ;;  %9516 = vmatmul.mubr.msk.f32.vlgmr.msra.gmra.mrb[86].mxu1 %vm4192_vm3, %v12399_v8 }
 0x81a   : > { %9485 = vmatprep.mubr.msk.f32.mxu0 %vm4192_vm3, %v12401_v9  ;;  %9518 = vmatprep.mubr.msk.f32.mxu1 %vm4192_vm3, %v4188_v52 }
 0x81d   : > { %9486 = vmatmul.mubr.msk.f32.vlgmr.msra.gmra.mrb[60].mxu0 %vm4192_vm3, %v12399_v8  ;;  %9519 = vmatmul.mubr.msk.f32.gmra.mrb[88].mxu1 %vm4192_vm3, %v12405_v40 }
 0x81e   : > { %9488 = vmatprep.mubr.msk.f32.mxu0 %vm4192_vm3, %v4188_v52  ;;  %10604 = vmatpush3.bf16.msra.mxu0 %v10601_v34 }
 0x81f   : > { %9529 = vmatprep.mubr.msk.f32.mxu1 %vm3604_vm2, %v5032_v36 }
 0x821   : > { %9489 = vmatmul.mubr.msk.f32.gmra.mrb[62].mxu0 %vm4192_vm3, %v12405_v40 }
 0x822   : > { %9505 = vmatprep.mubr.msk.f32.mxu0 %vm4192_vm3, %v12401_v9 }
 0x825   : > { %9506 = vmatmul.mubr.msk.f32.vlgmr.msra.gmra.mrb[64].mxu0 %vm4192_vm3, %v12399_v8 }
 0x826   : > { %9508 = vmatprep.mubr.msk.f32.mxu0 %vm4192_vm3, %v4188_v52 }
 0x829   : > { %9509 = vmatmul.mubr.msk.f32.gmra.mrb[66].mxu0 %vm4192_vm3, %v12405_v40 }
 0x82a   : > { %5154 = vmatprep.mubr.f32.mxu0 %v5031_v35 }
 0x8d4   : > { %v9437_v37 = vpop.f32.mrb[46].mxu0 }
 0x8d5   : > { %4291 = vst.msk [vmem:[#allocation4 + $0x8] sm:$0xff] %vm4192_vm3, %v9437_v37  ;;  %v4271_v38 = vpop.f32.mrb[47].mxu0 }
 0x8d6   : > { %4290 = vst.msk [vmem:[#allocation4] sm:$0xff] %vm4192_vm3, %v4271_v38 }
 0x8d8   : > { %v9440_v39 = vpop.f32.mrb[48].mxu0  ;;  %v9460_v43 = vpop.f32.mrb[76].mxu1 }
 0x8d9   : > { %4293 = vst.msk [vmem:[#allocation4 + $0x18] sm:$0xff] %vm4192_vm3, %v9440_v39  ;;  %4477 = vst.msk [vmem:[#allocation4 + $0x58] sm:$0xff] %vm4192_vm3, %v9460_v43  ;;  %v4281_v44 = vpop.f32.mrb[49].mxu0  ;;  %v4465_v45 = vpop.f32.mrb[77].mxu1 }
 0x8da   : > { %4292 = vst.msk [vmem:[#allocation4 + $0x10] sm:$0xff] %vm4192_vm3, %v4281_v44  ;;  %4476 = vst.msk [vmem:[#allocation4 + $0x50] sm:$0xff] %vm4192_vm3, %v4465_v45 }
 0x8dc   : > { %v9447_v15 = vpop.f32.mrb[50].mxu0  ;;  %v9477_v29 = vpop.f32.mrb[78].mxu1  ;;  %v5037_v47 = vld [vmem:[#allocation4 + $0x8] sm:$0xff] }
 0x8dd   : > { %4383 = vst.msk [vmem:[#allocation4 + $0x28] sm:$0xff] %vm4192_vm3, %v9447_v15  ;;  %4659 = vst.msk [vmem:[#allocation4 + $0x88] sm:$0xff] %vm4192_vm3, %v9477_v29  ;;  %v4363_v46 = vpop.f32.mrb[51].mxu0  ;;  %v4639_v32 = vpop.f32.mrb[79].mxu1  ;;  %v5036_v41 = vld [vmem:[#allocation4] sm:$0xff] }
 0x8de   : > { %4382 = vst.msk [vmem:[#allocation4 + $0x20] sm:$0xff] %vm4192_vm3, %v4363_v46  ;;  %4658 = vst.msk [vmem:[#allocation4 + $0x80] sm:$0xff] %vm4192_vm3, %v4639_v32  ;;  %v10611_v16 = vpack.c.bf16 %v5037_v47, %v5036_v41 }
 0x8e0   : > { %v9450_v48 = vpop.f32.mrb[52].mxu0  ;;  %v9480_v49 = vpop.f32.mrb[80].mxu1  ;;  %v5039_v63 = vld [vmem:[#allocation4 + $0x18] sm:$0xff] }
 0x8e1   : > { %4385 = vst.msk [vmem:[#allocation4 + $0x38] sm:$0xff] %vm4192_vm3, %v9450_v48  ;;  %4661 = vst.msk [vmem:[#allocation4 + $0x98] sm:$0xff] %vm4192_vm3, %v9480_v49  ;;  %v4373_v50 = vpop.f32.mrb[53].mxu0  ;;  %v4649_v51 = vpop.f32.mrb[81].mxu1  ;;  %v5038_v62 = vld [vmem:[#allocation4 + $0x10] sm:$0xff] }
 0x8e2   : > { %4384 = vst.msk [vmem:[#allocation4 + $0x30] sm:$0xff] %vm4192_vm3, %v4373_v50  ;;  %4660 = vst.msk [vmem:[#allocation4 + $0x90] sm:$0xff] %vm4192_vm3, %v4649_v51  ;;  %v10615_v3 = vpack.c.bf16 %v5039_v63, %v5038_v62  ;;  %v5046_v51 = vld [vmem:[#allocation4 + $0x50] sm:$0xff]  ;;  %v5030_v63 = vld [vmem:[%s12756_s5] sm:$0xff] }
 0x8e4   : > { %v9457_v42 = vpop.f32.mrb[54].mxu0  ;;  %v9497_v54 = vpop.f32.mrb[82].mxu1  ;;  %v5053_v23 = vld [vmem:[#allocation4 + $0x88] sm:$0xff] }
 0x8e5   : > { %4475 = vst.msk [vmem:[#allocation4 + $0x48] sm:$0xff] %vm4192_vm3, %v9457_v42  ;;  %4843 = vst.msk [vmem:[#allocation4 + $0xc8] sm:$0xff] %vm4192_vm3, %v9497_v54  ;;  %v4455_v55 = vpop.f32.mrb[55].mxu0  ;;  %v4823_v56 = vpop.f32.mrb[83].mxu1  ;;  %v5052_v57 = vld [vmem:[#allocation4 + $0x80] sm:$0xff]  ;;  %v5041_v52 = vld [vmem:[#allocation4 + $0x28] sm:$0xff] }
 0x8e6   : > { %4474 = vst.msk [vmem:[#allocation4 + $0x40] sm:$0xff] %vm4192_vm3, %v4455_v55  ;;  %4842 = vst.msk [vmem:[#allocation4 + $0xc0] sm:$0xff] %vm4192_vm3, %v4823_v56  ;;  %v10609_v58 = vpack.c.bf16 %v5053_v23, %v5052_v57  ;;  %v5040_v19 = vld [vmem:[#allocation4 + $0x20] sm:$0xff]  ;;  %v5047_v42 = vld [vmem:[#allocation4 + $0x58] sm:$0xff] }
 0x8e7   : > { %v10619_v26 = vpack.c.bf16 %v5041_v52, %v5040_v19  ;;  %v10631_v41 = vpack.c.bf16 %v5047_v42, %v5046_v51  ;;  %v6147_v51 = vld [vmem:[#allocation12 + $0x1c] sm:$0xf]  ;;  %v5901_v42 = vld [vmem:[#allocation12 + $0x10] sm:$0xf] }
 0x8e8   : > { %v9467_v59 = vpop.f32.mrb[56].mxu0  ;;  %v9500_v60 = vpop.f32.mrb[84].mxu1  ;;  %10610 = vmatprep.subr.bf16.mxu0 %v10609_v58  ;;  %v5055_v61 = vld [vmem:[#allocation4 + $0x98] sm:$0xff] }
 0x8e9   : > { %4567 = vst.msk [vmem:[#allocation4 + $0x68] sm:$0xff] %vm4192_vm3, %v9467_v59  ;;  %4845 = vst.msk [vmem:[#allocation4 + $0xd8] sm:$0xff] %vm4192_vm3, %v9500_v60  ;;  %v4547_v0 = vpop.f32.mrb[57].mxu0  ;;  %v4833_v33 = vpop.f32.mrb[85].mxu1  ;;  %10612 = vmatpush3.bf16.msra.mxu0 %v10611_v16  ;;  %v5054_v12 = vld [vmem:[#allocation4 + $0x90] sm:$0xff]  ;;  %v5043_v36 = vld [vmem:[#allocation4 + $0x38] sm:$0xff] }
 0x8ea   : > { %4566 = vst.msk [vmem:[#allocation4 + $0x60] sm:$0xff] %vm4192_vm3, %v4547_v0  ;;  %4844 = vst.msk [vmem:[#allocation4 + $0xd0] sm:$0xff] %vm4192_vm3, %v4833_v33  ;;  %v10613_v2 = vpack.c.bf16 %v5055_v61, %v5054_v12  ;;  %v5042_v35 = vld [vmem:[#allocation4 + $0x30] sm:$0xff]  ;;  %v5034_v0 = vld [vmem:[%s12756_s5 + $0x20] sm:$0xff] }
 0x8eb   : > { %v10623_v45 = vpack.c.bf16 %v5043_v36, %v5042_v35  ;;  %v5033_v33 = vld [vmem:[%s12756_s5 + $0x18] sm:$0xff]  ;;  %v5240_v12 = vld [vmem:[#allocation17] sm:$0xff] }
 0x8ec   : > { %v9470_v4 = vpop.f32.mrb[58].mxu0  ;;  %v9517_v5 = vpop.f32.mrb[86].mxu1  ;;  %10614 = vmatprep.subr.bf16.mxu0 %v10613_v2  ;;  %v5061_v43 = vld [vmem:[#allocation4 + $0xc8] sm:$0xff] }
 0x8ed   : > { %4569 = vst.msk [vmem:[#allocation4 + $0x78] sm:$0xff] %vm4192_vm3, %v9470_v4  ;;  %5027 = vst.msk [vmem:[#allocation4 + $0x108] sm:$0xff] %vm4192_vm3, %v9517_v5  ;;  %v4557_v6 = vpop.f32.mrb[59].mxu0  ;;  %v5007_v7 = vpop.f32.mrb[87].mxu1  ;;  %10616 = vmatpush3.bf16.msra.mxu0 %v10615_v3  ;;  %v5060_v39 = vld [vmem:[#allocation4 + $0xc0] sm:$0xff]  ;;  %v5045_v46 = vld [vmem:[#allocation4 + $0x48] sm:$0xff] }
 0x8ee   : > { %4568 = vst.msk [vmem:[#allocation4 + $0x70] sm:$0xff] %vm4192_vm3, %v4557_v6  ;;  %5026 = vst.msk [vmem:[#allocation4 + $0x100] sm:$0xff] %vm4192_vm3, %v5007_v7  ;;  %v10625_v15 = vpack.c.bf16 %v5061_v43, %v5060_v39  ;;  %v5044_v29 = vld [vmem:[#allocation4 + $0x40] sm:$0xff]  ;;  %v5241_v2 = vld [vmem:[#allocation17 + $0x8] sm:$0xff] }
 0x8ef   : > { %v10627_v49 = vpack.c.bf16 %v5045_v46, %v5044_v29  ;;  %v10649_v3 = vpack.c.bf16 %v5241_v2, %v5240_v12  ;;  %v5324_v4 = vld [vmem:[#allocation17 + $0x10] sm:$0xff]  ;;  %v5325_v5 = vld [vmem:[#allocation17 + $0x18] sm:$0xff] }
 0x8f0   : > { %v9487_v8 = vpop.f32.mrb[60].mxu0  ;;  %v9520_v9 = vpop.f32.mrb[88].mxu1  ;;  %v5063_v48 = vld [vmem:[#allocation4 + $0xd8] sm:$0xff]  ;;  %v5049_v56 = vld [vmem:[#allocation4 + $0x68] sm:$0xff]  ;;  %v10653_v6 = vpack.c.bf16 %v5325_v5, %v5324_v4 }
 0x8f1   : > { %4751 = vst.msk [vmem:[#allocation4 + $0xa8] sm:$0xff] %vm4192_vm3, %v9487_v8  ;;  %5029 = vst.msk [vmem:[#allocation4 + $0x118] sm:$0xff] %vm4192_vm3, %v9520_v9  ;;  %v4731_v10 = vpop.f32.mrb[61].mxu0  ;;  %v5017_v17 = vpop.f32.mrb[89].mxu1  ;;  %v5062_v32 = vld [vmem:[#allocation4 + $0xd0] sm:$0xff]  ;;  %v5048_v55 = vld [vmem:[#allocation4 + $0x60] sm:$0xff] }
 0x8f2   : > { %4750 = vst.msk [vmem:[#allocation4 + $0xa0] sm:$0xff] %vm4192_vm3, %v4731_v10  ;;  %5028 = vst.msk [vmem:[#allocation4 + $0x110] sm:$0xff] %vm4192_vm3, %v5017_v17  ;;  %v10629_v50 = vpack.c.bf16 %v5063_v48, %v5062_v32  ;;  %v10635_v16 = vpack.c.bf16 %v5049_v56, %v5048_v55 }
 0x8f4   : > { %v9490_v11 = vpop.f32.mrb[62].mxu0  ;;  %v5069_v27 = vld [vmem:[#allocation4 + $0x108] sm:$0xff]  ;;  %v5051_v61 = vld [vmem:[#allocation4 + $0x78] sm:$0xff] }
 0x8f5   : > { %4753 = vst.msk [vmem:[#allocation4 + $0xb8] sm:$0xff] %vm4192_vm3, %v9490_v11  ;;  %v4741_v13 = vpop.f32.mrb[63].mxu0  ;;  %v5068_v30 = vld [vmem:[#allocation4 + $0x100] sm:$0xff]  ;;  %v5050_v60 = vld [vmem:[#allocation4 + $0x70] sm:$0xff]  ;;  %v5077_v11 = vpop.permute.xlu0 %5076 }
 0x8f6   : > { %4752 = vst.msk [vmem:[#allocation4 + $0xb0] sm:$0xff] %vm4192_vm3, %v4741_v13  ;;  %v10641_v40 = vpack.c.bf16 %v5069_v27, %v5068_v30  ;;  %v10639_v62 = vpack.c.bf16 %v5051_v61, %v5050_v60 }
 0x8f8   : > { %v9507_v53 = vpop.f32.mrb[64].mxu0  ;;  %10642 = vmatprep.subr.bf16.mxu1 %v10641_v40  ;;  %v5057_v14 = vld [vmem:[#allocation4 + $0xa8] sm:$0xff]  ;;  %v5071_v18 = vld [vmem:[#allocation4 + $0x118] sm:$0xff] }
 0x8f9   : > { %4935 = vst.msk [vmem:[#allocation4 + $0xe8] sm:$0xff] %vm4192_vm3, %v9507_v53  ;;  %v4915_v20 = vpop.f32.mrb[65].mxu0  ;;  %10644 = vmatpush3.bf16.msra.mxu1 %v10641_v40  ;;  %v5056_v21 = vld [vmem:[#allocation4 + $0xa0] sm:$0xff]  ;;  %v5070_v22 = vld [vmem:[#allocation4 + $0x110] sm:$0xff]  ;;  %v5082_v53 = vpop.permute.xlu1 %5081 }
 0x8fa   : > { %4934 = vst.msk [vmem:[#allocation4 + $0xe0] sm:$0xff] %vm4192_vm3, %v4915_v20  ;;  %v10617_v24 = vpack.c.bf16 %v5057_v14, %v5056_v21  ;;  %v10645_v25 = vpack.c.bf16 %v5071_v18, %v5070_v22  ;;  %v5402_v14 = vld [vmem:[#allocation17 + $0x20] sm:$0xff]  ;;  %v5403_v18 = vld [vmem:[#allocation17 + $0x28] sm:$0xff]  ;;  %v5480_v22 = vld [vmem:[#allocation17 + $0x30] sm:$0xff] }
 0x8fb   : > { %v10657_v21 = vpack.c.bf16 %v5403_v18, %v5402_v14 }
 0x8fc   : > { %v9510_v31 = vpop.f32.mrb[66].mxu0  ;;  %10618 = vmatprep.subr.bf16.mxu0 %v10617_v24  ;;  %10646 = vmatprep.subr.bf16.mxu1 %v10645_v25  ;;  %v5059_v34 = vld [vmem:[#allocation4 + $0xb8] sm:$0xff] }
 0x8fd   : > { %4937 = vst.msk [vmem:[#allocation4 + $0xf8] sm:$0xff] %vm4192_vm3, %v9510_v31  ;;  %v4925_v37 = vpop.f32.mrb[67].mxu0  ;;  %10620 = vmatpush3.bf16.msra.mxu0 %v10619_v26  ;;  %10648 = vmatpush3.bf16.msra.mxu1 %v10645_v25  ;;  %v5058_v38 = vld [vmem:[#allocation4 + $0xb0] sm:$0xff]  ;;  %v5481_v24 = vld [vmem:[#allocation17 + $0x38] sm:$0xff]  ;;  %v5655_v31 = vld [vmem:[#allocation12 + $0x4] sm:$0xf] }
 0x8fe   : > { %4936 = vst.msk [vmem:[#allocation4 + $0xf0] sm:$0xff] %vm4192_vm3, %v4925_v37  ;;  %v10621_v44 = vpack.c.bf16 %v5059_v34, %v5058_v38  ;;  %10650 = vmatprep.subr.bf16.mxu1 %v10649_v3  ;;  %v10661_v25 = vpack.c.bf16 %v5481_v24, %v5480_v22  ;;  %v5566_v26 = vld [vmem:[#allocation12] sm:$0xf]  ;;  %v5983_v34 = vld [vmem:[#allocation12 + $0x14] sm:$0xf] }
 0x900   : > { %10622 = vmatprep.subr.bf16.mxu0 %v10621_v44  ;;  %9530 = vmatmul.mubr.msk.f32.vlgmr.msra.gmra.mrb[90].mxu1 %vm3604_vm2, %v5035_v28  ;;  %v5065_v23 = vld [vmem:[#allocation4 + $0xe8] sm:$0xff] }
 0x901   : > { %10624 = vmatpush3.bf16.msra.mxu0 %v10623_v45  ;;  %v5064_v54 = vld [vmem:[#allocation4 + $0xe0] sm:$0xff]  ;;  %10652 = vmatpush3.bf16.msra.mxu1 %v10649_v3  ;;  %v5819_v28 = vld [vmem:[#allocation12 + $0xc] sm:$0xf] }
 0x902   : > { %10626 = vmatprep.subr.bf16.mxu0 %v10625_v15  ;;  %v10633_v47 = vpack.c.bf16 %v5065_v23, %v5064_v54  ;;  %10654 = vmatprep.subr.bf16.mxu1 %v10653_v6  ;;  %v6065_v54 = vld [vmem:[#allocation12 + $0x18] sm:$0xf]  ;;  %v6229_v23 = vld [vmem:[#allocation12 + $0x20] sm:$0xf] }
 0x904   : > { %v5067_v58 = vld [vmem:[#allocation4 + $0xf8] sm:$0xff] }
 0x905   : > { %10628 = vmatpush3.bf16.msra.mxu0 %v10627_v49  ;;  %v5066_v57 = vld [vmem:[#allocation4 + $0xf0] sm:$0xff] }
 0x906   : > { %10630 = vmatprep.subr.bf16.mxu0 %v10629_v50  ;;  %v10637_v59 = vpack.c.bf16 %v5067_v58, %v5066_v57  ;;  %v5737_v50 = vld [vmem:[#allocation12 + $0x8] sm:$0xf] }
 0x909   : > { %10632 = vmatpush3.bf16.msra.mxu0 %v10631_v41  ;;  %v11718_v41 = vmov 0.0|0.0  }
 0x90a   : > { %10634 = vmatprep.subr.bf16.mxu0 %v10633_v47  ;;  %v6311_v47 = vld [vmem:[%s12823_s20 + $0x8] sm:$0xff] }
 0x90d   : > { %10636 = vmatpush3.bf16.msra.mxu0 %v10635_v16 }
 0x90e   : > { %10638 = vmatprep.subr.bf16.mxu0 %v10637_v59 }
 0x911   : > { %10640 = vmatpush3.bf16.msra.mxu0 %v10639_v62 }
 0x912   : > { %9575 = vmatprep.subr.msk.mxu0 %vm5573_vm4, %v5819_v28 }
 0x914   : > { %5155 = vmatmul.mubr.f32.vlgmr.msra.gmra.mrb[68].mxu0 %v5030_v63 }
 0x915   : > { %5159 = vmatprep.mubr.f32.mxu0 %v5034_v0  ;;  %9576 = vmatpush3.msk.msra.mxu0 %vm5573_vm4, %v5819_v28 }
 0x916   : > { %9585 = vmatprep.subr.msk.mxu0 %vm5573_vm4, %v5983_v34 }
 0x918   : > { %5160 = vmatmul.mubr.f32.gmra.mrb[70].mxu0 %v5033_v33 }
 0x9d3   : > { %v9531_v7 = vpop.f32.mrb[90].mxu1 }
 0x9d4   : > { %v5231_v8 = vpop.f32.mrb[91].mxu1 }
 0x9e7   : > { %v9076_v9 = vpop.f32.mrb[68].mxu0 }
 0x9e8   : > { %v9077_v10 = vpop.f32.mrb[69].mxu0 }
 0x9e9   : > { %v9078_v17 = vadd.f32 %v9077_v10, %v9076_v9 }
 0x9eb   : > { %v9079_v27 = vpop.f32.mrb[70].mxu0  ;;  %v5157_v13 = vadd.f32 %v9078_v17, %v5077_v11 }
 0x9ec   : > { %v9080_v30 = vpop.f32.mrb[71].mxu0 }
 0x9ed   : > { %v9081_v40 = vadd.f32 %v9080_v30, %v9079_v27  ;;  %v5232_v52 = vadd.f32 %v5231_v8, %v5157_v13 }
 0x9ef   : > { %v5162_v19 = vadd.f32 %v9081_v40, %v5082_v53  ;;  %9536 = vmatprep.mubr.msk.f32.mxu1 %vm4192_vm3, %v5232_v52 }
 0x9f1   : > { %v5237_v20 = vadd.f32 %v9531_v7, %v5162_v19 }
 0x9f3   : > { %9537 = vmatmul.mubr.msk.f32.vlgmr.msra.gmra.mrb[92].mxu1 %vm4192_vm3, %v5237_v20 }
 0x9f4   : > { %10656 = vmatpush3.bf16.msra.mxu1 %v10653_v6  ;;  %9543 = vmatprep.mubr.msk.f32.mxu1 %vm4192_vm3, %v5232_v52 }
 0x9f5   : > { %10658 = vmatprep.subr.bf16.mxu1 %v10657_v21 }
 0x9f7   : > { %9544 = vmatmul.mubr.msk.f32.vlgmr.msra.gmra.mrb[94].mxu1 %vm4192_vm3, %v5237_v20 }
 0x9f8   : > { %10660 = vmatpush3.bf16.msra.mxu1 %v10657_v21  ;;  %9550 = vmatprep.mubr.msk.f32.mxu1 %vm4192_vm3, %v5232_v52 }
 0x9f9   : > { %10662 = vmatprep.subr.bf16.mxu1 %v10661_v25 }
 0x9fb   : > { %9551 = vmatmul.mubr.msk.f32.vlgmr.msra.gmra.mrb[96].mxu1 %vm4192_vm3, %v5237_v20 }
 0x9fc   : > { %10664 = vmatpush3.bf16.msra.mxu1 %v10661_v25  ;;  %9557 = vmatprep.mubr.msk.f32.mxu1 %vm4192_vm3, %v5232_v52 }
 0x9fd   : > { %9560 = vmatprep.subr.msk.mxu1 %vm5573_vm4, %v5566_v26 }
 0x9ff   : > { %9558 = vmatmul.mubr.msk.f32.vlgmr.msra.gmra.mrb[98].mxu1 %vm4192_vm3, %v5237_v20 }
 0xa00   : > { %9561 = vmatpush3.msk.msra.mxu1 %vm5573_vm4, %v5566_v26 }
 0xa01   : > { %9565 = vmatprep.subr.msk.mxu1 %vm5573_vm4, %v5655_v31 }
 0xac6   : > { %v9538_v35 = vpop.f32.mrb[92].mxu1 }
 0xac7   : > { %v5314_v36 = vpop.f32.mrb[93].mxu1 }
 0xaca   : > { %v9545_v37 = vpop.f32.mrb[94].mxu1 }
 0xacb   : > { %v5558_v38 = vmax.f32 %v9538_v35, %v9545_v37  ;;  %v5392_v39 = vpop.f32.mrb[95].mxu1 }
 0xacc   : > { %v5557_v43 = vmax.f32 %v5314_v36, %v5392_v39  ;;  %v6313_v39 = vld [vmem:[%s12823_s20 + $0x18] sm:$0xff] }
 0xace   : > { %v9552_v44 = vpop.f32.mrb[96].mxu1 }
 0xacf   : > { %v5470_v45 = vpop.f32.mrb[97].mxu1 }
 0xad2   : > { %v9559_v15 = vpop.f32.mrb[98].mxu1 }
 0xad3   : > { %v5560_v29 = vmax.f32 %v9552_v44, %v9559_v15  ;;  %v5548_v46 = vpop.f32.mrb[99].mxu1  ;;  %v6315_v44 = vld [vmem:[%s12823_s20 + $0x28] sm:$0xff]  ;;  %v6317_v15 = vld [vmem:[%s12823_s20 + $0x38] sm:$0xff] }
 0xad4   : > { %v5559_v32 = vmax.f32 %v5470_v45, %v5548_v46  ;;  %v6314_v45 = vld [vmem:[%s12823_s20 + $0x20] sm:$0xff] }
 0xad5   : > { %v5562_v48 = vmax.f32 %v5558_v38, %v5560_v29  ;;  %v6310_v38 = vld [vmem:[%s12823_s20] sm:$0xff]  ;;  %v6316_v29 = vld [vmem:[%s12823_s20 + $0x30] sm:$0xff] }
 0xad6   : > { %v5561_v49 = vmax.f32 %v5557_v43, %v5559_v32  ;;  %v6312_v43 = vld [vmem:[%s12823_s20 + $0x10] sm:$0xff]  ;;  %v6461_v46 = vld [vmem:[#allocation18] sm:$0xff] }
 0xad7   : > { %5565 = vst.msk [vmem:[%s751_s3 + $0x8] sm:$0xff] %vm5563_vm5, %v5562_v48  ;;  %v6463_v32 = vcombine.high %v6461_v46, %v6461_v46 }
 0xad8   : > { %5564 = vst.msk [vmem:[%s751_s3] sm:$0xff] %vm5563_vm5, %v5561_v49  ;;  %9562 = vmatprep.mubr.msk.f32.mxu1 %vm5563_vm5, %v5561_v49  ;;  %9577 = vmatprep.mubr.msk.f32.mxu0 %vm5563_vm5, %v5561_v49 }
 0xad9   : > { %9563 = vmatmul.mubr.msk.f32.vlgmr.msra.gmra.mrb[100].mxu1 %vm5563_vm5, %v5562_v48  ;;  %9578 = vmatmul.mubr.msk.f32.vlgmr.msra.gmra.mrb[72].mxu0 %vm5563_vm5, %v5562_v48 }
 0xada   : > { %9566 = vmatpush3.msk.msra.mxu1 %vm5573_vm4, %v5655_v31  ;;  %9567 = vmatprep.mubr.msk.f32.mxu1 %vm5563_vm5, %v5561_v49 }
 0xadb   : > { %9587 = vmatprep.mubr.msk.f32.mxu0 %vm5563_vm5, %v5561_v49  ;;  %9586 = vmatpush3.msk.msra.mxu0 %vm5573_vm4, %v5983_v34 }
 0xadc   : > { %9570 = vmatprep.subr.msk.mxu1 %vm5573_vm4, %v5737_v50  ;;  %9595 = vmatprep.subr.msk.mxu0 %vm5573_vm4, %v6147_v51 }
 0xadd   : > { %9568 = vmatmul.mubr.msk.f32.vlgmr.msra.gmra.mrb[102].mxu1 %vm5563_vm5, %v5562_v48  ;;  %9588 = vmatmul.mubr.msk.f32.vlgmr.msra.gmra.mrb[74].mxu0 %vm5563_vm5, %v5562_v48 }
 0xade   : > { %9571 = vmatpush3.msk.msra.mxu1 %vm5573_vm4, %v5737_v50  ;;  %9572 = vmatprep.mubr.msk.f32.mxu1 %vm5563_vm5, %v5561_v49  ;;  %v6731_v50 = vld [vmem:[#allocation7 + $0x208] sm:$0xff] }
 0xadf   : > { %9597 = vmatprep.mubr.msk.f32.mxu0 %vm5563_vm5, %v5561_v49  ;;  %9596 = vmatpush3.msk.msra.mxu0 %vm5573_vm4, %v6147_v51 }
 0xae0   : > { %9580 = vmatprep.subr.msk.mxu1 %vm5573_vm4, %v5901_v42  ;;  %10665 = vmatprep.subr.bf16.mxu0 %v11718_v41 }
 0xae1   : > { %9573 = vmatmul.mubr.msk.f32.vlgmr.msra.gmra.mrb[104].mxu1 %vm5563_vm5, %v5562_v48  ;;  %9598 = vmatmul.mubr.msk.f32.vlgmr.msra.gmra.mrb[76].mxu0 %vm5563_vm5, %v5562_v48 }
 0xae2   : > { %9582 = vmatprep.mubr.msk.f32.mxu1 %vm5563_vm5, %v5561_v49  ;;  %9581 = vmatpush3.msk.msra.mxu1 %vm5573_vm4, %v5901_v42  ;;  %v6733_v42 = vld [vmem:[#allocation7 + $0x218] sm:$0xff] }
 0xae3   : > { %9590 = vmatprep.subr.msk.mxu1 %vm5573_vm4, %v6065_v54  ;;  %8591 = vmatprep.mubr.msk.f32.mxu0 %vm4192_vm3, %v6311_v47 }
 0xae5   : > { %9583 = vmatmul.mubr.msk.f32.vlgmr.msra.gmra.mrb[106].mxu1 %vm5563_vm5, %v5562_v48 }
 0xae6   : > { %9592 = vmatprep.mubr.msk.f32.mxu1 %vm5563_vm5, %v5561_v49  ;;  %9591 = vmatpush3.msk.msra.mxu1 %vm5573_vm4, %v6065_v54  ;;  %v10756_v54 = vpack.c.bf16 %v6733_v42, %v6731_v50  ;;  %v6772_v42 = vld [vmem:[#allocation7 + $0x350] sm:$0xff] }
 0xae7   : > { %9600 = vmatprep.subr.msk.mxu1 %vm5573_vm4, %v6229_v23 }
 0xae9   : > { %9593 = vmatmul.mubr.msk.f32.vlgmr.msra.gmra.mrb[108].mxu1 %vm5563_vm5, %v5562_v48 }
 0xaea   : > { %9602 = vmatprep.mubr.msk.f32.mxu1 %vm5563_vm5, %v5561_v49  ;;  %9601 = vmatpush3.msk.msra.mxu1 %vm5573_vm4, %v6229_v23  ;;  %v6572_v49 = vld [vmem:[#allocation7 + $0x18] sm:$0xff]  ;;  %v6730_v23 = vld [vmem:[#allocation7 + $0x200] sm:$0xff] }
 0xaeb   : > { %8595 = vmatprep.subr.msk.mxu1 %vm5573_vm4, %v6463_v32  ;;  %v6771_v32 = vld [vmem:[#allocation7 + $0x348] sm:$0xff] }
 0xaed   : > { %9603 = vmatmul.mubr.msk.f32.vlgmr.msra.gmra.mrb[110].mxu1 %vm5563_vm5, %v5562_v48  ;;  %v6570_v48 = vld [vmem:[#allocation7 + $0x8] sm:$0xff] }
 0xaee   : > { %6544 = vmatprep.mubr.f32.mxu1 %v11716_v1  ;;  %8596 = vmatpush1.msk.msra.mxu1 %vm5573_vm4, %v6461_v46  ;;  %v10692_v51 = vpack.c.bf16 %v6572_v49, %v6570_v48  ;;  %v6768_v46 = vld [vmem:[#allocation7 + $0x330] sm:$0xff]  ;;  %v6773_v48 = vld [vmem:[#allocation7 + $0x358] sm:$0xff] }
 0xaef   : > { %v10796_v50 = vpack.c.bf16 %v6773_v48, %v6771_v32  ;;  %v6582_v32 = vld [vmem:[#allocation7 + $0x68] sm:$0xff]  ;;  %v6584_v48 = vld [vmem:[#allocation7 + $0x78] sm:$0xff] }
 0xaf0   : > { %10693 = vmatprep.subr.bf16.mxu1 %v10692_v51  ;;  %v6770_v51 = vld [vmem:[#allocation7 + $0x340] sm:$0xff] }
 0xbac   : > { %v9564_v55 = vpop.f32.mrb[100].mxu1  ;;  %v9579_v56 = vpop.f32.mrb[72].mxu0 }
 0xbad   : > { %5653 = vst.msk [vmem:[#allocation5 + $0x8] sm:$0xff] %vm5563_vm5, %v9564_v55  ;;  %5899 = vst.msk [vmem:[#allocation5 + $0x38] sm:$0xff] %vm5563_vm5, %v9579_v56  ;;  %v5643_v57 = vpop.f32.mrb[101].mxu1  ;;  %v5889_v58 = vpop.f32.mrb[73].mxu0  ;;  %v6735_v55 = vld [vmem:[#allocation7 + $0x228] sm:$0xff]  ;;  %v6737_v56 = vld [vmem:[#allocation7 + $0x238] sm:$0xff] }
 0xbae   : > { %5652 = vst.msk [vmem:[#allocation5] sm:$0xff] %vm5563_vm5, %v5643_v57  ;;  %5898 = vst.msk [vmem:[#allocation5 + $0x30] sm:$0xff] %vm5563_vm5, %v5889_v58  ;;  %v10760_v57 = vpack.c.bf16 %v6737_v56, %v6735_v55  ;;  %v6734_v58 = vld [vmem:[#allocation7 + $0x220] sm:$0xff]  ;;  %v6776_v56 = vld [vmem:[#allocation7 + $0x370] sm:$0xff] }
 0xbaf   : > { %v6774_v55 = vld [vmem:[#allocation7 + $0x360] sm:$0xff] }
 0xbb0   : > { %v9569_v16 = vpop.f32.mrb[102].mxu1  ;;  %v9589_v59 = vpop.f32.mrb[74].mxu0 }
 0xbb1   : > { %5735 = vst.msk [vmem:[#allocation5 + $0x18] sm:$0xff] %vm5563_vm5, %v9569_v16  ;;  %6063 = vst.msk [vmem:[#allocation5 + $0x58] sm:$0xff] %vm5563_vm5, %v9589_v59  ;;  %v5725_v60 = vpop.f32.mrb[103].mxu1  ;;  %v6053_v61 = vpop.f32.mrb[75].mxu0  ;;  %v6736_v16 = vld [vmem:[#allocation7 + $0x230] sm:$0xff] }
 0xbb2   : > { %5734 = vst.msk [vmem:[#allocation5 + $0x10] sm:$0xff] %vm5563_vm5, %v5725_v60  ;;  %6062 = vst.msk [vmem:[#allocation5 + $0x50] sm:$0xff] %vm5563_vm5, %v6053_v61  ;;  %v10762_v59 = vpack.c.bf16 %v6736_v16, %v6734_v58  ;;  %v6739_v60 = vld [vmem:[#allocation7 + $0x248] sm:$0xff]  ;;  %v6741_v61 = vld [vmem:[#allocation7 + $0x258] sm:$0xff]  ;;  %v10802_v16 = vpack.c.bf16 %v6776_v56, %v6774_v55 }
 0xbb3   : > { %v6781_v58 = vld [vmem:[#allocation7 + $0x398] sm:$0xff]  ;;  %v6586_v56 = vld [vmem:[#allocation7 + $0x88] sm:$0xff] }
 0xbb4   : > { %v9574_v62 = vpop.f32.mrb[104].mxu1  ;;  %v9599_v63 = vpop.f32.mrb[76].mxu0  ;;  %v6319_v0 = vld [vmem:[#allocation5 + $0x8] sm:$0xff]  ;;  %v6325_v30 = vld [vmem:[#allocation5 + $0x38] sm:$0xff] }
 0xbb5   : > { %5817 = vst.msk [vmem:[#allocation5 + $0x28] sm:$0xff] %vm5563_vm5, %v9574_v62  ;;  %6227 = vst.msk [vmem:[#allocation5 + $0x78] sm:$0xff] %vm5563_vm5, %v9599_v63  ;;  %v5807_v33 = vpop.f32.mrb[105].mxu1  ;;  %v6217_v12 = vpop.f32.mrb[77].mxu0  ;;  %v6318_v2 = vld [vmem:[#allocation5] sm:$0xff]  ;;  %v6324_v13 = vld [vmem:[#allocation5 + $0x30] sm:$0xff]  ;;  %v10764_v62 = vpack.c.bf16 %v6741_v61, %v6739_v60 }
 0xbb6   : > { %5816 = vst.msk [vmem:[#allocation5 + $0x20] sm:$0xff] %vm5563_vm5, %v5807_v33  ;;  %6226 = vst.msk [vmem:[#allocation5 + $0x70] sm:$0xff] %vm5563_vm5, %v6217_v12  ;;  %v10666_v3 = vpack.c.bf16 %v6319_v0, %v6318_v2  ;;  %v10675_v53 = vpack.c.bf16 %v6325_v30, %v6324_v13  ;;  %v6738_v63 = vld [vmem:[#allocation7 + $0x240] sm:$0xff]  ;;  %v6740_v0 = vld [vmem:[#allocation7 + $0x250] sm:$0xff] }
 0xbb7   : > { %v6743_v33 = vld [vmem:[#allocation7 + $0x268] sm:$0xff]  ;;  %v10766_v12 = vpack.c.bf16 %v6740_v0, %v6738_v63  ;;  %v6745_v2 = vld [vmem:[#allocation7 + $0x278] sm:$0xff]  ;;  %v6778_v60 = vld [vmem:[#allocation7 + $0x380] sm:$0xff] }
 0xbb8   : > { %v9584_v4 = vpop.f32.mrb[106].mxu1  ;;  %10667 = vmatpush1.bf16.msra.mxu0 %v10666_v3  ;;  %v6321_v5 = vld [vmem:[#allocation5 + $0x18] sm:$0xff]  ;;  %v10768_v3 = vpack.c.bf16 %v6745_v2, %v6743_v33  ;;  %v6780_v61 = vld [vmem:[#allocation7 + $0x390] sm:$0xff]  ;;  %v6785_v63 = vld [vmem:[#allocation7 + $0x3b8] sm:$0xff] }
 0xbb9   : > { %5981 = vst.msk [vmem:[#allocation5 + $0x48] sm:$0xff] %vm5563_vm5, %v9584_v4  ;;  %v5971_v6 = vpop.f32.mrb[107].mxu1  ;;  %10668 = vmatprep.subr.bf16.mxu0 %v11718_v41  ;;  %v6320_v7 = vld [vmem:[#allocation5 + $0x10] sm:$0xff]  ;;  %v6329_v21 = vld [vmem:[#allocation5 + $0x58] sm:$0xff]  ;;  %v10806_v0 = vpack.c.bf16 %v6780_v61, %v6778_v60  ;;  %v6784_v2 = vld [vmem:[#allocation7 + $0x3b0] sm:$0xff] }
 0xbba   : > { %5980 = vst.msk [vmem:[#allocation5 + $0x40] sm:$0xff] %vm5563_vm5, %v5971_v6  ;;  %v10669_v8 = vpack.c.bf16 %v6321_v5, %v6320_v7  ;;  %v6328_v20 = vld [vmem:[#allocation5 + $0x50] sm:$0xff]  ;;  %v6744_v5 = vld [vmem:[#allocation7 + $0x270] sm:$0xff]  ;;  %v6747_v6 = vld [vmem:[#allocation7 + $0x288] sm:$0xff] }
 0xbbb   : > { %v10681_v22 = vpack.c.bf16 %v6329_v21, %v6328_v20  ;;  %v6742_v4 = vld [vmem:[#allocation7 + $0x260] sm:$0xff]  ;;  %v6749_v7 = vld [vmem:[#allocation7 + $0x298] sm:$0xff]  ;;  %v6756_v21 = vld [vmem:[#allocation7 + $0x2d0] sm:$0xff] }
 0xbbc   : > { %v9594_v9 = vpop.f32.mrb[108].mxu1  ;;  %10670 = vmatpush1.bf16.msra.mxu0 %v10669_v8  ;;  %v6323_v10 = vld [vmem:[#allocation5 + $0x28] sm:$0xff]  ;;  %v6333_v31 = vld [vmem:[#allocation5 + $0x78] sm:$0xff]  ;;  %v10770_v8 = vpack.c.bf16 %v6744_v5, %v6742_v4  ;;  %v6754_v20 = vld [vmem:[#allocation7 + $0x2c0] sm:$0xff] }
 0xbbd   : > { %6145 = vst.msk [vmem:[#allocation5 + $0x68] sm:$0xff] %vm5563_vm5, %v9594_v9  ;;  %v6135_v17 = vpop.f32.mrb[109].mxu1  ;;  %10671 = vmatprep.subr.bf16.mxu0 %v11718_v41  ;;  %v6322_v11 = vld [vmem:[#allocation5 + $0x20] sm:$0xff]  ;;  %v6332_v28 = vld [vmem:[#allocation5 + $0x70] sm:$0xff]  ;;  %v10772_v9 = vpack.c.bf16 %v6749_v7, %v6747_v6  ;;  %v6789_v4 = vld [vmem:[#allocation7 + $0x3d8] sm:$0xff] }
 0xbbe   : > { %6144 = vst.msk [vmem:[#allocation5 + $0x60] sm:$0xff] %vm5563_vm5, %v6135_v17  ;;  %v10672_v27 = vpack.c.bf16 %v6323_v10, %v6322_v11  ;;  %v10687_v34 = vpack.c.bf16 %v6333_v31, %v6332_v28  ;;  %v6746_v10 = vld [vmem:[#allocation7 + $0x280] sm:$0xff]  ;;  %v6748_v17 = vld [vmem:[#allocation7 + $0x290] sm:$0xff]  ;;  %v6751_v11 = vld [vmem:[#allocation7 + $0x2a8] sm:$0xff] }
 0xbbf   : > { %v10774_v13 = vpack.c.bf16 %v6748_v17, %v6746_v10  ;;  %v6758_v28 = vld [vmem:[#allocation7 + $0x2e0] sm:$0xff]  ;;  %v6760_v31 = vld [vmem:[#allocation7 + $0x2f0] sm:$0xff]  ;;  %v6793_v10 = vld [vmem:[#allocation7 + $0x3f8] sm:$0xff] }
 0xbc0   : > { %v9604_v40 = vpop.f32.mrb[110].mxu1  ;;  %10673 = vmatpush1.bf16.msra.mxu0 %v10672_v27  ;;  %v6327_v18 = vld [vmem:[#allocation5 + $0x48] sm:$0xff]  ;;  %v6786_v7 = vld [vmem:[#allocation7 + $0x3c0] sm:$0xff] }
 0xbc1   : > { %6309 = vst.msk [vmem:[#allocation5 + $0x88] sm:$0xff] %vm5563_vm5, %v9604_v40  ;;  %v6299_v52 = vpop.f32.mrb[111].mxu1  ;;  %10674 = vmatprep.subr.bf16.mxu0 %v11718_v41  ;;  %v6326_v14 = vld [vmem:[#allocation5 + $0x40] sm:$0xff]  ;;  %v6753_v27 = vld [vmem:[#allocation7 + $0x2b8] sm:$0xff]  ;;  %v6750_v40 = vld [vmem:[#allocation7 + $0x2a0] sm:$0xff] }
 0xbc2   : > { %6308 = vst.msk [vmem:[#allocation5 + $0x80] sm:$0xff] %vm5563_vm5, %v6299_v52  ;;  %v10678_v19 = vpack.c.bf16 %v6327_v18, %v6326_v14  ;;  %v10776_v30 = vpack.c.bf16 %v6753_v27, %v6751_v11  ;;  %v6752_v52 = vld [vmem:[#allocation7 + $0x2b0] sm:$0xff]  ;;  %v6757_v14 = vld [vmem:[#allocation7 + $0x2d8] sm:$0xff]  ;;  %v6790_v27 = vld [vmem:[#allocation7 + $0x3e0] sm:$0xff] }
 0xbc3   : > { %v10778_v18 = vpack.c.bf16 %v6752_v52, %v6750_v40  ;;  %v6569_v40 = vld [vmem:[#allocation7] sm:$0xff]  ;;  %v6571_v52 = vld [vmem:[#allocation7 + $0x10] sm:$0xff] }
 0xbc4   : > { %10676 = vmatpush1.bf16.msra.mxu0 %v10675_v53  ;;  %v6331_v25 = vld [vmem:[#allocation5 + $0x68] sm:$0xff]  ;;  %v6755_v53 = vld [vmem:[#allocation7 + $0x2c8] sm:$0xff] }
 0xbc5   : > { %10677 = vmatprep.subr.bf16.mxu0 %v11718_v41  ;;  %v6330_v24 = vld [vmem:[#allocation5 + $0x60] sm:$0xff] }
 0xbc6   : > { %v10684_v26 = vpack.c.bf16 %v6331_v25, %v6330_v24  ;;  %v6761_v24 = vld [vmem:[#allocation7 + $0x2f8] sm:$0xff]  ;;  %v10782_v25 = vpack.c.bf16 %v6756_v21, %v6754_v20 }
 0xbc8   : > { %10679 = vmatpush1.bf16.msra.mxu0 %v10678_v19  ;;  %v6335_v36 = vld [vmem:[#allocation5 + $0x88] sm:$0xff]  ;;  %v10780_v19 = vpack.c.bf16 %v6757_v14, %v6755_v53  ;;  %v6343_v53 = vpop.permute.xlu0 %6342 }
 0xbc9   : > { %10680 = vmatprep.subr.bf16.mxu0 %v11718_v41  ;;  %v6334_v35 = vld [vmem:[#allocation5 + $0x80] sm:$0xff] }
 0xbca   : > { %v10690_v37 = vpack.c.bf16 %v6335_v36, %v6334_v35  ;;  %v6765_v35 = vld [vmem:[#allocation7 + $0x318] sm:$0xff]  ;;  %v10786_v36 = vpack.c.bf16 %v6760_v31, %v6758_v28  ;;  %v6575_v28 = vld [vmem:[#allocation7 + $0x30] sm:$0xff]  ;;  %v6348_v31 = vpop.permute.xlu1 %6347 }
 0xbcc   : > { %10682 = vmatpush1.bf16.msra.mxu0 %v10681_v22  ;;  %v6759_v22 = vld [vmem:[#allocation7 + $0x2e8] sm:$0xff] }
 0xbcd   : > { %10683 = vmatprep.subr.bf16.mxu0 %v11718_v41 }
 0xbd0   : > { %10685 = vmatpush1.bf16.msra.mxu0 %v10684_v26  ;;  %v10784_v26 = vpack.c.bf16 %v6761_v24, %v6759_v22  ;;  %v10694_v22 = vpack.c.bf16 %v6571_v52, %v6569_v40  ;;  %v6599_v40 = vld [vmem:[#allocation7 + $0xf0] sm:$0xff]  ;;  %v6602_v52 = vld [vmem:[#allocation7 + $0x108] sm:$0xff] }
 0xbd1   : > { %10686 = vmatprep.subr.bf16.mxu0 %v11718_v41 }
 0xbd4   : > { %10688 = vmatpush1.bf16.msra.mxu0 %v10687_v34  ;;  %v6763_v34 = vld [vmem:[#allocation7 + $0x308] sm:$0xff] }
 0xbd5   : > { %10689 = vmatprep.subr.bf16.mxu0 %v11718_v41  ;;  %v6732_v41 = vld [vmem:[#allocation7 + $0x210] sm:$0xff] }
 0xbd6   : > { %v10758_v47 = vpack.c.bf16 %v6732_v41, %v6730_v23  ;;  %v6777_v23 = vld [vmem:[#allocation7 + $0x378] sm:$0xff]  ;;  %v10798_v41 = vpack.c.bf16 %v6772_v42, %v6770_v51 }
 0xbd8   : > { %10691 = vmatpush1.bf16.msra.mxu0 %v10690_v37  ;;  %v10788_v37 = vpack.c.bf16 %v6765_v35, %v6763_v34  ;;  %v6578_v35 = vld [vmem:[#allocation7 + $0x48] sm:$0xff] }
 0xbd9   : > { %10757 = vmatprep.subr.bf16.mxu0 %v10756_v54  ;;  %v6775_v54 = vld [vmem:[#allocation7 + $0x368] sm:$0xff] }
 0xbdb   : > { %6437 = vmatmul.mubr.f32.vlgmr.msra.gmra.mrb[78].mxu0 %v6310_v38  ;;  %v6762_v38 = vld [vmem:[#allocation7 + $0x300] sm:$0xff] }
 0xbdc   : > { %8592 = vmatprep.mubr.msk.f32.mxu0 %vm4192_vm3, %v6313_v39  ;;  %10759 = vmatpush1.bf16.msra.mxu0 %v10758_v47  ;;  %v6764_v39 = vld [vmem:[#allocation7 + $0x310] sm:$0xff]  ;;  %v10800_v47 = vpack.c.bf16 %v6777_v23, %v6775_v54  ;;  %v10704_v54 = vpack.c.bf16 %v6584_v48, %v6582_v32  ;;  %v6581_v23 = vld [vmem:[#allocation7 + $0x60] sm:$0xff]  ;;  %v6620_v32 = vld [vmem:[#allocation7 + $0x198] sm:$0xff] }
 0xbdd   : > { %10761 = vmatprep.subr.bf16.mxu0 %v10760_v57  ;;  %v6779_v57 = vld [vmem:[#allocation7 + $0x388] sm:$0xff] }
 0xbdf   : > { %6442 = vmatmul.mubr.f32.gmra.mrb[80].mxu0 %v6312_v43  ;;  %v6767_v43 = vld [vmem:[#allocation7 + $0x328] sm:$0xff] }
 0xbe0   : > { %8593 = vmatprep.mubr.msk.f32.mxu0 %vm4192_vm3, %v6315_v44  ;;  %10763 = vmatpush1.bf16.msra.mxu0 %v10762_v59  ;;  %v6769_v44 = vld [vmem:[#allocation7 + $0x338] sm:$0xff]  ;;  %v10804_v59 = vpack.c.bf16 %v6781_v58, %v6779_v57 }
 0xbe1   : > { %10765 = vmatprep.subr.bf16.mxu0 %v10764_v62  ;;  %v6783_v62 = vld [vmem:[#allocation7 + $0x3a8] sm:$0xff]  ;;  %v6588_v57 = vld [vmem:[#allocation7 + $0x98] sm:$0xff] }
 0xbe2   : > { %v10808_v33 = vpack.c.bf16 %v6785_v63, %v6783_v62  ;;  %v10708_v61 = vpack.c.bf16 %v6588_v57, %v6586_v56  ;;  %v6585_v62 = vld [vmem:[#allocation7 + $0x80] sm:$0xff]  ;;  %v6587_v63 = vld [vmem:[#allocation7 + $0x90] sm:$0xff]  ;;  %v6626_v56 = vld [vmem:[#allocation7 + $0x1c8] sm:$0xff] }
 0xbe3   : > { %6447 = vmatmul.mubr.f32.gmra.mrb[82].mxu0 %v6314_v45  ;;  %v10790_v45 = vpack.c.bf16 %v6764_v39, %v6762_v38  ;;  %v6628_v57 = vld [vmem:[#allocation7 + $0x1d8] sm:$0xff] }
 0xbe4   : > { %8594 = vmatprep.mubr.msk.f32.mxu0 %vm4192_vm3, %v6317_v15  ;;  %10767 = vmatpush1.bf16.msra.mxu0 %v10766_v12  ;;  %v10792_v15 = vpack.c.bf16 %v6769_v44, %v6767_v43  ;;  %v6782_v12 = vld [vmem:[#allocation7 + $0x3a0] sm:$0xff] }
 0xbe5   : > { %10769 = vmatprep.subr.bf16.mxu0 %v10768_v3  ;;  %v6787_v3 = vld [vmem:[#allocation7 + $0x3c8] sm:$0xff]  ;;  %v10810_v5 = vpack.c.bf16 %v6784_v2, %v6782_v12  ;;  %v10710_v12 = vpack.c.bf16 %v6587_v63, %v6585_v62  ;;  %v6632_v62 = vld [vmem:[#allocation7 + $0x1f8] sm:$0xff] }
 0xbe6   : > { %v10812_v6 = vpack.c.bf16 %v6789_v4, %v6787_v3  ;;  %v6589_v3 = vld [vmem:[#allocation7 + $0xa0] sm:$0xff]  ;;  %v6591_v4 = vld [vmem:[#allocation7 + $0xb0] sm:$0xff] }
 0xbe7   : > { %6452 = vmatmul.mubr.f32.gmra.mrb[84].mxu0 %v6316_v29  ;;  %v6766_v29 = vld [vmem:[#allocation7 + $0x320] sm:$0xff] }
 0xbe8   : > { %10771 = vmatpush1.bf16.msra.mxu0 %v10770_v8  ;;  %v10794_v49 = vpack.c.bf16 %v6768_v46, %v6766_v29  ;;  %v6788_v8 = vld [vmem:[#allocation7 + $0x3d0] sm:$0xff]  ;;  %v6353_v29 = vpop.permute.xlu0 %6352 }
 0xbe9   : > { %10773 = vmatprep.subr.bf16.mxu0 %v10772_v9  ;;  %v6791_v9 = vld [vmem:[#allocation7 + $0x3e8] sm:$0xff]  ;;  %v10814_v17 = vpack.c.bf16 %v6788_v8, %v6786_v7  ;;  %v10714_v7 = vpack.c.bf16 %v6591_v4, %v6589_v3  ;;  %v6894_v4 = vld [vmem:[#allocation7 + $0x418] sm:$0xff] }
 0xbea   : > { %v10816_v11 = vpack.c.bf16 %v6793_v10, %v6791_v9  ;;  %v6593_v9 = vld [vmem:[#allocation7 + $0xc0] sm:$0xff]  ;;  %v6595_v10 = vld [vmem:[#allocation7 + $0xd0] sm:$0xff]  ;;  %v6892_v3 = vld [vmem:[#allocation7 + $0x408] sm:$0xff] }
 0xbec   : > { %10775 = vmatpush1.bf16.msra.mxu0 %v10774_v13  ;;  %v6792_v13 = vld [vmem:[#allocation7 + $0x3f0] sm:$0xff] }
 0xbed   : > { %10777 = vmatprep.subr.bf16.mxu0 %v10776_v30  ;;  %v10818_v30 = vpack.c.bf16 %v6792_v13, %v6790_v27  ;;  %v10718_v27 = vpack.c.bf16 %v6595_v10, %v6593_v9  ;;  %v6891_v9 = vld [vmem:[#allocation7 + $0x400] sm:$0xff]  ;;  %v6893_v10 = vld [vmem:[#allocation7 + $0x410] sm:$0xff] }
 0xbf0   : > { %10779 = vmatpush1.bf16.msra.mxu0 %v10778_v18  ;;  %v6574_v18 = vld [vmem:[#allocation7 + $0x28] sm:$0xff] }
 0xbf1   : > { %10781 = vmatprep.subr.bf16.mxu0 %v10780_v19  ;;  %v6576_v19 = vld [vmem:[#allocation7 + $0x38] sm:$0xff] }
 0xbf4   : > { %10783 = vmatpush1.bf16.msra.mxu0 %v10782_v25  ;;  %v10696_v25 = vpack.c.bf16 %v6576_v19, %v6574_v18  ;;  %v6601_v19 = vld [vmem:[#allocation7 + $0x100] sm:$0xff] }
 0xbf5   : > { %10785 = vmatprep.subr.bf16.mxu0 %v10784_v26  ;;  %v6573_v26 = vld [vmem:[#allocation7 + $0x20] sm:$0xff] }
 0xbf6   : > { %v10698_v39 = vpack.c.bf16 %v6575_v28, %v6573_v26  ;;  %v6605_v26 = vld [vmem:[#allocation7 + $0x120] sm:$0xff]  ;;  %v6607_v28 = vld [vmem:[#allocation7 + $0x130] sm:$0xff] }
 0xbf8   : > { %10787 = vmatpush1.bf16.msra.mxu0 %v10786_v36  ;;  %v6580_v36 = vld [vmem:[#allocation7 + $0x58] sm:$0xff] }
 0xbf9   : > { %10789 = vmatprep.subr.bf16.mxu0 %v10788_v37  ;;  %v10700_v44 = vpack.c.bf16 %v6580_v36, %v6578_v35  ;;  %v10730_v35 = vpack.c.bf16 %v6607_v28, %v6605_v26  ;;  %v6900_v26 = vld [vmem:[#allocation7 + $0x448] sm:$0xff]  ;;  %v6902_v28 = vld [vmem:[#allocation7 + $0x458] sm:$0xff] }
 0xbfc   : > { %10791 = vmatpush1.bf16.msra.mxu0 %v10790_v45  ;;  %v6577_v45 = vld [vmem:[#allocation7 + $0x40] sm:$0xff] }
 0xbfd   : > { %10793 = vmatprep.subr.bf16.mxu0 %v10792_v15  ;;  %v6579_v15 = vld [vmem:[#allocation7 + $0x50] sm:$0xff] }
 0xbfe   : > { %v10702_v51 = vpack.c.bf16 %v6579_v15, %v6577_v45  ;;  %v6613_v15 = vld [vmem:[#allocation7 + $0x160] sm:$0xff] }
 0xc00   : > { %10795 = vmatpush1.bf16.msra.mxu0 %v10794_v49 }
 0xc01   : > { %10797 = vmatprep.subr.bf16.mxu0 %v10796_v50 }
 0xc04   : > { %10799 = vmatpush1.bf16.msra.mxu0 %v10798_v41  ;;  %v6583_v41 = vld [vmem:[#allocation7 + $0x70] sm:$0xff] }
 0xc05   : > { %10801 = vmatprep.subr.bf16.mxu0 %v10800_v47  ;;  %v6358_v47 = vpop.permute.xlu1 %6357 }
 0xc08   : > { %10803 = vmatpush1.bf16.msra.mxu0 %v10802_v16 }
 0xc09   : > { %10805 = vmatprep.subr.bf16.mxu0 %v10804_v59  ;;  %v10706_v59 = vpack.c.bf16 %v6583_v41, %v6581_v23 }
 0xc0c   : > { %10807 = vmatpush1.bf16.msra.mxu0 %v10806_v0  ;;  %v6590_v0 = vld [vmem:[#allocation7 + $0xa8] sm:$0xff] }
 0xc0d   : > { %10809 = vmatprep.subr.bf16.mxu0 %v10808_v33  ;;  %v6592_v33 = vld [vmem:[#allocation7 + $0xb8] sm:$0xff] }
 0xc0e   : > { %v10712_v2 = vpack.c.bf16 %v6592_v33, %v6590_v0  ;;  %v6629_v33 = vld [vmem:[#allocation7 + $0x1e0] sm:$0xff] }
 0xc10   : > { %10811 = vmatpush1.bf16.msra.mxu0 %v10810_v5  ;;  %v6594_v5 = vld [vmem:[#allocation7 + $0xc8] sm:$0xff] }
 0xc11   : > { %10813 = vmatprep.subr.bf16.mxu0 %v10812_v6  ;;  %v6596_v6 = vld [vmem:[#allocation7 + $0xd8] sm:$0xff] }
 0xc12   : > { %v10716_v8 = vpack.c.bf16 %v6596_v6, %v6594_v5  ;;  %v7053_v5 = vld [vmem:[#allocation7 + $0x608] sm:$0xff]  ;;  %v10820_v6 = vpack.c.bf16 %v6894_v4, %v6892_v3  ;;  %v7070_v3 = vld [vmem:[#allocation7 + $0x690] sm:$0xff] }
 0xc13   : > { %v6912_v4 = vld [vmem:[#allocation7 + $0x4a8] sm:$0xff] }
 0xc14   : > { %10815 = vmatpush1.bf16.msra.mxu0 %v10814_v17  ;;  %v6598_v17 = vld [vmem:[#allocation7 + $0xe8] sm:$0xff] }
 0xc15   : > { %10817 = vmatprep.subr.bf16.mxu0 %v10816_v11  ;;  %v6600_v11 = vld [vmem:[#allocation7 + $0xf8] sm:$0xff] }
 0xc16   : > { %v10720_v13 = vpack.c.bf16 %v6600_v11, %v6598_v17  ;;  %v7052_v17 = vld [vmem:[#allocation7 + $0x600] sm:$0xff]  ;;  %v7054_v11 = vld [vmem:[#allocation7 + $0x610] sm:$0xff] }
 0xc18   : > { %10819 = vmatpush1.bf16.msra.mxu0 %v10818_v30  ;;  %v6597_v30 = vld [vmem:[#allocation7 + $0xe0] sm:$0xff] }
 0xcae   : > { %v6438_v14 = vpop.f32.mrb[78].mxu0 }
 0xcaf   : > { %v6439_v20 = vadd.f32 %v6438_v14, %v6343_v53  ;;  %v6440_v21 = vpop.f32.mrb[79].mxu0  ;;  %v6604_v53 = vld [vmem:[#allocation7 + $0x118] sm:$0xff]  ;;  %v10722_v14 = vpack.c.bf16 %v6599_v40, %v6597_v30  ;;  %v7057_v30 = vld [vmem:[#allocation7 + $0x628] sm:$0xff] }
 0xcb0   : > { %v10724_v18 = vpack.c.bf16 %v6604_v53, %v6602_v52  ;;  %v6606_v21 = vld [vmem:[#allocation7 + $0x128] sm:$0xff]  ;;  %v7059_v40 = vld [vmem:[#allocation7 + $0x638] sm:$0xff]  ;;  %v10822_v53 = vpack.c.bf16 %v6893_v10, %v6891_v9 }
 0xcb1   : > { %v6457_v24 = vmax.f32 %v6439_v20, 0.0  ;;  %v6603_v20 = vld [vmem:[#allocation7 + $0x110] sm:$0xff]  ;;  %v7075_v9 = vld [vmem:[#allocation7 + $0x6b8] sm:$0xff] }
 0xcb2   : > { %v6443_v34 = vpop.f32.mrb[80].mxu0 }
 0xcb3   : > { %v6444_v37 = vadd.f32 %v6443_v34, %v6348_v31  ;;  %8597 = vmatmul.mubr.msk.f32.vlgmr.msra.gmra.mrb[112].mxu1 %vm5563_vm5, %v6457_v24  ;;  %v6445_v38 = vpop.f32.mrb[81].mxu0  ;;  %v10726_v24 = vpack.c.bf16 %v6603_v20, %v6601_v19  ;;  %v6610_v31 = vld [vmem:[#allocation7 + $0x148] sm:$0xff]  ;;  %v6612_v34 = vld [vmem:[#allocation7 + $0x158] sm:$0xff]  ;;  %v6897_v19 = vld [vmem:[#allocation7 + $0x430] sm:$0xff] }
 0xcb4   : > { %6550 = vmatprep.mubr.f32.mxu1 %v11716_v1  ;;  %10695 = vmatpush1.bf16.msra.mxu1 %v10694_v22  ;;  %v6608_v22 = vld [vmem:[#allocation7 + $0x138] sm:$0xff]  ;;  %v10732_v36 = vpack.c.bf16 %v6612_v34, %v6610_v31  ;;  %v6611_v38 = vld [vmem:[#allocation7 + $0x150] sm:$0xff]  ;;  %v7061_v31 = vld [vmem:[#allocation7 + $0x648] sm:$0xff] }
 0xcb5   : > { %v6458_v43 = vmax.f32 %v6444_v37, 0.0  ;;  %10697 = vmatprep.subr.bf16.mxu1 %v10696_v25  ;;  %v10728_v25 = vpack.c.bf16 %v6608_v22, %v6606_v21  ;;  %v6609_v37 = vld [vmem:[#allocation7 + $0x140] sm:$0xff]  ;;  %v10888_v22 = vpack.c.bf16 %v7059_v40, %v7057_v30  ;;  %v7063_v34 = vld [vmem:[#allocation7 + $0x658] sm:$0xff] }
 0xcb6   : > { %v6448_v46 = vpop.f32.mrb[82].mxu0  ;;  %v7072_v40 = vld [vmem:[#allocation7 + $0x6a0] sm:$0xff] }
 0xcb7   : > { %v6449_v49 = vadd.f32 %v6448_v46, %v6353_v29  ;;  %8598 = vmatmul.mubr.msk.f32.gmra.mrb[114].mxu1 %vm5563_vm5, %v6458_v43  ;;  %v6450_v50 = vpop.f32.mrb[83].mxu0  ;;  %v6616_v43 = vld [vmem:[#allocation7 + $0x178] sm:$0xff]  ;;  %v6615_v29 = vld [vmem:[#allocation7 + $0x170] sm:$0xff]  ;;  %v6618_v46 = vld [vmem:[#allocation7 + $0x188] sm:$0xff] }
 0xcb8   : > { %6556 = vmatprep.mubr.f32.mxu1 %v11716_v1  ;;  %10699 = vmatpush1.bf16.msra.mxu1 %v10698_v39  ;;  %v6614_v39 = vld [vmem:[#allocation7 + $0x168] sm:$0xff]  ;;  %v10738_v48 = vpack.c.bf16 %v6615_v29, %v6613_v15  ;;  %v6617_v50 = vld [vmem:[#allocation7 + $0x180] sm:$0xff]  ;;  %v7062_v29 = vld [vmem:[#allocation7 + $0x650] sm:$0xff] }
 0xcb9   : > { %v6459_v42 = vmax.f32 %v6449_v49, 0.0  ;;  %10701 = vmatprep.subr.bf16.mxu1 %v10700_v44  ;;  %v10734_v44 = vpack.c.bf16 %v6611_v38, %v6609_v37  ;;  %v10736_v45 = vpack.c.bf16 %v6616_v43, %v6614_v39  ;;  %v10740_v49 = vpack.c.bf16 %v6620_v32, %v6618_v46  ;;  %v6899_v38 = vld [vmem:[#allocation7 + $0x440] sm:$0xff]  ;;  %v6901_v39 = vld [vmem:[#allocation7 + $0x450] sm:$0xff]  ;;  %v6904_v46 = vld [vmem:[#allocation7 + $0x468] sm:$0xff] }
 0xcba   : > { %v6453_v55 = vpop.f32.mrb[84].mxu0  ;;  %v7060_v15 = vld [vmem:[#allocation7 + $0x640] sm:$0xff]  ;;  %v6906_v32 = vld [vmem:[#allocation7 + $0x478] sm:$0xff] }
 0xcbb   : > { %v6454_v58 = vadd.f32 %v6453_v55, %v6358_v47  ;;  %8599 = vmatmul.mubr.msk.f32.gmra.mrb[116].mxu1 %vm5563_vm5, %v6459_v42  ;;  %v6455_v16 = vpop.f32.mrb[85].mxu0  ;;  %v6622_v42 = vld [vmem:[#allocation7 + $0x1a8] sm:$0xff]  ;;  %v6621_v47 = vld [vmem:[#allocation7 + $0x1a0] sm:$0xff]  ;;  %v6623_v55 = vld [vmem:[#allocation7 + $0x1b0] sm:$0xff] }
 0xcbc   : > { %6562 = vmatprep.mubr.f32.mxu1 %v11716_v1  ;;  %10703 = vmatpush1.bf16.msra.mxu1 %v10702_v51  ;;  %v6619_v51 = vld [vmem:[#allocation7 + $0x190] sm:$0xff]  ;;  %v10748_v16 = vpack.c.bf16 %v6628_v57, %v6626_v56  ;;  %v7064_v56 = vld [vmem:[#allocation7 + $0x660] sm:$0xff] }
 0xcbd   : > { %v6460_v60 = vmax.f32 %v6454_v58, 0.0  ;;  %10705 = vmatprep.subr.bf16.mxu1 %v10704_v54  ;;  %v6624_v54 = vld [vmem:[#allocation7 + $0x1b8] sm:$0xff]  ;;  %v10742_v23 = vpack.c.bf16 %v6619_v51, %v6617_v50  ;;  %v10746_v58 = vpack.c.bf16 %v6623_v55, %v6621_v47  ;;  %v10830_v51 = vpack.c.bf16 %v6901_v39, %v6899_v38  ;;  %v6905_v55 = vld [vmem:[#allocation7 + $0x470] sm:$0xff]  ;;  %v7081_v39 = vld [vmem:[#allocation7 + $0x6e8] sm:$0xff] }
 0xcbe   : > { %v10744_v41 = vpack.c.bf16 %v6624_v54, %v6622_v42  ;;  %v10894_v42 = vpack.c.bf16 %v7062_v29, %v7060_v15  ;;  %v6903_v54 = vld [vmem:[#allocation7 + $0x460] sm:$0xff]  ;;  %v7066_v57 = vld [vmem:[#allocation7 + $0x670] sm:$0xff]  ;;  %v6922_v38 = vld [vmem:[#allocation7 + $0x4f8] sm:$0xff] }
 0xcbf   : > { %8600 = vmatmul.mubr.msk.f32.gmra.mrb[118].mxu1 %vm5563_vm5, %v6460_v60  ;;  %v6627_v60 = vld [vmem:[#allocation7 + $0x1d0] sm:$0xff]  ;;  %v6919_v29 = vld [vmem:[#allocation7 + $0x4e0] sm:$0xff] }
 0xcc0   : > { %10707 = vmatpush1.bf16.msra.mxu1 %v10706_v59  ;;  %v6625_v59 = vld [vmem:[#allocation7 + $0x1c0] sm:$0xff] }
 0xcc1   : > { %10709 = vmatprep.subr.bf16.mxu1 %v10708_v61  ;;  %v6630_v61 = vld [vmem:[#allocation7 + $0x1e8] sm:$0xff]  ;;  %v10750_v63 = vpack.c.bf16 %v6627_v60, %v6625_v59  ;;  %v7071_v60 = vld [vmem:[#allocation7 + $0x698] sm:$0xff] }
 0xcc2   : > { %v10752_v0 = vpack.c.bf16 %v6632_v62, %v6630_v61  ;;  %v7069_v59 = vld [vmem:[#allocation7 + $0x688] sm:$0xff]  ;;  %v10834_v62 = vpack.c.bf16 %v6905_v55, %v6903_v54  ;;  %v6926_v54 = vld [vmem:[#allocation7 + $0x518] sm:$0xff] }
 0xcc4   : > { %10711 = vmatpush1.bf16.msra.mxu1 %v10710_v12  ;;  %v6631_v12 = vld [vmem:[#allocation7 + $0x1f0] sm:$0xff] }
 0xcc5   : > { %10713 = vmatprep.subr.bf16.mxu1 %v10712_v2  ;;  %v10754_v2 = vpack.c.bf16 %v6631_v12, %v6629_v33  ;;  %v6909_v33 = vld [vmem:[#allocation7 + $0x490] sm:$0xff] }
 0xcc8   : > { %10715 = vmatpush1.bf16.msra.mxu1 %v10714_v7  ;;  %v7055_v7 = vld [vmem:[#allocation7 + $0x618] sm:$0xff] }
 0xcc9   : > { %10717 = vmatprep.subr.bf16.mxu1 %v10716_v8  ;;  %v10884_v8 = vpack.c.bf16 %v7055_v7, %v7053_v5  ;;  %v6914_v7 = vld [vmem:[#allocation7 + $0x4b8] sm:$0xff] }
 0xccb   : > { %10885 = vmatprep.subr.bf16.mxu0 %v10884_v8  ;;  %v7073_v8 = vld [vmem:[#allocation7 + $0x6a8] sm:$0xff] }
 0xccc   : > { %10719 = vmatpush1.bf16.msra.mxu1 %v10718_v27  ;;  %v6896_v27 = vld [vmem:[#allocation7 + $0x428] sm:$0xff]  ;;  %v10904_v30 = vpack.c.bf16 %v7075_v9, %v7073_v8  ;;  %v7088_v9 = vld [vmem:[#allocation7 + $0x720] sm:$0xff] }
 0xccd   : > { %10721 = vmatprep.subr.bf16.mxu1 %v10720_v13  ;;  %v6898_v13 = vld [vmem:[#allocation7 + $0x438] sm:$0xff] }
 0xcce   : > { %v10824_v21 = vpack.c.bf16 %v6898_v13, %v6896_v27  ;;  %v6913_v27 = vld [vmem:[#allocation7 + $0x4b0] sm:$0xff]  ;;  %v10840_v13 = vpack.c.bf16 %v6914_v7, %v6912_v4 }
 0xcd0   : > { %10723 = vmatpush1.bf16.msra.mxu1 %v10722_v14  ;;  %v10886_v14 = vpack.c.bf16 %v7054_v11, %v7052_v17  ;;  %v6911_v11 = vld [vmem:[#allocation7 + $0x4a0] sm:$0xff] }
 0xcd1   : > { %10725 = vmatprep.subr.bf16.mxu1 %v10724_v18  ;;  %v6895_v18 = vld [vmem:[#allocation7 + $0x420] sm:$0xff] }
 0xcd4   : > { %10727 = vmatpush1.bf16.msra.mxu1 %v10726_v24  ;;  %v7056_v24 = vld [vmem:[#allocation7 + $0x620] sm:$0xff] }
 0xcd5   : > { %10729 = vmatprep.subr.bf16.mxu1 %v10728_v25  ;;  %v7058_v25 = vld [vmem:[#allocation7 + $0x630] sm:$0xff] }
 0xcd6   : > { %v10890_v37 = vpack.c.bf16 %v7058_v25, %v7056_v24  ;;  %v6915_v25 = vld [vmem:[#allocation7 + $0x4c0] sm:$0xff] }
 0xcd8   : > { %10731 = vmatpush1.bf16.msra.mxu1 %v10730_v35 }
 0xcd9   : > { %10733 = vmatprep.subr.bf16.mxu1 %v10732_v36  ;;  %v10826_v36 = vpack.c.bf16 %v6897_v19, %v6895_v18  ;;  %v6918_v18 = vld [vmem:[#allocation7 + $0x4d8] sm:$0xff]  ;;  %v7077_v19 = vld [vmem:[#allocation7 + $0x6c8] sm:$0xff] }
 0xcdc   : > { %10735 = vmatpush1.bf16.msra.mxu1 %v10734_v44  ;;  %v10828_v44 = vpack.c.bf16 %v6902_v28, %v6900_v26  ;;  %v6917_v26 = vld [vmem:[#allocation7 + $0x4d0] sm:$0xff] }
 0xcdd   : > { %10737 = vmatprep.subr.bf16.mxu1 %v10736_v45  ;;  %v10892_v45 = vpack.c.bf16 %v7063_v34, %v7061_v31  ;;  %v7076_v34 = vld [vmem:[#allocation7 + $0x6c0] sm:$0xff] }
 0xce0   : > { %10739 = vmatpush1.bf16.msra.mxu1 %v10738_v48  ;;  %v7065_v48 = vld [vmem:[#allocation7 + $0x668] sm:$0xff] }
 0xce1   : > { %10741 = vmatprep.subr.bf16.mxu1 %v10740_v49  ;;  %v7067_v49 = vld [vmem:[#allocation7 + $0x678] sm:$0xff] }
 0xce2   : > { %v10896_v47 = vpack.c.bf16 %v7067_v49, %v7065_v48  ;;  %v7080_v49 = vld [vmem:[#allocation7 + $0x6e0] sm:$0xff] }
 0xce4   : > { %10743 = vmatpush1.bf16.msra.mxu1 %v10742_v23 }
 0xce5   : > { %10745 = vmatprep.subr.bf16.mxu1 %v10744_v41  ;;  %v10832_v41 = vpack.c.bf16 %v6906_v32, %v6904_v46  ;;  %v6921_v46 = vld [vmem:[#allocation7 + $0x4f0] sm:$0xff] }
 0xce6   : > { %v10850_v55 = vpack.c.bf16 %v6921_v46, %v6919_v29  ;;  %v6942_v29 = vld [vmem:[#allocation7 + $0x598] sm:$0xff]  ;;  %v7101_v46 = vld [vmem:[#allocation7 + $0x788] sm:$0xff] }
 0xce8   : > { %10747 = vmatpush1.bf16.msra.mxu1 %v10746_v58  ;;  %v6908_v58 = vld [vmem:[#allocation7 + $0x488] sm:$0xff] }
 0xce9   : > { %10749 = vmatprep.subr.bf16.mxu1 %v10748_v16  ;;  %v6910_v16 = vld [vmem:[#allocation7 + $0x498] sm:$0xff] }
 0xcea   : > { %v10836_v5 = vpack.c.bf16 %v6910_v16, %v6908_v58  ;;  %v6925_v58 = vld [vmem:[#allocation7 + $0x510] sm:$0xff] }
 0xcec   : > { %10751 = vmatpush1.bf16.msra.mxu1 %v10750_v63  ;;  %v10898_v63 = vpack.c.bf16 %v7066_v57, %v7064_v56  ;;  %v6923_v57 = vld [vmem:[#allocation7 + $0x500] sm:$0xff] }
 0xced   : > { %10753 = vmatprep.subr.bf16.mxu1 %v10752_v0  ;;  %v6907_v0 = vld [vmem:[#allocation7 + $0x480] sm:$0xff] }
 0xcee   : > { %v10838_v10 = vpack.c.bf16 %v6909_v33, %v6907_v0  ;;  %v6930_v0 = vld [vmem:[#allocation7 + $0x538] sm:$0xff]  ;;  %v7089_v33 = vld [vmem:[#allocation7 + $0x728] sm:$0xff] }
 0xcf0   : > { %10755 = vmatpush1.bf16.msra.mxu1 %v10754_v2  ;;  %v7068_v2 = vld [vmem:[#allocation7 + $0x680] sm:$0xff] }
 0xcf1   : > { %10821 = vmatprep.subr.bf16.mxu1 %v10820_v6  ;;  %v10900_v6 = vpack.c.bf16 %v7071_v60, %v7069_v59  ;;  %v10902_v17 = vpack.c.bf16 %v7070_v3, %v7068_v2  ;;  %v7084_v60 = vld [vmem:[#allocation7 + $0x700] sm:$0xff]  ;;  %v7091_v2 = vld [vmem:[#allocation7 + $0x738] sm:$0xff]  ;;  %v10854_v3 = vpack.c.bf16 %v6925_v58, %v6923_v57  ;;  %v7105_v58 = vld [vmem:[#allocation7 + $0x7a8] sm:$0xff] }
 0xcf2   : > { %v10920_v8 = vpack.c.bf16 %v7091_v2, %v7089_v33  ;;  %v6946_v57 = vld [vmem:[#allocation7 + $0x5b8] sm:$0xff]  ;;  %v7104_v2 = vld [vmem:[#allocation7 + $0x7a0] sm:$0xff] }
 0xd86   : > { %v12642_v52 = vpop.f32.mrb[112].mxu1 }
 0xd87   : > { %v12644_v20 = vpop.f32.mrb[113].mxu1 }
 0xd88   : > { %6697 = vmatprep.mubr.f32.mxu1 %v12644_v20  ;;  %6858 = vmatprep.mubr.f32.mxu0 %v12644_v20 }
 0xd89   : > { %6698 = vmatmul.mubr.f32.vlgmr.msra.gmra.mrb[120].mxu1 %v12642_v52  ;;  %6859 = vmatmul.mubr.f32.vlgmr.msra.gmra.mrb[86].mxu0 %v12642_v52 }
 0xd8a   : > { %10823 = vmatpush1.bf16.msra.mxu1 %v10822_v53  ;;  %10887 = vmatpush1.bf16.msra.mxu0 %v10886_v14  ;;  %v12650_v35 = vpop.f32.mrb[114].mxu1  ;;  %v7074_v53 = vld [vmem:[#allocation7 + $0x6b0] sm:$0xff]  ;;  %v6916_v14 = vld [vmem:[#allocation7 + $0x4c8] sm:$0xff] }
 0xd8b   : > { %v12652_v43 = vpop.f32.mrb[115].mxu1  ;;  %10825 = vmatprep.subr.bf16.mxu1 %v10824_v21  ;;  %10889 = vmatprep.subr.bf16.mxu0 %v10888_v22  ;;  %v7079_v21 = vld [vmem:[#allocation7 + $0x6d8] sm:$0xff]  ;;  %v10842_v22 = vpack.c.bf16 %v6913_v27, %v6911_v11  ;;  %v10906_v24 = vpack.c.bf16 %v7074_v53, %v7072_v40  ;;  %v10844_v28 = vpack.c.bf16 %v6918_v18, %v6916_v14  ;;  %v7093_v27 = vld [vmem:[#allocation7 + $0x748] sm:$0xff]  ;;  %v6931_v53 = vld [vmem:[#allocation7 + $0x540] sm:$0xff] }
 0xd8c   : > { %6703 = vmatprep.mubr.f32.mxu1 %v12652_v43  ;;  %6864 = vmatprep.mubr.f32.mxu0 %v12652_v43  ;;  %v10908_v31 = vpack.c.bf16 %v7079_v21, %v7077_v19  ;;  %v6934_v11 = vld [vmem:[#allocation7 + $0x558] sm:$0xff]  ;;  %v6933_v14 = vld [vmem:[#allocation7 + $0x550] sm:$0xff]  ;;  %v7092_v21 = vld [vmem:[#allocation7 + $0x740] sm:$0xff] }
 0xd8d   : > { %6704 = vmatmul.mubr.f32.gmra.mrb[122].mxu1 %v12650_v35  ;;  %6865 = vmatmul.mubr.f32.gmra.mrb[88].mxu0 %v12650_v35 }
 0xd8e   : > { %10827 = vmatpush1.bf16.msra.mxu1 %v10826_v36  ;;  %10891 = vmatpush1.bf16.msra.mxu0 %v10890_v37  ;;  %v12658_v50 = vpop.f32.mrb[116].mxu1  ;;  %v7078_v36 = vld [vmem:[#allocation7 + $0x6d0] sm:$0xff]  ;;  %v6920_v37 = vld [vmem:[#allocation7 + $0x4e8] sm:$0xff] }
 0xd8f   : > { %v12660_v23 = vpop.f32.mrb[117].mxu1  ;;  %10829 = vmatprep.subr.bf16.mxu1 %v10828_v44  ;;  %10893 = vmatprep.subr.bf16.mxu0 %v10892_v45  ;;  %v7083_v44 = vld [vmem:[#allocation7 + $0x6f8] sm:$0xff]  ;;  %v10846_v45 = vpack.c.bf16 %v6917_v26, %v6915_v25  ;;  %v10910_v15 = vpack.c.bf16 %v7078_v36, %v7076_v34  ;;  %v10848_v32 = vpack.c.bf16 %v6922_v38, %v6920_v37  ;;  %v7097_v26 = vld [vmem:[#allocation7 + $0x768] sm:$0xff]  ;;  %v6935_v36 = vld [vmem:[#allocation7 + $0x560] sm:$0xff] }
 0xd90   : > { %6709 = vmatprep.mubr.f32.mxu1 %v12660_v23  ;;  %6870 = vmatprep.mubr.f32.mxu0 %v12660_v23  ;;  %v10912_v48 = vpack.c.bf16 %v7083_v44, %v7081_v39  ;;  %v6938_v25 = vld [vmem:[#allocation7 + $0x578] sm:$0xff]  ;;  %v6937_v37 = vld [vmem:[#allocation7 + $0x570] sm:$0xff]  ;;  %v7096_v44 = vld [vmem:[#allocation7 + $0x760] sm:$0xff] }
 0xd91   : > { %6710 = vmatmul.mubr.f32.gmra.mrb[124].mxu1 %v12658_v50  ;;  %6871 = vmatmul.mubr.f32.gmra.mrb[90].mxu0 %v12658_v50 }
 0xd92   : > { %10831 = vmatpush1.bf16.msra.mxu1 %v10830_v51  ;;  %10895 = vmatpush1.bf16.msra.mxu0 %v10894_v42  ;;  %v12666_v61 = vpop.f32.mrb[118].mxu1  ;;  %v7082_v51 = vld [vmem:[#allocation7 + $0x6f0] sm:$0xff]  ;;  %v6924_v42 = vld [vmem:[#allocation7 + $0x508] sm:$0xff] }
 0xd93   : > { %v12668_v12 = vpop.f32.mrb[119].mxu1  ;;  %10833 = vmatprep.subr.bf16.mxu1 %v10832_v41  ;;  %10897 = vmatprep.subr.bf16.mxu0 %v10896_v47  ;;  %v7085_v41 = vld [vmem:[#allocation7 + $0x708] sm:$0xff]  ;;  %v7087_v47 = vld [vmem:[#allocation7 + $0x718] sm:$0xff]  ;;  %v10914_v56 = vpack.c.bf16 %v7082_v51, %v7080_v49  ;;  %v10852_v16 = vpack.c.bf16 %v6926_v54, %v6924_v42  ;;  %v6939_v51 = vld [vmem:[#allocation7 + $0x580] sm:$0xff] }
 0xd94   : > { %6715 = vmatprep.mubr.f32.mxu1 %v12668_v12  ;;  %6876 = vmatprep.mubr.f32.mxu0 %v12668_v12  ;;  %v10916_v59 = vpack.c.bf16 %v7087_v47, %v7085_v41  ;;  %v6941_v42 = vld [vmem:[#allocation7 + $0x590] sm:$0xff]  ;;  %v7100_v47 = vld [vmem:[#allocation7 + $0x780] sm:$0xff] }
 0xd95   : > { %6716 = vmatmul.mubr.f32.gmra.mrb[126].mxu1 %v12666_v61  ;;  %6877 = vmatmul.mubr.f32.gmra.mrb[92].mxu0 %v12666_v61 }
 0xd96   : > { %10835 = vmatpush1.bf16.msra.mxu1 %v10834_v62  ;;  %10899 = vmatpush1.bf16.msra.mxu0 %v10898_v63  ;;  %v7086_v62 = vld [vmem:[#allocation7 + $0x710] sm:$0xff]  ;;  %v6928_v63 = vld [vmem:[#allocation7 + $0x528] sm:$0xff] }
 0xd97   : > { %7019 = vmatprep.mubr.f32.mxu1 %v12644_v20  ;;  %7180 = vmatprep.mubr.f32.mxu0 %v12644_v20  ;;  %v10918_v4 = vpack.c.bf16 %v7086_v62, %v7084_v60  ;;  %v10856_v7 = vpack.c.bf16 %v6930_v0, %v6928_v63  ;;  %v6943_v62 = vld [vmem:[#allocation7 + $0x5a0] sm:$0xff]  ;;  %v6945_v63 = vld [vmem:[#allocation7 + $0x5b0] sm:$0xff] }
 0xd98   : > { %10837 = vmatprep.subr.bf16.mxu1 %v10836_v5  ;;  %10901 = vmatprep.subr.bf16.mxu0 %v10900_v6  ;;  %v6927_v5 = vld [vmem:[#allocation7 + $0x520] sm:$0xff]  ;;  %v6929_v6 = vld [vmem:[#allocation7 + $0x530] sm:$0xff] }
 0xd9a   : > { %10839 = vmatpush1.bf16.msra.mxu1 %v10838_v10  ;;  %10903 = vmatpush1.bf16.msra.mxu0 %v10902_v17  ;;  %v7090_v10 = vld [vmem:[#allocation7 + $0x730] sm:$0xff]  ;;  %v6932_v17 = vld [vmem:[#allocation7 + $0x548] sm:$0xff] }
 0xd9b   : > { %10841 = vmatprep.subr.bf16.mxu1 %v10840_v13  ;;  %10905 = vmatprep.subr.bf16.mxu0 %v10904_v30  ;;  %v7095_v13 = vld [vmem:[#allocation7 + $0x758] sm:$0xff]  ;;  %v10858_v30 = vpack.c.bf16 %v6929_v6, %v6927_v5  ;;  %v10922_v40 = vpack.c.bf16 %v7090_v10, %v7088_v9  ;;  %v10860_v18 = vpack.c.bf16 %v6934_v11, %v6932_v17  ;;  %v7109_v6 = vld [vmem:[#allocation7 + $0x7c8] sm:$0xff]  ;;  %v6947_v10 = vld [vmem:[#allocation7 + $0x5c0] sm:$0xff] }
 0xd9c   : > { %v10924_v19 = vpack.c.bf16 %v7095_v13, %v7093_v27  ;;  %v6950_v5 = vld [vmem:[#allocation7 + $0x5d8] sm:$0xff]  ;;  %v6949_v17 = vld [vmem:[#allocation7 + $0x5d0] sm:$0xff]  ;;  %v7108_v13 = vld [vmem:[#allocation7 + $0x7c0] sm:$0xff] }
 0xd9e   : > { %10843 = vmatpush1.bf16.msra.mxu1 %v10842_v22  ;;  %10907 = vmatpush1.bf16.msra.mxu0 %v10906_v24  ;;  %v7094_v22 = vld [vmem:[#allocation7 + $0x750] sm:$0xff]  ;;  %v6936_v24 = vld [vmem:[#allocation7 + $0x568] sm:$0xff] }
 0xd9f   : > { %10845 = vmatprep.subr.bf16.mxu1 %v10844_v28  ;;  %10909 = vmatprep.subr.bf16.mxu0 %v10908_v31  ;;  %v7099_v28 = vld [vmem:[#allocation7 + $0x778] sm:$0xff]  ;;  %v10862_v31 = vpack.c.bf16 %v6933_v14, %v6931_v53  ;;  %v10926_v34 = vpack.c.bf16 %v7094_v22, %v7092_v21  ;;  %v10864_v38 = vpack.c.bf16 %v6938_v25, %v6936_v24  ;;  %v7113_v14 = vld [vmem:[#allocation7 + $0x7e8] sm:$0xff]  ;;  %v6951_v22 = vld [vmem:[#allocation7 + $0x5e0] sm:$0xff] }
 0xda0   : > { %v10928_v39 = vpack.c.bf16 %v7099_v28, %v7097_v26  ;;  %v6954_v53 = vld [vmem:[#allocation7 + $0x5f8] sm:$0xff]  ;;  %v6953_v24 = vld [vmem:[#allocation7 + $0x5f0] sm:$0xff]  ;;  %v7112_v28 = vld [vmem:[#allocation7 + $0x7e0] sm:$0xff] }
 0xda2   : > { %10847 = vmatpush1.bf16.msra.mxu1 %v10846_v45  ;;  %10911 = vmatpush1.bf16.msra.mxu0 %v10910_v15  ;;  %v7098_v45 = vld [vmem:[#allocation7 + $0x770] sm:$0xff]  ;;  %v6940_v15 = vld [vmem:[#allocation7 + $0x588] sm:$0xff] }
 0xda3   : > { %10849 = vmatprep.subr.bf16.mxu1 %v10848_v32  ;;  %10913 = vmatprep.subr.bf16.mxu0 %v10912_v48  ;;  %v7103_v32 = vld [vmem:[#allocation7 + $0x798] sm:$0xff]  ;;  %v10866_v48 = vpack.c.bf16 %v6937_v37, %v6935_v36  ;;  %v10930_v49 = vpack.c.bf16 %v7098_v45, %v7096_v44  ;;  %v10868_v54 = vpack.c.bf16 %v6942_v29, %v6940_v15  ;;  %v7375_v37 = vld [vmem:[#allocation7 + $0xa08] sm:$0xff]  ;;  %v7213_v29 = vld [vmem:[#allocation7 + $0x800] sm:$0xff] }
 0xda4   : > { %v10932_v41 = vpack.c.bf16 %v7103_v32, %v7101_v46  ;;  %v7216_v36 = vld [vmem:[#allocation7 + $0x818] sm:$0xff]  ;;  %v7215_v46 = vld [vmem:[#allocation7 + $0x810] sm:$0xff]  ;;  %v7374_v32 = vld [vmem:[#allocation7 + $0xa00] sm:$0xff] }
 0xda6   : > { %10851 = vmatpush1.bf16.msra.mxu1 %v10850_v55  ;;  %10915 = vmatpush1.bf16.msra.mxu0 %v10914_v56  ;;  %v7102_v55 = vld [vmem:[#allocation7 + $0x790] sm:$0xff]  ;;  %v6944_v56 = vld [vmem:[#allocation7 + $0x5a8] sm:$0xff] }
 0xda7   : > { %10853 = vmatprep.subr.bf16.mxu1 %v10852_v16  ;;  %10917 = vmatprep.subr.bf16.mxu0 %v10916_v59  ;;  %v7107_v16 = vld [vmem:[#allocation7 + $0x7b8] sm:$0xff]  ;;  %v10870_v59 = vpack.c.bf16 %v6941_v42, %v6939_v51  ;;  %v10934_v60 = vpack.c.bf16 %v7102_v55, %v7100_v47  ;;  %v10872_v0 = vpack.c.bf16 %v6946_v57, %v6944_v56  ;;  %v7379_v42 = vld [vmem:[#allocation7 + $0xa28] sm:$0xff]  ;;  %v7217_v55 = vld [vmem:[#allocation7 + $0x820] sm:$0xff] }
 0xda8   : > { %v10936_v33 = vpack.c.bf16 %v7107_v16, %v7105_v58  ;;  %v7220_v51 = vld [vmem:[#allocation7 + $0x838] sm:$0xff]  ;;  %v7219_v56 = vld [vmem:[#allocation7 + $0x830] sm:$0xff]  ;;  %v7378_v16 = vld [vmem:[#allocation7 + $0xa20] sm:$0xff] }
 0xdaa   : > { %10855 = vmatpush1.bf16.msra.mxu1 %v10854_v3  ;;  %10919 = vmatpush1.bf16.msra.mxu0 %v10918_v4  ;;  %v7106_v3 = vld [vmem:[#allocation7 + $0x7b0] sm:$0xff]  ;;  %v6948_v4 = vld [vmem:[#allocation7 + $0x5c8] sm:$0xff] }
 0xdab   : > { %10857 = vmatprep.subr.bf16.mxu1 %v10856_v7  ;;  %10921 = vmatprep.subr.bf16.mxu0 %v10920_v8  ;;  %v7111_v7 = vld [vmem:[#allocation7 + $0x7d8] sm:$0xff]  ;;  %v10874_v8 = vpack.c.bf16 %v6945_v63, %v6943_v62  ;;  %v10938_v9 = vpack.c.bf16 %v7106_v3, %v7104_v2  ;;  %v10876_v11 = vpack.c.bf16 %v6950_v5, %v6948_v4  ;;  %v7383_v63 = vld [vmem:[#allocation7 + $0xa48] sm:$0xff]  ;;  %v7221_v3 = vld [vmem:[#allocation7 + $0x840] sm:$0xff] }
 0xdac   : > { %v10940_v27 = vpack.c.bf16 %v7111_v7, %v7109_v6  ;;  %v7224_v62 = vld [vmem:[#allocation7 + $0x858] sm:$0xff]  ;;  %v7223_v4 = vld [vmem:[#allocation7 + $0x850] sm:$0xff]  ;;  %v7382_v7 = vld [vmem:[#allocation7 + $0xa40] sm:$0xff] }
 0xdae   : > { %10859 = vmatpush1.bf16.msra.mxu1 %v10858_v30  ;;  %10923 = vmatpush1.bf16.msra.mxu0 %v10922_v40  ;;  %v7110_v30 = vld [vmem:[#allocation7 + $0x7d0] sm:$0xff]  ;;  %v6952_v40 = vld [vmem:[#allocation7 + $0x5e8] sm:$0xff] }
 0xdaf   : > { %10861 = vmatprep.subr.bf16.mxu1 %v10860_v18  ;;  %10925 = vmatprep.subr.bf16.mxu0 %v10924_v19  ;;  %v7115_v18 = vld [vmem:[#allocation7 + $0x7f8] sm:$0xff]  ;;  %v10878_v19 = vpack.c.bf16 %v6949_v17, %v6947_v10  ;;  %v10942_v21 = vpack.c.bf16 %v7110_v30, %v7108_v13  ;;  %v10880_v25 = vpack.c.bf16 %v6954_v53, %v6952_v40  ;;  %v7387_v17 = vld [vmem:[#allocation7 + $0xa68] sm:$0xff]  ;;  %v7225_v30 = vld [vmem:[#allocation7 + $0x860] sm:$0xff] }
 0xdb0   : > { %v10944_v26 = vpack.c.bf16 %v7115_v18, %v7113_v14  ;;  %v7228_v10 = vld [vmem:[#allocation7 + $0x878] sm:$0xff]  ;;  %v7227_v40 = vld [vmem:[#allocation7 + $0x870] sm:$0xff]  ;;  %v7386_v18 = vld [vmem:[#allocation7 + $0xa60] sm:$0xff] }
 0xdb2   : > { %10863 = vmatpush1.bf16.msra.mxu1 %v10862_v31  ;;  %10927 = vmatpush1.bf16.msra.mxu0 %v10926_v34  ;;  %v7114_v31 = vld [vmem:[#allocation7 + $0x7f0] sm:$0xff]  ;;  %v7214_v34 = vld [vmem:[#allocation7 + $0x808] sm:$0xff] }
 0xdb3   : > { %10865 = vmatprep.subr.bf16.mxu1 %v10864_v38  ;;  %10929 = vmatprep.subr.bf16.mxu0 %v10928_v39  ;;  %v7377_v38 = vld [vmem:[#allocation7 + $0xa18] sm:$0xff]  ;;  %v10882_v39 = vpack.c.bf16 %v6953_v24, %v6951_v22  ;;  %v10946_v44 = vpack.c.bf16 %v7114_v31, %v7112_v28  ;;  %v10948_v45 = vpack.c.bf16 %v7216_v36, %v7214_v34  ;;  %v7391_v24 = vld [vmem:[#allocation7 + $0xa88] sm:$0xff]  ;;  %v7229_v31 = vld [vmem:[#allocation7 + $0x880] sm:$0xff] }
 0xdb4   : > { %v11012_v15 = vpack.c.bf16 %v7377_v38, %v7375_v37  ;;  %v7232_v22 = vld [vmem:[#allocation7 + $0x898] sm:$0xff]  ;;  %v7231_v34 = vld [vmem:[#allocation7 + $0x890] sm:$0xff]  ;;  %v7390_v38 = vld [vmem:[#allocation7 + $0xa80] sm:$0xff] }
 0xdb6   : > { %10867 = vmatpush1.bf16.msra.mxu1 %v10866_v48  ;;  %10931 = vmatpush1.bf16.msra.mxu0 %v10930_v49  ;;  %v7376_v48 = vld [vmem:[#allocation7 + $0xa10] sm:$0xff]  ;;  %v7218_v49 = vld [vmem:[#allocation7 + $0x828] sm:$0xff] }
 0xdb7   : > { %10869 = vmatprep.subr.bf16.mxu1 %v10868_v54  ;;  %10933 = vmatprep.subr.bf16.mxu0 %v10932_v41  ;;  %v7381_v54 = vld [vmem:[#allocation7 + $0xa38] sm:$0xff]  ;;  %v10950_v41 = vpack.c.bf16 %v7215_v46, %v7213_v29  ;;  %v11014_v47 = vpack.c.bf16 %v7376_v48, %v7374_v32  ;;  %v10952_v57 = vpack.c.bf16 %v7220_v51, %v7218_v49  ;;  %v7233_v48 = vld [vmem:[#allocation7 + $0x8a0] sm:$0xff]  ;;  %v7235_v49 = vld [vmem:[#allocation7 + $0x8b0] sm:$0xff] }
 0xdb8   : > { %v11016_v58 = vpack.c.bf16 %v7381_v54, %v7379_v42  ;;  %v7397_v29 = vld [vmem:[#allocation7 + $0xab8] sm:$0xff]  ;;  %v10966_v46 = vpack.c.bf16 %v7231_v34, %v7229_v31  ;;  %v7394_v54 = vld [vmem:[#allocation7 + $0xaa0] sm:$0xff]  ;;  %v7411_v34 = vld [vmem:[#allocation7 + $0xb28] sm:$0xff] }
 0xdb9   : > { %v7252_v31 = vld [vmem:[#allocation7 + $0x938] sm:$0xff] }
 0xdba   : > { %10871 = vmatpush1.bf16.msra.mxu1 %v10870_v59  ;;  %10935 = vmatpush1.bf16.msra.mxu0 %v10934_v60  ;;  %v7380_v59 = vld [vmem:[#allocation7 + $0xa30] sm:$0xff]  ;;  %v7222_v60 = vld [vmem:[#allocation7 + $0x848] sm:$0xff] }
 0xdbb   : > { %10873 = vmatprep.subr.bf16.mxu1 %v10872_v0  ;;  %10937 = vmatprep.subr.bf16.mxu0 %v10936_v33  ;;  %v7385_v0 = vld [vmem:[#allocation7 + $0xa58] sm:$0xff]  ;;  %v10954_v33 = vpack.c.bf16 %v7219_v56, %v7217_v55  ;;  %v11018_v2 = vpack.c.bf16 %v7380_v59, %v7378_v16  ;;  %v10956_v5 = vpack.c.bf16 %v7224_v62, %v7222_v60  ;;  %v7399_v56 = vld [vmem:[#allocation7 + $0xac8] sm:$0xff]  ;;  %v7237_v59 = vld [vmem:[#allocation7 + $0x8c0] sm:$0xff] }
 0xdbc   : > { %v11020_v6 = vpack.c.bf16 %v7385_v0, %v7383_v63  ;;  %v7240_v55 = vld [vmem:[#allocation7 + $0x8d8] sm:$0xff]  ;;  %v7239_v60 = vld [vmem:[#allocation7 + $0x8d0] sm:$0xff]  ;;  %v7398_v0 = vld [vmem:[#allocation7 + $0xac0] sm:$0xff] }
 0xdbe   : > { %10875 = vmatpush1.bf16.msra.mxu1 %v10874_v8  ;;  %10939 = vmatpush1.bf16.msra.mxu0 %v10938_v9  ;;  %v7384_v8 = vld [vmem:[#allocation7 + $0xa50] sm:$0xff]  ;;  %v7226_v9 = vld [vmem:[#allocation7 + $0x868] sm:$0xff] }
 0xdbf   : > { %10877 = vmatprep.subr.bf16.mxu1 %v10876_v11  ;;  %10941 = vmatprep.subr.bf16.mxu0 %v10940_v27  ;;  %v7389_v11 = vld [vmem:[#allocation7 + $0xa78] sm:$0xff]  ;;  %v10958_v27 = vpack.c.bf16 %v7223_v4, %v7221_v3  ;;  %v11022_v13 = vpack.c.bf16 %v7384_v8, %v7382_v7  ;;  %v10960_v53 = vpack.c.bf16 %v7228_v10, %v7226_v9  ;;  %v7403_v4 = vld [vmem:[#allocation7 + $0xae8] sm:$0xff]  ;;  %v7241_v8 = vld [vmem:[#allocation7 + $0x8e0] sm:$0xff] }
 0xdc0   : > { %v11024_v14 = vpack.c.bf16 %v7389_v11, %v7387_v17  ;;  %v7244_v3 = vld [vmem:[#allocation7 + $0x8f8] sm:$0xff]  ;;  %v7243_v9 = vld [vmem:[#allocation7 + $0x8f0] sm:$0xff]  ;;  %v7402_v11 = vld [vmem:[#allocation7 + $0xae0] sm:$0xff] }
 0xdc2   : > { %10879 = vmatpush1.bf16.msra.mxu1 %v10878_v19  ;;  %10943 = vmatpush1.bf16.msra.mxu0 %v10942_v21  ;;  %v7388_v19 = vld [vmem:[#allocation7 + $0xa70] sm:$0xff]  ;;  %v7230_v21 = vld [vmem:[#allocation7 + $0x888] sm:$0xff] }
 0xdc3   : > { %10881 = vmatprep.subr.bf16.mxu1 %v10880_v25  ;;  %10945 = vmatprep.subr.bf16.mxu0 %v10944_v26  ;;  %v7393_v25 = vld [vmem:[#allocation7 + $0xa98] sm:$0xff]  ;;  %v10962_v26 = vpack.c.bf16 %v7227_v40, %v7225_v30  ;;  %v11026_v28 = vpack.c.bf16 %v7388_v19, %v7386_v18  ;;  %v10964_v36 = vpack.c.bf16 %v7232_v22, %v7230_v21  ;;  %v7407_v40 = vld [vmem:[#allocation7 + $0xb08] sm:$0xff]  ;;  %v7245_v19 = vld [vmem:[#allocation7 + $0x900] sm:$0xff] }
 0xdc4   : > { %v11028_v37 = vpack.c.bf16 %v7393_v25, %v7391_v24  ;;  %v7248_v30 = vld [vmem:[#allocation7 + $0x918] sm:$0xff]  ;;  %v7247_v21 = vld [vmem:[#allocation7 + $0x910] sm:$0xff]  ;;  %v7406_v25 = vld [vmem:[#allocation7 + $0xb00] sm:$0xff] }
 0xdc6   : > { %10883 = vmatpush1.bf16.msra.mxu1 %v10882_v39  ;;  %10947 = vmatpush1.bf16.msra.mxu0 %v10946_v44  ;;  %v7392_v39 = vld [vmem:[#allocation7 + $0xa90] sm:$0xff]  ;;  %v7234_v44 = vld [vmem:[#allocation7 + $0x8a8] sm:$0xff] }
 0xdc7   : > { %10949 = vmatprep.subr.bf16.mxu1 %v10948_v45  ;;  %11013 = vmatprep.subr.bf16.mxu0 %v11012_v15  ;;  %v7236_v45 = vld [vmem:[#allocation7 + $0x8b8] sm:$0xff]  ;;  %v7395_v15 = vld [vmem:[#allocation7 + $0xaa8] sm:$0xff]  ;;  %v11030_v32 = vpack.c.bf16 %v7392_v39, %v7390_v38  ;;  %v7249_v39 = vld [vmem:[#allocation7 + $0x920] sm:$0xff] }
 0xdc8   : > { %v10968_v51 = vpack.c.bf16 %v7236_v45, %v7234_v44  ;;  %v11032_v42 = vpack.c.bf16 %v7397_v29, %v7395_v15  ;;  %v7251_v44 = vld [vmem:[#allocation7 + $0x930] sm:$0xff]  ;;  %v7410_v29 = vld [vmem:[#allocation7 + $0xb20] sm:$0xff] }
 0xdc9   : > { %7020 = vmatmul.mubr.f32.vlgmr.msra.gmra.mrb[128].mxu1 %v12642_v52  ;;  %7181 = vmatmul.mubr.f32.vlgmr.msra.gmra.mrb[94].mxu0 %v12642_v52 }
 0xdca   : > { %7025 = vmatprep.mubr.f32.mxu1 %v12652_v43  ;;  %7186 = vmatprep.mubr.f32.mxu0 %v12652_v43 }
 0xdcb   : > { %10951 = vmatpush1.bf16.msra.mxu1 %v10950_v41  ;;  %11015 = vmatpush1.bf16.msra.mxu0 %v11014_v47  ;;  %v7396_v41 = vld [vmem:[#allocation7 + $0xab0] sm:$0xff]  ;;  %v7238_v47 = vld [vmem:[#allocation7 + $0x8c8] sm:$0xff] }
 0xdcc   : > { %10953 = vmatprep.subr.bf16.mxu1 %v10952_v57  ;;  %11017 = vmatprep.subr.bf16.mxu0 %v11016_v58  ;;  %v7401_v57 = vld [vmem:[#allocation7 + $0xad8] sm:$0xff]  ;;  %v10970_v58 = vpack.c.bf16 %v7235_v49, %v7233_v48  ;;  %v11034_v16 = vpack.c.bf16 %v7396_v41, %v7394_v54  ;;  %v10972_v62 = vpack.c.bf16 %v7240_v55, %v7238_v47  ;;  %v7415_v49 = vld [vmem:[#allocation7 + $0xb48] sm:$0xff]  ;;  %v7253_v41 = vld [vmem:[#allocation7 + $0x940] sm:$0xff] }
 0xdcd   : > { %7026 = vmatmul.mubr.f32.gmra.mrb[130].mxu1 %v12650_v35  ;;  %7187 = vmatmul.mubr.f32.gmra.mrb[96].mxu0 %v12650_v35  ;;  %v11036_v63 = vpack.c.bf16 %v7401_v57, %v7399_v56  ;;  %v7256_v48 = vld [vmem:[#allocation7 + $0x958] sm:$0xff]  ;;  %v7255_v47 = vld [vmem:[#allocation7 + $0x950] sm:$0xff]  ;;  %v7414_v57 = vld [vmem:[#allocation7 + $0xb40] sm:$0xff] }
 0xdce   : > { %7031 = vmatprep.mubr.f32.mxu1 %v12660_v23  ;;  %7192 = vmatprep.mubr.f32.mxu0 %v12660_v23 }
 0xdcf   : > { %10955 = vmatpush1.bf16.msra.mxu1 %v10954_v33  ;;  %11019 = vmatpush1.bf16.msra.mxu0 %v11018_v2  ;;  %v7400_v33 = vld [vmem:[#allocation7 + $0xad0] sm:$0xff]  ;;  %v7242_v2 = vld [vmem:[#allocation7 + $0x8e8] sm:$0xff] }
 0xdd0   : > { %10957 = vmatprep.subr.bf16.mxu1 %v10956_v5  ;;  %11021 = vmatprep.subr.bf16.mxu0 %v11020_v6  ;;  %v7405_v5 = vld [vmem:[#allocation7 + $0xaf8] sm:$0xff]  ;;  %v10974_v6 = vpack.c.bf16 %v7239_v60, %v7237_v59  ;;  %v11038_v7 = vpack.c.bf16 %v7400_v33, %v7398_v0  ;;  %v10976_v10 = vpack.c.bf16 %v7244_v3, %v7242_v2  ;;  %v7419_v60 = vld [vmem:[#allocation7 + $0xb68] sm:$0xff]  ;;  %v7257_v33 = vld [vmem:[#allocation7 + $0x960] sm:$0xff] }
 0xdd1   : > { %7032 = vmatmul.mubr.f32.gmra.mrb[132].mxu1 %v12658_v50  ;;  %7193 = vmatmul.mubr.f32.gmra.mrb[98].mxu0 %v12658_v50  ;;  %v11040_v17 = vpack.c.bf16 %v7405_v5, %v7403_v4  ;;  %v7260_v59 = vld [vmem:[#allocation7 + $0x978] sm:$0xff]  ;;  %v7259_v2 = vld [vmem:[#allocation7 + $0x970] sm:$0xff]  ;;  %v7418_v5 = vld [vmem:[#allocation7 + $0xb60] sm:$0xff] }
 0xdd2   : > { %7037 = vmatprep.mubr.f32.mxu1 %v12668_v12  ;;  %7198 = vmatprep.mubr.f32.mxu0 %v12668_v12 }
 0xdd3   : > { %10959 = vmatpush1.bf16.msra.mxu1 %v10958_v27  ;;  %11023 = vmatpush1.bf16.msra.mxu0 %v11022_v13  ;;  %v7404_v27 = vld [vmem:[#allocation7 + $0xaf0] sm:$0xff]  ;;  %v7246_v13 = vld [vmem:[#allocation7 + $0x908] sm:$0xff] }
 0xdd4   : > { %10961 = vmatprep.subr.bf16.mxu1 %v10960_v53  ;;  %11025 = vmatprep.subr.bf16.mxu0 %v11024_v14  ;;  %v7409_v53 = vld [vmem:[#allocation7 + $0xb18] sm:$0xff]  ;;  %v10978_v14 = vpack.c.bf16 %v7243_v9, %v7241_v8  ;;  %v11042_v18 = vpack.c.bf16 %v7404_v27, %v7402_v11  ;;  %v10980_v22 = vpack.c.bf16 %v7248_v30, %v7246_v13  ;;  %v7423_v9 = vld [vmem:[#allocation7 + $0xb88] sm:$0xff]  ;;  %v7261_v27 = vld [vmem:[#allocation7 + $0x980] sm:$0xff] }
 0xdd5   : > { %7038 = vmatmul.mubr.f32.gmra.mrb[134].mxu1 %v12666_v61  ;;  %7199 = vmatmul.mubr.f32.gmra.mrb[100].mxu0 %v12666_v61  ;;  %v11044_v24 = vpack.c.bf16 %v7409_v53, %v7407_v40  ;;  %v7264_v8 = vld [vmem:[#allocation7 + $0x998] sm:$0xff]  ;;  %v7263_v13 = vld [vmem:[#allocation7 + $0x990] sm:$0xff]  ;;  %v7422_v53 = vld [vmem:[#allocation7 + $0xb80] sm:$0xff] }
 0xdd6   : > { %7341 = vmatprep.mubr.f32.mxu1 %v12644_v20  ;;  %7502 = vmatprep.mubr.f32.mxu0 %v12644_v20 }
 0xdd7   : > { %10963 = vmatpush1.bf16.msra.mxu1 %v10962_v26  ;;  %11027 = vmatpush1.bf16.msra.mxu0 %v11026_v28  ;;  %v7408_v26 = vld [vmem:[#allocation7 + $0xb10] sm:$0xff]  ;;  %v7250_v28 = vld [vmem:[#allocation7 + $0x928] sm:$0xff] }
 0xdd8   : > { %10965 = vmatprep.subr.bf16.mxu1 %v10964_v36  ;;  %11029 = vmatprep.subr.bf16.mxu0 %v11028_v37  ;;  %v7413_v36 = vld [vmem:[#allocation7 + $0xb38] sm:$0xff]  ;;  %v10982_v37 = vpack.c.bf16 %v7247_v21, %v7245_v19  ;;  %v11046_v38 = vpack.c.bf16 %v7408_v26, %v7406_v25  ;;  %v10984_v45 = vpack.c.bf16 %v7252_v31, %v7250_v28  ;;  %v7427_v21 = vld [vmem:[#allocation7 + $0xba8] sm:$0xff]  ;;  %v7265_v26 = vld [vmem:[#allocation7 + $0x9a0] sm:$0xff] }
 0xdd9   : > { %v11048_v15 = vpack.c.bf16 %v7413_v36, %v7411_v34  ;;  %v7268_v19 = vld [vmem:[#allocation7 + $0x9b8] sm:$0xff]  ;;  %v7267_v28 = vld [vmem:[#allocation7 + $0x9b0] sm:$0xff]  ;;  %v7426_v36 = vld [vmem:[#allocation7 + $0xba0] sm:$0xff] }
 0xddb   : > { %10967 = vmatpush1.bf16.msra.mxu1 %v10966_v46  ;;  %11031 = vmatpush1.bf16.msra.mxu0 %v11030_v32  ;;  %v7412_v46 = vld [vmem:[#allocation7 + $0xb30] sm:$0xff]  ;;  %v7254_v32 = vld [vmem:[#allocation7 + $0x948] sm:$0xff] }
 0xddc   : > { %10969 = vmatprep.subr.bf16.mxu1 %v10968_v51  ;;  %11033 = vmatprep.subr.bf16.mxu0 %v11032_v42  ;;  %v7417_v51 = vld [vmem:[#allocation7 + $0xb58] sm:$0xff]  ;;  %v10986_v42 = vpack.c.bf16 %v7251_v44, %v7249_v39  ;;  %v11050_v54 = vpack.c.bf16 %v7412_v46, %v7410_v29  ;;  %v10988_v55 = vpack.c.bf16 %v7256_v48, %v7254_v32  ;;  %v7431_v44 = vld [vmem:[#allocation7 + $0xbc8] sm:$0xff]  ;;  %v7269_v46 = vld [vmem:[#allocation7 + $0x9c0] sm:$0xff] }
 0xddd   : > { %v11052_v56 = vpack.c.bf16 %v7417_v51, %v7415_v49  ;;  %v7272_v39 = vld [vmem:[#allocation7 + $0x9d8] sm:$0xff]  ;;  %v7271_v32 = vld [vmem:[#allocation7 + $0x9d0] sm:$0xff]  ;;  %v7430_v51 = vld [vmem:[#allocation7 + $0xbc0] sm:$0xff] }
 0xddf   : > { %10971 = vmatpush1.bf16.msra.mxu1 %v10970_v58  ;;  %11035 = vmatpush1.bf16.msra.mxu0 %v11034_v16  ;;  %v7416_v58 = vld [vmem:[#allocation7 + $0xb50] sm:$0xff]  ;;  %v7258_v16 = vld [vmem:[#allocation7 + $0x968] sm:$0xff] }
 0xde0   : > { %10973 = vmatprep.subr.bf16.mxu1 %v10972_v62  ;;  %11037 = vmatprep.subr.bf16.mxu0 %v11036_v63  ;;  %v7421_v62 = vld [vmem:[#allocation7 + $0xb78] sm:$0xff]  ;;  %v10990_v63 = vpack.c.bf16 %v7255_v47, %v7253_v41  ;;  %v11054_v0 = vpack.c.bf16 %v7416_v58, %v7414_v57  ;;  %v10992_v3 = vpack.c.bf16 %v7260_v59, %v7258_v16  ;;  %v7435_v47 = vld [vmem:[#allocation7 + $0xbe8] sm:$0xff]  ;;  %v7273_v58 = vld [vmem:[#allocation7 + $0x9e0] sm:$0xff] }
 0xde1   : > { %v11056_v4 = vpack.c.bf16 %v7421_v62, %v7419_v60  ;;  %v7276_v41 = vld [vmem:[#allocation7 + $0x9f8] sm:$0xff]  ;;  %v7275_v16 = vld [vmem:[#allocation7 + $0x9f0] sm:$0xff]  ;;  %v7434_v62 = vld [vmem:[#allocation7 + $0xbe0] sm:$0xff] }
 0xde3   : > { %10975 = vmatpush1.bf16.msra.mxu1 %v10974_v6  ;;  %11039 = vmatpush1.bf16.msra.mxu0 %v11038_v7  ;;  %v7420_v6 = vld [vmem:[#allocation7 + $0xb70] sm:$0xff]  ;;  %v7262_v7 = vld [vmem:[#allocation7 + $0x988] sm:$0xff] }
 0xde4   : > { %10977 = vmatprep.subr.bf16.mxu1 %v10976_v10  ;;  %11041 = vmatprep.subr.bf16.mxu0 %v11040_v17  ;;  %v7425_v10 = vld [vmem:[#allocation7 + $0xb98] sm:$0xff]  ;;  %v10994_v17 = vpack.c.bf16 %v7259_v2, %v7257_v33  ;;  %v11058_v11 = vpack.c.bf16 %v7420_v6, %v7418_v5  ;;  %v10996_v30 = vpack.c.bf16 %v7264_v8, %v7262_v7  ;;  %v7697_v2 = vld [vmem:[#allocation7 + $0xe08] sm:$0xff]  ;;  %v7535_v8 = vld [vmem:[#allocation7 + $0xc00] sm:$0xff] }
 0xde5   : > { %v11060_v40 = vpack.c.bf16 %v7425_v10, %v7423_v9  ;;  %v7538_v33 = vld [vmem:[#allocation7 + $0xc18] sm:$0xff]  ;;  %v7537_v9 = vld [vmem:[#allocation7 + $0xc10] sm:$0xff]  ;;  %v7696_v10 = vld [vmem:[#allocation7 + $0xe00] sm:$0xff] }
 0xde7   : > { %10979 = vmatpush1.bf16.msra.mxu1 %v10978_v14  ;;  %11043 = vmatpush1.bf16.msra.mxu0 %v11042_v18  ;;  %v7424_v14 = vld [vmem:[#allocation7 + $0xb90] sm:$0xff]  ;;  %v7266_v18 = vld [vmem:[#allocation7 + $0x9a8] sm:$0xff] }
 0xde8   : > { %10981 = vmatprep.subr.bf16.mxu1 %v10980_v22  ;;  %11045 = vmatprep.subr.bf16.mxu0 %v11044_v24  ;;  %v7429_v22 = vld [vmem:[#allocation7 + $0xbb8] sm:$0xff]  ;;  %v10998_v24 = vpack.c.bf16 %v7263_v13, %v7261_v27  ;;  %v11062_v25 = vpack.c.bf16 %v7424_v14, %v7422_v53  ;;  %v11000_v31 = vpack.c.bf16 %v7268_v19, %v7266_v18  ;;  %v7701_v13 = vld [vmem:[#allocation7 + $0xe28] sm:$0xff]  ;;  %v7539_v14 = vld [vmem:[#allocation7 + $0xc20] sm:$0xff] }
 0xde9   : > { %v11064_v34 = vpack.c.bf16 %v7429_v22, %v7427_v21  ;;  %v7542_v27 = vld [vmem:[#allocation7 + $0xc38] sm:$0xff]  ;;  %v7541_v18 = vld [vmem:[#allocation7 + $0xc30] sm:$0xff]  ;;  %v7700_v22 = vld [vmem:[#allocation7 + $0xe20] sm:$0xff] }
 0xdeb   : > { %10983 = vmatpush1.bf16.msra.mxu1 %v10982_v37  ;;  %11047 = vmatpush1.bf16.msra.mxu0 %v11046_v38  ;;  %v7428_v37 = vld [vmem:[#allocation7 + $0xbb0] sm:$0xff]  ;;  %v7270_v38 = vld [vmem:[#allocation7 + $0x9c8] sm:$0xff] }
 0xdec   : > { %10985 = vmatprep.subr.bf16.mxu1 %v10984_v45  ;;  %11049 = vmatprep.subr.bf16.mxu0 %v11048_v15  ;;  %v7433_v45 = vld [vmem:[#allocation7 + $0xbd8] sm:$0xff]  ;;  %v11002_v15 = vpack.c.bf16 %v7267_v28, %v7265_v26  ;;  %v11066_v29 = vpack.c.bf16 %v7428_v37, %v7426_v36  ;;  %v11004_v48 = vpack.c.bf16 %v7272_v39, %v7270_v38  ;;  %v7705_v28 = vld [vmem:[#allocation7 + $0xe48] sm:$0xff]  ;;  %v7543_v37 = vld [vmem:[#allocation7 + $0xc40] sm:$0xff] }
 0xded   : > { %v11068_v49 = vpack.c.bf16 %v7433_v45, %v7431_v44  ;;  %v7546_v26 = vld [vmem:[#allocation7 + $0xc58] sm:$0xff]  ;;  %v7545_v38 = vld [vmem:[#allocation7 + $0xc50] sm:$0xff]  ;;  %v7704_v45 = vld [vmem:[#allocation7 + $0xe40] sm:$0xff] }
 0xdef   : > { %10987 = vmatpush1.bf16.msra.mxu1 %v10986_v42  ;;  %11051 = vmatpush1.bf16.msra.mxu0 %v11050_v54  ;;  %v7432_v42 = vld [vmem:[#allocation7 + $0xbd0] sm:$0xff]  ;;  %v7274_v54 = vld [vmem:[#allocation7 + $0x9e8] sm:$0xff] }
 0xdf0   : > { %10989 = vmatprep.subr.bf16.mxu1 %v10988_v55  ;;  %11053 = vmatprep.subr.bf16.mxu0 %v11052_v56  ;;  %v7437_v55 = vld [vmem:[#allocation7 + $0xbf8] sm:$0xff]  ;;  %v11006_v56 = vpack.c.bf16 %v7271_v32, %v7269_v46  ;;  %v11070_v57 = vpack.c.bf16 %v7432_v42, %v7430_v51  ;;  %v11008_v59 = vpack.c.bf16 %v7276_v41, %v7274_v54  ;;  %v7709_v32 = vld [vmem:[#allocation7 + $0xe68] sm:$0xff]  ;;  %v7547_v42 = vld [vmem:[#allocation7 + $0xc60] sm:$0xff] }
 0xdf1   : > { %v11072_v60 = vpack.c.bf16 %v7437_v55, %v7435_v47  ;;  %v7550_v46 = vld [vmem:[#allocation7 + $0xc78] sm:$0xff]  ;;  %v7549_v54 = vld [vmem:[#allocation7 + $0xc70] sm:$0xff]  ;;  %v7708_v55 = vld [vmem:[#allocation7 + $0xe60] sm:$0xff] }
 0xdf3   : > { %10991 = vmatpush1.bf16.msra.mxu1 %v10990_v63  ;;  %11055 = vmatpush1.bf16.msra.mxu0 %v11054_v0  ;;  %v7436_v63 = vld [vmem:[#allocation7 + $0xbf0] sm:$0xff]  ;;  %v7536_v0 = vld [vmem:[#allocation7 + $0xc08] sm:$0xff] }
 0xdf4   : > { %10993 = vmatprep.subr.bf16.mxu1 %v10992_v3  ;;  %11057 = vmatprep.subr.bf16.mxu0 %v11056_v4  ;;  %v7699_v3 = vld [vmem:[#allocation7 + $0xe18] sm:$0xff]  ;;  %v11010_v4 = vpack.c.bf16 %v7275_v16, %v7273_v58  ;;  %v11074_v5 = vpack.c.bf16 %v7436_v63, %v7434_v62  ;;  %v11076_v6 = vpack.c.bf16 %v7538_v33, %v7536_v0  ;;  %v7713_v16 = vld [vmem:[#allocation7 + $0xe88] sm:$0xff]  ;;  %v7551_v63 = vld [vmem:[#allocation7 + $0xc80] sm:$0xff] }
 0xdf5   : > { %v11140_v7 = vpack.c.bf16 %v7699_v3, %v7697_v2  ;;  %v7554_v58 = vld [vmem:[#allocation7 + $0xc98] sm:$0xff]  ;;  %v7553_v0 = vld [vmem:[#allocation7 + $0xc90] sm:$0xff]  ;;  %v7712_v3 = vld [vmem:[#allocation7 + $0xe80] sm:$0xff] }
 0xdf7   : > { %10995 = vmatpush1.bf16.msra.mxu1 %v10994_v17  ;;  %11059 = vmatpush1.bf16.msra.mxu0 %v11058_v11  ;;  %v7698_v17 = vld [vmem:[#allocation7 + $0xe10] sm:$0xff]  ;;  %v7540_v11 = vld [vmem:[#allocation7 + $0xc28] sm:$0xff] }
 0xdf8   : > { %10997 = vmatprep.subr.bf16.mxu1 %v10996_v30  ;;  %11061 = vmatprep.subr.bf16.mxu0 %v11060_v40  ;;  %v7703_v30 = vld [vmem:[#allocation7 + $0xe38] sm:$0xff]  ;;  %v11078_v40 = vpack.c.bf16 %v7537_v9, %v7535_v8  ;;  %v11142_v53 = vpack.c.bf16 %v7698_v17, %v7696_v10  ;;  %v11080_v19 = vpack.c.bf16 %v7542_v27, %v7540_v11  ;;  %v7555_v17 = vld [vmem:[#allocation7 + $0xca0] sm:$0xff]  ;;  %v7557_v11 = vld [vmem:[#allocation7 + $0xcb0] sm:$0xff] }
 0xdf9   : > { %v11144_v21 = vpack.c.bf16 %v7703_v30, %v7701_v13  ;;  %v7719_v8 = vld [vmem:[#allocation7 + $0xeb8] sm:$0xff]  ;;  %v11094_v9 = vpack.c.bf16 %v7553_v0, %v7551_v63  ;;  %v7716_v30 = vld [vmem:[#allocation7 + $0xea0] sm:$0xff]  ;;  %v7733_v0 = vld [vmem:[#allocation7 + $0xf28] sm:$0xff] }
 0xdfa   : > { %v7574_v63 = vld [vmem:[#allocation7 + $0xd38] sm:$0xff] }
 0xdfb   : > { %10999 = vmatpush1.bf16.msra.mxu1 %v10998_v24  ;;  %11063 = vmatpush1.bf16.msra.mxu0 %v11062_v25  ;;  %v7702_v24 = vld [vmem:[#allocation7 + $0xe30] sm:$0xff]  ;;  %v7544_v25 = vld [vmem:[#allocation7 + $0xc48] sm:$0xff] }
 0xdfc   : > { %11001 = vmatprep.subr.bf16.mxu1 %v11000_v31  ;;  %11065 = vmatprep.subr.bf16.mxu0 %v11064_v34  ;;  %v7707_v31 = vld [vmem:[#allocation7 + $0xe58] sm:$0xff]  ;;  %v11082_v34 = vpack.c.bf16 %v7541_v18, %v7539_v14  ;;  %v11146_v36 = vpack.c.bf16 %v7702_v24, %v7700_v22  ;;  %v11084_v39 = vpack.c.bf16 %v7546_v26, %v7544_v25  ;;  %v7721_v18 = vld [vmem:[#allocation7 + $0xec8] sm:$0xff]  ;;  %v7559_v24 = vld [vmem:[#allocation7 + $0xcc0] sm:$0xff] }
 0xdfd   : > { %v11148_v44 = vpack.c.bf16 %v7707_v31, %v7705_v28  ;;  %v7562_v14 = vld [vmem:[#allocation7 + $0xcd8] sm:$0xff]  ;;  %v7561_v25 = vld [vmem:[#allocation7 + $0xcd0] sm:$0xff]  ;;  %v7720_v31 = vld [vmem:[#allocation7 + $0xec0] sm:$0xff] }
 0xdff   : > { %11003 = vmatpush1.bf16.msra.mxu1 %v11002_v15  ;;  %11067 = vmatpush1.bf16.msra.mxu0 %v11066_v29  ;;  %v7706_v15 = vld [vmem:[#allocation7 + $0xe50] sm:$0xff]  ;;  %v7548_v29 = vld [vmem:[#allocation7 + $0xc68] sm:$0xff] }
 0xe00   : > { %11005 = vmatprep.subr.bf16.mxu1 %v11004_v48  ;;  %11069 = vmatprep.subr.bf16.mxu0 %v11068_v49  ;;  %v7711_v48 = vld [vmem:[#allocation7 + $0xe78] sm:$0xff]  ;;  %v11086_v49 = vpack.c.bf16 %v7545_v38, %v7543_v37  ;;  %v11150_v51 = vpack.c.bf16 %v7706_v15, %v7704_v45  ;;  %v11088_v41 = vpack.c.bf16 %v7550_v46, %v7548_v29  ;;  %v7725_v38 = vld [vmem:[#allocation7 + $0xee8] sm:$0xff]  ;;  %v7563_v15 = vld [vmem:[#allocation7 + $0xce0] sm:$0xff] }
 0xe01   : > { %v11152_v47 = vpack.c.bf16 %v7711_v48, %v7709_v32  ;;  %v7566_v37 = vld [vmem:[#allocation7 + $0xcf8] sm:$0xff]  ;;  %v7565_v29 = vld [vmem:[#allocation7 + $0xcf0] sm:$0xff]  ;;  %v7724_v48 = vld [vmem:[#allocation7 + $0xee0] sm:$0xff] }
 0xe03   : > { %11007 = vmatpush1.bf16.msra.mxu1 %v11006_v56  ;;  %11071 = vmatpush1.bf16.msra.mxu0 %v11070_v57  ;;  %v7710_v56 = vld [vmem:[#allocation7 + $0xe70] sm:$0xff]  ;;  %v7552_v57 = vld [vmem:[#allocation7 + $0xc88] sm:$0xff] }
 0xe04   : > { %11009 = vmatprep.subr.bf16.mxu1 %v11008_v59  ;;  %11073 = vmatprep.subr.bf16.mxu0 %v11072_v60  ;;  %v7715_v59 = vld [vmem:[#allocation7 + $0xe98] sm:$0xff]  ;;  %v11090_v60 = vpack.c.bf16 %v7549_v54, %v7547_v42  ;;  %v11154_v62 = vpack.c.bf16 %v7710_v56, %v7708_v55  ;;  %v11092_v33 = vpack.c.bf16 %v7554_v58, %v7552_v57  ;;  %v7729_v54 = vld [vmem:[#allocation7 + $0xf08] sm:$0xff]  ;;  %v7567_v56 = vld [vmem:[#allocation7 + $0xd00] sm:$0xff] }
 0xe05   : > { %v11156_v2 = vpack.c.bf16 %v7715_v59, %v7713_v16  ;;  %v7570_v42 = vld [vmem:[#allocation7 + $0xd18] sm:$0xff]  ;;  %v7569_v57 = vld [vmem:[#allocation7 + $0xd10] sm:$0xff]  ;;  %v7728_v59 = vld [vmem:[#allocation7 + $0xf00] sm:$0xff] }
 0xe07   : > { %11011 = vmatpush1.bf16.msra.mxu1 %v11010_v4  ;;  %11075 = vmatpush1.bf16.msra.mxu0 %v11074_v5  ;;  %v7714_v4 = vld [vmem:[#allocation7 + $0xe90] sm:$0xff]  ;;  %v7556_v5 = vld [vmem:[#allocation7 + $0xca8] sm:$0xff] }
 0xe08   : > { %11077 = vmatprep.subr.bf16.mxu1 %v11076_v6  ;;  %11141 = vmatprep.subr.bf16.mxu0 %v11140_v7  ;;  %v7558_v6 = vld [vmem:[#allocation7 + $0xcb8] sm:$0xff]  ;;  %v7717_v7 = vld [vmem:[#allocation7 + $0xea8] sm:$0xff]  ;;  %v11158_v10 = vpack.c.bf16 %v7714_v4, %v7712_v3  ;;  %v7571_v4 = vld [vmem:[#allocation7 + $0xd20] sm:$0xff] }
 0xe09   : > { %v11096_v27 = vpack.c.bf16 %v7558_v6, %v7556_v5  ;;  %v11160_v13 = vpack.c.bf16 %v7719_v8, %v7717_v7  ;;  %v7573_v5 = vld [vmem:[#allocation7 + $0xd30] sm:$0xff]  ;;  %v7732_v8 = vld [vmem:[#allocation7 + $0xf20] sm:$0xff] }
 0xe0a   : > { %7342 = vmatmul.mubr.f32.vlgmr.msra.gmra.mrb[136].mxu1 %v12642_v52  ;;  %7503 = vmatmul.mubr.f32.vlgmr.msra.gmra.mrb[102].mxu0 %v12642_v52 }
 0xe0b   : > { %7347 = vmatprep.mubr.f32.mxu1 %v12652_v43  ;;  %7508 = vmatprep.mubr.f32.mxu0 %v12652_v43 }
 0xe0c   : > { %11079 = vmatpush1.bf16.msra.mxu1 %v11078_v40  ;;  %11143 = vmatpush1.bf16.msra.mxu0 %v11142_v53  ;;  %v7718_v40 = vld [vmem:[#allocation7 + $0xeb0] sm:$0xff]  ;;  %v7560_v53 = vld [vmem:[#allocation7 + $0xcc8] sm:$0xff] }
 0xe0d   : > { %11081 = vmatprep.subr.bf16.mxu1 %v11080_v19  ;;  %11145 = vmatprep.subr.bf16.mxu0 %v11144_v21  ;;  %v7723_v19 = vld [vmem:[#allocation7 + $0xed8] sm:$0xff]  ;;  %v11098_v21 = vpack.c.bf16 %v7557_v11, %v7555_v17  ;;  %v11162_v22 = vpack.c.bf16 %v7718_v40, %v7716_v30  ;;  %v11100_v26 = vpack.c.bf16 %v7562_v14, %v7560_v53  ;;  %v7737_v11 = vld [vmem:[#allocation7 + $0xf48] sm:$0xff]  ;;  %v7575_v40 = vld [vmem:[#allocation7 + $0xd40] sm:$0xff] }
 0xe0e   : > { %7348 = vmatmul.mubr.f32.gmra.mrb[138].mxu1 %v12650_v35  ;;  %7509 = vmatmul.mubr.f32.gmra.mrb[104].mxu0 %v12650_v35  ;;  %v11164_v28 = vpack.c.bf16 %v7723_v19, %v7721_v18  ;;  %v7578_v17 = vld [vmem:[#allocation7 + $0xd58] sm:$0xff]  ;;  %v7577_v53 = vld [vmem:[#allocation7 + $0xd50] sm:$0xff]  ;;  %v7736_v19 = vld [vmem:[#allocation7 + $0xf40] sm:$0xff] }
 0xe0f   : > { %7353 = vmatprep.mubr.f32.mxu1 %v12660_v23  ;;  %7514 = vmatprep.mubr.f32.mxu0 %v12660_v23 }
 0xe10   : > { %11083 = vmatpush1.bf16.msra.mxu1 %v11082_v34  ;;  %11147 = vmatpush1.bf16.msra.mxu0 %v11146_v36  ;;  %v7722_v34 = vld [vmem:[#allocation7 + $0xed0] sm:$0xff]  ;;  %v7564_v36 = vld [vmem:[#allocation7 + $0xce8] sm:$0xff] }
 0xe11   : > { %11085 = vmatprep.subr.bf16.mxu1 %v11084_v39  ;;  %11149 = vmatprep.subr.bf16.mxu0 %v11148_v44  ;;  %v7727_v39 = vld [vmem:[#allocation7 + $0xef8] sm:$0xff]  ;;  %v11102_v44 = vpack.c.bf16 %v7561_v25, %v7559_v24  ;;  %v11166_v45 = vpack.c.bf16 %v7722_v34, %v7720_v31  ;;  %v11104_v46 = vpack.c.bf16 %v7566_v37, %v7564_v36  ;;  %v7741_v25 = vld [vmem:[#allocation7 + $0xf68] sm:$0xff]  ;;  %v7579_v34 = vld [vmem:[#allocation7 + $0xd60] sm:$0xff] }
 0xe12   : > { %7354 = vmatmul.mubr.f32.gmra.mrb[140].mxu1 %v12658_v50  ;;  %7515 = vmatmul.mubr.f32.gmra.mrb[106].mxu0 %v12658_v50  ;;  %v11168_v32 = vpack.c.bf16 %v7727_v39, %v7725_v38  ;;  %v7582_v24 = vld [vmem:[#allocation7 + $0xd78] sm:$0xff]  ;;  %v7581_v36 = vld [vmem:[#allocation7 + $0xd70] sm:$0xff]  ;;  %v7740_v39 = vld [vmem:[#allocation7 + $0xf60] sm:$0xff] }
 0xe13   : > { %7359 = vmatprep.mubr.f32.mxu1 %v12668_v12  ;;  %7520 = vmatprep.mubr.f32.mxu0 %v12668_v12 }
 0xe14   : > { %11087 = vmatpush1.bf16.msra.mxu1 %v11086_v49  ;;  %11151 = vmatpush1.bf16.msra.mxu0 %v11150_v51  ;;  %v7726_v49 = vld [vmem:[#allocation7 + $0xef0] sm:$0xff]  ;;  %v7568_v51 = vld [vmem:[#allocation7 + $0xd08] sm:$0xff] }
 0xe15   : > { %11089 = vmatprep.subr.bf16.mxu1 %v11088_v41  ;;  %11153 = vmatprep.subr.bf16.mxu0 %v11152_v47  ;;  %v7731_v41 = vld [vmem:[#allocation7 + $0xf18] sm:$0xff]  ;;  %v11106_v47 = vpack.c.bf16 %v7565_v29, %v7563_v15  ;;  %v11170_v55 = vpack.c.bf16 %v7726_v49, %v7724_v48  ;;  %v11108_v58 = vpack.c.bf16 %v7570_v42, %v7568_v51  ;;  %v7745_v29 = vld [vmem:[#allocation7 + $0xf88] sm:$0xff]  ;;  %v7583_v49 = vld [vmem:[#allocation7 + $0xd80] sm:$0xff] }
 0xe16   : > { %7360 = vmatmul.mubr.f32.gmra.mrb[142].mxu1 %v12666_v61  ;;  %7521 = vmatmul.mubr.f32.gmra.mrb[108].mxu0 %v12666_v61  ;;  %v11172_v16 = vpack.c.bf16 %v7731_v41, %v7729_v54  ;;  %v7586_v15 = vld [vmem:[#allocation7 + $0xd98] sm:$0xff]  ;;  %v7585_v51 = vld [vmem:[#allocation7 + $0xd90] sm:$0xff]  ;;  %v7744_v41 = vld [vmem:[#allocation7 + $0xf80] sm:$0xff] }
 0xe17   : > { %7663 = vmatprep.mubr.f32.mxu1 %v12644_v20  ;;  %7824 = vmatprep.mubr.f32.mxu0 %v12644_v20 }
 0xe18   : > { %11091 = vmatpush1.bf16.msra.mxu1 %v11090_v60  ;;  %11155 = vmatpush1.bf16.msra.mxu0 %v11154_v62  ;;  %v7730_v60 = vld [vmem:[#allocation7 + $0xf10] sm:$0xff]  ;;  %v7572_v62 = vld [vmem:[#allocation7 + $0xd28] sm:$0xff] }
 0xe19   : > { %11093 = vmatprep.subr.bf16.mxu1 %v11092_v33  ;;  %11157 = vmatprep.subr.bf16.mxu0 %v11156_v2  ;;  %v7735_v33 = vld [vmem:[#allocation7 + $0xf38] sm:$0xff]  ;;  %v11110_v2 = vpack.c.bf16 %v7569_v57, %v7567_v56  ;;  %v11174_v3 = vpack.c.bf16 %v7730_v60, %v7728_v59  ;;  %v11112_v6 = vpack.c.bf16 %v7574_v63, %v7572_v62  ;;  %v7749_v57 = vld [vmem:[#allocation7 + $0xfa8] sm:$0xff]  ;;  %v7587_v60 = vld [vmem:[#allocation7 + $0xda0] sm:$0xff] }
 0xe1a   : > { %v11176_v7 = vpack.c.bf16 %v7735_v33, %v7733_v0  ;;  %v7590_v56 = vld [vmem:[#allocation7 + $0xdb8] sm:$0xff]  ;;  %v7589_v62 = vld [vmem:[#allocation7 + $0xdb0] sm:$0xff]  ;;  %v7748_v33 = vld [vmem:[#allocation7 + $0xfa0] sm:$0xff] }
 0xe1c   : > { %11095 = vmatpush1.bf16.msra.mxu1 %v11094_v9  ;;  %11159 = vmatpush1.bf16.msra.mxu0 %v11158_v10  ;;  %v7734_v9 = vld [vmem:[#allocation7 + $0xf30] sm:$0xff]  ;;  %v7576_v10 = vld [vmem:[#allocation7 + $0xd48] sm:$0xff] }
 0xe1d   : > { %11097 = vmatprep.subr.bf16.mxu1 %v11096_v27  ;;  %11161 = vmatprep.subr.bf16.mxu0 %v11160_v13  ;;  %v7739_v27 = vld [vmem:[#allocation7 + $0xf58] sm:$0xff]  ;;  %v11114_v13 = vpack.c.bf16 %v7573_v5, %v7571_v4  ;;  %v11178_v30 = vpack.c.bf16 %v7734_v9, %v7732_v8  ;;  %v11116_v14 = vpack.c.bf16 %v7578_v17, %v7576_v10  ;;  %v7753_v5 = vld [vmem:[#allocation7 + $0xfc8] sm:$0xff]  ;;  %v7591_v9 = vld [vmem:[#allocation7 + $0xdc0] sm:$0xff] }
 0xe1e   : > { %v11180_v18 = vpack.c.bf16 %v7739_v27, %v7737_v11  ;;  %v7594_v4 = vld [vmem:[#allocation7 + $0xdd8] sm:$0xff]  ;;  %v7593_v10 = vld [vmem:[#allocation7 + $0xdd0] sm:$0xff]  ;;  %v7752_v27 = vld [vmem:[#allocation7 + $0xfc0] sm:$0xff] }
 0xe20   : > { %11099 = vmatpush1.bf16.msra.mxu1 %v11098_v21  ;;  %11163 = vmatpush1.bf16.msra.mxu0 %v11162_v22  ;;  %v7738_v21 = vld [vmem:[#allocation7 + $0xf50] sm:$0xff]  ;;  %v7580_v22 = vld [vmem:[#allocation7 + $0xd68] sm:$0xff] }
 0xe21   : > { %11101 = vmatprep.subr.bf16.mxu1 %v11100_v26  ;;  %11165 = vmatprep.subr.bf16.mxu0 %v11164_v28  ;;  %v7743_v26 = vld [vmem:[#allocation7 + $0xf78] sm:$0xff]  ;;  %v11118_v28 = vpack.c.bf16 %v7577_v53, %v7575_v40  ;;  %v11182_v31 = vpack.c.bf16 %v7738_v21, %v7736_v19  ;;  %v11120_v37 = vpack.c.bf16 %v7582_v24, %v7580_v22  ;;  %v7757_v53 = vld [vmem:[#allocation7 + $0xfe8] sm:$0xff]  ;;  %v7595_v21 = vld [vmem:[#allocation7 + $0xde0] sm:$0xff] }
 0xe22   : > { %v11184_v38 = vpack.c.bf16 %v7743_v26, %v7741_v25  ;;  %v7598_v40 = vld [vmem:[#allocation7 + $0xdf8] sm:$0xff]  ;;  %v7597_v25 = vld [vmem:[#allocation7 + $0xdf0] sm:$0xff]  ;;  %v7756_v26 = vld [vmem:[#allocation7 + $0xfe0] sm:$0xff] }
 0xe24   : > { %11103 = vmatpush1.bf16.msra.mxu1 %v11102_v44  ;;  %11167 = vmatpush1.bf16.msra.mxu0 %v11166_v45  ;;  %v7742_v44 = vld [vmem:[#allocation7 + $0xf70] sm:$0xff]  ;;  %v7584_v45 = vld [vmem:[#allocation7 + $0xd88] sm:$0xff] }
 0xe25   : > { %11105 = vmatprep.subr.bf16.mxu1 %v11104_v46  ;;  %11169 = vmatprep.subr.bf16.mxu0 %v11168_v32  ;;  %v7747_v46 = vld [vmem:[#allocation7 + $0xf98] sm:$0xff]  ;;  %v11122_v32 = vpack.c.bf16 %v7581_v36, %v7579_v34  ;;  %v11186_v48 = vpack.c.bf16 %v7742_v44, %v7740_v39  ;;  %v11124_v42 = vpack.c.bf16 %v7586_v15, %v7584_v45  ;;  %v7857_v39 = vld [vmem:[#allocation7 + $0x1000] sm:$0xff]  ;;  %v7859_v44 = vld [vmem:[#allocation7 + $0x1010] sm:$0xff] }
 0xe26   : > { %v11188_v54 = vpack.c.bf16 %v7747_v46, %v7745_v29  ;;  %v7860_v34 = vld [vmem:[#allocation7 + $0x1018] sm:$0xff]  ;;  %v11138_v36 = vpack.c.bf16 %v7597_v25, %v7595_v21  ;;  %v7862_v45 = vld [vmem:[#allocation7 + $0x1028] sm:$0xff]  ;;  %v11206_v29 = vpack.c.bf16 %v7859_v44, %v7857_v39 }
 0xe27   : > { %v7864_v15 = vld [vmem:[#allocation7 + $0x1038] sm:$0xff]  ;;  %v7890_v39 = vld [vmem:[#allocation7 + $0x1108] sm:$0xff] }
 0xe28   : > { %11107 = vmatpush1.bf16.msra.mxu1 %v11106_v47  ;;  %11171 = vmatpush1.bf16.msra.mxu0 %v11170_v55  ;;  %v7746_v47 = vld [vmem:[#allocation7 + $0xf90] sm:$0xff]  ;;  %v7588_v55 = vld [vmem:[#allocation7 + $0xda8] sm:$0xff]  ;;  %v11208_v46 = vpack.c.bf16 %v7864_v15, %v7862_v45  ;;  %v7892_v44 = vld [vmem:[#allocation7 + $0x1118] sm:$0xff] }
 0xe29   : > { %11109 = vmatprep.subr.bf16.mxu1 %v11108_v58  ;;  %11173 = vmatprep.subr.bf16.mxu0 %v11172_v16  ;;  %v7751_v58 = vld [vmem:[#allocation7 + $0xfb8] sm:$0xff]  ;;  %v11126_v16 = vpack.c.bf16 %v7585_v51, %v7583_v49  ;;  %v11190_v59 = vpack.c.bf16 %v7746_v47, %v7744_v41  ;;  %v11128_v63 = vpack.c.bf16 %v7590_v56, %v7588_v55  ;;  %v7866_v49 = vld [vmem:[#allocation7 + $0x1048] sm:$0xff]  ;;  %v7865_v41 = vld [vmem:[#allocation7 + $0x1040] sm:$0xff] }
 0xe2a   : > { %v11192_v0 = vpack.c.bf16 %v7751_v58, %v7749_v57  ;;  %v7868_v51 = vld [vmem:[#allocation7 + $0x1058] sm:$0xff]  ;;  %v7867_v47 = vld [vmem:[#allocation7 + $0x1050] sm:$0xff]  ;;  %v7870_v55 = vld [vmem:[#allocation7 + $0x1068] sm:$0xff] }
 0xe2b   : > { %v7872_v56 = vld [vmem:[#allocation7 + $0x1078] sm:$0xff]  ;;  %v11214_v57 = vpack.c.bf16 %v7867_v47, %v7865_v41 }
 0xe2c   : > { %11111 = vmatpush1.bf16.msra.mxu1 %v11110_v2  ;;  %11175 = vmatpush1.bf16.msra.mxu0 %v11174_v3  ;;  %v7750_v2 = vld [vmem:[#allocation7 + $0xfb0] sm:$0xff]  ;;  %v7592_v3 = vld [vmem:[#allocation7 + $0xdc8] sm:$0xff]  ;;  %v11216_v58 = vpack.c.bf16 %v7872_v56, %v7870_v55 }
 0xe2d   : > { %11113 = vmatprep.subr.bf16.mxu1 %v11112_v6  ;;  %11177 = vmatprep.subr.bf16.mxu0 %v11176_v7  ;;  %v7755_v6 = vld [vmem:[#allocation7 + $0xfd8] sm:$0xff]  ;;  %v11130_v7 = vpack.c.bf16 %v7589_v62, %v7587_v60  ;;  %v11194_v8 = vpack.c.bf16 %v7750_v2, %v7748_v33  ;;  %v11132_v17 = vpack.c.bf16 %v7594_v4, %v7592_v3  ;;  %v7874_v60 = vld [vmem:[#allocation7 + $0x1088] sm:$0xff]  ;;  %v7873_v33 = vld [vmem:[#allocation7 + $0x1080] sm:$0xff] }
 0xe2e   : > { %v11196_v11 = vpack.c.bf16 %v7755_v6, %v7753_v5  ;;  %v7876_v62 = vld [vmem:[#allocation7 + $0x1098] sm:$0xff]  ;;  %v7875_v2 = vld [vmem:[#allocation7 + $0x1090] sm:$0xff]  ;;  %v7878_v3 = vld [vmem:[#allocation7 + $0x10a8] sm:$0xff] }
 0xe2f   : > { %v7880_v4 = vld [vmem:[#allocation7 + $0x10b8] sm:$0xff]  ;;  %v11222_v5 = vpack.c.bf16 %v7875_v2, %v7873_v33  ;;  %v7898_v33 = vld [vmem:[#allocation7 + $0x1148] sm:$0xff] }
 0xe30   : > { %11115 = vmatpush1.bf16.msra.mxu1 %v11114_v13  ;;  %11179 = vmatpush1.bf16.msra.mxu0 %v11178_v30  ;;  %v7754_v13 = vld [vmem:[#allocation7 + $0xfd0] sm:$0xff]  ;;  %v7596_v30 = vld [vmem:[#allocation7 + $0xde8] sm:$0xff]  ;;  %v11224_v6 = vpack.c.bf16 %v7880_v4, %v7878_v3  ;;  %v7900_v2 = vld [vmem:[#allocation7 + $0x1158] sm:$0xff] }
 0xe31   : > { %11117 = vmatprep.subr.bf16.mxu1 %v11116_v14  ;;  %11181 = vmatprep.subr.bf16.mxu0 %v11180_v18  ;;  %v7759_v14 = vld [vmem:[#allocation7 + $0xff8] sm:$0xff]  ;;  %v11134_v18 = vpack.c.bf16 %v7593_v10, %v7591_v9  ;;  %v11198_v19 = vpack.c.bf16 %v7754_v13, %v7752_v27  ;;  %v11136_v22 = vpack.c.bf16 %v7598_v40, %v7596_v30  ;;  %v7882_v9 = vld [vmem:[#allocation7 + $0x10c8] sm:$0xff] }
 0xe32   : > { %v11200_v24 = vpack.c.bf16 %v7759_v14, %v7757_v53  ;;  %v7884_v10 = vld [vmem:[#allocation7 + $0x10d8] sm:$0xff]  ;;  %v7881_v53 = vld [vmem:[#allocation7 + $0x10c0] sm:$0xff]  ;;  %v7883_v14 = vld [vmem:[#allocation7 + $0x10d0] sm:$0xff]  ;;  %v11244_v4 = vpack.c.bf16 %v7900_v2, %v7898_v33 }
 0xe33   : > { %v11228_v40 = vpack.c.bf16 %v7884_v10, %v7882_v9 }
 0xe34   : > { %11119 = vmatpush1.bf16.msra.mxu1 %v11118_v28  ;;  %11183 = vmatpush1.bf16.msra.mxu0 %v11182_v31  ;;  %v7758_v28 = vld [vmem:[#allocation7 + $0xff0] sm:$0xff]  ;;  %v7858_v31 = vld [vmem:[#allocation7 + $0x1008] sm:$0xff] }
 0xe35   : > { %11121 = vmatprep.subr.bf16.mxu1 %v11120_v37  ;;  %11185 = vmatprep.subr.bf16.mxu0 %v11184_v38  ;;  %v11202_v37 = vpack.c.bf16 %v7758_v28, %v7756_v26  ;;  %v11204_v38 = vpack.c.bf16 %v7860_v34, %v7858_v31  ;;  %v11230_v28 = vpack.c.bf16 %v7883_v14, %v7881_v53  ;;  %v7905_v53 = vld [vmem:[#allocation7 + $0x1180] sm:$0xff]  ;;  %v7907_v14 = vld [vmem:[#allocation7 + $0x1190] sm:$0xff] }
 0xe38   : > { %11123 = vmatpush1.bf16.msra.mxu1 %v11122_v32  ;;  %11187 = vmatpush1.bf16.msra.mxu0 %v11186_v48  ;;  %v7861_v32 = vld [vmem:[#allocation7 + $0x1020] sm:$0xff]  ;;  %v7863_v48 = vld [vmem:[#allocation7 + $0x1030] sm:$0xff] }
 0xe39   : > { %11125 = vmatprep.subr.bf16.mxu1 %v11124_v42  ;;  %11189 = vmatprep.subr.bf16.mxu0 %v11188_v54  ;;  %v11210_v42 = vpack.c.bf16 %v7863_v48, %v7861_v32  ;;  %v11212_v54 = vpack.c.bf16 %v7868_v51, %v7866_v49  ;;  %v11236_v48 = vpack.c.bf16 %v7892_v44, %v7890_v39  ;;  %v7889_v49 = vld [vmem:[#allocation7 + $0x1100] sm:$0xff]  ;;  %v7891_v51 = vld [vmem:[#allocation7 + $0x1110] sm:$0xff] }
 0xe3c   : > { %11127 = vmatpush1.bf16.msra.mxu1 %v11126_v16  ;;  %11191 = vmatpush1.bf16.msra.mxu0 %v11190_v59  ;;  %v7869_v16 = vld [vmem:[#allocation7 + $0x1060] sm:$0xff]  ;;  %v7871_v59 = vld [vmem:[#allocation7 + $0x1070] sm:$0xff] }
 0xe3d   : > { %11129 = vmatprep.subr.bf16.mxu1 %v11128_v63  ;;  %11193 = vmatprep.subr.bf16.mxu0 %v11192_v0  ;;  %v11218_v63 = vpack.c.bf16 %v7871_v59, %v7869_v16  ;;  %v11220_v0 = vpack.c.bf16 %v7876_v62, %v7874_v60  ;;  %v11238_v16 = vpack.c.bf16 %v7891_v51, %v7889_v49 }
 0xe40   : > { %11131 = vmatpush1.bf16.msra.mxu1 %v11130_v7  ;;  %11195 = vmatpush1.bf16.msra.mxu0 %v11194_v8  ;;  %v7877_v7 = vld [vmem:[#allocation7 + $0x10a0] sm:$0xff]  ;;  %v7879_v8 = vld [vmem:[#allocation7 + $0x10b0] sm:$0xff] }
 0xe41   : > { %11133 = vmatprep.subr.bf16.mxu1 %v11132_v17  ;;  %11197 = vmatprep.subr.bf16.mxu0 %v11196_v11  ;;  %v11226_v30 = vpack.c.bf16 %v7879_v8, %v7877_v7  ;;  %v7902_v7 = vld [vmem:[#allocation7 + $0x1168] sm:$0xff]  ;;  %v7904_v8 = vld [vmem:[#allocation7 + $0x1178] sm:$0xff] }
 0xe42   : > { %v11248_v10 = vpack.c.bf16 %v7904_v8, %v7902_v7 }
 0xe44   : > { %11135 = vmatpush1.bf16.msra.mxu1 %v11134_v18  ;;  %11199 = vmatpush1.bf16.msra.mxu0 %v11198_v19  ;;  %v7888_v18 = vld [vmem:[#allocation7 + $0x10f8] sm:$0xff] }
 0xe45   : > { %11137 = vmatprep.subr.bf16.mxu1 %v11136_v22  ;;  %11201 = vmatprep.subr.bf16.mxu0 %v11200_v24 }
 0xe48   : > { %11139 = vmatpush1.bf16.msra.mxu1 %v11138_v36  ;;  %11203 = vmatpush1.bf16.msra.mxu0 %v11202_v37  ;;  %v7885_v37 = vld [vmem:[#allocation7 + $0x10e0] sm:$0xff] }
 0xe49   : > { %11205 = vmatprep.subr.bf16.mxu1 %v11204_v38  ;;  %v7887_v38 = vld [vmem:[#allocation7 + $0x10f0] sm:$0xff] }
 0xe4a   : > { %v11234_v32 = vpack.c.bf16 %v7887_v38, %v7885_v37  ;;  %v7918_v37 = vld [vmem:[#allocation7 + $0x11e8] sm:$0xff]  ;;  %v7920_v38 = vld [vmem:[#allocation7 + $0x11f8] sm:$0xff] }
 0xe4b   : > { %7664 = vmatmul.mubr.f32.vlgmr.msra.gmra.mrb[144].mxu1 %v12642_v52  ;;  %7825 = vmatmul.mubr.f32.vlgmr.msra.gmra.mrb[110].mxu0 %v12642_v52  ;;  %v11264_v44 = vpack.c.bf16 %v7920_v38, %v7918_v37 }
 0xe4c   : > { %7669 = vmatprep.mubr.f32.mxu1 %v12652_v43  ;;  %7830 = vmatprep.mubr.f32.mxu0 %v12652_v43 }
 0xe4d   : > { %11207 = vmatpush1.bf16.msra.mxu1 %v11206_v29 }
 0xe4e   : > { %11209 = vmatprep.subr.bf16.mxu1 %v11208_v46 }
 0xe4f   : > { %7670 = vmatmul.mubr.f32.gmra.mrb[146].mxu1 %v12650_v35  ;;  %7831 = vmatmul.mubr.f32.gmra.mrb[112].mxu0 %v12650_v35 }
 0xe50   : > { %7675 = vmatprep.mubr.f32.mxu1 %v12660_v23  ;;  %7836 = vmatprep.mubr.f32.mxu0 %v12660_v23 }
 0xe51   : > { %11211 = vmatpush1.bf16.msra.mxu1 %v11210_v42  ;;  %v7894_v42 = vld [vmem:[#allocation7 + $0x1128] sm:$0xff] }
 0xe52   : > { %11213 = vmatprep.subr.bf16.mxu1 %v11212_v54  ;;  %v7896_v54 = vld [vmem:[#allocation7 + $0x1138] sm:$0xff] }
 0xe53   : > { %7676 = vmatmul.mubr.f32.gmra.mrb[148].mxu1 %v12658_v50  ;;  %7837 = vmatmul.mubr.f32.gmra.mrb[114].mxu0 %v12658_v50  ;;  %v11240_v62 = vpack.c.bf16 %v7896_v54, %v7894_v42 }
 0xe54   : > { %7681 = vmatprep.mubr.f32.mxu1 %v12668_v12  ;;  %7842 = vmatprep.mubr.f32.mxu0 %v12668_v12 }
 0xe55   : > { %11215 = vmatpush1.bf16.msra.mxu1 %v11214_v57 }
 0xe56   : > { %11217 = vmatprep.subr.bf16.mxu1 %v11216_v58 }
 0xe57   : > { %7682 = vmatmul.mubr.f32.gmra.mrb[150].mxu1 %v12666_v61  ;;  %7843 = vmatmul.mubr.f32.gmra.mrb[116].mxu0 %v12666_v61 }
 0xe58   : > { %7985 = vmatprep.mubr.f32.mxu1 %v12644_v20  ;;  %v7886_v20 = vld [vmem:[#allocation7 + $0x10e8] sm:$0xff] }
 0xe59   : > { %11219 = vmatpush1.bf16.msra.mxu1 %v11218_v63  ;;  %v11232_v36 = vpack.c.bf16 %v7888_v18, %v7886_v20  ;;  %v7893_v63 = vld [vmem:[#allocation7 + $0x1120] sm:$0xff]  ;;  %v7910_v20 = vld [vmem:[#allocation7 + $0x11a8] sm:$0xff]  ;;  %v7912_v18 = vld [vmem:[#allocation7 + $0x11b8] sm:$0xff] }
 0xe5a   : > { %11221 = vmatprep.subr.bf16.mxu1 %v11220_v0  ;;  %v7895_v0 = vld [vmem:[#allocation7 + $0x1130] sm:$0xff] }
 0xe5b   : > { %v11242_v3 = vpack.c.bf16 %v7895_v0, %v7893_v63 }
 0xe5c   : > { %v6699_v17 = vpop.f32.mrb[120].mxu1  ;;  %v12723_v11 = vpop.f32.mrb[86].mxu0 }
 0xe5d   : > { %11223 = vmatpush1.bf16.msra.mxu1 %v11222_v5  ;;  %v6701_v27 = vpop.f32.mrb[121].mxu1  ;;  %v6862_v13 = vpop.f32.mrb[87].mxu0  ;;  %v7897_v5 = vld [vmem:[#allocation7 + $0x1140] sm:$0xff] }
 0xe5e   : > { %11225 = vmatprep.subr.bf16.mxu1 %v11224_v6  ;;  %v7899_v6 = vld [vmem:[#allocation7 + $0x1150] sm:$0xff] }
 0xe5f   : > { %v11246_v9 = vpack.c.bf16 %v7899_v6, %v7897_v5 }
 0xe60   : > { %v6705_v19 = vpop.f32.mrb[122].mxu1  ;;  %v6866_v21 = vpop.f32.mrb[88].mxu0 }
 0xe61   : > { %11227 = vmatpush1.bf16.msra.mxu1 %v11226_v30  ;;  %v11270_v22 = vpack.c.bf16 %v6705_v19, %v6699_v17  ;;  %v11278_v24 = vpack.c.bf16 %v6866_v21, %v12723_v11  ;;  %v6707_v25 = vpop.f32.mrb[123].mxu1  ;;  %v6868_v26 = vpop.f32.mrb[89].mxu0  ;;  %v7901_v17 = vld [vmem:[#allocation7 + $0x1160] sm:$0xff]  ;;  %v7903_v11 = vld [vmem:[#allocation7 + $0x1170] sm:$0xff]  ;;  %v11254_v19 = vpack.c.bf16 %v7907_v14, %v7905_v53  ;;  %v11256_v21 = vpack.c.bf16 %v7912_v18, %v7910_v20 }
 0xe62   : > { %11229 = vmatprep.subr.bf16.mxu1 %v11228_v40  ;;  %v11268_v31 = vpack.c.bf16 %v6707_v25, %v6701_v27  ;;  %v11276_v34 = vpack.c.bf16 %v6868_v26, %v6862_v13  ;;  %v7906_v27 = vld [vmem:[#allocation7 + $0x1188] sm:$0xff]  ;;  %v7908_v13 = vld [vmem:[#allocation7 + $0x1198] sm:$0xff]  ;;  %v11250_v30 = vpack.c.bf16 %v7903_v11, %v7901_v17 }
 0xe63   : > { %v11252_v40 = vpack.c.bf16 %v7908_v13, %v7906_v27  ;;  %v7914_v25 = vld [vmem:[#allocation7 + $0x11c8] sm:$0xff]  ;;  %v7916_v26 = vld [vmem:[#allocation7 + $0x11d8] sm:$0xff] }
 0xe64   : > { %v6711_v45 = vpop.f32.mrb[124].mxu1  ;;  %v6872_v15 = vpop.f32.mrb[90].mxu0  ;;  %11269 = vmatprep.subr.bf16.mxu0 %v11268_v31  ;;  %v11260_v31 = vpack.c.bf16 %v7916_v26, %v7914_v25 }
 0xe65   : > { %11231 = vmatpush1.bf16.msra.mxu1 %v11230_v28  ;;  %v6713_v29 = vpop.f32.mrb[125].mxu1  ;;  %v6874_v46 = vpop.f32.mrb[91].mxu0  ;;  %11271 = vmatpush1.bf16.msra.mxu0 %v11270_v22  ;;  %v7909_v22 = vld [vmem:[#allocation7 + $0x11a0] sm:$0xff] }
 0xe66   : > { %11233 = vmatprep.subr.bf16.mxu1 %v11232_v36  ;;  %v7915_v36 = vld [vmem:[#allocation7 + $0x11d0] sm:$0xff] }
 0xe68   : > { %v6717_v41 = vpop.f32.mrb[126].mxu1  ;;  %v6878_v47 = vpop.f32.mrb[92].mxu0 }
 0xe69   : > { %11235 = vmatpush1.bf16.msra.mxu1 %v11234_v32  ;;  %v11274_v55 = vpack.c.bf16 %v6717_v41, %v6711_v45  ;;  %v11282_v56 = vpack.c.bf16 %v6878_v47, %v6872_v15  ;;  %v6719_v57 = vpop.f32.mrb[127].mxu1  ;;  %v6880_v58 = vpop.f32.mrb[93].mxu0  ;;  %v7917_v45 = vld [vmem:[#allocation7 + $0x11e0] sm:$0xff]  ;;  %v7919_v15 = vld [vmem:[#allocation7 + $0x11f0] sm:$0xff] }
 0xe6a   : > { %11237 = vmatprep.subr.bf16.mxu1 %v11236_v48  ;;  %v11272_v59 = vpack.c.bf16 %v6719_v57, %v6713_v29  ;;  %v11280_v60 = vpack.c.bf16 %v6880_v58, %v6874_v46  ;;  %v11266_v29 = vpack.c.bf16 %v7919_v15, %v7917_v45 }
 0xe6c   : > { %11273 = vmatprep.subr.bf16.mxu0 %v11272_v59 }
 0xe6d   : > { %11239 = vmatpush1.bf16.msra.mxu1 %v11238_v16  ;;  %11275 = vmatpush1.bf16.msra.mxu0 %v11274_v55 }
 0xe6e   : > { %11241 = vmatprep.subr.bf16.mxu1 %v11240_v62  ;;  %11277 = vmatprep.subr.bf16.mxu0 %v11276_v34  ;;  %v7913_v34 = vld [vmem:[#allocation7 + $0x11c0] sm:$0xff] }
 0xe6f   : > { %v11262_v39 = vpack.c.bf16 %v7915_v36, %v7913_v34 }
 0xe71   : > { %11243 = vmatpush1.bf16.msra.mxu1 %v11242_v3  ;;  %11279 = vmatpush1.bf16.msra.mxu0 %v11278_v24  ;;  %v7911_v24 = vld [vmem:[#allocation7 + $0x11b0] sm:$0xff] }
 0xe72   : > { %11245 = vmatprep.subr.bf16.mxu1 %v11244_v4  ;;  %11281 = vmatprep.subr.bf16.mxu0 %v11280_v60  ;;  %v11258_v28 = vpack.c.bf16 %v7911_v24, %v7909_v22 }
 0xe75   : > { %11247 = vmatpush1.bf16.msra.mxu1 %v11246_v9  ;;  %11283 = vmatpush1.bf16.msra.mxu0 %v11282_v56 }
 0xe76   : > { %11249 = vmatprep.subr.bf16.mxu1 %v11248_v10 }
 0xe79   : > { %11251 = vmatpush1.bf16.msra.mxu1 %v11250_v30  ;;  %v8019_v30 = vld [vmem:[%s12824_s22 + $0x8] sm:$0xff] }
 0xe7a   : > { %11253 = vmatprep.subr.bf16.mxu1 %v11252_v40  ;;  %8166 = vmatprep.mubr.f32.mxu0 %v8019_v30 }
 0xe7d   : > { %11255 = vmatpush1.bf16.msra.mxu1 %v11254_v19 }
 0xe7e   : > { %11257 = vmatprep.subr.bf16.mxu1 %v11256_v21 }
 0xe81   : > { %11259 = vmatpush1.bf16.msra.mxu1 %v11258_v28 }
 0xe82   : > { %11261 = vmatprep.subr.bf16.mxu1 %v11260_v31 }
 0xe85   : > { %11263 = vmatpush1.bf16.msra.mxu1 %v11262_v39 }
 0xe86   : > { %11265 = vmatprep.subr.bf16.mxu1 %v11264_v44 }
 0xe89   : > { %11267 = vmatpush1.bf16.msra.mxu1 %v11266_v29 }
 0xe8c   : > { %7986 = vmatmul.mubr.f32.vlgmr.msra.gmra.mrb[152].mxu1 %v12642_v52 }
 0xe8d   : > { %7991 = vmatprep.mubr.f32.mxu1 %v12652_v43 }
 0xe90   : > { %7992 = vmatmul.mubr.f32.gmra.mrb[154].mxu1 %v12650_v35 }
 0xe91   : > { %7997 = vmatprep.mubr.f32.mxu1 %v12660_v23 }
 0xe94   : > { %7998 = vmatmul.mubr.f32.gmra.mrb[156].mxu1 %v12658_v50 }
 0xe95   : > { %8003 = vmatprep.mubr.f32.mxu1 %v12668_v12 }
 0xe98   : > { %8004 = vmatmul.mubr.f32.gmra.mrb[158].mxu1 %v12666_v61 }
 0xe9c   : > { %v7021_v46 = vpop.f32.mrb[128].mxu1  ;;  %v7182_v32 = vpop.f32.mrb[94].mxu0 }
 0xe9d   : > { %v7023_v48 = vpop.f32.mrb[129].mxu1  ;;  %v7184_v49 = vpop.f32.mrb[95].mxu0 }
 0xea0   : > { %v7027_v51 = vpop.f32.mrb[130].mxu1  ;;  %v7188_v42 = vpop.f32.mrb[96].mxu0 }
 0xea1   : > { %v11286_v54 = vpack.c.bf16 %v7027_v51, %v7021_v46  ;;  %v11294_v52 = vpack.c.bf16 %v7188_v42, %v7182_v32  ;;  %v7029_v41 = vpop.f32.mrb[131].mxu1  ;;  %v7190_v43 = vpop.f32.mrb[97].mxu0 }
 0xea2   : > { %v11284_v47 = vpack.c.bf16 %v7029_v41, %v7023_v48  ;;  %v11292_v35 = vpack.c.bf16 %v7190_v43, %v7184_v49 }
 0xea4   : > { %v7033_v55 = vpop.f32.mrb[132].mxu1  ;;  %v7194_v23 = vpop.f32.mrb[98].mxu0  ;;  %11285 = vmatprep.subr.bf16.mxu0 %v11284_v47  ;;  %v8018_v47 = vld [vmem:[%s12824_s22] sm:$0xff] }
 0xea5   : > { %v7035_v50 = vpop.f32.mrb[133].mxu1  ;;  %v7196_v56 = vpop.f32.mrb[99].mxu0  ;;  %11287 = vmatpush1.bf16.msra.mxu0 %v11286_v54 }
 0xea8   : > { %v7039_v12 = vpop.f32.mrb[134].mxu1  ;;  %v7200_v61 = vpop.f32.mrb[100].mxu0 }
 0xea9   : > { %v11290_v57 = vpack.c.bf16 %v7039_v12, %v7033_v55  ;;  %v11298_v58 = vpack.c.bf16 %v7200_v61, %v7194_v23  ;;  %v7041_v16 = vpop.f32.mrb[135].mxu1  ;;  %v7202_v59 = vpop.f32.mrb[101].mxu0 }
 0xeaa   : > { %v11288_v60 = vpack.c.bf16 %v7041_v16, %v7035_v50  ;;  %v11296_v62 = vpack.c.bf16 %v7202_v59, %v7196_v56 }
 0xeac   : > { %11289 = vmatprep.subr.bf16.mxu0 %v11288_v60 }
 0xead   : > { %11291 = vmatpush1.bf16.msra.mxu0 %v11290_v57 }
 0xeae   : > { %11293 = vmatprep.subr.bf16.mxu0 %v11292_v35 }
 0xeb1   : > { %11295 = vmatpush1.bf16.msra.mxu0 %v11294_v52 }
 0xeb2   : > { %11297 = vmatprep.subr.bf16.mxu0 %v11296_v62  ;;  %v11719_v62 = vmov 1966171168  }
 0xeb5   : > { %11299 = vmatpush1.bf16.msra.mxu0 %v11298_v58 }
 0xedd   : > { %v7343_v63 = vpop.f32.mrb[136].mxu1  ;;  %v7504_v0 = vpop.f32.mrb[102].mxu0 }
 0xede   : > { %v7345_v33 = vpop.f32.mrb[137].mxu1  ;;  %v7506_v2 = vpop.f32.mrb[103].mxu0 }
 0xee1   : > { %v7349_v3 = vpop.f32.mrb[138].mxu1  ;;  %v7510_v4 = vpop.f32.mrb[104].mxu0 }
 0xee2   : > { %v11302_v5 = vpack.c.bf16 %v7349_v3, %v7343_v63  ;;  %v11310_v6 = vpack.c.bf16 %v7510_v4, %v7504_v0  ;;  %v7351_v7 = vpop.f32.mrb[139].mxu1  ;;  %v7512_v8 = vpop.f32.mrb[105].mxu0  ;;  %v8248_v63 = vunpack.c.l.s4 %v11719_v62  ;;  %v8250_v0 = vlaneseq }
 0xee3   : > { %v11300_v9 = vpack.c.bf16 %v7351_v7, %v7345_v33  ;;  %v11308_v10 = vpack.c.bf16 %v7512_v8, %v7506_v2  ;;  %v8097_v3 = vpop.permute.xlu0 %8096 }
 0xee4   : > { %v8249_v33 = vunpack.c.0.s8 %v8248_v63  ;;  %v8251_v2 = vshrl.u32 %v8250_v0, 7  ;;  %vm8264_vm6 = vcmp.lt.s32.totalorder %v8250_v0, 256 }
 0xee5   : > { %v7355_v17 = vpop.f32.mrb[140].mxu1  ;;  %v7516_v11 = vpop.f32.mrb[106].mxu0  ;;  %11301 = vmatprep.subr.bf16.mxu0 %v11300_v9 }
 0xee6   : > { %v7357_v27 = vpop.f32.mrb[141].mxu1  ;;  %v7518_v13 = vpop.f32.mrb[107].mxu0  ;;  %11303 = vmatpush1.bf16.msra.mxu0 %v11302_v5  ;;  %v8252_v8 = vsub.s32 %v8249_v33, %v8251_v2 }
 0xee9   : > { %v7361_v40 = vpop.f32.mrb[142].mxu1  ;;  %v7522_v53 = vpop.f32.mrb[108].mxu0 }
 0xeea   : > { %v11306_v14 = vpack.c.bf16 %v7361_v40, %v7355_v17  ;;  %v11314_v20 = vpack.c.bf16 %v7522_v53, %v7516_v11  ;;  %v7363_v18 = vpop.f32.mrb[143].mxu1  ;;  %v7524_v19 = vpop.f32.mrb[109].mxu0 }
 0xeeb   : > { %v11304_v21 = vpack.c.bf16 %v7363_v18, %v7357_v27  ;;  %v11312_v22 = vpack.c.bf16 %v7524_v19, %v7518_v13 }
 0xeed   : > { %11305 = vmatprep.subr.bf16.mxu0 %v11304_v21 }
 0xeee   : > { %11307 = vmatpush1.bf16.msra.mxu0 %v11306_v14 }
 0xeef   : > { %11309 = vmatprep.subr.bf16.mxu0 %v11308_v10 }
 0xef2   : > { %11311 = vmatpush1.bf16.msra.mxu0 %v11310_v6 }
 0xef3   : > { %11313 = vmatprep.subr.bf16.mxu0 %v11312_v22 }
 0xef6   : > { %11315 = vmatpush1.bf16.msra.mxu0 %v11314_v20 }
 0xf1e   : > { %v7665_v24 = vpop.f32.mrb[144].mxu1  ;;  %v7826_v25 = vpop.f32.mrb[110].mxu0 }
 0xf1f   : > { %v7667_v26 = vpop.f32.mrb[145].mxu1  ;;  %v7828_v28 = vpop.f32.mrb[111].mxu0 }
 0xf22   : > { %v7671_v31 = vpop.f32.mrb[146].mxu1  ;;  %v7832_v34 = vpop.f32.mrb[112].mxu0 }
 0xf23   : > { %v11318_v36 = vpack.c.bf16 %v7671_v31, %v7665_v24  ;;  %v11326_v37 = vpack.c.bf16 %v7832_v34, %v7826_v25  ;;  %v7673_v38 = vpop.f32.mrb[147].mxu1  ;;  %v7834_v39 = vpop.f32.mrb[113].mxu0 }
 0xf24   : > { %v11316_v44 = vpack.c.bf16 %v7673_v38, %v7667_v26  ;;  %v11324_v45 = vpack.c.bf16 %v7834_v39, %v7828_v28 }
 0xf26   : > { %v7677_v15 = vpop.f32.mrb[148].mxu1  ;;  %v7838_v29 = vpop.f32.mrb[114].mxu0  ;;  %11317 = vmatprep.subr.bf16.mxu0 %v11316_v44 }
 0xf27   : > { %v7679_v46 = vpop.f32.mrb[149].mxu1  ;;  %v7840_v32 = vpop.f32.mrb[115].mxu0  ;;  %11319 = vmatpush1.bf16.msra.mxu0 %v11318_v36 }
 0xf2a   : > { %v7683_v48 = vpop.f32.mrb[150].mxu1  ;;  %v7844_v49 = vpop.f32.mrb[116].mxu0 }
 0xf2b   : > { %v11322_v51 = vpack.c.bf16 %v7683_v48, %v7677_v15  ;;  %v11330_v42 = vpack.c.bf16 %v7844_v49, %v7838_v29  ;;  %v7685_v54 = vpop.f32.mrb[151].mxu1  ;;  %v7846_v52 = vpop.f32.mrb[117].mxu0 }
 0xf2c   : > { %v11320_v41 = vpack.c.bf16 %v7685_v54, %v7679_v46  ;;  %v11328_v43 = vpack.c.bf16 %v7846_v52, %v7840_v32 }
 0xf2e   : > { %11321 = vmatprep.subr.bf16.mxu0 %v11320_v41 }
 0xf2f   : > { %11323 = vmatpush1.bf16.msra.mxu0 %v11322_v51 }
 0xf30   : > { %11325 = vmatprep.subr.bf16.mxu0 %v11324_v45 }
 0xf33   : > { %11327 = vmatpush1.bf16.msra.mxu0 %v11326_v37 }
 0xf34   : > { %11329 = vmatprep.subr.bf16.mxu0 %v11328_v43 }
 0xf37   : > { %11331 = vmatpush1.bf16.msra.mxu0 %v11330_v42 }
 0xf3a   : > { %8167 = vmatmul.mubr.f32.vlgmr.msra.gmra.mrb[118].mxu0 %v8018_v47 }
 0xf3b   : > { %8237 = vmatprep.mubr.f32.mxu0 %v11716_v1  ;;  %v8020_v1 = vld [vmem:[%s12824_s22 + $0x10] sm:$0xff] }
 0xf5f   : > { %v7987_v35 = vpop.f32.mrb[152].mxu1 }
 0xf60   : > { %v7989_v55 = vpop.f32.mrb[153].mxu1 }
 0xf63   : > { %v7993_v23 = vpop.f32.mrb[154].mxu1 }
 0xf64   : > { %v11334_v50 = vpack.c.bf16 %v7993_v23, %v7987_v35  ;;  %v7995_v56 = vpop.f32.mrb[155].mxu1 }
 0xf65   : > { %v11332_v12 = vpack.c.bf16 %v7995_v56, %v7989_v55 }
 0xf67   : > { %v7999_v61 = vpop.f32.mrb[156].mxu1  ;;  %11333 = vmatprep.subr.bf16.mxu0 %v11332_v12 }
 0xf68   : > { %v8001_v57 = vpop.f32.mrb[157].mxu1  ;;  %11335 = vmatpush1.bf16.msra.mxu0 %v11334_v50 }
 0xf6b   : > { %v8005_v58 = vpop.f32.mrb[158].mxu1 }
 0xf6c   : > { %v11338_v16 = vpack.c.bf16 %v8005_v58, %v7999_v61  ;;  %v8007_v59 = vpop.f32.mrb[159].mxu1 }
 0xf6d   : > { %v11336_v60 = vpack.c.bf16 %v8007_v59, %v8001_v57 }
 0xf6f   : > { %11337 = vmatprep.subr.bf16.mxu0 %v11336_v60 }
 0xf70   : > { %11339 = vmatpush1.bf16.msra.mxu0 %v11338_v16 }
 0xf73   : > { %8601 = vmatmul.mubr.msk.f32.vlgmr.msra.gmra.mrb[118].mxu0 %vm3604_vm2, %v8020_v1 }
0x1046   : > { %v8239_v4 = vpop.f32.mrb[118].mxu0 }
0x1047   : > { %v11342_v5 = vadd.f32 %v8239_v4, %v8097_v3  ;;  %v8241_v6 = vpop.f32.mrb[119].mxu0 }
0x1048   : > { %v11343_v7 = vadd.f32 %v8241_v6, %v8097_v3 }
0x104a   : > { %v8246_v9 = vcombine.low %v11342_v5, %v11343_v7 }
0x104c   : > { %v8253_v10 = vrot.slane %v8246_v9, %v8252_v8 }
0x104e   : > { %v8260_v17 = vrot.slane %v8253_v10, %v8252_v8 }
0x1050   : > { %8266 = vst.msk [vmem:[%s755_s4] sm:$0x3] %vm8264_vm6, %v8260_v17 }
0x1051 PF: > { %s12826_s21 = sld [smem:[#allocation25_spill]] }
0x1057   : > { %s36_s1 = sadd.s32 1, %s12826_s21  }
0x1058   : > { %p33_p9 = scmp.ge.s32.totalorder %s36_s1, 4  }
0x105a   :  { %35 = sbr.rel (!%p33_p9) target bundleno = 18 (0x12), region = 212 }
0x1061   :  { %8302 = vsyncpa [#allocation8], 1 }
0x1062   :  { %8304 = vsyncpa [#allocation8 + $0x1], 1 }
0x1063   :  { %8305 = vsyncpa [#allocation10], 1 }
0x1064   :  { %8306 = vsyncpa [#allocation13], 1 }
0x1065   :  { %8307 = vsyncpa [#allocation16], 1 }
0x1066   :  { %8308 = vsyncpa [#allocation19], 1 }

</bundles_post_ra>
